<compile_context>
chip_gen: v7x
topology: tpu7x:2x2x1
jax: 0.10.0
libtpu: 0.0.40
codegen_flags: <defaults>
</compile_context>

<pallas_src>
import functools

import jax
import jax.numpy as jnp
from jax.experimental import pallas as pl
from jax.experimental.pallas import tpu as pltpu

LRELU_SLOPE = 0.2
BN_EPS = 1e-5
_VMEM_LIMIT = 64 * 1024 * 1024


def _round_up(x, m):
    return (x + m - 1) // m * m


def _pick_tile_m(m, cap=512):
    for t in (cap, 256, 128, 64, 32, 16, 8):
        if t <= cap and m % t == 0:
            return t
    return m  # m not a multiple of 8: full extent (allowed: block == array dim)


def _compiler_params():
    return pltpu.CompilerParams(
        dimension_semantics=("parallel",),
        vmem_limit_bytes=_VMEM_LIMIT,
    )


# ----------------------------- Pallas kernels ------------------------------


def _matmul_act_kernel(x_ref, w_ref, o_ref, *, act):
    # x_ref: (tm, K) bf16, w_ref: (K, C) bf16 -> f32 accumulator on the MXU.
    y = jnp.dot(x_ref[...], w_ref[...], preferred_element_type=jnp.float32)
    if act == "lrelu":
        y = jnp.where(y >= 0.0, y, LRELU_SLOPE * y)
    elif act == "sigmoid":
        # exp + approximate reciprocal both run on the EUP slot.
        y = pl.reciprocal(1.0 + jnp.exp(-y), approx=True)
        y = jnp.clip(y, 0.0, 1.0)
    o_ref[...] = y.astype(o_ref.dtype)


def _matmul_stats_kernel(x_ref, w_ref, y_ref, stats_ref):
    # Pass 1 of BN layers: conv output tile + per-tile channel sum / sumsq.
    y = jnp.dot(x_ref[...], w_ref[...], preferred_element_type=jnp.float32)
    y_ref[...] = y
    c = y.shape[1]
    s = jnp.sum(y, axis=0, keepdims=True)
    ss = jnp.sum(y * y, axis=0, keepdims=True)
    stats_ref[...] = jnp.concatenate(
        [s, ss, jnp.zeros((6, c), jnp.float32)], axis=0)


def _bn_act_kernel(y_ref, scale_ref, shift_ref, o_ref):
    # Pass 2 of BN layers: y * scale + shift, then LeakyReLU(0.2).
    y = y_ref[...] * scale_ref[...] + shift_ref[...]
    o_ref[...] = jnp.where(y >= 0.0, y, LRELU_SLOPE * y).astype(o_ref.dtype)


# ----------------------------- kernel wrappers ------------------------------


def _matmul_act(x_col, w_mat, *, act, out_dtype):
    m, k = x_col.shape
    c = w_mat.shape[1]
    tm = _pick_tile_m(m)
    kern = functools.partial(_matmul_act_kernel, act=act)
    return pl.pallas_call(
        kern,
        out_shape=jax.ShapeDtypeStruct((m, c), out_dtype),
        grid=(m // tm,),
        in_specs=[pl.BlockSpec((tm, k), lambda i: (i, 0)),
                  pl.BlockSpec((k, c), lambda i: (0, 0))],
        out_specs=pl.BlockSpec((tm, c), lambda i: (i, 0)),
        compiler_params=_compiler_params(),
        cost_estimate=pl.CostEstimate(
            flops=2 * m * k * c,
            transcendentals=m * c if act == "sigmoid" else 0,
            bytes_accessed=(x_col.size * x_col.dtype.itemsize
                            + w_mat.size * w_mat.dtype.itemsize
                            + m * c * jnp.dtype(out_dtype).itemsize)),
    )(x_col, w_mat)


def _matmul_stats(x_col, w_mat):
    m, k = x_col.shape
    c = w_mat.shape[1]
    tm = _pick_tile_m(m)
    n_tiles = m // tm
    y, stats = pl.pallas_call(
        _matmul_stats_kernel,
        out_shape=(jax.ShapeDtypeStruct((m, c), jnp.float32),
                   jax.ShapeDtypeStruct((n_tiles * 8, c), jnp.float32)),
        grid=(n_tiles,),
        in_specs=[pl.BlockSpec((tm, k), lambda i: (i, 0)),
                  pl.BlockSpec((k, c), lambda i: (0, 0))],
        out_specs=(pl.BlockSpec((tm, c), lambda i: (i, 0)),
                   pl.BlockSpec((8, c), lambda i: (i, 0))),
        compiler_params=_compiler_params(),
        cost_estimate=pl.CostEstimate(
            flops=2 * m * k * c,
            transcendentals=0,
            bytes_accessed=(x_col.size * x_col.dtype.itemsize
                            + w_mat.size * w_mat.dtype.itemsize
                            + m * c * 4)),
    )(x_col, w_mat)
    return y, stats, n_tiles


def _bn_act(y, scale, shift, *, out_dtype):
    m, c = y.shape
    tm = _pick_tile_m(m)
    return pl.pallas_call(
        _bn_act_kernel,
        out_shape=jax.ShapeDtypeStruct((m, c), out_dtype),
        grid=(m // tm,),
        in_specs=[pl.BlockSpec((tm, c), lambda i: (i, 0)),
                  pl.BlockSpec((1, c), lambda i: (0, 0)),
                  pl.BlockSpec((1, c), lambda i: (0, 0))],
        out_specs=pl.BlockSpec((tm, c), lambda i: (i, 0)),
        compiler_params=_compiler_params(),
    )(y, scale, shift)


# ------------------------------- layer glue ---------------------------------


def _im2col_nhwc(x, k, stride, pad):
    """NHWC -> (N*Ho*Wo, k*k*C); column order (kh, kw, c).  No transposes."""
    n, h, w, c = x.shape
    if pad:
        x = jnp.pad(x, ((0, 0), (pad, pad), (pad, pad), (0, 0)))
    ho = (h + 2 * pad - k) // stride + 1
    wo = (w + 2 * pad - k) // stride + 1
    cols = []
    for kh in range(k):
        for kw in range(k):
            cols.append(x[:, kh:kh + stride * ho:stride,
                          kw:kw + stride * wo:stride, :])
    col = jnp.concatenate(cols, axis=-1)          # (N, Ho, Wo, k*k*C)
    return col.reshape(n * ho * wo, k * k * c), ho, wo


def _conv_layer(x_nhwc, layer_p, *, stride, pad, use_bn, act,
                out_dtype=jnp.bfloat16):
    w_mat, gamma, beta = layer_p
    n = x_nhwc.shape[0]
    x_col, ho, wo = _im2col_nhwc(x_nhwc, 4, stride, pad)   # bf16 patches
    m = x_col.shape[0]
    c = w_mat.shape[1]
    if not use_bn:
        y = _matmul_act(x_col, w_mat, act=act, out_dtype=out_dtype)
    else:
        y_raw, stats, n_tiles = _matmul_stats(x_col, w_mat)
        parts = stats.reshape(n_tiles, 8, c)
        s = jnp.sum(parts[:, 0, :], axis=0)
        ss = jnp.sum(parts[:, 1, :], axis=0)
        mean = s / m
        var = jnp.maximum(ss / m - mean * mean, 0.0)   # biased batch variance
        inv = jax.lax.rsqrt(var + BN_EPS)
        scale = gamma[0] * inv
        shift = beta[0] - mean * scale
        y = _bn_act(y_raw, scale.reshape(1, c), shift.reshape(1, c),
                    out_dtype=out_dtype)
    return y.reshape(n, ho, wo, c)


# ------------------------------- parameters ---------------------------------


def init_params(key, nc, ndf):
    """PyTorch-layout synthetic weights: Conv2d ~ N(0, 0.02), bias=False;
    BatchNorm2d affine defaults gamma=1, beta=0."""
    chans = [(nc, ndf), (ndf, ndf * 2), (ndf * 2, ndf * 4),
             (ndf * 4, ndf * 8), (ndf * 8, 1)]
    params = []
    for cin, cout in chans:
        key, sub = jax.random.split(key)
        w = 0.02 * jax.random.normal(sub, (cout, cin, 4, 4), jnp.float32)
        params.append((w, jnp.ones((cout,), jnp.float32),
                       jnp.zeros((cout,), jnp.float32)))
    return params


def prepare_params(params, nc):
    """PyTorch (C_out, C_in, 4, 4) weights -> zero-padded bf16 (K, C_out_pad)
    matmul operands with K ordered (kh, kw, c_in).  BN affine params are
    zero-padded so padded channels stay identically zero."""
    c_in_pad = _round_up(nc, 8)      # layer-1 K = 16 * 8 = 128 (lane aligned)
    prepped = []
    for w, gamma, beta in params:
        c_out, c_in, kh, kw = w.shape
        c_out_pad = _round_up(c_out, 128)
        wt = jnp.transpose(w, (2, 3, 1, 0))            # (kh, kw, c_in, c_out)
        wt = jnp.pad(wt, ((0, 0), (0, 0),
                          (0, c_in_pad - c_in), (0, c_out_pad - c_out)))
        w_mat = wt.reshape(kh * kw * c_in_pad, c_out_pad).astype(jnp.bfloat16)
        g = jnp.pad(gamma, (0, c_out_pad - c_out)).reshape(1, c_out_pad)
        b = jnp.pad(beta, (0, c_out_pad - c_out)).reshape(1, c_out_pad)
        prepped.append((w_mat, g, b))
        c_in_pad = c_out_pad
    return prepped


# --------------------------------- forward ----------------------------------


def discriminator_forward(x_nchw, prepped):
    nc_ = x_nchw.shape[1]
    x = jnp.transpose(x_nchw, (0, 2, 3, 1))          # NCHW -> NHWC (input only)
    x = jnp.pad(x, ((0, 0), (0, 0), (0, 0), (0, _round_up(nc_, 8) - nc_)))
    x = x.astype(jnp.bfloat16)
    # Conv(nc->ndf, 4, 2, 1, bias=False) + LeakyReLU(0.2)
    x = _conv_layer(x, prepped[0], stride=2, pad=1, use_bn=False, act="lrelu")
    # 3 x [Conv(4, 2, 1, bias=False) + BatchNorm2d (train-mode batch stats) + LeakyReLU(0.2)]
    for i in (1, 2, 3):
        x = _conv_layer(x, prepped[i], stride=2, pad=1, use_bn=True, act="lrelu")
    # Conv(ndf*8 -> 1, 4, 2, 0, bias=False) + Sigmoid
    y = _conv_layer(x, prepped[4], stride=2, pad=0, use_bn=False,
                    act="sigmoid", out_dtype=jnp.float32)
    # TODO(synk): BatchNorm running_mean/running_var updates (training-time
    # side effect) are not reproduced; they do not affect the forward output.
    # TODO(synk): im2col patches are still materialized in HBM (now
    # transpose-free and bf16); a fully fused in-kernel gather would require
    # stride-2 manual DMA and is left out.
    return jnp.transpose(y[:, :, :, :1], (0, 3, 1, 2))   # back to NCHW (N,1,1,1)


if __name__ == "__main__":
    # The 5 stride-2 4x4 convs require 64x64 spatial input (64->32->16->8->4->1);
    # keep batch and ndf small for the smoke test.
    nc, ndf = 1, 8
    n, h, w = 2, 64, 64

    key = jax.random.PRNGKey(0)
    key, kx = jax.random.split(key)
    x = jax.random.normal(kx, (n, nc, h, w), jnp.float32)
    params = prepare_params(init_params(key, nc, ndf), nc)

    out = jax.jit(discriminator_forward)(x, params)
    out = jax.block_until_ready(out)

    assert out.shape == (n, 1, 1, 1), out.shape
    assert out.dtype == jnp.float32
    assert bool(jnp.all(jnp.isfinite(out)))
    assert bool(jnp.all((out >= 0.0) & (out <= 1.0)))
    print("KERNEL_OK")
</pallas_src>

<mosaic_0001>
module attributes {stable_mosaic.version = 11 : i64} {
  func.func @_matmul_act_kernel(%arg0: i32, %arg1: memref<512x128xbf16, #tpu.memory_space<vmem>>, %arg2: memref<128x128xbf16, #tpu.memory_space<vmem>>, %arg3: memref<512x128xbf16, #tpu.memory_space<vmem>>) attributes {dimension_semantics = [#tpu.dimension_semantics<parallel>], iteration_bounds = array<i64: 4>, scalar_prefetch = 0 : i64, scratch_operands = 0 : i64, tpu.core_type = #tpu.core_type<tc>, window_params = [{transform_indices = @transform_0, window_bounds = array<i64: 512, 128>}, {pipeline_mode = #tpu.pipeline_mode<synchronous>, transform_indices = @transform_1, window_bounds = array<i64: 128, 128>}, {transform_indices = @transform_2, window_bounds = array<i64: 512, 128>}]} {
    %c0 = arith.constant 0 : index
    %c0_0 = arith.constant 0 : index
    %0 = vector.load %arg1[%c0, %c0_0] : memref<512x128xbf16, #tpu.memory_space<vmem>>, vector<512x128xbf16>
    %c0_1 = arith.constant 0 : index
    %c0_2 = arith.constant 0 : index
    %1 = vector.load %arg2[%c0_1, %c0_2] : memref<128x128xbf16, #tpu.memory_space<vmem>>, vector<128x128xbf16>
    %cst = arith.constant dense<0.000000e+00> : vector<512x128xf32>
    %2 = tpu.matmul %0, %1, %cst {dimension_numbers = #tpu.dot_dimension_numbers<[1], [0], [0], [1], [0, 0, 1, 1], [], []>} : vector<512x128xbf16>, vector<128x128xbf16>, vector<512x128xf32> -> vector<512x128xf32>
    %cst_3 = arith.constant 0.000000e+00 : f32
    %3 = vector.broadcast %cst_3 : f32 to vector<512x128xf32>
    %4 = arith.cmpf oge, %2, %3 : vector<512x128xf32>
    %cst_4 = arith.constant 2.000000e-01 : f32
    %5 = vector.broadcast %cst_4 : f32 to vector<512x128xf32>
    %6 = arith.mulf %5, %2 : vector<512x128xf32>
    %7 = arith.select %4, %2, %6 : vector<512x128xi1>, vector<512x128xf32>
    %8 = arith.truncf %7 : vector<512x128xf32> to vector<512x128xbf16>
    %c0_5 = arith.constant 0 : index
    %c0_6 = arith.constant 0 : index
    %9 = vector.load %arg3[%c0_5, %c0_6] : memref<512x128xbf16, #tpu.memory_space<vmem>>, vector<512x128xbf16>
    tpu.vector_store %arg3[%c0_5, %c0_6], %8 {strides = array<i32>} : memref<512x128xbf16, #tpu.memory_space<vmem>>, vector<512x128xbf16>,
    return
  }
  func.func @transform_0(%arg0: i32) -> (i32, i32) {
    %c0_i32 = arith.constant 0 : i32
    %c0_i32_0 = arith.constant 0 : i32
    return %arg0, %c0_i32 : i32, i32
  }
  func.func @transform_1(%arg0: i32) -> (i32, i32) {
    %c0_i32 = arith.constant 0 : i32
    %c0_i32_0 = arith.constant 0 : i32
    %c0_i32_1 = arith.constant 0 : i32
    return %c0_i32, %c0_i32_0 : i32, i32
  }
  func.func @transform_2(%arg0: i32) -> (i32, i32) {
    %c0_i32 = arith.constant 0 : i32
    %c0_i32_0 = arith.constant 0 : i32
    return %arg0, %c0_i32 : i32, i32
  }
}

module attributes {stable_mosaic.version = 11 : i64} {
  func.func @_bn_act_kernel(%arg0: i32, %arg1: memref<512x128xf32, #tpu.memory_space<vmem>>, %arg2: memref<1x128xf32, #tpu.memory_space<vmem>>, %arg3: memref<1x128xf32, #tpu.memory_space<vmem>>, %arg4: memref<512x128xbf16, #tpu.memory_space<vmem>>) attributes {dimension_semantics = [#tpu.dimension_semantics<parallel>], iteration_bounds = array<i64: 1>, scalar_prefetch = 0 : i64, scratch_operands = 0 : i64, tpu.core_type = #tpu.core_type<tc>, window_params = [{transform_indices = @transform_0, window_bounds = array<i64: 512, 128>}, {pipeline_mode = #tpu.pipeline_mode<synchronous>, transform_indices = @transform_1, window_bounds = array<i64: 1, 128>}, {pipeline_mode = #tpu.pipeline_mode<synchronous>, transform_indices = @transform_2, window_bounds = array<i64: 1, 128>}, {transform_indices = @transform_3, window_bounds = array<i64: 512, 128>}]} {
    %c0 = arith.constant 0 : index
    %c0_0 = arith.constant 0 : index
    %0 = vector.load %arg1[%c0, %c0_0] : memref<512x128xf32, #tpu.memory_space<vmem>>, vector<512x128xf32>
    %c0_1 = arith.constant 0 : index
    %c0_2 = arith.constant 0 : index
    %1 = vector.load %arg2[%c0_1, %c0_2] : memref<1x128xf32, #tpu.memory_space<vmem>>, vector<1x128xf32>
    %2 = vector.broadcast %1 : vector<1x128xf32> to vector<512x128xf32>
    %3 = arith.mulf %0, %2 : vector<512x128xf32>
    %c0_3 = arith.constant 0 : index
    %c0_4 = arith.constant 0 : index
    %4 = vector.load %arg3[%c0_3, %c0_4] : memref<1x128xf32, #tpu.memory_space<vmem>>, vector<1x128xf32>
    %5 = vector.broadcast %4 : vector<1x128xf32> to vector<512x128xf32>
    %6 = arith.addf %3, %5 : vector<512x128xf32>
    %cst = arith.constant 0.000000e+00 : f32
    %7 = vector.broadcast %cst : f32 to vector<512x128xf32>
    %8 = arith.cmpf oge, %6, %7 : vector<512x128xf32>
    %cst_5 = arith.constant 2.000000e-01 : f32
    %9 = vector.broadcast %cst_5 : f32 to vector<512x128xf32>
    %10 = arith.mulf %9, %6 : vector<512x128xf32>
    %11 = arith.select %8, %6, %10 : vector<512x128xi1>, vector<512x128xf32>
    %12 = arith.truncf %11 : vector<512x128xf32> to vector<512x128xbf16>
    %c0_6 = arith.constant 0 : index
    %c0_7 = arith.constant 0 : index
    %13 = vector.load %arg4[%c0_6, %c0_7] : memref<512x128xbf16, #tpu.memory_space<vmem>>, vector<512x128xbf16>
    tpu.vector_store %arg4[%c0_6, %c0_7], %12 {strides = array<i32>} : memref<512x128xbf16, #tpu.memory_space<vmem>>, vector<512x128xbf16>,
    return
  }
  func.func @transform_0(%arg0: i32) -> (i32, i32) {
    %c0_i32 = arith.constant 0 : i32
    %c0_i32_0 = arith.constant 0 : i32
    return %arg0, %c0_i32 : i32, i32
  }
  func.func @transform_1(%arg0: i32) -> (i32, i32) {
    %c0_i32 = arith.constant 0 : i32
    %c0_i32_0 = arith.constant 0 : i32
    %c0_i32_1 = arith.constant 0 : i32
    return %c0_i32, %c0_i32_0 : i32, i32
  }
  func.func @transform_2(%arg0: i32) -> (i32, i32) {
    %c0_i32 = arith.constant 0 : i32
    %c0_i32_0 = arith.constant 0 : i32
    %c0_i32_1 = arith.constant 0 : i32
    return %c0_i32, %c0_i32_0 : i32, i32
  }
  func.func @transform_3(%arg0: i32) -> (i32, i32) {
    %c0_i32 = arith.constant 0 : i32
    %c0_i32_0 = arith.constant 0 : i32
    return %arg0, %c0_i32 : i32, i32
  }
}

module attributes {stable_mosaic.version = 11 : i64} {
  func.func @_matmul_stats_kernel(%arg0: i32, %arg1: memref<512x2048xbf16, #tpu.memory_space<vmem>>, %arg2: memref<2048x128xbf16, #tpu.memory_space<vmem>>, %arg3: memref<512x128xf32, #tpu.memory_space<vmem>>, %arg4: memref<8x128xf32, #tpu.memory_space<vmem>>) attributes {dimension_semantics = [#tpu.dimension_semantics<parallel>], iteration_bounds = array<i64: 1>, scalar_prefetch = 0 : i64, scratch_operands = 0 : i64, tpu.core_type = #tpu.core_type<tc>, window_params = [{transform_indices = @transform_0, window_bounds = array<i64: 512, 2048>}, {pipeline_mode = #tpu.pipeline_mode<synchronous>, transform_indices = @transform_1, window_bounds = array<i64: 2048, 128>}, {transform_indices = @transform_2, window_bounds = array<i64: 512, 128>}, {transform_indices = @transform_3, window_bounds = array<i64: 8, 128>}]} {
    %c0 = arith.constant 0 : index
    %c0_0 = arith.constant 0 : index
    %0 = vector.load %arg1[%c0, %c0_0] : memref<512x2048xbf16, #tpu.memory_space<vmem>>, vector<512x2048xbf16>
    %c0_1 = arith.constant 0 : index
    %c0_2 = arith.constant 0 : index
    %1 = vector.load %arg2[%c0_1, %c0_2] : memref<2048x128xbf16, #tpu.memory_space<vmem>>, vector<2048x128xbf16>
    %cst = arith.constant dense<0.000000e+00> : vector<512x128xf32>
    %2 = tpu.matmul %0, %1, %cst {dimension_numbers = #tpu.dot_dimension_numbers<[1], [0], [0], [1], [0, 0, 1, 1], [], []>} : vector<512x2048xbf16>, vector<2048x128xbf16>, vector<512x128xf32> -> vector<512x128xf32>
    %c0_3 = arith.constant 0 : index
    %c0_4 = arith.constant 0 : index
    %3 = vector.load %arg3[%c0_3, %c0_4] : memref<512x128xf32, #tpu.memory_space<vmem>>, vector<512x128xf32>
    tpu.vector_store %arg3[%c0_3, %c0_4], %2 {strides = array<i32>} : memref<512x128xf32, #tpu.memory_space<vmem>>, vector<512x128xf32>,
    %cst_5 = arith.constant dense<0.000000e+00> : vector<128xf32>
    %4 = vector.multi_reduction <add>, %2, %cst_5 [0] : vector<512x128xf32> to vector<128xf32>
    %5 = vector.shape_cast %4 : vector<128xf32> to vector<1x128xf32>
    %6 = arith.mulf %2, %2 : vector<512x128xf32>
    %cst_6 = arith.constant dense<0.000000e+00> : vector<128xf32>
    %7 = vector.multi_reduction <add>, %6, %cst_6 [0] : vector<512x128xf32> to vector<128xf32>
    %8 = vector.shape_cast %7 : vector<128xf32> to vector<1x128xf32>
    %cst_7 = arith.constant 0.000000e+00 : f32
    %9 = vector.broadcast %cst_7 : f32 to vector<6x128xf32>
    %10 = tpu.concatenate %5, %8, %9 in 0 : vector<1x128xf32>, vector<1x128xf32>, vector<6x128xf32> -> vector<8x128xf32>
    %c0_8 = arith.constant 0 : index
    %c0_9 = arith.constant 0 : index
    %11 = vector.load %arg4[%c0_8, %c0_9] : memref<8x128xf32, #tpu.memory_space<vmem>>, vector<8x128xf32>
    tpu.vector_store %arg4[%c0_8, %c0_9], %10 {strides = array<i32>} : memref<8x128xf32, #tpu.memory_space<vmem>>, vector<8x128xf32>,
    return
  }
  func.func @transform_0(%arg0: i32) -> (i32, i32) {
    %c0_i32 = arith.constant 0 : i32
    %c0_i32_0 = arith.constant 0 : i32
    return %arg0, %c0_i32 : i32, i32
  }
  func.func @transform_1(%arg0: i32) -> (i32, i32) {
    %c0_i32 = arith.constant 0 : i32
    %c0_i32_0 = arith.constant 0 : i32
    %c0_i32_1 = arith.constant 0 : i32
    return %c0_i32, %c0_i32_0 : i32, i32
  }
  func.func @transform_2(%arg0: i32) -> (i32, i32) {
    %c0_i32 = arith.constant 0 : i32
    %c0_i32_0 = arith.constant 0 : i32
    return %arg0, %c0_i32 : i32, i32
  }
  func.func @transform_3(%arg0: i32) -> (i32, i32) {
    %c0_i32 = arith.constant 0 : i32
    %c0_i32_0 = arith.constant 0 : i32
    return %arg0, %c0_i32 : i32, i32
  }
}

module attributes {stable_mosaic.version = 11 : i64} {
  func.func @_matmul_stats_kernel(%arg0: i32, %arg1: memref<128x2048xbf16, #tpu.memory_space<vmem>>, %arg2: memref<2048x128xbf16, #tpu.memory_space<vmem>>, %arg3: memref<128x128xf32, #tpu.memory_space<vmem>>, %arg4: memref<8x128xf32, #tpu.memory_space<vmem>>) attributes {dimension_semantics = [#tpu.dimension_semantics<parallel>], iteration_bounds = array<i64: 1>, scalar_prefetch = 0 : i64, scratch_operands = 0 : i64, tpu.core_type = #tpu.core_type<tc>, window_params = [{transform_indices = @transform_0, window_bounds = array<i64: 128, 2048>}, {pipeline_mode = #tpu.pipeline_mode<synchronous>, transform_indices = @transform_1, window_bounds = array<i64: 2048, 128>}, {transform_indices = @transform_2, window_bounds = array<i64: 128, 128>}, {transform_indices = @transform_3, window_bounds = array<i64: 8, 128>}]} {
    %c0 = arith.constant 0 : index
    %c0_0 = arith.constant 0 : index
    %0 = vector.load %arg1[%c0, %c0_0] : memref<128x2048xbf16, #tpu.memory_space<vmem>>, vector<128x2048xbf16>
    %c0_1 = arith.constant 0 : index
    %c0_2 = arith.constant 0 : index
    %1 = vector.load %arg2[%c0_1, %c0_2] : memref<2048x128xbf16, #tpu.memory_space<vmem>>, vector<2048x128xbf16>
    %cst = arith.constant dense<0.000000e+00> : vector<128x128xf32>
    %2 = tpu.matmul %0, %1, %cst {dimension_numbers = #tpu.dot_dimension_numbers<[1], [0], [0], [1], [0, 0, 1, 1], [], []>} : vector<128x2048xbf16>, vector<2048x128xbf16>, vector<128x128xf32> -> vector<128x128xf32>
    %c0_3 = arith.constant 0 : index
    %c0_4 = arith.constant 0 : index
    %3 = vector.load %arg3[%c0_3, %c0_4] : memref<128x128xf32, #tpu.memory_space<vmem>>, vector<128x128xf32>
    tpu.vector_store %arg3[%c0_3, %c0_4], %2 {strides = array<i32>} : memref<128x128xf32, #tpu.memory_space<vmem>>, vector<128x128xf32>,
    %cst_5 = arith.constant dense<0.000000e+00> : vector<128xf32>
    %4 = vector.multi_reduction <add>, %2, %cst_5 [0] : vector<128x128xf32> to vector<128xf32>
    %5 = vector.shape_cast %4 : vector<128xf32> to vector<1x128xf32>
    %6 = arith.mulf %2, %2 : vector<128x128xf32>
    %cst_6 = arith.constant dense<0.000000e+00> : vector<128xf32>
    %7 = vector.multi_reduction <add>, %6, %cst_6 [0] : vector<128x128xf32> to vector<128xf32>
    %8 = vector.shape_cast %7 : vector<128xf32> to vector<1x128xf32>
    %cst_7 = arith.constant 0.000000e+00 : f32
    %9 = vector.broadcast %cst_7 : f32 to vector<6x128xf32>
    %10 = tpu.concatenate %5, %8, %9 in 0 : vector<1x128xf32>, vector<1x128xf32>, vector<6x128xf32> -> vector<8x128xf32>
    %c0_8 = arith.constant 0 : index
    %c0_9 = arith.constant 0 : index
    %11 = vector.load %arg4[%c0_8, %c0_9] : memref<8x128xf32, #tpu.memory_space<vmem>>, vector<8x128xf32>
    tpu.vector_store %arg4[%c0_8, %c0_9], %10 {strides = array<i32>} : memref<8x128xf32, #tpu.memory_space<vmem>>, vector<8x128xf32>,
    return
  }
  func.func @transform_0(%arg0: i32) -> (i32, i32) {
    %c0_i32 = arith.constant 0 : i32
    %c0_i32_0 = arith.constant 0 : i32
    return %arg0, %c0_i32 : i32, i32
  }
  func.func @transform_1(%arg0: i32) -> (i32, i32) {
    %c0_i32 = arith.constant 0 : i32
    %c0_i32_0 = arith.constant 0 : i32
    %c0_i32_1 = arith.constant 0 : i32
    return %c0_i32, %c0_i32_0 : i32, i32
  }
  func.func @transform_2(%arg0: i32) -> (i32, i32) {
    %c0_i32 = arith.constant 0 : i32
    %c0_i32_0 = arith.constant 0 : i32
    return %arg0, %c0_i32 : i32, i32
  }
  func.func @transform_3(%arg0: i32) -> (i32, i32) {
    %c0_i32 = arith.constant 0 : i32
    %c0_i32_0 = arith.constant 0 : i32
    return %arg0, %c0_i32 : i32, i32
  }
}

module attributes {stable_mosaic.version = 11 : i64} {
  func.func @_bn_act_kernel(%arg0: i32, %arg1: memref<128x128xf32, #tpu.memory_space<vmem>>, %arg2: memref<1x128xf32, #tpu.memory_space<vmem>>, %arg3: memref<1x128xf32, #tpu.memory_space<vmem>>, %arg4: memref<128x128xbf16, #tpu.memory_space<vmem>>) attributes {dimension_semantics = [#tpu.dimension_semantics<parallel>], iteration_bounds = array<i64: 1>, scalar_prefetch = 0 : i64, scratch_operands = 0 : i64, tpu.core_type = #tpu.core_type<tc>, window_params = [{transform_indices = @transform_0, window_bounds = array<i64: 128, 128>}, {pipeline_mode = #tpu.pipeline_mode<synchronous>, transform_indices = @transform_1, window_bounds = array<i64: 1, 128>}, {pipeline_mode = #tpu.pipeline_mode<synchronous>, transform_indices = @transform_2, window_bounds = array<i64: 1, 128>}, {transform_indices = @transform_3, window_bounds = array<i64: 128, 128>}]} {
    %c0 = arith.constant 0 : index
    %c0_0 = arith.constant 0 : index
    %0 = vector.load %arg1[%c0, %c0_0] : memref<128x128xf32, #tpu.memory_space<vmem>>, vector<128x128xf32>
    %c0_1 = arith.constant 0 : index
    %c0_2 = arith.constant 0 : index
    %1 = vector.load %arg2[%c0_1, %c0_2] : memref<1x128xf32, #tpu.memory_space<vmem>>, vector<1x128xf32>
    %2 = vector.broadcast %1 : vector<1x128xf32> to vector<128x128xf32>
    %3 = arith.mulf %0, %2 : vector<128x128xf32>
    %c0_3 = arith.constant 0 : index
    %c0_4 = arith.constant 0 : index
    %4 = vector.load %arg3[%c0_3, %c0_4] : memref<1x128xf32, #tpu.memory_space<vmem>>, vector<1x128xf32>
    %5 = vector.broadcast %4 : vector<1x128xf32> to vector<128x128xf32>
    %6 = arith.addf %3, %5 : vector<128x128xf32>
    %cst = arith.constant 0.000000e+00 : f32
    %7 = vector.broadcast %cst : f32 to vector<128x128xf32>
    %8 = arith.cmpf oge, %6, %7 : vector<128x128xf32>
    %cst_5 = arith.constant 2.000000e-01 : f32
    %9 = vector.broadcast %cst_5 : f32 to vector<128x128xf32>
    %10 = arith.mulf %9, %6 : vector<128x128xf32>
    %11 = arith.select %8, %6, %10 : vector<128x128xi1>, vector<128x128xf32>
    %12 = arith.truncf %11 : vector<128x128xf32> to vector<128x128xbf16>
    %c0_6 = arith.constant 0 : index
    %c0_7 = arith.constant 0 : index
    %13 = vector.load %arg4[%c0_6, %c0_7] : memref<128x128xbf16, #tpu.memory_space<vmem>>, vector<128x128xbf16>
    tpu.vector_store %arg4[%c0_6, %c0_7], %12 {strides = array<i32>} : memref<128x128xbf16, #tpu.memory_space<vmem>>, vector<128x128xbf16>,
    return
  }
  func.func @transform_0(%arg0: i32) -> (i32, i32) {
    %c0_i32 = arith.constant 0 : i32
    %c0_i32_0 = arith.constant 0 : i32
    return %arg0, %c0_i32 : i32, i32
  }
  func.func @transform_1(%arg0: i32) -> (i32, i32) {
    %c0_i32 = arith.constant 0 : i32
    %c0_i32_0 = arith.constant 0 : i32
    %c0_i32_1 = arith.constant 0 : i32
    return %c0_i32, %c0_i32_0 : i32, i32
  }
  func.func @transform_2(%arg0: i32) -> (i32, i32) {
    %c0_i32 = arith.constant 0 : i32
    %c0_i32_0 = arith.constant 0 : i32
    %c0_i32_1 = arith.constant 0 : i32
    return %c0_i32, %c0_i32_0 : i32, i32
  }
  func.func @transform_3(%arg0: i32) -> (i32, i32) {
    %c0_i32 = arith.constant 0 : i32
    %c0_i32_0 = arith.constant 0 : i32
    return %arg0, %c0_i32 : i32, i32
  }
}

module attributes {stable_mosaic.version = 11 : i64} {
  func.func @_matmul_stats_kernel(%arg0: i32, %arg1: memref<32x2048xbf16, #tpu.memory_space<vmem>>, %arg2: memref<2048x128xbf16, #tpu.memory_space<vmem>>, %arg3: memref<32x128xf32, #tpu.memory_space<vmem>>, %arg4: memref<8x128xf32, #tpu.memory_space<vmem>>) attributes {dimension_semantics = [#tpu.dimension_semantics<parallel>], iteration_bounds = array<i64: 1>, scalar_prefetch = 0 : i64, scratch_operands = 0 : i64, tpu.core_type = #tpu.core_type<tc>, window_params = [{transform_indices = @transform_0, window_bounds = array<i64: 32, 2048>}, {pipeline_mode = #tpu.pipeline_mode<synchronous>, transform_indices = @transform_1, window_bounds = array<i64: 2048, 128>}, {transform_indices = @transform_2, window_bounds = array<i64: 32, 128>}, {transform_indices = @transform_3, window_bounds = array<i64: 8, 128>}]} {
    %c0 = arith.constant 0 : index
    %c0_0 = arith.constant 0 : index
    %0 = vector.load %arg1[%c0, %c0_0] : memref<32x2048xbf16, #tpu.memory_space<vmem>>, vector<32x2048xbf16>
    %c0_1 = arith.constant 0 : index
    %c0_2 = arith.constant 0 : index
    %1 = vector.load %arg2[%c0_1, %c0_2] : memref<2048x128xbf16, #tpu.memory_space<vmem>>, vector<2048x128xbf16>
    %cst = arith.constant dense<0.000000e+00> : vector<32x128xf32>
    %2 = tpu.matmul %0, %1, %cst {dimension_numbers = #tpu.dot_dimension_numbers<[1], [0], [0], [1], [0, 0, 1, 1], [], []>} : vector<32x2048xbf16>, vector<2048x128xbf16>, vector<32x128xf32> -> vector<32x128xf32>
    %c0_3 = arith.constant 0 : index
    %c0_4 = arith.constant 0 : index
    %3 = vector.load %arg3[%c0_3, %c0_4] : memref<32x128xf32, #tpu.memory_space<vmem>>, vector<32x128xf32>
    tpu.vector_store %arg3[%c0_3, %c0_4], %2 {strides = array<i32>} : memref<32x128xf32, #tpu.memory_space<vmem>>, vector<32x128xf32>,
    %cst_5 = arith.constant dense<0.000000e+00> : vector<128xf32>
    %4 = vector.multi_reduction <add>, %2, %cst_5 [0] : vector<32x128xf32> to vector<128xf32>
    %5 = vector.shape_cast %4 : vector<128xf32> to vector<1x128xf32>
    %6 = arith.mulf %2, %2 : vector<32x128xf32>
    %cst_6 = arith.constant dense<0.000000e+00> : vector<128xf32>
    %7 = vector.multi_reduction <add>, %6, %cst_6 [0] : vector<32x128xf32> to vector<128xf32>
    %8 = vector.shape_cast %7 : vector<128xf32> to vector<1x128xf32>
    %cst_7 = arith.constant 0.000000e+00 : f32
    %9 = vector.broadcast %cst_7 : f32 to vector<6x128xf32>
    %10 = tpu.concatenate %5, %8, %9 in 0 : vector<1x128xf32>, vector<1x128xf32>, vector<6x128xf32> -> vector<8x128xf32>
    %c0_8 = arith.constant 0 : index
    %c0_9 = arith.constant 0 : index
    %11 = vector.load %arg4[%c0_8, %c0_9] : memref<8x128xf32, #tpu.memory_space<vmem>>, vector<8x128xf32>
    tpu.vector_store %arg4[%c0_8, %c0_9], %10 {strides = array<i32>} : memref<8x128xf32, #tpu.memory_space<vmem>>, vector<8x128xf32>,
    return
  }
  func.func @transform_0(%arg0: i32) -> (i32, i32) {
    %c0_i32 = arith.constant 0 : i32
    %c0_i32_0 = arith.constant 0 : i32
    return %arg0, %c0_i32 : i32, i32
  }
  func.func @transform_1(%arg0: i32) -> (i32, i32) {
    %c0_i32 = arith.constant 0 : i32
    %c0_i32_0 = arith.constant 0 : i32
    %c0_i32_1 = arith.constant 0 : i32
    return %c0_i32, %c0_i32_0 : i32, i32
  }
  func.func @transform_2(%arg0: i32) -> (i32, i32) {
    %c0_i32 = arith.constant 0 : i32
    %c0_i32_0 = arith.constant 0 : i32
    return %arg0, %c0_i32 : i32, i32
  }
  func.func @transform_3(%arg0: i32) -> (i32, i32) {
    %c0_i32 = arith.constant 0 : i32
    %c0_i32_0 = arith.constant 0 : i32
    return %arg0, %c0_i32 : i32, i32
  }
}

module attributes {stable_mosaic.version = 11 : i64} {
  func.func @_bn_act_kernel(%arg0: i32, %arg1: memref<32x128xf32, #tpu.memory_space<vmem>>, %arg2: memref<1x128xf32, #tpu.memory_space<vmem>>, %arg3: memref<1x128xf32, #tpu.memory_space<vmem>>, %arg4: memref<32x128xbf16, #tpu.memory_space<vmem>>) attributes {dimension_semantics = [#tpu.dimension_semantics<parallel>], iteration_bounds = array<i64: 1>, scalar_prefetch = 0 : i64, scratch_operands = 0 : i64, tpu.core_type = #tpu.core_type<tc>, window_params = [{transform_indices = @transform_0, window_bounds = array<i64: 32, 128>}, {pipeline_mode = #tpu.pipeline_mode<synchronous>, transform_indices = @transform_1, window_bounds = array<i64: 1, 128>}, {pipeline_mode = #tpu.pipeline_mode<synchronous>, transform_indices = @transform_2, window_bounds = array<i64: 1, 128>}, {transform_indices = @transform_3, window_bounds = array<i64: 32, 128>}]} {
    %c0 = arith.constant 0 : index
    %c0_0 = arith.constant 0 : index
    %0 = vector.load %arg1[%c0, %c0_0] : memref<32x128xf32, #tpu.memory_space<vmem>>, vector<32x128xf32>
    %c0_1 = arith.constant 0 : index
    %c0_2 = arith.constant 0 : index
    %1 = vector.load %arg2[%c0_1, %c0_2] : memref<1x128xf32, #tpu.memory_space<vmem>>, vector<1x128xf32>
    %2 = vector.broadcast %1 : vector<1x128xf32> to vector<32x128xf32>
    %3 = arith.mulf %0, %2 : vector<32x128xf32>
    %c0_3 = arith.constant 0 : index
    %c0_4 = arith.constant 0 : index
    %4 = vector.load %arg3[%c0_3, %c0_4] : memref<1x128xf32, #tpu.memory_space<vmem>>, vector<1x128xf32>
    %5 = vector.broadcast %4 : vector<1x128xf32> to vector<32x128xf32>
    %6 = arith.addf %3, %5 : vector<32x128xf32>
    %cst = arith.constant 0.000000e+00 : f32
    %7 = vector.broadcast %cst : f32 to vector<32x128xf32>
    %8 = arith.cmpf oge, %6, %7 : vector<32x128xf32>
    %cst_5 = arith.constant 2.000000e-01 : f32
    %9 = vector.broadcast %cst_5 : f32 to vector<32x128xf32>
    %10 = arith.mulf %9, %6 : vector<32x128xf32>
    %11 = arith.select %8, %6, %10 : vector<32x128xi1>, vector<32x128xf32>
    %12 = arith.truncf %11 : vector<32x128xf32> to vector<32x128xbf16>
    %c0_6 = arith.constant 0 : index
    %c0_7 = arith.constant 0 : index
    %13 = vector.load %arg4[%c0_6, %c0_7] : memref<32x128xbf16, #tpu.memory_space<vmem>>, vector<32x128xbf16>
    tpu.vector_store %arg4[%c0_6, %c0_7], %12 {strides = array<i32>} : memref<32x128xbf16, #tpu.memory_space<vmem>>, vector<32x128xbf16>,
    return
  }
  func.func @transform_0(%arg0: i32) -> (i32, i32) {
    %c0_i32 = arith.constant 0 : i32
    %c0_i32_0 = arith.constant 0 : i32
    return %arg0, %c0_i32 : i32, i32
  }
  func.func @transform_1(%arg0: i32) -> (i32, i32) {
    %c0_i32 = arith.constant 0 : i32
    %c0_i32_0 = arith.constant 0 : i32
    %c0_i32_1 = arith.constant 0 : i32
    return %c0_i32, %c0_i32_0 : i32, i32
  }
  func.func @transform_2(%arg0: i32) -> (i32, i32) {
    %c0_i32 = arith.constant 0 : i32
    %c0_i32_0 = arith.constant 0 : i32
    %c0_i32_1 = arith.constant 0 : i32
    return %c0_i32, %c0_i32_0 : i32, i32
  }
  func.func @transform_3(%arg0: i32) -> (i32, i32) {
    %c0_i32 = arith.constant 0 : i32
    %c0_i32_0 = arith.constant 0 : i32
    return %arg0, %c0_i32 : i32, i32
  }
}

module attributes {stable_mosaic.version = 11 : i64} {
  func.func @_matmul_act_kernel(%arg0: i32, %arg1: memref<2x2048xbf16, #tpu.memory_space<vmem>>, %arg2: memref<2048x128xbf16, #tpu.memory_space<vmem>>, %arg3: memref<2x128xf32, #tpu.memory_space<vmem>>) attributes {dimension_semantics = [#tpu.dimension_semantics<parallel>], iteration_bounds = array<i64: 1>, scalar_prefetch = 0 : i64, scratch_operands = 0 : i64, tpu.core_type = #tpu.core_type<tc>, window_params = [{transform_indices = @transform_0, window_bounds = array<i64: 2, 2048>}, {pipeline_mode = #tpu.pipeline_mode<synchronous>, transform_indices = @transform_1, window_bounds = array<i64: 2048, 128>}, {transform_indices = @transform_2, window_bounds = array<i64: 2, 128>}]} {
    %c0 = arith.constant 0 : index
    %c0_0 = arith.constant 0 : index
    %0 = vector.load %arg1[%c0, %c0_0] : memref<2x2048xbf16, #tpu.memory_space<vmem>>, vector<2x2048xbf16>
    %c0_1 = arith.constant 0 : index
    %c0_2 = arith.constant 0 : index
    %1 = vector.load %arg2[%c0_1, %c0_2] : memref<2048x128xbf16, #tpu.memory_space<vmem>>, vector<2048x128xbf16>
    %cst = arith.constant dense<0.000000e+00> : vector<2x128xf32>
    %2 = tpu.matmul %0, %1, %cst {dimension_numbers = #tpu.dot_dimension_numbers<[1], [0], [0], [1], [0, 0, 1, 1], [], []>} : vector<2x2048xbf16>, vector<2048x128xbf16>, vector<2x128xf32> -> vector<2x128xf32>
    %cst_3 = arith.constant 0.000000e+00 : f32
    %3 = vector.broadcast %cst_3 : f32 to vector<2x128xf32>
    %4 = arith.subf %3, %2 : vector<2x128xf32>
    %5 = math.exp %4 : vector<2x128xf32>
    %cst_4 = arith.constant 1.000000e+00 : f32
    %6 = vector.broadcast %cst_4 : f32 to vector<2x128xf32>
    %7 = arith.addf %6, %5 : vector<2x128xf32>
    %8 = tpu.reciprocal %7 {approx = true} : vector<2x128xf32> -> vector<2x128xf32>
    %cst_5 = arith.constant 0.000000e+00 : f32
    %cst_6 = arith.constant 1.000000e+00 : f32
    %9 = vector.broadcast %cst_5 : f32 to vector<2x128xf32>
    %10 = arith.maximumf %9, %8 : vector<2x128xf32>
    %11 = vector.broadcast %cst_6 : f32 to vector<2x128xf32>
    %12 = arith.minimumf %11, %10 : vector<2x128xf32>
    %c0_7 = arith.constant 0 : index
    %c0_8 = arith.constant 0 : index
    %13 = vector.load %arg3[%c0_7, %c0_8] : memref<2x128xf32, #tpu.memory_space<vmem>>, vector<2x128xf32>
    tpu.vector_store %arg3[%c0_7, %c0_8], %12 {strides = array<i32>} : memref<2x128xf32, #tpu.memory_space<vmem>>, vector<2x128xf32>,
    return
  }
  func.func @transform_0(%arg0: i32) -> (i32, i32) {
    %c0_i32 = arith.constant 0 : i32
    %c0_i32_0 = arith.constant 0 : i32
    return %arg0, %c0_i32 : i32, i32
  }
  func.func @transform_1(%arg0: i32) -> (i32, i32) {
    %c0_i32 = arith.constant 0 : i32
    %c0_i32_0 = arith.constant 0 : i32
    %c0_i32_1 = arith.constant 0 : i32
    return %c0_i32, %c0_i32_0 : i32, i32
  }
  func.func @transform_2(%arg0: i32) -> (i32, i32) {
    %c0_i32 = arith.constant 0 : i32
    %c0_i32_0 = arith.constant 0 : i32
    return %arg0, %c0_i32 : i32, i32
  }
}

</mosaic_0001>

<bundles_post_ra>
// kernel: discriminator_forward.8
= control target key start
LH: loop header
LB: loop body
LE: loop exit
PB: predicated region body
PF: predicated region fallthrough
CT: control target
= control target key end

     0   :  { %7 = vsyncpa [#allocation3], 0  ;;  %s2444_s0 = inlined_call_operand.hbm [shape: bf16[2048,128], index: 0, kind: input, shape index: {}]   ;;  %s2445_s1 = inlined_call_operand.hbm [shape: bf16[128,128], index: 1, kind: input, shape index: {}]   ;;  %s2446_s2 = inlined_call_operand.hbm [shape: bf16[2048,128], index: 2, kind: output, shape index: {}]  }
   0x1   :  { %9 = vsyncpa [#allocation3 + $0x1], 0 }
   0x2   :  { %10 = vsyncpa [#allocation6], 0 }
   0x3   :  { %11 = vsyncpa [#allocation4], 0 }
   0x4   :  { %13 = vsyncpa [#allocation4 + $0x1], 0  ;;  %s2164_s9 = smov 0   ;;  %s2166_s10 = smov 0  }
   0x5   :  { %s2168_s11 = smov 0   ;;  %s2170_s12 = smov 0  }
   0x6 LB: > { %s2185_s13 = sadd.s32 4294967295, %s2140_s12   ;;  %s1398_s14 = sadd.s32 4294967294, %s2140_s12   ;;  %s2140_s12 = sphi %s2170_s12, %s2465_s12   ;;  %s2136_s11 = sphi %s2168_s11, %s2464_s11   ;;  %s2132_s10 = sphi %s2166_s10, %s2463_s10   ;;  %s2128_s9 = sphi %s2164_s9, %s2462_s9  }
   0x7   : > { %p39_p0 = scmp.ne.s32.totalorder %s2132_s10, %s2128_s9  ;;  %p2447_p1 = scmp.eq.s32.totalorder %s2185_s13, 0 }
   0x8   : > { %p90_p3 = scmp.eq.s32.totalorder %s1398_s14, 3  ;;  %p1399_p5 = scmp.ge.s32.totalorder %s2140_s12, 1 }
   0x9   : > { %p2194_p4 = por %p2447_p1, %p39_p0  ;;  %p97_p7 = scmp.lt.s32.totalorder %s2140_s12, 5 }
   0xa   : > { %p2199_p6 = por %p90_p3, %p39_p0  ;;  %s2142_s18 = smov [#allocation5]  }
   0xb   : > { %s2450_s15 = scalar_select %p2194_p4, 1, 0 }
   0xc   : > { %s2451_s16 = scalar_select %p2199_p6, 1, 0 }
   0xd   : > { %p2204_p8 = pnand %p1399_p5, %p97_p7  ;;  %s109_s19 = sshll.u32 %s2142_s18, 4  ;;  %s110_s19 = int_to_ptr.vmem [resolvable:$true] %s109_s19 }
   0xe   : > { %s2217_s21 = sadd.s32 1, %s2140_s12   ;;  %s26_s22 = sadd.s32 1, %s2136_s11 }
   0xf   : > { %s2452_s17 = scalar_select %p2204_p8, 1, 0 }
  0x10   : > { %p1919_p9 = pneg %p2204_p8  ;;  %s23_s23 = ssub.s32 %s2140_s12, %s2217_s21 }
  0x11   : > { %s2012_s26 = scalar_lea.hbm %s2445_s1, 1024 }
  0x12   : > { %p2212_p10 = pnand %p1919_p9, %p2447_p1  ;;  %p2013_p11 = scmp.ne.s32.totalorder %s2445_s1, %s2012_s26 }
  0x13   : > { %p2019_p3 = scmp.lt.u32.totalorder %s2012_s26, %s2445_s1 }
  0x14   : > { %p2014_p12 = pneg %p2212_p10 }
  0x16   : > { %p2015_p13 = pnand %p2014_p12, %p2013_p11 }
  0x18   : > { %p2016_p0 = pneg %p2015_p13 }
  0x1a   : > { %p2021_p5 = pnand %p2019_p3, %p2016_p0 }
  0x1c   : > { %2024 = shalt.err (!%p2021_p5)
}
  0x1d   : > { %s2025_s3 = scalar_lea.vmem %s110_s19, 1024  ;;  %p2033_p2 = scmp.lt.s32.totalorder %s110_s19, %s110_s19 }
  0x1e   : > { %p2026_p7 = scmp.ne.s32.totalorder %s110_s19, %s2025_s3  ;;  %p2034_p6 = scmp.lt.s32.totalorder %s2025_s3, %s2025_s3 }
  0x20   : > { %p2028_p9 = pnand %p2026_p7, %p2014_p12  ;;  %p2035_p4 = por %p2034_p6, %p2033_p2 }
  0x22   : > { %p2029_p1 = pneg %p2028_p9 }
  0x24   : > { %p2036_p8 = pnand %p2035_p4, %p2029_p1 }
  0x26   : > { %2039 = shalt.err (!%p2036_p8)
}
  0x27   : > { %s2143_s4 = smov 64   ;;  %s2144_s5 = smov 4  }
  0x28   : > { %1922 = dma.hbm_to_vmem [thread:$0]  (!%p2212_p10), %s2445_s1, 1024, %s110_s19, [#allocation6], %s2143_s4, %s2143_s4, %s2144_s5  }
  0x29   : > { %p24_p1 = scmp.eq.s32.totalorder %s23_s23, 0  ;;  %p33_p2 = scmp.ne.s32.totalorder %s2136_s11, %s2132_s10 }
  0x2a   : > { %p34_p4 = scmp.eq.s32.totalorder %s2140_s12, 0  ;;  %p1932_p6 = scmp.lt.s32.totalorder %s2140_s12, 4 }
  0x2b   : > { %s2246_s8 = scalar_select %p24_p1, %s2136_s11, %s26_s22  }
  0x2c   : > { %p35_p8 = por %p34_p4, %p33_p2  ;;  %p2454_p11 = scmp.eq.s32.totalorder %s2185_s13, 3 }
  0x2d   : > { %s123_s18 = sand.u32 1, %s2136_s11   ;;  %s1518_s20 = sshll.u32 %s2140_s12, 12 }
  0x2e   : > { %p2250_p12 = por %p2454_p11, %p33_p2  ;;  %s1402_s24 = sshll.u32 %s123_s18, 8 }
  0x2f   : > { %s2259_s27 = scalar_lea.hbm %s2444_s0, %s1518_s20  ;;  %s127_s19 = scalar_lea.vmem [#allocation2], %s1402_s24 }
  0x30   : > { %s134_s22 = sshll.u32 %s127_s19, 4  ;;  %p2261_p10 = pnand %p1932_p6, %p35_p8  ;;  %s2265_s22 = int_to_ptr.vmem [resolvable:$true] %s134_s22 }
  0x31   : > { %s2267_s28 = scalar_lea.sflag [#allocation3], %s123_s18  ;;  %s2040_s29 = scalar_lea.hbm %s2259_s27, 4096 }
  0x32   : > { %p2041_p13 = scmp.ne.s32.totalorder %s2259_s27, %s2040_s29  ;;  %p2042_p0 = pneg %p2261_p10 }
  0x33   : > { %s2045_s6 = scalar_lea.hbm %s2444_s0, 16384  ;;  %p2046_p7 = scmp.lt.u32.totalorder %s2259_s27, %s2444_s0 }
  0x34   : > { %p2043_p3 = pnand %p2042_p0, %p2041_p13  ;;  %p2047_p9 = scmp.lt.u32.totalorder %s2045_s6, %s2040_s29 }
  0x35   : > { %p2049_p2 = scmp.lt.u32.totalorder %s2040_s29, %s2259_s27 }
  0x36   : > { %p2044_p5 = pneg %p2043_p3  ;;  %p2048_p1 = por %p2047_p9, %p2046_p7 }
  0x38   : > { %p2050_p4 = por %p2049_p2, %p2048_p1 }
  0x3a   : > { %p2051_p6 = pnand %p2050_p4, %p2044_p5 }
  0x3c   : > { %2054 = shalt.err (!%p2051_p6)
}
  0x3d   : > { %s2055_s18 = scalar_lea.vmem %s2265_s22, 4096  ;;  %s2145_s24 = smov [#allocation2]  }
  0x3e   : > { %p2056_p8 = scmp.ne.s32.totalorder %s2265_s22, %s2055_s18  ;;  %s2060_s25 = sshll.u32 %s2145_s24, 4  ;;  %s2061_s25 = int_to_ptr.vmem [resolvable:$false] %s2060_s25 }
  0x3f   : > { %s2062_s26 = scalar_lea.vmem %s2061_s25, 8192  ;;  %p2063_p3 = scmp.lt.s32.totalorder %s2265_s22, %s2061_s25 }
  0x40   : > { %p2058_p11 = pnand %p2056_p8, %p2042_p0  ;;  %p2064_p7 = scmp.lt.s32.totalorder %s2062_s26, %s2055_s18 }
  0x42   : > { %p2059_p13 = pneg %p2058_p11  ;;  %p2065_p9 = por %p2064_p7, %p2063_p3 }
  0x44   : > { %p2066_p1 = pnand %p2065_p9, %p2059_p13 }
  0x46   : > { %2069 = shalt.err (!%p2066_p1)
}
  0x47   : > { %1926 = dma.hbm_to_vmem [thread:$0]  (!%p2261_p10), %s2259_s27, 4096, %s2265_s22, %s2267_s28, %s2143_s4, %s2143_s4, %s2144_s5  }
  0x48   : > { %p2457_p0 = scmp.ne.s32.totalorder %s2452_s17, 0 }
  0x49   : > { %s2301_s19 = sand.u32 (!%p2457_p0), 1, %s2132_s10   ;;  %p2458_p5 = scmp.ne.s32.totalorder (!%p2457_p0), %s2450_s15, 0 }
  0x4a   : > { %146 = sbr.rel (%p2457_p0) target bundleno = 411 (0x19b), region = 28  ;;  %s1406_s29 = sshll.u32 (!%p2457_p0), %s2301_s19, 8 }
  0x4b   : > { %s149_s30 = scalar_lea.sflag (!%p2457_p0), [#allocation3], %s2301_s19  ;;  %s2307_s23 = scalar_lea.vmem (!%p2457_p0), [#allocation2], %s1406_s29 }
  0x51   : > { %2115 = dma.done.wait (%p2458_p5), %s149_s30, 4096  }
  0x52   : > { %2117 = vsyncadd (%p2458_p5), %s149_s30, 4294963200  ;;  %p2459_p10 = scmp.eq.s32.totalorder %s2185_s13, 0 }
  0x54   : > { %2119 = dma.done.wait (%p2459_p10), [#allocation6], 1024   ;;  %p2460_p2 = pmov %p2459_p10 }
  0x55   : > { %v1972_v0 = vld [vmem:[#allocation5] sm:$0xff]   ;;  %v1973_v1 = vld [vmem:[#allocation5 + $0x8] sm:$0xff]   ;;  %v1974_v2 = vld [vmem:[#allocation5 + $0x10] sm:$0xff]   ;;  %s2351_s15 = scalar_lea.vmem [#allocation7], %s1406_s29  ;;  %s1583_s17 = sshll.u32 %s2185_s13, 12 }
  0x56   : > { %2121 = vsyncadd (%p2460_p2), [#allocation6], 4294966272  ;;  %1815 = vmatprep.subr.bf16.mxu0 %v1972_v0  ;;  %1895 = vmatprep.subr.bf16.mxu1 %v1972_v0  ;;  %v1975_v3 = vld [vmem:[#allocation5 + $0x18] sm:$0xff]   ;;  %v1980_v4 = vld [vmem:[%s2307_s23] sm:$0xff]   ;;  %s1315_s4 = sshll.u32 %s2351_s15, 4  ;;  %s2395_s22 = scalar_lea.hbm %s2446_s2, %s1583_s17  ;;  %s2397_s4 = int_to_ptr.vmem [resolvable:$true] %s1315_s4 }
  0x57   : > { %1816 = vmatpush3.bf16.msra.mxu0 %v1972_v0  ;;  %1903 = vmatpush3.bf16.msra.mxu1 %v1972_v0  ;;  %v1981_v5 = vld [vmem:[%s2307_s23 + $0x80] sm:$0xff]   ;;  %v1977_v7 = vld [vmem:[#allocation5 + $0x28] sm:$0xff]   ;;  %v1978_v8 = vld [vmem:[#allocation5 + $0x30] sm:$0xff]   ;;  %s1302_s28 = scalar_lea.sflag [#allocation4], %s2301_s19  ;;  %s2070_s3 = scalar_lea.vmem %s2397_s4, 4096 }
  0x58   : > { %1817 = vmatprep.subr.bf16.mxu0 %v1973_v1  ;;  %1896 = vmatprep.subr.bf16.mxu1 %v1973_v1  ;;  %v1976_v6 = vld [vmem:[#allocation5 + $0x20] sm:$0xff]   ;;  %v1979_v9 = vld [vmem:[#allocation5 + $0x38] sm:$0xff]   ;;  %v1982_v10 = vld [vmem:[%s2307_s23 + $0x8] sm:$0xff]   ;;  %p2071_p4 = scmp.ne.s32.totalorder %s2397_s4, %s2070_s3  ;;  %s2146_s13 = smov [#allocation7]  }
  0x59   : > { %1831 = vmatprep.mubr.bf16.mxu0 %v1980_v4  ;;  %1863 = vmatprep.mubr.bf16.mxu1 %v1981_v5  ;;  %v1983_v11 = vld [vmem:[%s2307_s23 + $0x88] sm:$0xff]   ;;  %v1984_v12 = vld [vmem:[%s2307_s23 + $0x10] sm:$0xff]   ;;  %v1986_v14 = vld [vmem:[%s2307_s23 + $0x18] sm:$0xff]   ;;  %s2074_s6 = sshll.u32 %s2146_s13, 4  ;;  %s2075_s6 = int_to_ptr.vmem [resolvable:$false] %s2074_s6 }
  0x5a   : > { %v1985_v13 = vld [vmem:[%s2307_s23 + $0x90] sm:$0xff]   ;;  %v1987_v15 = vld [vmem:[%s2307_s23 + $0x98] sm:$0xff]   ;;  %v1988_v16 = vld [vmem:[%s2307_s23 + $0x20] sm:$0xff]   ;;  %p2072_p6 = pnand %p2071_p4, %p2250_p12  ;;  %s2076_s7 = scalar_lea.vmem %s2075_s6, 8192 }
  0x5b   : > { %1818 = vmatpush3.bf16.msra.mxu0 %v1973_v1  ;;  %1904 = vmatpush3.bf16.msra.mxu1 %v1973_v1  ;;  %v1989_v17 = vld [vmem:[%s2307_s23 + $0xa0] sm:$0xff]   ;;  %v1990_v18 = vld [vmem:[%s2307_s23 + $0x28] sm:$0xff]   ;;  %v1992_v20 = vld [vmem:[%s2307_s23 + $0x30] sm:$0xff]   ;;  %p2077_p11 = scmp.lt.s32.totalorder %s2397_s4, %s2075_s6  ;;  %p2078_p13 = scmp.lt.s32.totalorder %s2076_s7, %s2070_s3 }
  0x5c   : > { %1819 = vmatprep.subr.bf16.mxu0 %v1974_v2  ;;  %1897 = vmatprep.subr.bf16.mxu1 %v1974_v2  ;;  %v1991_v19 = vld [vmem:[%s2307_s23 + $0xa8] sm:$0xff]   ;;  %v1993_v21 = vld [vmem:[%s2307_s23 + $0xb0] sm:$0xff]   ;;  %v1994_v22 = vld [vmem:[%s2307_s23 + $0x38] sm:$0xff]   ;;  %p2073_p8 = pneg %p2072_p6 }
  0x5d   : > { %v1995_v23 = vld [vmem:[%s2307_s23 + $0xb8] sm:$0xff]   ;;  %v1996_v24 = vld [vmem:[%s2307_s23 + $0x40] sm:$0xff]   ;;  %v1998_v26 = vld [vmem:[%s2307_s23 + $0x48] sm:$0xff]   ;;  %p2079_p3 = por %p2078_p13, %p2077_p11 }
  0x5e   : > { %v1997_v25 = vld [vmem:[%s2307_s23 + $0xc0] sm:$0xff]   ;;  %v1999_v27 = vld [vmem:[%s2307_s23 + $0xc8] sm:$0xff]   ;;  %v2000_v28 = vld [vmem:[%s2307_s23 + $0x50] sm:$0xff]  }
  0x5f   : > { %1820 = vmatpush3.bf16.msra.mxu0 %v1974_v2  ;;  %1905 = vmatpush3.bf16.msra.mxu1 %v1974_v2  ;;  %v2001_v29 = vld [vmem:[%s2307_s23 + $0xd0] sm:$0xff]   ;;  %v2002_v30 = vld [vmem:[%s2307_s23 + $0x58] sm:$0xff]   ;;  %v2004_v32 = vld [vmem:[%s2307_s23 + $0x60] sm:$0xff]   ;;  %p2080_p7 = pnand %p2079_p3, %p2073_p8 }
  0x60   : > { %1821 = vmatprep.subr.bf16.mxu0 %v1975_v3  ;;  %1898 = vmatprep.subr.bf16.mxu1 %v1975_v3  ;;  %v2003_v31 = vld [vmem:[%s2307_s23 + $0xd8] sm:$0xff]   ;;  %v2005_v33 = vld [vmem:[%s2307_s23 + $0xe0] sm:$0xff]   ;;  %v2006_v34 = vld [vmem:[%s2307_s23 + $0x68] sm:$0xff]  }
  0x61   : > { %v2007_v35 = vld [vmem:[%s2307_s23 + $0xe8] sm:$0xff]   ;;  %v2008_v36 = vld [vmem:[%s2307_s23 + $0x70] sm:$0xff]   ;;  %v2010_v38 = vld [vmem:[%s2307_s23 + $0x78] sm:$0xff]  }
  0x62   : > { %v2009_v37 = vld [vmem:[%s2307_s23 + $0xf0] sm:$0xff]   ;;  %v2011_v39 = vld [vmem:[%s2307_s23 + $0xf8] sm:$0xff]  }
  0x63   : > { %1822 = vmatpush3.bf16.msra.mxu0 %v1975_v3  ;;  %1906 = vmatpush3.bf16.msra.mxu1 %v1975_v3 }
  0x64   : > { %1823 = vmatprep.subr.bf16.mxu0 %v1976_v6  ;;  %1899 = vmatprep.subr.bf16.mxu1 %v1976_v6 }
  0x67   : > { %1824 = vmatpush3.bf16.msra.mxu0 %v1976_v6  ;;  %1907 = vmatpush3.bf16.msra.mxu1 %v1976_v6 }
  0x68   : > { %1825 = vmatprep.subr.bf16.mxu0 %v1977_v7  ;;  %1900 = vmatprep.subr.bf16.mxu1 %v1977_v7 }
  0x6b   : > { %1826 = vmatpush3.bf16.msra.mxu0 %v1977_v7  ;;  %1908 = vmatpush3.bf16.msra.mxu1 %v1977_v7 }
  0x6c   : > { %1827 = vmatprep.subr.bf16.mxu0 %v1978_v8  ;;  %1901 = vmatprep.subr.bf16.mxu1 %v1978_v8 }
  0x6f   : > { %1828 = vmatpush3.bf16.msra.mxu0 %v1978_v8  ;;  %1909 = vmatpush3.bf16.msra.mxu1 %v1978_v8 }
  0x70   : > { %1829 = vmatprep.subr.bf16.mxu0 %v1979_v9  ;;  %1902 = vmatprep.subr.bf16.mxu1 %v1979_v9 }
  0x73   : > { %1830 = vmatpush3.bf16.msra.mxu0 %v1979_v9  ;;  %1910 = vmatpush3.bf16.msra.mxu1 %v1979_v9 }
  0x76   : > { %1832 = vmatmul.mubr.bf16.vlgmr.msra.gmra.mrb[0].mxu0 %v1982_v10  ;;  %1864 = vmatmul.mubr.bf16.vlgmr.msra.gmra.mrb[0].mxu1 %v1983_v11 }
  0x77   : > { %1835 = vmatprep.mubr.bf16.mxu0 %v1984_v12  ;;  %1867 = vmatprep.mubr.bf16.mxu1 %v1985_v13 }
  0x7e   : > { %1836 = vmatmul.mubr.bf16.gmra.mrb[4].mxu0 %v1986_v14  ;;  %1868 = vmatmul.mubr.bf16.gmra.mrb[4].mxu1 %v1987_v15 }
  0x7f   : > { %1839 = vmatprep.mubr.bf16.mxu0 %v1988_v16  ;;  %1871 = vmatprep.mubr.bf16.mxu1 %v1989_v17 }
  0x86   : > { %1840 = vmatmul.mubr.bf16.gmra.mrb[8].mxu0 %v1990_v18  ;;  %1872 = vmatmul.mubr.bf16.gmra.mrb[8].mxu1 %v1991_v19 }
  0x87   : > { %1843 = vmatprep.mubr.bf16.mxu0 %v1992_v20  ;;  %1875 = vmatprep.mubr.bf16.mxu1 %v1993_v21 }
  0x8e   : > { %1844 = vmatmul.mubr.bf16.gmra.mrb[12].mxu0 %v1994_v22  ;;  %1876 = vmatmul.mubr.bf16.gmra.mrb[12].mxu1 %v1995_v23 }
  0x8f   : > { %1847 = vmatprep.mubr.bf16.mxu0 %v1996_v24  ;;  %1879 = vmatprep.mubr.bf16.mxu1 %v1997_v25 }
  0x96   : > { %1848 = vmatmul.mubr.bf16.gmra.mrb[16].mxu0 %v1998_v26  ;;  %1880 = vmatmul.mubr.bf16.gmra.mrb[16].mxu1 %v1999_v27 }
  0x97   : > { %1851 = vmatprep.mubr.bf16.mxu0 %v2000_v28  ;;  %1883 = vmatprep.mubr.bf16.mxu1 %v2001_v29 }
  0x9e   : > { %1852 = vmatmul.mubr.bf16.gmra.mrb[20].mxu0 %v2002_v30  ;;  %1884 = vmatmul.mubr.bf16.gmra.mrb[20].mxu1 %v2003_v31 }
  0x9f   : > { %1855 = vmatprep.mubr.bf16.mxu0 %v2004_v32  ;;  %1887 = vmatprep.mubr.bf16.mxu1 %v2005_v33 }
  0xa6   : > { %1856 = vmatmul.mubr.bf16.gmra.mrb[24].mxu0 %v2006_v34  ;;  %1888 = vmatmul.mubr.bf16.gmra.mrb[24].mxu1 %v2007_v35 }
  0xa7   : > { %1859 = vmatprep.mubr.bf16.mxu0 %v2008_v36  ;;  %1891 = vmatprep.mubr.bf16.mxu1 %v2009_v37 }
  0xae   : > { %1860 = vmatmul.mubr.bf16.gmra.mrb[28].mxu0 %v2010_v38  ;;  %1892 = vmatmul.mubr.bf16.gmra.mrb[28].mxu1 %v2011_v39 }
 0x149   : > { %v1833_v40 = vpop.f32.mrb[0].mxu0  ;;  %v1865_v41 = vpop.f32.mrb[0].mxu1 }
 0x14a   : > { %vm791_vm0 = vcmp.ge.f32.partialorder %v1833_v40, 0.0  ;;  %v855_v42 = vmul.f32 0.2, %v1833_v40  ;;  %v887_v43 = vmul.f32 0.2, %v1865_v41  ;;  %vm823_vm1 = vcmp.ge.f32.partialorder %v1865_v41, 0.0 }
 0x14b   : > { %v534_v44 = vpop.f32.mrb[1].mxu0  ;;  %v662_v45 = vpop.f32.mrb[1].mxu1 }
 0x14c   : > { %v853_v46 = vmul.f32 0.2, %v534_v44  ;;  %v1834_v47 = vpop.f32.mrb[2].mxu0  ;;  %v1866_v48 = vpop.f32.mrb[2].mxu1  ;;  %v919_v49 = vsel %vm791_vm0, %v1833_v40, %v855_v42  ;;  %v885_v50 = vmul.f32 0.2, %v662_v45  ;;  %v951_v52 = vsel %vm823_vm1, %v1865_v41, %v887_v43 }
 0x14d   : > { %vm792_vm2 = vcmp.ge.f32.partialorder %v1834_v47, 0.0  ;;  %v856_v51 = vmul.f32 0.2, %v1834_v47  ;;  %vm789_vm3 = vcmp.ge.f32.partialorder %v534_v44, 0.0  ;;  %vm824_vm4 = vcmp.ge.f32.partialorder %v1866_v48, 0.0  ;;  %v537_v54 = vpop.f32.mrb[3].mxu0 }
 0x14e   : > { %v888_v53 = vmul.f32 0.2, %v1866_v48  ;;  %v665_v55 = vpop.f32.mrb[3].mxu1  ;;  %vm821_vm5 = vcmp.ge.f32.partialorder %v662_v45, 0.0  ;;  %vm790_vm6 = vcmp.ge.f32.partialorder %v537_v54, 0.0  ;;  %v917_v61 = vsel %vm789_vm3, %v534_v44, %v853_v46 }
 0x14f   : > { %v920_v56 = vsel %vm792_vm2, %v1834_v47, %v856_v51  ;;  %v854_v57 = vmul.f32 0.2, %v537_v54  ;;  %vm822_vm7 = vcmp.ge.f32.partialorder %v665_v55, 0.0  ;;  %v886_v60 = vmul.f32 0.2, %v665_v55 }
 0x150   : > { %v1592_v58 = vpack.c.bf16 %v920_v56, %v919_v49  ;;  %v952_v59 = vsel %vm824_vm4, %v1866_v48, %v888_v53  ;;  %v949_v2 = vsel %vm821_vm5, %v662_v45, %v885_v50 }
 0x151   : > { %v1672_v62 = vpack.c.bf16 %v952_v59, %v951_v52  ;;  %v918_v63 = vsel %vm790_vm6, %v537_v54, %v854_v57  ;;  %v1837_v0 = vpop.f32.mrb[4].mxu0  ;;  %v1869_v1 = vpop.f32.mrb[4].mxu1  ;;  %v950_v4 = vsel %vm822_vm7, %v665_v55, %v886_v60 }
 0x152   : > { %1744 = vst [vmem:[%s2351_s15 + $0x8] sm:$0xff] %v1592_v58   ;;  %v1587_v3 = vpack.c.bf16 %v918_v63, %v917_v61  ;;  %v859_v5 = vmul.f32 0.2, %v1837_v0  ;;  %v550_v6 = vpop.f32.mrb[5].mxu0  ;;  %v678_v7 = vpop.f32.mrb[5].mxu1  ;;  %v1667_v8 = vpack.c.bf16 %v950_v4, %v949_v2  ;;  %vm795_vm8 = vcmp.ge.f32.partialorder %v1837_v0, 0.0 }
 0x153   : > { %1760 = vst [vmem:[%s2351_s15 + $0x88] sm:$0xff] %v1672_v62   ;;  %v891_v9 = vmul.f32 0.2, %v1869_v1  ;;  %v1838_v10 = vpop.f32.mrb[6].mxu0  ;;  %v1870_v11 = vpop.f32.mrb[6].mxu1  ;;  %vm827_vm9 = vcmp.ge.f32.partialorder %v1869_v1, 0.0 }
 0x154   : > { %1588 = vst [vmem:[%s2351_s15] sm:$0xff] %v1587_v3   ;;  %v857_v12 = vmul.f32 0.2, %v550_v6  ;;  %v889_v13 = vmul.f32 0.2, %v678_v7  ;;  %v553_v14 = vpop.f32.mrb[7].mxu0  ;;  %1759 = vst [vmem:[%s2351_s15 + $0x80] sm:$0xff] %v1667_v8   ;;  %v923_v17 = vsel %vm795_vm8, %v1837_v0, %v859_v5 }
 0x155   : > { %vm793_vm10 = vcmp.ge.f32.partialorder %v550_v6, 0.0  ;;  %vm796_vm11 = vcmp.ge.f32.partialorder %v1838_v10, 0.0  ;;  %v860_v15 = vmul.f32 0.2, %v1838_v10  ;;  %vm828_vm12 = vcmp.ge.f32.partialorder %v1870_v11, 0.0  ;;  %v681_v16 = vpop.f32.mrb[7].mxu1 }
 0x156   : > { %vm825_vm13 = vcmp.ge.f32.partialorder %v678_v7, 0.0  ;;  %v892_v18 = vmul.f32 0.2, %v1870_v11  ;;  %vm794_vm14 = vcmp.ge.f32.partialorder %v553_v14, 0.0  ;;  %v858_v20 = vmul.f32 0.2, %v553_v14 }
 0x157   : > { %v924_v19 = vsel %vm796_vm11, %v1838_v10, %v860_v15  ;;  %vm826_vm15 = vcmp.ge.f32.partialorder %v681_v16, 0.0  ;;  %v890_v21 = vmul.f32 0.2, %v681_v16  ;;  %v955_v22 = vsel %vm827_vm9, %v1869_v1, %v891_v9 }
 0x158   : > { %v921_v23 = vsel %vm793_vm10, %v550_v6, %v857_v12  ;;  %v1602_v24 = vpack.c.bf16 %v924_v19, %v923_v17  ;;  %v956_v25 = vsel %vm828_vm12, %v1870_v11, %v892_v18  ;;  %v953_v26 = vsel %vm825_vm13, %v678_v7, %v889_v13 }
 0x159   : > { %v1682_v27 = vpack.c.bf16 %v956_v25, %v955_v22  ;;  %v922_v28 = vsel %vm794_vm14, %v553_v14, %v858_v20  ;;  %v954_v29 = vsel %vm826_vm15, %v681_v16, %v890_v21  ;;  %v1841_v30 = vpop.f32.mrb[8].mxu0  ;;  %v1873_v31 = vpop.f32.mrb[8].mxu1 }
 0x15a   : > { %1746 = vst [vmem:[%s2351_s15 + $0x18] sm:$0xff] %v1602_v24   ;;  %v1597_v32 = vpack.c.bf16 %v922_v28, %v921_v23  ;;  %v1677_v33 = vpack.c.bf16 %v954_v29, %v953_v26  ;;  %vm799_vm0 = vcmp.ge.f32.partialorder %v1841_v30, 0.0  ;;  %v863_v34 = vmul.f32 0.2, %v1841_v30  ;;  %v566_v35 = vpop.f32.mrb[9].mxu0  ;;  %v694_v36 = vpop.f32.mrb[9].mxu1 }
 0x15b   : > { %1762 = vst [vmem:[%s2351_s15 + $0x98] sm:$0xff] %v1682_v27   ;;  %vm831_vm1 = vcmp.ge.f32.partialorder %v1873_v31, 0.0  ;;  %v895_v37 = vmul.f32 0.2, %v1873_v31  ;;  %v861_v38 = vmul.f32 0.2, %v566_v35 }
 0x15c   : > { %1745 = vst [vmem:[%s2351_s15 + $0x10] sm:$0xff] %v1597_v32   ;;  %1761 = vst [vmem:[%s2351_s15 + $0x90] sm:$0xff] %v1677_v33   ;;  %v893_v39 = vmul.f32 0.2, %v694_v36  ;;  %v1842_v40 = vpop.f32.mrb[10].mxu0  ;;  %v1874_v41 = vpop.f32.mrb[10].mxu1  ;;  %v927_v42 = vsel %vm799_vm0, %v1841_v30, %v863_v34 }
 0x15d   : > { %vm797_vm2 = vcmp.ge.f32.partialorder %v566_v35, 0.0  ;;  %vm800_vm3 = vcmp.ge.f32.partialorder %v1842_v40, 0.0  ;;  %v864_v43 = vmul.f32 0.2, %v1842_v40  ;;  %v569_v44 = vpop.f32.mrb[11].mxu0  ;;  %v697_v45 = vpop.f32.mrb[11].mxu1  ;;  %v959_v50 = vsel %vm831_vm1, %v1873_v31, %v895_v37 }
 0x15e   : > { %vm829_vm4 = vcmp.ge.f32.partialorder %v694_v36, 0.0  ;;  %vm832_vm5 = vcmp.ge.f32.partialorder %v1874_v41, 0.0  ;;  %v896_v46 = vmul.f32 0.2, %v1874_v41  ;;  %vm798_vm6 = vcmp.ge.f32.partialorder %v569_v44, 0.0 }
 0x15f   : > { %v928_v47 = vsel %vm800_vm3, %v1842_v40, %v864_v43  ;;  %v862_v48 = vmul.f32 0.2, %v569_v44  ;;  %vm830_vm7 = vcmp.ge.f32.partialorder %v697_v45, 0.0  ;;  %v894_v49 = vmul.f32 0.2, %v697_v45 }
 0x160   : > { %v925_v51 = vsel %vm797_vm2, %v566_v35, %v861_v38  ;;  %v1612_v52 = vpack.c.bf16 %v928_v47, %v927_v42  ;;  %v960_v53 = vsel %vm832_vm5, %v1874_v41, %v896_v46  ;;  %v957_v54 = vsel %vm829_vm4, %v694_v36, %v893_v39 }
 0x161   : > { %v1692_v55 = vpack.c.bf16 %v960_v53, %v959_v50  ;;  %v926_v56 = vsel %vm798_vm6, %v569_v44, %v862_v48  ;;  %v958_v57 = vsel %vm830_vm7, %v697_v45, %v894_v49  ;;  %v1845_v58 = vpop.f32.mrb[12].mxu0  ;;  %v1877_v59 = vpop.f32.mrb[12].mxu1 }
 0x162   : > { %1748 = vst [vmem:[%s2351_s15 + $0x28] sm:$0xff] %v1612_v52   ;;  %v1607_v60 = vpack.c.bf16 %v926_v56, %v925_v51  ;;  %v1687_v61 = vpack.c.bf16 %v958_v57, %v957_v54  ;;  %vm803_vm8 = vcmp.ge.f32.partialorder %v1845_v58, 0.0  ;;  %v867_v62 = vmul.f32 0.2, %v1845_v58  ;;  %v582_v63 = vpop.f32.mrb[13].mxu0  ;;  %v710_v0 = vpop.f32.mrb[13].mxu1 }
 0x163   : > { %1764 = vst [vmem:[%s2351_s15 + $0xa8] sm:$0xff] %v1692_v55   ;;  %vm835_vm9 = vcmp.ge.f32.partialorder %v1877_v59, 0.0  ;;  %v899_v1 = vmul.f32 0.2, %v1877_v59  ;;  %v865_v2 = vmul.f32 0.2, %v582_v63 }
 0x164   : > { %1747 = vst [vmem:[%s2351_s15 + $0x20] sm:$0xff] %v1607_v60   ;;  %1763 = vst [vmem:[%s2351_s15 + $0xa0] sm:$0xff] %v1687_v61   ;;  %v897_v3 = vmul.f32 0.2, %v710_v0  ;;  %v1846_v4 = vpop.f32.mrb[14].mxu0  ;;  %v1878_v5 = vpop.f32.mrb[14].mxu1  ;;  %v931_v6 = vsel %vm803_vm8, %v1845_v58, %v867_v62 }
 0x165   : > { %vm801_vm10 = vcmp.ge.f32.partialorder %v582_v63, 0.0  ;;  %vm804_vm11 = vcmp.ge.f32.partialorder %v1846_v4, 0.0  ;;  %v868_v7 = vmul.f32 0.2, %v1846_v4  ;;  %v585_v8 = vpop.f32.mrb[15].mxu0  ;;  %v713_v9 = vpop.f32.mrb[15].mxu1  ;;  %v963_v14 = vsel %vm835_vm9, %v1877_v59, %v899_v1 }
 0x166   : > { %vm833_vm12 = vcmp.ge.f32.partialorder %v710_v0, 0.0  ;;  %vm836_vm13 = vcmp.ge.f32.partialorder %v1878_v5, 0.0  ;;  %v900_v10 = vmul.f32 0.2, %v1878_v5  ;;  %vm802_vm14 = vcmp.ge.f32.partialorder %v585_v8, 0.0 }
 0x167   : > { %v932_v11 = vsel %vm804_vm11, %v1846_v4, %v868_v7  ;;  %v866_v12 = vmul.f32 0.2, %v585_v8  ;;  %vm834_vm15 = vcmp.ge.f32.partialorder %v713_v9, 0.0  ;;  %v898_v13 = vmul.f32 0.2, %v713_v9 }
 0x168   : > { %v929_v15 = vsel %vm801_vm10, %v582_v63, %v865_v2  ;;  %v1622_v16 = vpack.c.bf16 %v932_v11, %v931_v6  ;;  %v964_v17 = vsel %vm836_vm13, %v1878_v5, %v900_v10  ;;  %v961_v18 = vsel %vm833_vm12, %v710_v0, %v897_v3 }
 0x169   : > { %v1702_v19 = vpack.c.bf16 %v964_v17, %v963_v14  ;;  %v930_v20 = vsel %vm802_vm14, %v585_v8, %v866_v12  ;;  %v962_v21 = vsel %vm834_vm15, %v713_v9, %v898_v13  ;;  %v1849_v22 = vpop.f32.mrb[16].mxu0  ;;  %v1881_v23 = vpop.f32.mrb[16].mxu1 }
 0x16a   : > { %1750 = vst [vmem:[%s2351_s15 + $0x38] sm:$0xff] %v1622_v16   ;;  %v1617_v24 = vpack.c.bf16 %v930_v20, %v929_v15  ;;  %v1697_v25 = vpack.c.bf16 %v962_v21, %v961_v18  ;;  %vm807_vm0 = vcmp.ge.f32.partialorder %v1849_v22, 0.0  ;;  %v871_v26 = vmul.f32 0.2, %v1849_v22  ;;  %v598_v27 = vpop.f32.mrb[17].mxu0  ;;  %v726_v28 = vpop.f32.mrb[17].mxu1 }
 0x16b   : > { %1766 = vst [vmem:[%s2351_s15 + $0xb8] sm:$0xff] %v1702_v19   ;;  %vm839_vm1 = vcmp.ge.f32.partialorder %v1881_v23, 0.0  ;;  %v903_v29 = vmul.f32 0.2, %v1881_v23  ;;  %v869_v30 = vmul.f32 0.2, %v598_v27 }
 0x16c   : > { %1749 = vst [vmem:[%s2351_s15 + $0x30] sm:$0xff] %v1617_v24   ;;  %1765 = vst [vmem:[%s2351_s15 + $0xb0] sm:$0xff] %v1697_v25   ;;  %v901_v31 = vmul.f32 0.2, %v726_v28  ;;  %v1850_v32 = vpop.f32.mrb[18].mxu0  ;;  %v1882_v33 = vpop.f32.mrb[18].mxu1  ;;  %v935_v34 = vsel %vm807_vm0, %v1849_v22, %v871_v26 }
 0x16d   : > { %vm805_vm2 = vcmp.ge.f32.partialorder %v598_v27, 0.0  ;;  %vm808_vm3 = vcmp.ge.f32.partialorder %v1850_v32, 0.0  ;;  %v872_v35 = vmul.f32 0.2, %v1850_v32  ;;  %v601_v36 = vpop.f32.mrb[19].mxu0  ;;  %v729_v37 = vpop.f32.mrb[19].mxu1  ;;  %v967_v42 = vsel %vm839_vm1, %v1881_v23, %v903_v29 }
 0x16e   : > { %vm837_vm4 = vcmp.ge.f32.partialorder %v726_v28, 0.0  ;;  %vm840_vm5 = vcmp.ge.f32.partialorder %v1882_v33, 0.0  ;;  %v904_v38 = vmul.f32 0.2, %v1882_v33  ;;  %vm806_vm6 = vcmp.ge.f32.partialorder %v601_v36, 0.0 }
 0x16f   : > { %v936_v39 = vsel %vm808_vm3, %v1850_v32, %v872_v35  ;;  %v870_v40 = vmul.f32 0.2, %v601_v36  ;;  %vm838_vm7 = vcmp.ge.f32.partialorder %v729_v37, 0.0  ;;  %v902_v41 = vmul.f32 0.2, %v729_v37 }
 0x170   : > { %v933_v43 = vsel %vm805_vm2, %v598_v27, %v869_v30  ;;  %v1632_v44 = vpack.c.bf16 %v936_v39, %v935_v34  ;;  %v968_v45 = vsel %vm840_vm5, %v1882_v33, %v904_v38  ;;  %v965_v46 = vsel %vm837_vm4, %v726_v28, %v901_v31 }
 0x171   : > { %v1712_v47 = vpack.c.bf16 %v968_v45, %v967_v42  ;;  %v934_v48 = vsel %vm806_vm6, %v601_v36, %v870_v40  ;;  %v966_v49 = vsel %vm838_vm7, %v729_v37, %v902_v41  ;;  %v1853_v50 = vpop.f32.mrb[20].mxu0  ;;  %v1885_v51 = vpop.f32.mrb[20].mxu1 }
 0x172   : > { %1752 = vst [vmem:[%s2351_s15 + $0x48] sm:$0xff] %v1632_v44   ;;  %v1627_v52 = vpack.c.bf16 %v934_v48, %v933_v43  ;;  %v1707_v53 = vpack.c.bf16 %v966_v49, %v965_v46  ;;  %vm811_vm8 = vcmp.ge.f32.partialorder %v1853_v50, 0.0  ;;  %v875_v54 = vmul.f32 0.2, %v1853_v50  ;;  %v614_v55 = vpop.f32.mrb[21].mxu0  ;;  %v742_v56 = vpop.f32.mrb[21].mxu1 }
 0x173   : > { %1768 = vst [vmem:[%s2351_s15 + $0xc8] sm:$0xff] %v1712_v47   ;;  %vm843_vm9 = vcmp.ge.f32.partialorder %v1885_v51, 0.0  ;;  %v907_v57 = vmul.f32 0.2, %v1885_v51  ;;  %v873_v58 = vmul.f32 0.2, %v614_v55 }
 0x174   : > { %1751 = vst [vmem:[%s2351_s15 + $0x40] sm:$0xff] %v1627_v52   ;;  %1767 = vst [vmem:[%s2351_s15 + $0xc0] sm:$0xff] %v1707_v53   ;;  %v905_v59 = vmul.f32 0.2, %v742_v56  ;;  %v1854_v60 = vpop.f32.mrb[22].mxu0  ;;  %v1886_v61 = vpop.f32.mrb[22].mxu1  ;;  %v939_v62 = vsel %vm811_vm8, %v1853_v50, %v875_v54 }
 0x175   : > { %vm809_vm10 = vcmp.ge.f32.partialorder %v614_v55, 0.0  ;;  %vm812_vm11 = vcmp.ge.f32.partialorder %v1854_v60, 0.0  ;;  %v876_v63 = vmul.f32 0.2, %v1854_v60  ;;  %v617_v0 = vpop.f32.mrb[23].mxu0  ;;  %v745_v1 = vpop.f32.mrb[23].mxu1  ;;  %v971_v6 = vsel %vm843_vm9, %v1885_v51, %v907_v57 }
 0x176   : > { %vm841_vm12 = vcmp.ge.f32.partialorder %v742_v56, 0.0  ;;  %vm844_vm13 = vcmp.ge.f32.partialorder %v1886_v61, 0.0  ;;  %v908_v2 = vmul.f32 0.2, %v1886_v61  ;;  %vm810_vm14 = vcmp.ge.f32.partialorder %v617_v0, 0.0 }
 0x177   : > { %v940_v3 = vsel %vm812_vm11, %v1854_v60, %v876_v63  ;;  %v874_v4 = vmul.f32 0.2, %v617_v0  ;;  %vm842_vm15 = vcmp.ge.f32.partialorder %v745_v1, 0.0  ;;  %v906_v5 = vmul.f32 0.2, %v745_v1 }
 0x178   : > { %v937_v7 = vsel %vm809_vm10, %v614_v55, %v873_v58  ;;  %v1642_v8 = vpack.c.bf16 %v940_v3, %v939_v62  ;;  %v972_v9 = vsel %vm844_vm13, %v1886_v61, %v908_v2  ;;  %v969_v10 = vsel %vm841_vm12, %v742_v56, %v905_v59 }
 0x179   : > { %v1722_v11 = vpack.c.bf16 %v972_v9, %v971_v6  ;;  %v938_v12 = vsel %vm810_vm14, %v617_v0, %v874_v4  ;;  %v970_v13 = vsel %vm842_vm15, %v745_v1, %v906_v5  ;;  %v1857_v14 = vpop.f32.mrb[24].mxu0  ;;  %v1889_v15 = vpop.f32.mrb[24].mxu1 }
 0x17a   : > { %1754 = vst [vmem:[%s2351_s15 + $0x58] sm:$0xff] %v1642_v8   ;;  %v1637_v16 = vpack.c.bf16 %v938_v12, %v937_v7  ;;  %v1717_v17 = vpack.c.bf16 %v970_v13, %v969_v10  ;;  %vm815_vm0 = vcmp.ge.f32.partialorder %v1857_v14, 0.0  ;;  %v879_v18 = vmul.f32 0.2, %v1857_v14  ;;  %v630_v19 = vpop.f32.mrb[25].mxu0  ;;  %v758_v20 = vpop.f32.mrb[25].mxu1 }
 0x17b   : > { %1770 = vst [vmem:[%s2351_s15 + $0xd8] sm:$0xff] %v1722_v11   ;;  %vm847_vm1 = vcmp.ge.f32.partialorder %v1889_v15, 0.0  ;;  %v911_v21 = vmul.f32 0.2, %v1889_v15  ;;  %v877_v22 = vmul.f32 0.2, %v630_v19 }
 0x17c   : > { %1753 = vst [vmem:[%s2351_s15 + $0x50] sm:$0xff] %v1637_v16   ;;  %1769 = vst [vmem:[%s2351_s15 + $0xd0] sm:$0xff] %v1717_v17   ;;  %v909_v23 = vmul.f32 0.2, %v758_v20  ;;  %v1858_v24 = vpop.f32.mrb[26].mxu0  ;;  %v1890_v25 = vpop.f32.mrb[26].mxu1  ;;  %v943_v26 = vsel %vm815_vm0, %v1857_v14, %v879_v18 }
 0x17d   : > { %vm813_vm2 = vcmp.ge.f32.partialorder %v630_v19, 0.0  ;;  %vm816_vm3 = vcmp.ge.f32.partialorder %v1858_v24, 0.0  ;;  %v880_v27 = vmul.f32 0.2, %v1858_v24  ;;  %v633_v28 = vpop.f32.mrb[27].mxu0  ;;  %v761_v29 = vpop.f32.mrb[27].mxu1  ;;  %v975_v34 = vsel %vm847_vm1, %v1889_v15, %v911_v21 }
 0x17e   : > { %vm845_vm4 = vcmp.ge.f32.partialorder %v758_v20, 0.0  ;;  %vm848_vm5 = vcmp.ge.f32.partialorder %v1890_v25, 0.0  ;;  %v912_v30 = vmul.f32 0.2, %v1890_v25  ;;  %vm814_vm6 = vcmp.ge.f32.partialorder %v633_v28, 0.0 }
 0x17f   : > { %v944_v31 = vsel %vm816_vm3, %v1858_v24, %v880_v27  ;;  %v878_v32 = vmul.f32 0.2, %v633_v28  ;;  %vm846_vm7 = vcmp.ge.f32.partialorder %v761_v29, 0.0  ;;  %v910_v33 = vmul.f32 0.2, %v761_v29 }
 0x180   : > { %v941_v35 = vsel %vm813_vm2, %v630_v19, %v877_v22  ;;  %v1652_v36 = vpack.c.bf16 %v944_v31, %v943_v26  ;;  %v976_v37 = vsel %vm848_vm5, %v1890_v25, %v912_v30  ;;  %v973_v38 = vsel %vm845_vm4, %v758_v20, %v909_v23 }
 0x181   : > { %v1732_v39 = vpack.c.bf16 %v976_v37, %v975_v34  ;;  %v942_v40 = vsel %vm814_vm6, %v633_v28, %v878_v32  ;;  %v974_v41 = vsel %vm846_vm7, %v761_v29, %v910_v33  ;;  %v1861_v42 = vpop.f32.mrb[28].mxu0  ;;  %v1893_v43 = vpop.f32.mrb[28].mxu1 }
 0x182   : > { %1756 = vst [vmem:[%s2351_s15 + $0x68] sm:$0xff] %v1652_v36   ;;  %v1647_v44 = vpack.c.bf16 %v942_v40, %v941_v35  ;;  %v1727_v45 = vpack.c.bf16 %v974_v41, %v973_v38  ;;  %vm819_vm8 = vcmp.ge.f32.partialorder %v1861_v42, 0.0  ;;  %v883_v46 = vmul.f32 0.2, %v1861_v42  ;;  %v646_v47 = vpop.f32.mrb[29].mxu0  ;;  %v774_v48 = vpop.f32.mrb[29].mxu1 }
 0x183   : > { %1772 = vst [vmem:[%s2351_s15 + $0xe8] sm:$0xff] %v1732_v39   ;;  %vm851_vm9 = vcmp.ge.f32.partialorder %v1893_v43, 0.0  ;;  %v915_v49 = vmul.f32 0.2, %v1893_v43  ;;  %v881_v50 = vmul.f32 0.2, %v646_v47 }
 0x184   : > { %1755 = vst [vmem:[%s2351_s15 + $0x60] sm:$0xff] %v1647_v44   ;;  %1771 = vst [vmem:[%s2351_s15 + $0xe0] sm:$0xff] %v1727_v45   ;;  %v913_v51 = vmul.f32 0.2, %v774_v48  ;;  %v1862_v52 = vpop.f32.mrb[30].mxu0  ;;  %v1894_v53 = vpop.f32.mrb[30].mxu1  ;;  %v947_v54 = vsel %vm819_vm8, %v1861_v42, %v883_v46 }
 0x185   : > { %vm817_vm10 = vcmp.ge.f32.partialorder %v646_v47, 0.0  ;;  %vm820_vm11 = vcmp.ge.f32.partialorder %v1862_v52, 0.0  ;;  %v884_v55 = vmul.f32 0.2, %v1862_v52  ;;  %v649_v56 = vpop.f32.mrb[31].mxu0  ;;  %v777_v57 = vpop.f32.mrb[31].mxu1  ;;  %v979_v62 = vsel %vm851_vm9, %v1893_v43, %v915_v49 }
 0x186   : > { %vm849_vm12 = vcmp.ge.f32.partialorder %v774_v48, 0.0  ;;  %vm852_vm13 = vcmp.ge.f32.partialorder %v1894_v53, 0.0  ;;  %v916_v58 = vmul.f32 0.2, %v1894_v53  ;;  %vm818_vm14 = vcmp.ge.f32.partialorder %v649_v56, 0.0 }
 0x187   : > { %v948_v59 = vsel %vm820_vm11, %v1862_v52, %v884_v55  ;;  %v882_v60 = vmul.f32 0.2, %v649_v56  ;;  %vm850_vm15 = vcmp.ge.f32.partialorder %v777_v57, 0.0  ;;  %v914_v61 = vmul.f32 0.2, %v777_v57 }
 0x188   : > { %v945_v63 = vsel %vm817_vm10, %v646_v47, %v881_v50  ;;  %v1662_v0 = vpack.c.bf16 %v948_v59, %v947_v54  ;;  %v980_v1 = vsel %vm852_vm13, %v1894_v53, %v916_v58  ;;  %v977_v2 = vsel %vm849_vm12, %v774_v48, %v913_v51 }
 0x189   : > { %v1742_v3 = vpack.c.bf16 %v980_v1, %v979_v62  ;;  %v946_v4 = vsel %vm818_vm14, %v649_v56, %v882_v60  ;;  %v978_v5 = vsel %vm850_vm15, %v777_v57, %v914_v61 }
 0x18a   : > { %1758 = vst [vmem:[%s2351_s15 + $0x78] sm:$0xff] %v1662_v0   ;;  %v1657_v6 = vpack.c.bf16 %v946_v4, %v945_v63  ;;  %v1737_v7 = vpack.c.bf16 %v978_v5, %v977_v2 }
 0x18b   : > { %1774 = vst [vmem:[%s2351_s15 + $0xf8] sm:$0xff] %v1742_v3  }
 0x18c   : > { %1757 = vst [vmem:[%s2351_s15 + $0x70] sm:$0xff] %v1657_v6   ;;  %1773 = vst [vmem:[%s2351_s15 + $0xf0] sm:$0xff] %v1737_v7  }
 0x18d   : > { %2083 = shalt.err (!%p2080_p7)
}
 0x18e   : > { %s2084_s20 = scalar_lea.hbm %s2395_s22, 4096  ;;  %s2088_s25 = scalar_lea.hbm %s2446_s2, 16384 }
 0x18f   : > { %p2085_p9 = scmp.ne.s32.totalorder %s2395_s22, %s2084_s20  ;;  %p2089_p5 = scmp.lt.u32.totalorder %s2395_s22, %s2446_s2 }
 0x190   : > { %p2090_p10 = scmp.lt.u32.totalorder %s2088_s25, %s2084_s20  ;;  %p2092_p4 = scmp.lt.u32.totalorder %s2084_s20, %s2395_s22 }
 0x191   : > { %p2086_p1 = pnand %p2085_p9, %p2250_p12 }
 0x192   : > { %p2091_p2 = por %p2090_p10, %p2089_p5 }
 0x193   : > { %p2087_p0 = pneg %p2086_p1 }
 0x194   : > { %p2093_p6 = por %p2092_p4, %p2091_p2 }
 0x196   : > { %p2094_p8 = pnand %p2093_p6, %p2087_p0 }
 0x198   : > { %2097 = shalt.err (!%p2094_p8)
}
 0x199   : > { %s2147_s30 = smov 64   ;;  %s2148_s23 = smov 4  }
 0x19a   : > { %1917 = dma.vmem_to_hbm [thread:$0]  (%p2250_p12), %s2397_s4, 4096, %s2395_s22, %s1302_s28, %s2147_s30, %s2147_s30, %s2148_s23  }
 0x19b PF: > { %p1934_p11 = scmp.ge.s32.totalorder %s2140_s12, 2  ;;  %s1330_s15 = sand.u32 1, %s2128_s9  }
 0x19c   : > { %p2461_p13 = scmp.ne.s32.totalorder %s2451_s16, 0  ;;  %s1331_s17 = scalar_lea.sflag [#allocation4], %s1330_s15 }
 0x19e   : > { %p1928_p3 = pnand %p1934_p11, %p2461_p13 }
 0x1a0   : > { %2123 = dma.done.wait (!%p1928_p3), %s1331_s17, 4096  }
 0x1a1   : > { %2125 = vsyncadd (!%p1928_p3), %s1331_s17, 4294963200  ;;  %p16_p7 = scmp.ge.s32.totalorder %s2217_s21, 6   ;;  %s2462_s9 = smov %s2132_s10 }
 0x1a2   : > { %s2463_s10 = smov %s2136_s11  ;;  %s2464_s11 = smov %s2246_s8 }
 0x1a3   : > { %s2465_s12 = smov %s2217_s21  ;;  %18 = sbr.rel (!%p16_p7) target bundleno = 6 (0x6), region = 77 }
 0x1aa   :  { %1336 = vsyncpa [#allocation3], 1 }
 0x1ab   :  { %1338 = vsyncpa [#allocation3 + $0x1], 1 }
 0x1ac   :  { %1339 = vsyncpa [#allocation6], 1 }
 0x1ad   :  { %1340 = vsyncpa [#allocation4], 1 }
 0x1ae   :  { %1342 = vsyncpa [#allocation4 + $0x1], 1 }

// kernel: discriminator_forward.10
= control target key start
LH: loop header
LB: loop body
LE: loop exit
PB: predicated region body
PF: predicated region fallthrough
CT: control target
= control target key end

     0   :  { %8 = vsyncpa [#allocation3], 0  ;;  %s1426_s0 = inlined_call_operand.hbm [shape: f32[512,128], index: 0, kind: input, shape index: {}]   ;;  %s1427_s1 = inlined_call_operand.hbm [shape: f32[1,128], index: 1, kind: input, shape index: {}]   ;;  %s1428_s2 = inlined_call_operand.hbm [shape: f32[1,128], index: 2, kind: input, shape index: {}]   ;;  %s1429_s3 = inlined_call_operand.hbm [shape: bf16[512,128], index: 3, kind: output, shape index: {}]  }
   0x1   :  { %9 = vsyncpa [#allocation6], 0 }
   0x2   :  { %10 = vsyncpa [#allocation4], 0  ;;  %s1211_s12 = smov [#allocation5]   ;;  %s1212_s14 = smov [#allocation2]  }
   0x3   :  { %s29_s13 = sshll.u32 %s1211_s12, 4  ;;  %s16_s15 = sshll.u32 %s1212_s14, 4  ;;  %s30_s13 = int_to_ptr.vmem [resolvable:$true] %s29_s13  ;;  %s1239_s15 = int_to_ptr.vmem [resolvable:$true] %s16_s15 }
   0x4   :  { %s1117_s18 = scalar_lea.hbm %s1427_s1, 16 }
   0x5   :  { %p1118_p0 = scmp.ne.s32.totalorder %s1427_s1, %s1117_s18  ;;  %p1121_p1 = scmp.lt.u32.totalorder %s1117_s18, %s1427_s1 }
   0x7   :  { %p1123_p2 = pnand %p1121_p1, %p1118_p0 }
   0x9   :  { %1126 = shalt.err (!%p1123_p2)
}
   0xa   :  { %s1127_s23 = scalar_lea.vmem %s30_s13, 16  ;;  %s1131_s24 = scalar_lea.vmem %s30_s13, 32 }
   0xb   :  { %p1128_p3 = scmp.ne.s32.totalorder %s30_s13, %s1127_s23  ;;  %p1132_p4 = scmp.lt.s32.totalorder %s30_s13, %s30_s13 }
   0xc   :  { %p1133_p5 = scmp.lt.s32.totalorder %s1131_s24, %s1127_s23 }
   0xe   :  { %p1134_p6 = por %p1133_p5, %p1132_p4 }
  0x10   :  { %p1135_p7 = pnand %p1134_p6, %p1128_p3 }
  0x12   :  { %1138 = shalt.err (!%p1135_p7)
}
  0x13   :  { %32 = dma.hbm_to_vmem [thread:$0]  %s1427_s1, 16, %s30_s13, [#allocation6]  }
  0x14   :  { %s1139_s29 = scalar_lea.hbm %s1426_s0, 8192 }
  0x15   :  { %p1140_p8 = scmp.ne.s32.totalorder %s1426_s0, %s1139_s29  ;;  %p1143_p9 = scmp.lt.u32.totalorder %s1139_s29, %s1426_s0 }
  0x17   :  { %p1145_p10 = pnand %p1143_p9, %p1140_p8 }
  0x19   :  { %1148 = shalt.err (!%p1145_p10)
}
  0x1a   :  { %s1149_s7 = scalar_lea.vmem %s1239_s15, 8192  ;;  %p1154_p12 = scmp.lt.s32.totalorder %s1239_s15, %s1239_s15 }
  0x1b   :  { %p1150_p11 = scmp.ne.s32.totalorder %s1239_s15, %s1149_s7  ;;  %p1155_p13 = scmp.lt.s32.totalorder %s1149_s7, %s1149_s7 }
  0x1d   :  { %p1156_p0 = por %p1155_p13, %p1154_p12 }
  0x1f   :  { %p1157_p1 = pnand %p1156_p0, %p1150_p11 }
  0x21   :  { %1160 = shalt.err (!%p1157_p1)
}
  0x22   :  { %s1213_s1 = smov 128   ;;  %s1214_s8 = smov 8  }
  0x23   :  { %22 = dma.hbm_to_vmem [thread:$0]  %s1426_s0, 8192, %s1239_s15, [#allocation3], %s1213_s1, %s1213_s1, %s1214_s8  }
  0x24   :  { %s1215_s11 = smov [#allocation7]   ;;  %s1161_s16 = scalar_lea.hbm %s1428_s2, 16 }
  0x25   :  { %s39_s12 = sshll.u32 %s1215_s11, 4  ;;  %p1162_p2 = scmp.ne.s32.totalorder %s1428_s2, %s1161_s16  ;;  %s40_s12 = int_to_ptr.vmem [resolvable:$true] %s39_s12 }
  0x26   :  { %p1165_p3 = scmp.lt.u32.totalorder %s1161_s16, %s1428_s2 }
  0x28   :  { %p1167_p4 = pnand %p1165_p3, %p1162_p2 }
  0x2a   :  { %1170 = shalt.err (!%p1167_p4)
}
  0x2b   :  { %s1171_s21 = scalar_lea.vmem %s40_s12, 16  ;;  %s1175_s0 = scalar_lea.vmem %s40_s12, 32 }
  0x2c   :  { %p1172_p5 = scmp.ne.s32.totalorder %s40_s12, %s1171_s21  ;;  %p1176_p6 = scmp.lt.s32.totalorder %s40_s12, %s40_s12 }
  0x2d   :  { %p1177_p7 = scmp.lt.s32.totalorder %s1175_s0, %s1171_s21 }
  0x2f   :  { %p1178_p8 = por %p1177_p7, %p1176_p6 }
  0x31   :  { %p1179_p9 = pnand %p1178_p8, %p1172_p5 }
  0x33   :  { %1182 = shalt.err (!%p1179_p9)
}
  0x34   :  { %42 = dma.hbm_to_vmem [thread:$0]  %s1428_s2, 16, %s40_s12, [#allocation6]  }
  0x35   :  { %1205 = dma.done.wait [#allocation3], 8192  }
  0x36   :  { %1206 = vsyncadd [#allocation3], 4294959104 }
  0x37   :  { %1207 = dma.done.wait [#allocation6], 32  }
  0x38   :  { %1208 = vsyncadd [#allocation6], 4294967264  ;;  %v52_v0 = vld [vmem:[#allocation2] sm:$0xff]  ;;  %v53_v1 = vld [vmem:[#allocation2 + $0x8] sm:$0xff]  ;;  %s1216_s2 = smov [#allocation8]  }
  0x39   :  { %v1282_v2 = vld [vmem:[#allocation5] ss:$0 sm:$0xff]  ;;  %v1286_v5 = vld [vmem:[#allocation7] ss:$0 sm:$0xff]  ;;  %v54_v6 = vld [vmem:[#allocation2 + $0x10] sm:$0xff]  ;;  %s775_s23 = sshll.u32 %s1216_s2, 4  ;;  %s776_s23 = int_to_ptr.vmem [resolvable:$true] %s775_s23 }
  0x3a   :  { %v123_v3 = vmul.f32 %v1282_v2, %v52_v0  ;;  %v124_v4 = vmul.f32 %v1282_v2, %v53_v1  ;;  %v55_v7 = vld [vmem:[#allocation2 + $0x18] sm:$0xff]  ;;  %v125_v8 = vmul.f32 %v1282_v2, %v54_v6  ;;  %v56_v10 = vld [vmem:[#allocation2 + $0x20] sm:$0xff]  ;;  %v57_v11 = vld [vmem:[#allocation2 + $0x28] sm:$0xff]  ;;  %s1183_s24 = scalar_lea.vmem %s776_s23, 4096  ;;  %p1188_p11 = scmp.lt.s32.totalorder %s776_s23, %s776_s23 }
  0x3b   :  { %v126_v9 = vmul.f32 %v1282_v2, %v55_v7  ;;  %v58_v12 = vld [vmem:[#allocation2 + $0x30] sm:$0xff]  ;;  %v127_v15 = vmul.f32 %v1282_v2, %v56_v10  ;;  %v128_v16 = vmul.f32 %v1282_v2, %v57_v11  ;;  %v59_v17 = vld [vmem:[#allocation2 + $0x38] sm:$0xff]  ;;  %v60_v34 = vld [vmem:[#allocation2 + $0x40] sm:$0xff]  ;;  %p1184_p10 = scmp.ne.s32.totalorder %s776_s23, %s1183_s24  ;;  %p1189_p12 = scmp.lt.s32.totalorder %s1183_s24, %s1183_s24 }
  0x3c   :  { %v194_v13 = vadd.f32 %v1286_v5, %v123_v3  ;;  %v195_v14 = vadd.f32 %v1286_v5, %v124_v4  ;;  %v196_v18 = vadd.f32 %v1286_v5, %v125_v8  ;;  %v129_v20 = vmul.f32 %v1282_v2, %v58_v12  ;;  %v61_v35 = vld [vmem:[#allocation2 + $0x48] sm:$0xff]  ;;  %v62_v36 = vld [vmem:[#allocation2 + $0x50] sm:$0xff]  ;;  %v63_v42 = vld [vmem:[#allocation2 + $0x58] sm:$0xff] }
  0x3d   :  { %v197_v19 = vadd.f32 %v1286_v5, %v126_v9  ;;  %v130_v21 = vmul.f32 %v1282_v2, %v59_v17  ;;  %v198_v28 = vadd.f32 %v1286_v5, %v127_v15  ;;  %v199_v29 = vadd.f32 %v1286_v5, %v128_v16  ;;  %v64_v47 = vld [vmem:[#allocation2 + $0x60] sm:$0xff]  ;;  %v65_v48 = vld [vmem:[#allocation2 + $0x68] sm:$0xff]  ;;  %v66_v60 = vld [vmem:[#allocation2 + $0x70] sm:$0xff]  ;;  %p1190_p13 = por %p1189_p12, %p1188_p11 }
  0x3e   :  { %vm258_vm0 = vcmp.ge.f32.partialorder %v194_v13, 0.0  ;;  %vm259_vm1 = vcmp.ge.f32.partialorder %v195_v14, 0.0  ;;  %v322_v22 = vmul.f32 0.2, %v194_v13  ;;  %v323_v23 = vmul.f32 0.2, %v195_v14 }
  0x3f   :  { %vm260_vm2 = vcmp.ge.f32.partialorder %v196_v18, 0.0  ;;  %vm261_vm3 = vcmp.ge.f32.partialorder %v197_v19, 0.0  ;;  %v324_v24 = vmul.f32 0.2, %v196_v18  ;;  %v325_v25 = vmul.f32 0.2, %v197_v19  ;;  %p1191_p0 = pnand %p1190_p13, %p1184_p10 }
  0x40   :  { %v386_v26 = vsel %vm258_vm0, %v194_v13, %v322_v22  ;;  %v387_v27 = vsel %vm259_vm1, %v195_v14, %v323_v23  ;;  %v200_v33 = vadd.f32 %v1286_v5, %v129_v20  ;;  %vm262_vm4 = vcmp.ge.f32.partialorder %v198_v28, 0.0  ;;  %v67_v7 = vld [vmem:[#allocation2 + $0x78] sm:$0xff]  ;;  %v68_v12 = vld [vmem:[#allocation2 + $0x80] sm:$0xff]  ;;  %v69_v13 = vld [vmem:[#allocation2 + $0x88] sm:$0xff] }
  0x41   :  { %v921_v30 = vpack.c.bf16 %v387_v27, %v386_v26  ;;  %v388_v31 = vsel %vm260_vm2, %v196_v18, %v324_v24  ;;  %v389_v32 = vsel %vm261_vm3, %v197_v19, %v325_v25  ;;  %vm263_vm5 = vcmp.ge.f32.partialorder %v199_v29, 0.0  ;;  %v70_v20 = vld [vmem:[#allocation2 + $0x90] sm:$0xff]  ;;  %v71_v25 = vld [vmem:[#allocation2 + $0x98] sm:$0xff] }
  0x42   :  { %v926_v37 = vpack.c.bf16 %v389_v32, %v388_v31  ;;  %v326_v38 = vmul.f32 0.2, %v198_v28  ;;  %v327_v39 = vmul.f32 0.2, %v199_v29  ;;  %v201_v40 = vadd.f32 %v1286_v5, %v130_v21 }
  0x43   :  { %922 = vst [vmem:[#allocation8] sm:$0xff] %v921_v30   ;;  %vm264_vm6 = vcmp.ge.f32.partialorder %v200_v33, 0.0  ;;  %v328_v41 = vmul.f32 0.2, %v200_v33  ;;  %v131_v44 = vmul.f32 %v1282_v2, %v60_v34  ;;  %v132_v45 = vmul.f32 %v1282_v2, %v61_v35 }
  0x44   :  { %1078 = vst [vmem:[#allocation8 + $0x8] sm:$0xff] %v926_v37   ;;  %v390_v43 = vsel %vm262_vm4, %v198_v28, %v326_v38  ;;  %v133_v46 = vmul.f32 %v1282_v2, %v62_v36  ;;  %v391_v49 = vsel %vm263_vm5, %v199_v29, %v327_v39  ;;  %vm265_vm7 = vcmp.ge.f32.partialorder %v201_v40, 0.0  ;;  %v73_v37 = vld [vmem:[#allocation2 + $0xa8] sm:$0xff] }
  0x45   :  { %v329_v50 = vmul.f32 0.2, %v201_v40  ;;  %v392_v51 = vsel %vm264_vm6, %v200_v33, %v328_v41  ;;  %v931_v52 = vpack.c.bf16 %v391_v49, %v390_v43  ;;  %v202_v53 = vadd.f32 %v1286_v5, %v131_v44  ;;  %v72_v33 = vld [vmem:[#allocation2 + $0xa0] sm:$0xff]  ;;  %v74_v44 = vld [vmem:[#allocation2 + $0xb0] sm:$0xff]  ;;  %v75_v49 = vld [vmem:[#allocation2 + $0xb8] sm:$0xff] }
  0x46   :  { %v203_v54 = vadd.f32 %v1286_v5, %v132_v45  ;;  %v134_v55 = vmul.f32 %v1282_v2, %v63_v42  ;;  %v204_v57 = vadd.f32 %v1286_v5, %v133_v46  ;;  %v135_v58 = vmul.f32 %v1282_v2, %v64_v47 }
  0x47   :  { %v393_v56 = vsel %vm265_vm7, %v201_v40, %v329_v50  ;;  %v136_v59 = vmul.f32 %v1282_v2, %v65_v48  ;;  %1079 = vst [vmem:[#allocation8 + $0x10] sm:$0xff] %v931_v52   ;;  %vm266_vm8 = vcmp.ge.f32.partialorder %v202_v53, 0.0  ;;  %v330_v62 = vmul.f32 0.2, %v202_v53  ;;  %v76_v50 = vld [vmem:[#allocation2 + $0xc0] sm:$0xff] }
  0x48   :  { %v936_v61 = vpack.c.bf16 %v393_v56, %v392_v51  ;;  %vm267_vm9 = vcmp.ge.f32.partialorder %v203_v54, 0.0  ;;  %v331_v63 = vmul.f32 0.2, %v203_v54  ;;  %v205_v0 = vadd.f32 %v1286_v5, %v134_v55  ;;  %v77_v51 = vld [vmem:[#allocation2 + $0xc8] sm:$0xff] }
  0x49   :  { %vm268_vm10 = vcmp.ge.f32.partialorder %v204_v57, 0.0  ;;  %v332_v1 = vmul.f32 0.2, %v204_v57  ;;  %v394_v3 = vsel %vm266_vm8, %v202_v53, %v330_v62  ;;  %v206_v4 = vadd.f32 %v1286_v5, %v135_v58  ;;  %v78_v62 = vld [vmem:[#allocation2 + $0xd0] sm:$0xff] }
  0x4a   :  { %1080 = vst [vmem:[#allocation8 + $0x18] sm:$0xff] %v936_v61   ;;  %v207_v6 = vadd.f32 %v1286_v5, %v136_v59  ;;  %v137_v8 = vmul.f32 %v1282_v2, %v66_v60  ;;  %v395_v9 = vsel %vm267_vm9, %v203_v54, %v331_v63  ;;  %vm269_vm11 = vcmp.ge.f32.partialorder %v205_v0, 0.0 }
  0x4b   :  { %v333_v10 = vmul.f32 0.2, %v205_v0  ;;  %v396_v11 = vsel %vm268_vm10, %v204_v57, %v332_v1  ;;  %v941_v14 = vpack.c.bf16 %v395_v9, %v394_v3  ;;  %vm270_vm12 = vcmp.ge.f32.partialorder %v206_v4, 0.0 }
  0x4c   :  { %vm271_vm13 = vcmp.ge.f32.partialorder %v207_v6, 0.0  ;;  %v334_v15 = vmul.f32 0.2, %v206_v4  ;;  %v335_v17 = vmul.f32 0.2, %v207_v6  ;;  %v138_v18 = vmul.f32 %v1282_v2, %v67_v7 }
  0x4d   :  { %v397_v16 = vsel %vm269_vm11, %v205_v0, %v333_v10  ;;  %v208_v19 = vadd.f32 %v1286_v5, %v137_v8  ;;  %1081 = vst [vmem:[#allocation8 + $0x20] sm:$0xff] %v941_v14   ;;  %v139_v23 = vmul.f32 %v1282_v2, %v68_v12  ;;  %v140_v24 = vmul.f32 %v1282_v2, %v69_v13  ;;  %v79_v10 = vld [vmem:[#allocation2 + $0xd8] sm:$0xff]  ;;  %v80_v14 = vld [vmem:[#allocation2 + $0xe0] sm:$0xff] }
  0x4e   :  { %v946_v21 = vpack.c.bf16 %v397_v16, %v396_v11  ;;  %v398_v22 = vsel %vm270_vm12, %v206_v4, %v334_v15  ;;  %v399_v26 = vsel %vm271_vm13, %v207_v6, %v335_v17  ;;  %v209_v27 = vadd.f32 %v1286_v5, %v138_v18  ;;  %v81_v15 = vld [vmem:[#allocation2 + $0xe8] sm:$0xff] }
  0x4f   :  { %vm272_vm14 = vcmp.ge.f32.partialorder %v208_v19, 0.0  ;;  %v336_v28 = vmul.f32 0.2, %v208_v19  ;;  %v951_v29 = vpack.c.bf16 %v399_v26, %v398_v22  ;;  %v210_v30 = vadd.f32 %v1286_v5, %v139_v23  ;;  %v82_v26 = vld [vmem:[#allocation2 + $0xf0] sm:$0xff] }
  0x50   :  { %1082 = vst [vmem:[#allocation8 + $0x28] sm:$0xff] %v946_v21   ;;  %v211_v31 = vadd.f32 %v1286_v5, %v140_v24  ;;  %v141_v32 = vmul.f32 %v1282_v2, %v70_v20  ;;  %vm273_vm15 = vcmp.ge.f32.partialorder %v209_v27, 0.0  ;;  %v337_v34 = vmul.f32 0.2, %v209_v27 }
  0x51   :  { %v400_v35 = vsel %vm272_vm14, %v208_v19, %v336_v28  ;;  %v142_v36 = vmul.f32 %v1282_v2, %v71_v25  ;;  %1083 = vst [vmem:[#allocation8 + $0x30] sm:$0xff] %v951_v29   ;;  %vm274_vm0 = vcmp.ge.f32.partialorder %v210_v30, 0.0  ;;  %v338_v38 = vmul.f32 0.2, %v210_v30 }
  0x52   :  { %vm275_vm1 = vcmp.ge.f32.partialorder %v211_v31, 0.0  ;;  %v339_v39 = vmul.f32 0.2, %v211_v31  ;;  %v401_v40 = vsel %vm273_vm15, %v209_v27, %v337_v34  ;;  %v212_v41 = vadd.f32 %v1286_v5, %v141_v32 }
  0x53   :  { %v213_v42 = vadd.f32 %v1286_v5, %v142_v36  ;;  %v143_v43 = vmul.f32 %v1282_v2, %v72_v33  ;;  %v956_v45 = vpack.c.bf16 %v401_v40, %v400_v35  ;;  %v402_v46 = vsel %vm274_vm0, %v210_v30, %v338_v38  ;;  %v84_v38 = vld [vmem:[#allocation2 + $0x100] sm:$0xff] }
  0x54   :  { %v403_v47 = vsel %vm275_vm1, %v211_v31, %v339_v39  ;;  %v144_v48 = vmul.f32 %v1282_v2, %v73_v37  ;;  %vm276_vm2 = vcmp.ge.f32.partialorder %v212_v41, 0.0  ;;  %v340_v53 = vmul.f32 0.2, %v212_v41  ;;  %v83_v31 = vld [vmem:[#allocation2 + $0xf8] sm:$0xff] }
  0x55   :  { %v961_v52 = vpack.c.bf16 %v403_v47, %v402_v46  ;;  %vm277_vm3 = vcmp.ge.f32.partialorder %v213_v42, 0.0  ;;  %1084 = vst [vmem:[#allocation8 + $0x38] sm:$0xff] %v956_v45   ;;  %v341_v54 = vmul.f32 0.2, %v213_v42  ;;  %v214_v55 = vadd.f32 %v1286_v5, %v143_v43 }
  0x56   :  { %v215_v56 = vadd.f32 %v1286_v5, %v144_v48  ;;  %v145_v57 = vmul.f32 %v1282_v2, %v74_v44  ;;  %v404_v58 = vsel %vm276_vm2, %v212_v41, %v340_v53  ;;  %v146_v59 = vmul.f32 %v1282_v2, %v75_v49 }
  0x57   :  { %1085 = vst [vmem:[#allocation8 + $0x40] sm:$0xff] %v961_v52   ;;  %v147_v60 = vmul.f32 %v1282_v2, %v76_v50  ;;  %v148_v61 = vmul.f32 %v1282_v2, %v77_v51  ;;  %v405_v63 = vsel %vm277_vm3, %v213_v42, %v341_v54  ;;  %vm278_vm4 = vcmp.ge.f32.partialorder %v214_v55, 0.0  ;;  %v85_v42 = vld [vmem:[#allocation2 + $0x108] sm:$0xff]  ;;  %v86_v50 = vld [vmem:[#allocation2 + $0x110] sm:$0xff]  ;;  %v87_v51 = vld [vmem:[#allocation2 + $0x118] sm:$0xff] }
  0x58   :  { %vm279_vm5 = vcmp.ge.f32.partialorder %v215_v56, 0.0  ;;  %v342_v0 = vmul.f32 0.2, %v214_v55  ;;  %v966_v1 = vpack.c.bf16 %v405_v63, %v404_v58  ;;  %v343_v3 = vmul.f32 0.2, %v215_v56  ;;  %v89_v63 = vld [vmem:[#allocation2 + $0x128] sm:$0xff] }
  0x59   :  { %v216_v4 = vadd.f32 %v1286_v5, %v145_v57  ;;  %v217_v6 = vadd.f32 %v1286_v5, %v146_v59  ;;  %v218_v8 = vadd.f32 %v1286_v5, %v147_v60  ;;  %v219_v9 = vadd.f32 %v1286_v5, %v148_v61 }
  0x5a   :  { %v406_v7 = vsel %vm278_vm4, %v214_v55, %v342_v0  ;;  %v149_v11 = vmul.f32 %v1282_v2, %v78_v62  ;;  %1086 = vst [vmem:[#allocation8 + $0x48] sm:$0xff] %v966_v1   ;;  %v407_v12 = vsel %vm279_vm5, %v215_v56, %v343_v3  ;;  %v150_v21 = vmul.f32 %v1282_v2, %v79_v10  ;;  %v88_v55 = vld [vmem:[#allocation2 + $0x120] sm:$0xff] }
  0x5b   :  { %vm280_vm6 = vcmp.ge.f32.partialorder %v216_v4, 0.0  ;;  %vm281_vm7 = vcmp.ge.f32.partialorder %v217_v6, 0.0  ;;  %v344_v13 = vmul.f32 0.2, %v216_v4  ;;  %v971_v16 = vpack.c.bf16 %v407_v12, %v406_v7 }
  0x5c   :  { %v345_v17 = vmul.f32 0.2, %v217_v6  ;;  %vm282_vm8 = vcmp.ge.f32.partialorder %v218_v8, 0.0  ;;  %vm283_vm9 = vcmp.ge.f32.partialorder %v219_v9, 0.0  ;;  %v346_v19 = vmul.f32 0.2, %v218_v8 }
  0x5d   :  { %v408_v18 = vsel %vm280_vm6, %v216_v4, %v344_v13  ;;  %v347_v20 = vmul.f32 0.2, %v219_v9  ;;  %1087 = vst [vmem:[#allocation8 + $0x50] sm:$0xff] %v971_v16   ;;  %v220_v23 = vadd.f32 %v1286_v5, %v149_v11  ;;  %v151_v24 = vmul.f32 %v1282_v2, %v80_v14  ;;  %v90_v4 = vld [vmem:[#allocation2 + $0x130] sm:$0xff]  ;;  %v91_v13 = vld [vmem:[#allocation2 + $0x138] sm:$0xff] }
  0x5e   :  { %v409_v22 = vsel %vm281_vm7, %v217_v6, %v345_v17  ;;  %v152_v25 = vmul.f32 %v1282_v2, %v81_v15  ;;  %v410_v28 = vsel %vm282_vm8, %v218_v8, %v346_v19  ;;  %v221_v30 = vadd.f32 %v1286_v5, %v150_v21 }
  0x5f   :  { %v976_v27 = vpack.c.bf16 %v409_v22, %v408_v18  ;;  %v411_v29 = vsel %vm283_vm9, %v219_v9, %v347_v20  ;;  %vm284_vm10 = vcmp.ge.f32.partialorder %v220_v23, 0.0  ;;  %v348_v33 = vmul.f32 0.2, %v220_v23  ;;  %v92_v20 = vld [vmem:[#allocation2 + $0x140] sm:$0xff] }
  0x60   :  { %v981_v32 = vpack.c.bf16 %v411_v29, %v410_v28  ;;  %v222_v34 = vadd.f32 %v1286_v5, %v151_v24  ;;  %vm285_vm11 = vcmp.ge.f32.partialorder %v221_v30, 0.0  ;;  %v349_v35 = vmul.f32 0.2, %v221_v30  ;;  %v93_v24 = vld [vmem:[#allocation2 + $0x148] sm:$0xff] }
  0x61   :  { %1088 = vst [vmem:[#allocation8 + $0x58] sm:$0xff] %v976_v27   ;;  %v223_v36 = vadd.f32 %v1286_v5, %v152_v25  ;;  %v153_v37 = vmul.f32 %v1282_v2, %v82_v26  ;;  %v412_v39 = vsel %vm284_vm10, %v220_v23, %v348_v33  ;;  %v154_v41 = vmul.f32 %v1282_v2, %v83_v31  ;;  %v95_v33 = vld [vmem:[#allocation2 + $0x158] sm:$0xff] }
  0x62   :  { %1089 = vst [vmem:[#allocation8 + $0x60] sm:$0xff] %v981_v32   ;;  %vm286_vm12 = vcmp.ge.f32.partialorder %v222_v34, 0.0  ;;  %v350_v40 = vmul.f32 0.2, %v222_v34  ;;  %v413_v43 = vsel %vm285_vm11, %v221_v30, %v349_v35  ;;  %v155_v49 = vmul.f32 %v1282_v2, %v84_v38  ;;  %v94_v32 = vld [vmem:[#allocation2 + $0x150] sm:$0xff] }
  0x63   :  { %vm287_vm13 = vcmp.ge.f32.partialorder %v223_v36, 0.0  ;;  %v351_v44 = vmul.f32 0.2, %v223_v36  ;;  %v224_v45 = vadd.f32 %v1286_v5, %v153_v37  ;;  %v986_v46 = vpack.c.bf16 %v413_v43, %v412_v39  ;;  %v96_v37 = vld [vmem:[#allocation2 + $0x160] sm:$0xff] }
  0x64   :  { %v414_v47 = vsel %vm286_vm12, %v222_v34, %v350_v40  ;;  %v225_v48 = vadd.f32 %v1286_v5, %v154_v41  ;;  %v156_v54 = vmul.f32 %v1282_v2, %v85_v42  ;;  %v226_v58 = vadd.f32 %v1286_v5, %v155_v49  ;;  %v98_v49 = vld [vmem:[#allocation2 + $0x170] sm:$0xff] }
  0x65   :  { %v415_v52 = vsel %vm287_vm13, %v223_v36, %v351_v44  ;;  %vm288_vm14 = vcmp.ge.f32.partialorder %v224_v45, 0.0  ;;  %v352_v53 = vmul.f32 0.2, %v224_v45  ;;  %1090 = vst [vmem:[#allocation8 + $0x68] sm:$0xff] %v986_v46   ;;  %v157_v61 = vmul.f32 %v1282_v2, %v86_v50 }
  0x66   :  { %v991_v56 = vpack.c.bf16 %v415_v52, %v414_v47  ;;  %vm289_vm15 = vcmp.ge.f32.partialorder %v225_v48, 0.0  ;;  %v353_v57 = vmul.f32 0.2, %v225_v48  ;;  %v227_v60 = vadd.f32 %v1286_v5, %v156_v54 }
  0x67   :  { %v416_v59 = vsel %vm288_vm14, %v224_v45, %v352_v53  ;;  %v158_v62 = vmul.f32 %v1282_v2, %v87_v51  ;;  %vm290_vm0 = vcmp.ge.f32.partialorder %v226_v58, 0.0  ;;  %v354_v1 = vmul.f32 0.2, %v226_v58  ;;  %v97_v45 = vld [vmem:[#allocation2 + $0x168] sm:$0xff] }
  0x68   :  { %1091 = vst [vmem:[#allocation8 + $0x70] sm:$0xff] %v991_v56   ;;  %v417_v0 = vsel %vm289_vm15, %v225_v48, %v353_v57  ;;  %v159_v3 = vmul.f32 %v1282_v2, %v88_v55  ;;  %vm291_vm1 = vcmp.ge.f32.partialorder %v227_v60, 0.0  ;;  %v355_v7 = vmul.f32 0.2, %v227_v60  ;;  %v99_v57 = vld [vmem:[#allocation2 + $0x178] sm:$0xff] }
  0x69   :  { %v996_v6 = vpack.c.bf16 %v417_v0, %v416_v59  ;;  %v228_v8 = vadd.f32 %v1286_v5, %v157_v61  ;;  %v418_v9 = vsel %vm290_vm0, %v226_v58, %v354_v1  ;;  %v229_v10 = vadd.f32 %v1286_v5, %v158_v62  ;;  %v100_v0 = vld [vmem:[#allocation2 + $0x180] sm:$0xff] }
  0x6a   :  { %v160_v11 = vmul.f32 %v1282_v2, %v89_v63  ;;  %v230_v12 = vadd.f32 %v1286_v5, %v159_v3  ;;  %v419_v14 = vsel %vm291_vm1, %v227_v60, %v355_v7  ;;  %v161_v16 = vmul.f32 %v1282_v2, %v90_v4 }
  0x6b   :  { %1092 = vst [vmem:[#allocation8 + $0x78] sm:$0xff] %v996_v6   ;;  %vm292_vm2 = vcmp.ge.f32.partialorder %v228_v8, 0.0  ;;  %v356_v15 = vmul.f32 0.2, %v228_v8  ;;  %v1001_v17 = vpack.c.bf16 %v419_v14, %v418_v9  ;;  %vm293_vm3 = vcmp.ge.f32.partialorder %v229_v10, 0.0  ;;  %v101_v6 = vld [vmem:[#allocation2 + $0x188] sm:$0xff] }
  0x6c   :  { %v357_v18 = vmul.f32 0.2, %v229_v10  ;;  %v231_v19 = vadd.f32 %v1286_v5, %v160_v11  ;;  %vm294_vm4 = vcmp.ge.f32.partialorder %v230_v12, 0.0  ;;  %v358_v22 = vmul.f32 0.2, %v230_v12  ;;  %v102_v14 = vld [vmem:[#allocation2 + $0x190] sm:$0xff] }
  0x6d   :  { %v420_v21 = vsel %vm292_vm2, %v228_v8, %v356_v15  ;;  %v162_v23 = vmul.f32 %v1282_v2, %v91_v13  ;;  %1093 = vst [vmem:[#allocation8 + $0x80] sm:$0xff] %v1001_v17   ;;  %v232_v27 = vadd.f32 %v1286_v5, %v161_v16  ;;  %v163_v31 = vmul.f32 %v1282_v2, %v92_v20  ;;  %v103_v15 = vld [vmem:[#allocation2 + $0x198] sm:$0xff] }
  0x6e   :  { %v421_v25 = vsel %vm293_vm3, %v229_v10, %v357_v18  ;;  %vm295_vm5 = vcmp.ge.f32.partialorder %v231_v19, 0.0  ;;  %v359_v26 = vmul.f32 0.2, %v231_v19  ;;  %v422_v29 = vsel %vm294_vm4, %v230_v12, %v358_v22 }
  0x6f   :  { %v1006_v28 = vpack.c.bf16 %v421_v25, %v420_v21  ;;  %v233_v30 = vadd.f32 %v1286_v5, %v162_v23  ;;  %vm296_vm6 = vcmp.ge.f32.partialorder %v232_v27, 0.0  ;;  %v360_v35 = vmul.f32 0.2, %v232_v27 }
  0x70   :  { %v423_v34 = vsel %vm295_vm5, %v231_v19, %v359_v26  ;;  %v164_v36 = vmul.f32 %v1282_v2, %v93_v24  ;;  %v234_v40 = vadd.f32 %v1286_v5, %v163_v31  ;;  %v165_v43 = vmul.f32 %v1282_v2, %v94_v32  ;;  %v104_v19 = vld [vmem:[#allocation2 + $0x1a0] sm:$0xff]  ;;  %v106_v31 = vld [vmem:[#allocation2 + $0x1b0] sm:$0xff] }
  0x71   :  { %1094 = vst [vmem:[#allocation8 + $0x88] sm:$0xff] %v1006_v28   ;;  %v1011_v38 = vpack.c.bf16 %v423_v34, %v422_v29  ;;  %vm297_vm7 = vcmp.ge.f32.partialorder %v233_v30, 0.0  ;;  %v361_v39 = vmul.f32 0.2, %v233_v30  ;;  %v424_v41 = vsel %vm296_vm6, %v232_v27, %v360_v35  ;;  %v105_v27 = vld [vmem:[#allocation2 + $0x1a8] sm:$0xff] }
  0x72   :  { %v235_v42 = vadd.f32 %v1286_v5, %v164_v36  ;;  %v166_v44 = vmul.f32 %v1282_v2, %v95_v33  ;;  %vm298_vm8 = vcmp.ge.f32.partialorder %v234_v40, 0.0  ;;  %v362_v47 = vmul.f32 0.2, %v234_v40 }
  0x73   :  { %1095 = vst [vmem:[#allocation8 + $0x90] sm:$0xff] %v1011_v38   ;;  %v425_v46 = vsel %vm297_vm7, %v233_v30, %v361_v39  ;;  %v167_v48 = vmul.f32 %v1282_v2, %v96_v37  ;;  %v236_v52 = vadd.f32 %v1286_v5, %v165_v43  ;;  %v168_v55 = vmul.f32 %v1282_v2, %v97_v45  ;;  %v107_v39 = vld [vmem:[#allocation2 + $0x1b8] sm:$0xff] }
  0x74   :  { %v1016_v50 = vpack.c.bf16 %v425_v46, %v424_v41  ;;  %vm299_vm9 = vcmp.ge.f32.partialorder %v235_v42, 0.0  ;;  %v363_v51 = vmul.f32 0.2, %v235_v42  ;;  %v426_v53 = vsel %vm298_vm8, %v234_v40, %v362_v47  ;;  %v108_v46 = vld [vmem:[#allocation2 + $0x1c0] sm:$0xff] }
  0x75   :  { %v237_v54 = vadd.f32 %v1286_v5, %v166_v44  ;;  %v238_v56 = vadd.f32 %v1286_v5, %v167_v48  ;;  %vm300_vm10 = vcmp.ge.f32.partialorder %v236_v52, 0.0  ;;  %v364_v59 = vmul.f32 0.2, %v236_v52 }
  0x76   :  { %1096 = vst [vmem:[#allocation8 + $0x98] sm:$0xff] %v1016_v50   ;;  %v427_v58 = vsel %vm299_vm9, %v235_v42, %v363_v51  ;;  %v169_v60 = vmul.f32 %v1282_v2, %v98_v49  ;;  %v239_v63 = vadd.f32 %v1286_v5, %v168_v55  ;;  %v170_v4 = vmul.f32 %v1282_v2, %v99_v57  ;;  %v109_v50 = vld [vmem:[#allocation2 + $0x1c8] sm:$0xff] }
  0x77   :  { %v1021_v61 = vpack.c.bf16 %v427_v58, %v426_v53  ;;  %vm301_vm11 = vcmp.ge.f32.partialorder %v237_v54, 0.0  ;;  %v365_v62 = vmul.f32 0.2, %v237_v54  ;;  %v428_v1 = vsel %vm300_vm10, %v236_v52, %v364_v59  ;;  %v110_v58 = vld [vmem:[#allocation2 + $0x1d0] sm:$0xff]  ;;  %v111_v59 = vld [vmem:[#allocation2 + $0x1d8] sm:$0xff] }
  0x78   :  { %vm302_vm12 = vcmp.ge.f32.partialorder %v238_v56, 0.0  ;;  %v366_v3 = vmul.f32 0.2, %v238_v56  ;;  %vm303_vm13 = vcmp.ge.f32.partialorder %v239_v63, 0.0  ;;  %v367_v8 = vmul.f32 0.2, %v239_v63 }
  0x79   :  { %1097 = vst [vmem:[#allocation8 + $0xa0] sm:$0xff] %v1021_v61   ;;  %v429_v7 = vsel %vm301_vm11, %v237_v54, %v365_v62  ;;  %v240_v9 = vadd.f32 %v1286_v5, %v169_v60  ;;  %v241_v12 = vadd.f32 %v1286_v5, %v170_v4  ;;  %v171_v13 = vmul.f32 %v1282_v2, %v100_v0 }
  0x7a   :  { %v1026_v10 = vpack.c.bf16 %v429_v7, %v428_v1  ;;  %v430_v11 = vsel %vm302_vm12, %v238_v56, %v366_v3  ;;  %v431_v16 = vsel %vm303_vm13, %v239_v63, %v367_v8  ;;  %v172_v18 = vmul.f32 %v1282_v2, %v101_v6  ;;  %v112_v63 = vld [vmem:[#allocation2 + $0x1e0] sm:$0xff] }
  0x7b   :  { %vm304_vm14 = vcmp.ge.f32.partialorder %v240_v9, 0.0  ;;  %v368_v17 = vmul.f32 0.2, %v240_v9  ;;  %v1031_v20 = vpack.c.bf16 %v431_v16, %v430_v11  ;;  %vm305_vm15 = vcmp.ge.f32.partialorder %v241_v12, 0.0 }
  0x7c   :  { %1098 = vst [vmem:[#allocation8 + $0xa8] sm:$0xff] %v1026_v10   ;;  %v369_v21 = vmul.f32 0.2, %v241_v12  ;;  %v242_v22 = vadd.f32 %v1286_v5, %v171_v13  ;;  %v243_v24 = vadd.f32 %v1286_v5, %v172_v18  ;;  %v173_v25 = vmul.f32 %v1282_v2, %v102_v14  ;;  %v114_v13 = vld [vmem:[#allocation2 + $0x1f0] sm:$0xff] }
  0x7d   :  { %v432_v23 = vsel %vm304_vm14, %v240_v9, %v368_v17  ;;  %v174_v26 = vmul.f32 %v1282_v2, %v103_v15  ;;  %1099 = vst [vmem:[#allocation8 + $0xb0] sm:$0xff] %v1031_v20   ;;  %v175_v30 = vmul.f32 %v1282_v2, %v104_v19  ;;  %v176_v37 = vmul.f32 %v1282_v2, %v105_v27  ;;  %v113_v9 = vld [vmem:[#allocation2 + $0x1e8] sm:$0xff] }
  0x7e   :  { %v433_v28 = vsel %vm305_vm15, %v241_v12, %v369_v21  ;;  %vm306_vm0 = vcmp.ge.f32.partialorder %v242_v22, 0.0  ;;  %v370_v29 = vmul.f32 0.2, %v242_v22  ;;  %vm307_vm1 = vcmp.ge.f32.partialorder %v243_v24, 0.0  ;;  %v115_v21 = vld [vmem:[#allocation2 + $0x1f8] sm:$0xff] }
  0x7f   :  { %v1036_v32 = vpack.c.bf16 %v433_v28, %v432_v23  ;;  %v371_v33 = vmul.f32 0.2, %v243_v24  ;;  %v244_v34 = vadd.f32 %v1286_v5, %v173_v25  ;;  %v245_v36 = vadd.f32 %v1286_v5, %v174_v26 }
  0x80   :  { %v434_v35 = vsel %vm306_vm0, %v242_v22, %v370_v29  ;;  %v246_v38 = vadd.f32 %v1286_v5, %v175_v30  ;;  %v177_v42 = vmul.f32 %v1282_v2, %v106_v31  ;;  %v247_v45 = vadd.f32 %v1286_v5, %v176_v37 }
  0x81   :  { %1100 = vst [vmem:[#allocation8 + $0xb8] sm:$0xff] %v1036_v32   ;;  %v435_v40 = vsel %vm307_vm1, %v243_v24, %v371_v33  ;;  %vm308_vm2 = vcmp.ge.f32.partialorder %v244_v34, 0.0  ;;  %v372_v41 = vmul.f32 0.2, %v244_v34  ;;  %vm309_vm3 = vcmp.ge.f32.partialorder %v245_v36, 0.0 }
  0x82   :  { %v1041_v43 = vpack.c.bf16 %v435_v40, %v434_v35  ;;  %v373_v44 = vmul.f32 0.2, %v245_v36  ;;  %vm310_vm4 = vcmp.ge.f32.partialorder %v246_v38, 0.0  ;;  %v374_v48 = vmul.f32 0.2, %v246_v38 }
  0x83   :  { %v436_v47 = vsel %vm308_vm2, %v244_v34, %v372_v41  ;;  %v178_v49 = vmul.f32 %v1282_v2, %v107_v39  ;;  %vm311_vm5 = vcmp.ge.f32.partialorder %v247_v45, 0.0  ;;  %v375_v52 = vmul.f32 0.2, %v247_v45 }
  0x84   :  { %1101 = vst [vmem:[#allocation8 + $0xc0] sm:$0xff] %v1041_v43   ;;  %v437_v51 = vsel %vm309_vm3, %v245_v36, %v373_v44  ;;  %v248_v53 = vadd.f32 %v1286_v5, %v177_v42  ;;  %v438_v55 = vsel %vm310_vm4, %v246_v38, %v374_v48  ;;  %v179_v57 = vmul.f32 %v1282_v2, %v108_v46 }
  0x85   :  { %v1046_v54 = vpack.c.bf16 %v437_v51, %v436_v47  ;;  %v249_v56 = vadd.f32 %v1286_v5, %v178_v49  ;;  %v439_v60 = vsel %vm311_vm5, %v247_v45, %v375_v52  ;;  %v180_v62 = vmul.f32 %v1282_v2, %v109_v50 }
  0x86   :  { %vm312_vm6 = vcmp.ge.f32.partialorder %v248_v53, 0.0  ;;  %v376_v61 = vmul.f32 0.2, %v248_v53  ;;  %v1051_v0 = vpack.c.bf16 %v439_v60, %v438_v55  ;;  %v250_v3 = vadd.f32 %v1286_v5, %v179_v57 }
  0x87   :  { %1102 = vst [vmem:[#allocation8 + $0xc8] sm:$0xff] %v1046_v54   ;;  %vm313_vm7 = vcmp.ge.f32.partialorder %v249_v56, 0.0  ;;  %v377_v1 = vmul.f32 0.2, %v249_v56  ;;  %v251_v6 = vadd.f32 %v1286_v5, %v180_v62  ;;  %v181_v7 = vmul.f32 %v1282_v2, %v110_v58 }
  0x88   :  { %v440_v4 = vsel %vm312_vm6, %v248_v53, %v376_v61  ;;  %v182_v8 = vmul.f32 %v1282_v2, %v111_v59  ;;  %1103 = vst [vmem:[#allocation8 + $0xd0] sm:$0xff] %v1051_v0   ;;  %vm314_vm8 = vcmp.ge.f32.partialorder %v250_v3, 0.0  ;;  %v378_v11 = vmul.f32 0.2, %v250_v3 }
  0x89   :  { %v441_v10 = vsel %vm313_vm7, %v249_v56, %v377_v1  ;;  %v183_v12 = vmul.f32 %v1282_v2, %v112_v63  ;;  %vm315_vm9 = vcmp.ge.f32.partialorder %v251_v6, 0.0  ;;  %v379_v15 = vmul.f32 0.2, %v251_v6 }
  0x8a   :  { %v1056_v14 = vpack.c.bf16 %v441_v10, %v440_v4  ;;  %v252_v16 = vadd.f32 %v1286_v5, %v181_v7  ;;  %v442_v17 = vsel %vm314_vm8, %v250_v3, %v378_v11  ;;  %v253_v18 = vadd.f32 %v1286_v5, %v182_v8 }
  0x8b   :  { %v184_v19 = vmul.f32 %v1282_v2, %v113_v9  ;;  %v254_v20 = vadd.f32 %v1286_v5, %v183_v12  ;;  %v443_v22 = vsel %vm315_vm9, %v251_v6, %v379_v15  ;;  %v185_v24 = vmul.f32 %v1282_v2, %v114_v13 }
  0x8c   :  { %1104 = vst [vmem:[#allocation8 + $0xd8] sm:$0xff] %v1056_v14   ;;  %vm316_vm10 = vcmp.ge.f32.partialorder %v252_v16, 0.0  ;;  %v380_v23 = vmul.f32 0.2, %v252_v16  ;;  %v1061_v25 = vpack.c.bf16 %v443_v22, %v442_v17  ;;  %vm317_vm11 = vcmp.ge.f32.partialorder %v253_v18, 0.0 }
  0x8d   :  { %v381_v26 = vmul.f32 0.2, %v253_v18  ;;  %v255_v27 = vadd.f32 %v1286_v5, %v184_v19  ;;  %vm318_vm12 = vcmp.ge.f32.partialorder %v254_v20, 0.0  ;;  %v382_v29 = vmul.f32 0.2, %v254_v20 }
  0x8e   :  { %v444_v28 = vsel %vm316_vm10, %v252_v16, %v380_v23  ;;  %v186_v30 = vmul.f32 %v1282_v2, %v115_v21  ;;  %1105 = vst [vmem:[#allocation8 + $0xe0] sm:$0xff] %v1061_v25   ;;  %v256_v33 = vadd.f32 %v1286_v5, %v185_v24 }
  0x8f   :  { %v445_v31 = vsel %vm317_vm11, %v253_v18, %v381_v26  ;;  %vm319_vm13 = vcmp.ge.f32.partialorder %v255_v27, 0.0  ;;  %v383_v32 = vmul.f32 0.2, %v255_v27  ;;  %v446_v35 = vsel %vm318_vm12, %v254_v20, %v382_v29 }
  0x90   :  { %v1066_v34 = vpack.c.bf16 %v445_v31, %v444_v28  ;;  %v257_v36 = vadd.f32 %v1286_v5, %v186_v30  ;;  %vm320_vm14 = vcmp.ge.f32.partialorder %v256_v33, 0.0  ;;  %v384_v38 = vmul.f32 0.2, %v256_v33 }
  0x91   :  { %v447_v37 = vsel %vm319_vm13, %v255_v27, %v383_v32 }
  0x92   :  { %1106 = vst [vmem:[#allocation8 + $0xe8] sm:$0xff] %v1066_v34   ;;  %v1071_v39 = vpack.c.bf16 %v447_v37, %v446_v35  ;;  %vm321_vm15 = vcmp.ge.f32.partialorder %v257_v36, 0.0  ;;  %v385_v40 = vmul.f32 0.2, %v257_v36  ;;  %v448_v2 = vsel %vm320_vm14, %v256_v33, %v384_v38 }
  0x94   :  { %1107 = vst [vmem:[#allocation8 + $0xf0] sm:$0xff] %v1071_v39   ;;  %v449_v41 = vsel %vm321_vm15, %v257_v36, %v385_v40 }
  0x95   :  { %v1076_v42 = vpack.c.bf16 %v449_v41, %v448_v2 }
  0x97   :  { %1108 = vst [vmem:[#allocation8 + $0xf8] sm:$0xff] %v1076_v42  }
  0x98   :  { %1194 = shalt.err (!%p1191_p0)
}
  0x99   :  { %s1195_s27 = scalar_lea.hbm %s1429_s3, 4096 }
  0x9a   :  { %p1196_p1 = scmp.ne.s32.totalorder %s1429_s3, %s1195_s27  ;;  %p1199_p2 = scmp.lt.u32.totalorder %s1195_s27, %s1429_s3 }
  0x9c   :  { %p1201_p3 = pnand %p1199_p2, %p1196_p1 }
  0x9e   :  { %1204 = shalt.err (!%p1201_p3)
}
  0x9f   :  { %s1217_s5 = smov 64   ;;  %s1218_s6 = smov 4  }
  0xa0   :  { %781 = dma.vmem_to_hbm [thread:$0]  %s776_s23, 4096, %s1429_s3, [#allocation4], %s1217_s5, %s1217_s5, %s1218_s6  }
  0xa1   :  { %1209 = dma.done.wait [#allocation4], 4096  }
  0xa2   :  { %1210 = vsyncadd [#allocation4], 4294963200 }
  0xa3   :  { %785 = vsyncpa [#allocation3], 1 }
  0xa4   :  { %786 = vsyncpa [#allocation6], 1 }
  0xa5   :  { %787 = vsyncpa [#allocation4], 1 }

// kernel: discriminator_forward.12
= control target key start
LH: loop header
LB: loop body
LE: loop exit
PB: predicated region body
PF: predicated region fallthrough
CT: control target
= control target key end

     0   :  { %8 = vsyncpa [#allocation3], 0  ;;  %s562_s0 = inlined_call_operand.hbm [shape: f32[128,128], index: 0, kind: input, shape index: {}]   ;;  %s563_s1 = inlined_call_operand.hbm [shape: f32[1,128], index: 1, kind: input, shape index: {}]   ;;  %s564_s2 = inlined_call_operand.hbm [shape: f32[1,128], index: 2, kind: input, shape index: {}]   ;;  %s565_s3 = inlined_call_operand.hbm [shape: bf16[128,128], index: 3, kind: output, shape index: {}]  }
   0x1   :  { %9 = vsyncpa [#allocation6], 0 }
   0x2   :  { %10 = vsyncpa [#allocation4], 0  ;;  %s443_s12 = smov [#allocation5]   ;;  %s444_s14 = smov [#allocation2]  }
   0x3   :  { %s29_s13 = sshll.u32 %s443_s12, 4  ;;  %s16_s15 = sshll.u32 %s444_s14, 4  ;;  %s30_s13 = int_to_ptr.vmem [resolvable:$true] %s29_s13  ;;  %s471_s15 = int_to_ptr.vmem [resolvable:$true] %s16_s15 }
   0x4   :  { %s349_s18 = scalar_lea.hbm %s563_s1, 16 }
   0x5   :  { %p350_p0 = scmp.ne.s32.totalorder %s563_s1, %s349_s18  ;;  %p353_p1 = scmp.lt.u32.totalorder %s349_s18, %s563_s1 }
   0x7   :  { %p355_p2 = pnand %p353_p1, %p350_p0 }
   0x9   :  { %358 = shalt.err (!%p355_p2)
}
   0xa   :  { %s359_s23 = scalar_lea.vmem %s30_s13, 16  ;;  %s363_s24 = scalar_lea.vmem %s30_s13, 32 }
   0xb   :  { %p360_p3 = scmp.ne.s32.totalorder %s30_s13, %s359_s23  ;;  %p364_p4 = scmp.lt.s32.totalorder %s30_s13, %s30_s13 }
   0xc   :  { %p365_p5 = scmp.lt.s32.totalorder %s363_s24, %s359_s23 }
   0xe   :  { %p366_p6 = por %p365_p5, %p364_p4 }
  0x10   :  { %p367_p7 = pnand %p366_p6, %p360_p3 }
  0x12   :  { %370 = shalt.err (!%p367_p7)
}
  0x13   :  { %32 = dma.hbm_to_vmem [thread:$0]  %s563_s1, 16, %s30_s13, [#allocation6]  }
  0x14   :  { %s371_s29 = scalar_lea.hbm %s562_s0, 2048 }
  0x15   :  { %p372_p8 = scmp.ne.s32.totalorder %s562_s0, %s371_s29  ;;  %p375_p9 = scmp.lt.u32.totalorder %s371_s29, %s562_s0 }
  0x17   :  { %p377_p10 = pnand %p375_p9, %p372_p8 }
  0x19   :  { %380 = shalt.err (!%p377_p10)
}
  0x1a   :  { %s381_s7 = scalar_lea.vmem %s471_s15, 2048  ;;  %p386_p12 = scmp.lt.s32.totalorder %s471_s15, %s471_s15 }
  0x1b   :  { %p382_p11 = scmp.ne.s32.totalorder %s471_s15, %s381_s7  ;;  %p387_p13 = scmp.lt.s32.totalorder %s381_s7, %s381_s7 }
  0x1d   :  { %p388_p0 = por %p387_p13, %p386_p12 }
  0x1f   :  { %p389_p1 = pnand %p388_p0, %p382_p11 }
  0x21   :  { %392 = shalt.err (!%p389_p1)
}
  0x22   :  { %s445_s1 = smov 128   ;;  %s446_s8 = smov 8  }
  0x23   :  { %22 = dma.hbm_to_vmem [thread:$0]  %s562_s0, 2048, %s471_s15, [#allocation3], %s445_s1, %s445_s1, %s446_s8  }
  0x24   :  { %s447_s11 = smov [#allocation7]   ;;  %s393_s16 = scalar_lea.hbm %s564_s2, 16 }
  0x25   :  { %s39_s12 = sshll.u32 %s447_s11, 4  ;;  %p394_p2 = scmp.ne.s32.totalorder %s564_s2, %s393_s16  ;;  %s40_s12 = int_to_ptr.vmem [resolvable:$true] %s39_s12 }
  0x26   :  { %p397_p3 = scmp.lt.u32.totalorder %s393_s16, %s564_s2 }
  0x28   :  { %p399_p4 = pnand %p397_p3, %p394_p2 }
  0x2a   :  { %402 = shalt.err (!%p399_p4)
}
  0x2b   :  { %s403_s21 = scalar_lea.vmem %s40_s12, 16  ;;  %s407_s0 = scalar_lea.vmem %s40_s12, 32 }
  0x2c   :  { %p404_p5 = scmp.ne.s32.totalorder %s40_s12, %s403_s21  ;;  %p408_p6 = scmp.lt.s32.totalorder %s40_s12, %s40_s12 }
  0x2d   :  { %p409_p7 = scmp.lt.s32.totalorder %s407_s0, %s403_s21 }
  0x2f   :  { %p410_p8 = por %p409_p7, %p408_p6 }
  0x31   :  { %p411_p9 = pnand %p410_p8, %p404_p5 }
  0x33   :  { %414 = shalt.err (!%p411_p9)
}
  0x34   :  { %42 = dma.hbm_to_vmem [thread:$0]  %s564_s2, 16, %s40_s12, [#allocation6]  }
  0x35   :  { %437 = dma.done.wait [#allocation3], 2048  }
  0x36   :  { %438 = vsyncadd [#allocation3], 4294965248 }
  0x37   :  { %439 = dma.done.wait [#allocation6], 32  }
  0x38   :  { %440 = vsyncadd [#allocation6], 4294967264  ;;  %v52_v0 = vld [vmem:[#allocation2] sm:$0xff]  ;;  %v53_v1 = vld [vmem:[#allocation2 + $0x8] sm:$0xff]  ;;  %s448_s2 = smov [#allocation8]  }
  0x39   :  { %v514_v2 = vld [vmem:[#allocation5] ss:$0 sm:$0xff]  ;;  %v518_v5 = vld [vmem:[#allocation7] ss:$0 sm:$0xff]  ;;  %v54_v6 = vld [vmem:[#allocation2 + $0x10] sm:$0xff]  ;;  %s247_s23 = sshll.u32 %s448_s2, 4  ;;  %s248_s23 = int_to_ptr.vmem [resolvable:$true] %s247_s23 }
  0x3a   :  { %v75_v3 = vmul.f32 %v514_v2, %v52_v0  ;;  %v76_v4 = vmul.f32 %v514_v2, %v53_v1  ;;  %v55_v7 = vld [vmem:[#allocation2 + $0x18] sm:$0xff]  ;;  %v77_v8 = vmul.f32 %v514_v2, %v54_v6  ;;  %v56_v10 = vld [vmem:[#allocation2 + $0x20] sm:$0xff]  ;;  %v57_v11 = vld [vmem:[#allocation2 + $0x28] sm:$0xff]  ;;  %s415_s24 = scalar_lea.vmem %s248_s23, 1024  ;;  %p420_p11 = scmp.lt.s32.totalorder %s248_s23, %s248_s23 }
  0x3b   :  { %v78_v9 = vmul.f32 %v514_v2, %v55_v7  ;;  %v58_v12 = vld [vmem:[#allocation2 + $0x30] sm:$0xff]  ;;  %v79_v15 = vmul.f32 %v514_v2, %v56_v10  ;;  %v80_v16 = vmul.f32 %v514_v2, %v57_v11  ;;  %v59_v17 = vld [vmem:[#allocation2 + $0x38] sm:$0xff]  ;;  %v60_v34 = vld [vmem:[#allocation2 + $0x40] sm:$0xff]  ;;  %p416_p10 = scmp.ne.s32.totalorder %s248_s23, %s415_s24  ;;  %p421_p12 = scmp.lt.s32.totalorder %s415_s24, %s415_s24 }
  0x3c   :  { %v98_v13 = vadd.f32 %v518_v5, %v75_v3  ;;  %v99_v14 = vadd.f32 %v518_v5, %v76_v4  ;;  %v100_v18 = vadd.f32 %v518_v5, %v77_v8  ;;  %v81_v20 = vmul.f32 %v514_v2, %v58_v12  ;;  %v61_v35 = vld [vmem:[#allocation2 + $0x48] sm:$0xff]  ;;  %v62_v36 = vld [vmem:[#allocation2 + $0x50] sm:$0xff]  ;;  %v63_v42 = vld [vmem:[#allocation2 + $0x58] sm:$0xff] }
  0x3d   :  { %v101_v19 = vadd.f32 %v518_v5, %v78_v9  ;;  %v82_v21 = vmul.f32 %v514_v2, %v59_v17  ;;  %v102_v28 = vadd.f32 %v518_v5, %v79_v15  ;;  %v103_v29 = vadd.f32 %v518_v5, %v80_v16  ;;  %v64_v47 = vld [vmem:[#allocation2 + $0x60] sm:$0xff]  ;;  %v65_v48 = vld [vmem:[#allocation2 + $0x68] sm:$0xff]  ;;  %v66_v60 = vld [vmem:[#allocation2 + $0x70] sm:$0xff]  ;;  %p422_p13 = por %p421_p12, %p420_p11 }
  0x3e   :  { %vm114_vm0 = vcmp.ge.f32.partialorder %v98_v13, 0.0  ;;  %vm115_vm1 = vcmp.ge.f32.partialorder %v99_v14, 0.0  ;;  %v130_v22 = vmul.f32 0.2, %v98_v13  ;;  %v131_v23 = vmul.f32 0.2, %v99_v14 }
  0x3f   :  { %vm116_vm2 = vcmp.ge.f32.partialorder %v100_v18, 0.0  ;;  %vm117_vm3 = vcmp.ge.f32.partialorder %v101_v19, 0.0  ;;  %v132_v24 = vmul.f32 0.2, %v100_v18  ;;  %v133_v25 = vmul.f32 0.2, %v101_v19  ;;  %p423_p0 = pnand %p422_p13, %p416_p10 }
  0x40   :  { %v146_v26 = vsel %vm114_vm0, %v98_v13, %v130_v22  ;;  %v147_v27 = vsel %vm115_vm1, %v99_v14, %v131_v23  ;;  %v104_v33 = vadd.f32 %v518_v5, %v81_v20  ;;  %vm118_vm4 = vcmp.ge.f32.partialorder %v102_v28, 0.0  ;;  %v67_v7 = vld [vmem:[#allocation2 + $0x78] sm:$0xff] }
  0x41   :  { %v297_v30 = vpack.c.bf16 %v147_v27, %v146_v26  ;;  %v148_v31 = vsel %vm116_vm2, %v100_v18, %v132_v24  ;;  %v149_v32 = vsel %vm117_vm3, %v101_v19, %v133_v25  ;;  %vm119_vm5 = vcmp.ge.f32.partialorder %v103_v29, 0.0 }
  0x42   :  { %v302_v37 = vpack.c.bf16 %v149_v32, %v148_v31  ;;  %v134_v38 = vmul.f32 0.2, %v102_v28  ;;  %v135_v39 = vmul.f32 0.2, %v103_v29  ;;  %v105_v40 = vadd.f32 %v518_v5, %v82_v21 }
  0x43   :  { %298 = vst [vmem:[#allocation8] sm:$0xff] %v297_v30   ;;  %vm120_vm6 = vcmp.ge.f32.partialorder %v104_v33, 0.0  ;;  %v136_v41 = vmul.f32 0.2, %v104_v33  ;;  %v83_v44 = vmul.f32 %v514_v2, %v60_v34  ;;  %v84_v45 = vmul.f32 %v514_v2, %v61_v35 }
  0x44   :  { %334 = vst [vmem:[#allocation8 + $0x8] sm:$0xff] %v302_v37   ;;  %v150_v43 = vsel %vm118_vm4, %v102_v28, %v134_v38  ;;  %v85_v46 = vmul.f32 %v514_v2, %v62_v36  ;;  %v151_v49 = vsel %vm119_vm5, %v103_v29, %v135_v39  ;;  %vm121_vm7 = vcmp.ge.f32.partialorder %v105_v40, 0.0 }
  0x45   :  { %v137_v50 = vmul.f32 0.2, %v105_v40  ;;  %v152_v51 = vsel %vm120_vm6, %v104_v33, %v136_v41  ;;  %v307_v52 = vpack.c.bf16 %v151_v49, %v150_v43  ;;  %v106_v53 = vadd.f32 %v518_v5, %v83_v44 }
  0x46   :  { %v107_v54 = vadd.f32 %v518_v5, %v84_v45  ;;  %v86_v55 = vmul.f32 %v514_v2, %v63_v42  ;;  %v108_v57 = vadd.f32 %v518_v5, %v85_v46  ;;  %v87_v58 = vmul.f32 %v514_v2, %v64_v47 }
  0x47   :  { %v153_v56 = vsel %vm121_vm7, %v105_v40, %v137_v50  ;;  %v88_v59 = vmul.f32 %v514_v2, %v65_v48  ;;  %335 = vst [vmem:[#allocation8 + $0x10] sm:$0xff] %v307_v52   ;;  %vm122_vm8 = vcmp.ge.f32.partialorder %v106_v53, 0.0  ;;  %v138_v62 = vmul.f32 0.2, %v106_v53 }
  0x48   :  { %v312_v61 = vpack.c.bf16 %v153_v56, %v152_v51  ;;  %vm123_vm9 = vcmp.ge.f32.partialorder %v107_v54, 0.0  ;;  %v139_v63 = vmul.f32 0.2, %v107_v54  ;;  %v109_v0 = vadd.f32 %v518_v5, %v86_v55 }
  0x49   :  { %vm124_vm10 = vcmp.ge.f32.partialorder %v108_v57, 0.0  ;;  %v140_v1 = vmul.f32 0.2, %v108_v57  ;;  %v154_v3 = vsel %vm122_vm8, %v106_v53, %v138_v62  ;;  %v110_v4 = vadd.f32 %v518_v5, %v87_v58 }
  0x4a   :  { %336 = vst [vmem:[#allocation8 + $0x18] sm:$0xff] %v312_v61   ;;  %v111_v6 = vadd.f32 %v518_v5, %v88_v59  ;;  %v89_v8 = vmul.f32 %v514_v2, %v66_v60  ;;  %v155_v9 = vsel %vm123_vm9, %v107_v54, %v139_v63  ;;  %vm125_vm11 = vcmp.ge.f32.partialorder %v109_v0, 0.0 }
  0x4b   :  { %v141_v10 = vmul.f32 0.2, %v109_v0  ;;  %v156_v11 = vsel %vm124_vm10, %v108_v57, %v140_v1  ;;  %v317_v12 = vpack.c.bf16 %v155_v9, %v154_v3  ;;  %vm126_vm12 = vcmp.ge.f32.partialorder %v110_v4, 0.0 }
  0x4c   :  { %vm127_vm13 = vcmp.ge.f32.partialorder %v111_v6, 0.0  ;;  %v142_v13 = vmul.f32 0.2, %v110_v4  ;;  %v143_v15 = vmul.f32 0.2, %v111_v6  ;;  %v90_v16 = vmul.f32 %v514_v2, %v67_v7 }
  0x4d   :  { %v157_v14 = vsel %vm125_vm11, %v109_v0, %v141_v10  ;;  %v112_v17 = vadd.f32 %v518_v5, %v89_v8  ;;  %337 = vst [vmem:[#allocation8 + $0x20] sm:$0xff] %v317_v12  }
  0x4e   :  { %v322_v18 = vpack.c.bf16 %v157_v14, %v156_v11  ;;  %v158_v19 = vsel %vm126_vm12, %v110_v4, %v142_v13  ;;  %v159_v20 = vsel %vm127_vm13, %v111_v6, %v143_v15  ;;  %v113_v21 = vadd.f32 %v518_v5, %v90_v16 }
  0x4f   :  { %vm128_vm14 = vcmp.ge.f32.partialorder %v112_v17, 0.0  ;;  %v144_v22 = vmul.f32 0.2, %v112_v17  ;;  %v327_v23 = vpack.c.bf16 %v159_v20, %v158_v19 }
  0x50   :  { %338 = vst [vmem:[#allocation8 + $0x28] sm:$0xff] %v322_v18   ;;  %vm129_vm15 = vcmp.ge.f32.partialorder %v113_v21, 0.0  ;;  %v145_v24 = vmul.f32 0.2, %v113_v21 }
  0x51   :  { %v160_v25 = vsel %vm128_vm14, %v112_v17, %v144_v22  ;;  %339 = vst [vmem:[#allocation8 + $0x30] sm:$0xff] %v327_v23  }
  0x52   :  { %v161_v26 = vsel %vm129_vm15, %v113_v21, %v145_v24 }
  0x53   :  { %v332_v2 = vpack.c.bf16 %v161_v26, %v160_v25 }
  0x55   :  { %340 = vst [vmem:[#allocation8 + $0x38] sm:$0xff] %v332_v2  }
  0x56   :  { %426 = shalt.err (!%p423_p0)
}
  0x57   :  { %s427_s27 = scalar_lea.hbm %s565_s3, 1024 }
  0x58   :  { %p428_p1 = scmp.ne.s32.totalorder %s565_s3, %s427_s27  ;;  %p431_p2 = scmp.lt.u32.totalorder %s427_s27, %s565_s3 }
  0x5a   :  { %p433_p3 = pnand %p431_p2, %p428_p1 }
  0x5c   :  { %436 = shalt.err (!%p433_p3)
}
  0x5d   :  { %s449_s5 = smov 64   ;;  %s450_s6 = smov 4  }
  0x5e   :  { %253 = dma.vmem_to_hbm [thread:$0]  %s248_s23, 1024, %s565_s3, [#allocation4], %s449_s5, %s449_s5, %s450_s6  }
  0x5f   :  { %441 = dma.done.wait [#allocation4], 1024  }
  0x60   :  { %442 = vsyncadd [#allocation4], 4294966272 }
  0x61   :  { %257 = vsyncpa [#allocation3], 1 }
  0x62   :  { %258 = vsyncpa [#allocation6], 1 }
  0x63   :  { %259 = vsyncpa [#allocation4], 1 }

// kernel: discriminator_forward.11
= control target key start
LH: loop header
LB: loop body
LE: loop exit
PB: predicated region body
PF: predicated region fallthrough
CT: control target
= control target key end

     0   :  { %9 = vsyncpa [#allocation3], 0  ;;  %s3945_s0 = inlined_call_operand.hbm [shape: bf16[128,2048], index: 0, kind: input, shape index: {}]   ;;  %s3946_s1 = inlined_call_operand.hbm [shape: bf16[2048,128], index: 1, kind: input, shape index: {}]   ;;  %s3947_s2 = inlined_call_operand.hbm [shape: f32[128,128], index: 2, kind: output, shape index: {0}]   ;;  %s3948_s3 = inlined_call_operand.hbm [shape: f32[8,128], index: 3, kind: output, shape index: {1}]  }
   0x1   :  { %10 = vsyncpa [#allocation6], 0 }
   0x2   :  { %11 = vsyncpa [#allocation4], 0 }
   0x3   :  { %12 = vsyncpa [#allocation9], 0  ;;  %s3724_s12 = smov [#allocation2]   ;;  %s3628_s16 = scalar_lea.hbm %s3945_s0, 16384 }
   0x4   :  { %s18_s13 = sshll.u32 %s3724_s12, 4  ;;  %p3629_p0 = scmp.ne.s32.totalorder %s3945_s0, %s3628_s16  ;;  %s19_s13 = int_to_ptr.vmem [resolvable:$true] %s18_s13 }
   0x5   :  { %p3632_p1 = scmp.lt.u32.totalorder %s3628_s16, %s3945_s0 }
   0x7   :  { %p3634_p2 = pnand %p3632_p1, %p3629_p0 }
   0x9   :  { %3637 = shalt.err (!%p3634_p2)
}
   0xa   :  { %s3638_s21 = scalar_lea.vmem %s19_s13, 16384  ;;  %p3643_p4 = scmp.lt.s32.totalorder %s19_s13, %s19_s13 }
   0xb   :  { %p3639_p3 = scmp.ne.s32.totalorder %s19_s13, %s3638_s21  ;;  %p3644_p5 = scmp.lt.s32.totalorder %s3638_s21, %s3638_s21 }
   0xd   :  { %p3645_p6 = por %p3644_p5, %p3643_p4 }
   0xf   :  { %p3646_p7 = pnand %p3645_p6, %p3639_p3 }
  0x11   :  { %3649 = shalt.err (!%p3646_p7)
}
  0x12   :  { %s3725_s22 = smov 1024   ;;  %s3726_s23 = smov 64  }
  0x13   :  { %24 = dma.hbm_to_vmem [thread:$0]  %s3945_s0, 16384, %s19_s13, [#allocation3], %s3725_s22, %s3725_s22, %s3726_s23  }
  0x14   :  { %s3727_s26 = smov [#allocation5]   ;;  %s3650_s30 = scalar_lea.hbm %s3946_s1, 16384 }
  0x15   :  { %s30_s27 = sshll.u32 %s3727_s26, 4  ;;  %p3651_p8 = scmp.ne.s32.totalorder %s3946_s1, %s3650_s30  ;;  %s31_s27 = int_to_ptr.vmem [resolvable:$true] %s30_s27 }
  0x16   :  { %p3654_p9 = scmp.lt.u32.totalorder %s3650_s30, %s3946_s1 }
  0x18   :  { %p3656_p10 = pnand %p3654_p9, %p3651_p8 }
  0x1a   :  { %3659 = shalt.err (!%p3656_p10)
}
  0x1b   :  { %s3660_s8 = scalar_lea.vmem %s31_s27, 16384  ;;  %p3665_p12 = scmp.lt.s32.totalorder %s31_s27, %s31_s27 }
  0x1c   :  { %p3661_p11 = scmp.ne.s32.totalorder %s31_s27, %s3660_s8  ;;  %p3666_p13 = scmp.lt.s32.totalorder %s3660_s8, %s3660_s8 }
  0x1e   :  { %p3667_p0 = por %p3666_p13, %p3665_p12 }
  0x20   :  { %p3668_p1 = pnand %p3667_p0, %p3661_p11 }
  0x22   :  { %3671 = shalt.err (!%p3668_p1)
}
  0x23   :  { %s3728_s0 = smov 4  }
  0x24   :  { %36 = dma.hbm_to_vmem [thread:$0]  %s3946_s1, 16384, %s31_s27, [#allocation6], %s3726_s23, %s3726_s23, %s3728_s0  }
  0x25   :  { %3716 = dma.done.wait [#allocation3], 16384  }
  0x26   :  { %3717 = vsyncadd [#allocation3], 4294950912 }
  0x27   :  { %3718 = dma.done.wait [#allocation6], 16384  }
  0x28   :  { %3719 = vsyncadd [#allocation6], 4294950912  ;;  %v3500_v0 = vld [vmem:[#allocation5 + $0x40] sm:$0xff]   ;;  %v3504_v4 = vld [vmem:[#allocation5 + $0x48] sm:$0xff]   ;;  %s3729_s1 = smov [#allocation7]  }
  0x29   :  { %v3501_v1 = vld [vmem:[#allocation5 + $0xc0] sm:$0xff]   ;;  %2979 = vmatprep.subr.bf16.mxu0 %v3500_v0  ;;  %v3505_v5 = vld [vmem:[#allocation5 + $0xc8] sm:$0xff]   ;;  %v3508_v8 = vld [vmem:[#allocation5 + $0x50] sm:$0xff]   ;;  %s2696_s11 = sshll.u32 %s3729_s1, 4  ;;  %s2697_s11 = int_to_ptr.vmem [resolvable:$true] %s2696_s11 }
  0x2a   :  { %v3502_v2 = vld [vmem:[#allocation5] sm:$0xff]   ;;  %3043 = vmatprep.subr.bf16.mxu1 %v3501_v1  ;;  %v3506_v6 = vld [vmem:[#allocation5 + $0x8] sm:$0xff]   ;;  %v3509_v9 = vld [vmem:[#allocation5 + $0xd0] sm:$0xff]   ;;  %s3672_s12 = scalar_lea.vmem %s2697_s11, 2048  ;;  %p3677_p3 = scmp.lt.s32.totalorder %s2697_s11, %s2697_s11 }
  0x2b   :  { %v3503_v3 = vld [vmem:[#allocation5 + $0x80] sm:$0xff]   ;;  %2980 = vmatpush3.bf16.msra.mxu0 %v3502_v2  ;;  %v3507_v7 = vld [vmem:[#allocation5 + $0x88] sm:$0xff]   ;;  %v3510_v10 = vld [vmem:[#allocation5 + $0x10] sm:$0xff]   ;;  %p3673_p2 = scmp.ne.s32.totalorder %s2697_s11, %s3672_s12  ;;  %p3678_p4 = scmp.lt.s32.totalorder %s3672_s12, %s3672_s12 }
  0x2c   :  { %3044 = vmatpush3.bf16.msra.mxu1 %v3503_v3  ;;  %2981 = vmatprep.subr.bf16.mxu0 %v3504_v4  ;;  %v3511_v11 = vld [vmem:[#allocation5 + $0x90] sm:$0xff]   ;;  %v3512_v12 = vld [vmem:[#allocation5 + $0x58] sm:$0xff]   ;;  %v3516_v16 = vld [vmem:[#allocation5 + $0x60] sm:$0xff]  }
  0x2d   :  { %3045 = vmatprep.subr.bf16.mxu1 %v3505_v5  ;;  %v3513_v13 = vld [vmem:[#allocation5 + $0xd8] sm:$0xff]   ;;  %v3517_v17 = vld [vmem:[#allocation5 + $0xe0] sm:$0xff]   ;;  %v3520_v20 = vld [vmem:[#allocation5 + $0x68] sm:$0xff]   ;;  %p3679_p5 = por %p3678_p4, %p3677_p3 }
  0x2e   :  { %v3514_v14 = vld [vmem:[#allocation5 + $0x18] sm:$0xff]   ;;  %v3518_v18 = vld [vmem:[#allocation5 + $0x20] sm:$0xff]   ;;  %v3521_v21 = vld [vmem:[#allocation5 + $0xe8] sm:$0xff]  }
  0x2f   :  { %2982 = vmatpush3.bf16.msra.mxu0 %v3506_v6  ;;  %v3515_v15 = vld [vmem:[#allocation5 + $0x98] sm:$0xff]   ;;  %v3519_v19 = vld [vmem:[#allocation5 + $0xa0] sm:$0xff]   ;;  %v3522_v22 = vld [vmem:[#allocation5 + $0x28] sm:$0xff]   ;;  %p3680_p6 = pnand %p3679_p5, %p3673_p2 }
  0x30   :  { %3046 = vmatpush3.bf16.msra.mxu1 %v3507_v7  ;;  %2983 = vmatprep.subr.bf16.mxu0 %v3508_v8  ;;  %v3523_v23 = vld [vmem:[#allocation5 + $0xa8] sm:$0xff]   ;;  %v3524_v24 = vld [vmem:[#allocation5 + $0x70] sm:$0xff]   ;;  %v3528_v28 = vld [vmem:[#allocation5 + $0x78] sm:$0xff]  }
  0x31   :  { %3047 = vmatprep.subr.bf16.mxu1 %v3509_v9  ;;  %v3525_v25 = vld [vmem:[#allocation5 + $0xf0] sm:$0xff]   ;;  %v3529_v29 = vld [vmem:[#allocation5 + $0xf8] sm:$0xff]   ;;  %v44_v32 = vld [vmem:[#allocation2] sm:$0xff] }
  0x32   :  { %v3526_v26 = vld [vmem:[#allocation5 + $0x30] sm:$0xff]   ;;  %v3530_v30 = vld [vmem:[#allocation5 + $0x38] sm:$0xff]   ;;  %v52_v33 = vld [vmem:[#allocation2 + $0x40] sm:$0xff] }
  0x33   :  { %2984 = vmatpush3.bf16.msra.mxu0 %v3510_v10  ;;  %v3527_v27 = vld [vmem:[#allocation5 + $0xb0] sm:$0xff]   ;;  %v3531_v31 = vld [vmem:[#allocation5 + $0xb8] sm:$0xff]   ;;  %v45_v34 = vld [vmem:[#allocation2 + $0x8] sm:$0xff]  ;;  %v2723_v35 = vcombine.low %v44_v32, %v52_v33  ;;  %v2724_v36 = vcombine.high %v44_v32, %v52_v33 }
  0x34   :  { %3048 = vmatpush3.bf16.msra.mxu1 %v3511_v11  ;;  %2985 = vmatprep.subr.bf16.mxu0 %v3512_v12  ;;  %v53_v37 = vld [vmem:[#allocation2 + $0x48] sm:$0xff]  ;;  %v3532_v40 = vld [vmem:[#allocation5 + $0x140] sm:$0xff]   ;;  %v3540_v62 = vld [vmem:[#allocation5 + $0x150] sm:$0xff]  }
  0x35   :  { %3049 = vmatprep.subr.bf16.mxu1 %v3513_v13  ;;  %v2725_v38 = vcombine.low %v45_v34, %v53_v37  ;;  %v2726_v39 = vcombine.high %v45_v34, %v53_v37  ;;  %1868 = vmatprep.mubr.bf16.mxu0 %v2724_v36  ;;  %v3533_v41 = vld [vmem:[#allocation5 + $0x100] sm:$0xff]   ;;  %v61_v47 = vld [vmem:[#allocation2 + $0x88] sm:$0xff]  ;;  %v3541_v63 = vld [vmem:[#allocation5 + $0x110] sm:$0xff]  }
  0x36   :  { %v3534_v42 = vld [vmem:[#allocation5 + $0x1c0] sm:$0xff]   ;;  %v69_v48 = vld [vmem:[#allocation2 + $0xc8] sm:$0xff]  ;;  %v3542_v0 = vld [vmem:[#allocation5 + $0x1d0] sm:$0xff]  }
  0x37   :  { %2986 = vmatpush3.bf16.msra.mxu0 %v3514_v14  ;;  %1965 = vmatprep.mubr.bf16.mxu1 %v2726_v39  ;;  %v3535_v43 = vld [vmem:[#allocation5 + $0x180] sm:$0xff]   ;;  %v2742_v49 = vcombine.high %v61_v47, %v69_v48  ;;  %v3536_v50 = vld [vmem:[#allocation5 + $0x148] sm:$0xff]   ;;  %v2741_v53 = vcombine.low %v61_v47, %v69_v48  ;;  %v3543_v1 = vld [vmem:[#allocation5 + $0x190] sm:$0xff]  }
  0x38   :  { %3050 = vmatpush3.bf16.msra.mxu1 %v3515_v15  ;;  %2987 = vmatprep.subr.bf16.mxu0 %v3516_v16  ;;  %v60_v44 = vld [vmem:[#allocation2 + $0x80] sm:$0xff]  ;;  %v3537_v52 = vld [vmem:[#allocation5 + $0x108] sm:$0xff]   ;;  %v3544_v10 = vld [vmem:[#allocation5 + $0x158] sm:$0xff]  }
  0x39   :  { %3051 = vmatprep.subr.bf16.mxu1 %v3517_v17  ;;  %v68_v45 = vld [vmem:[#allocation2 + $0xc0] sm:$0xff]  ;;  %v3538_v54 = vld [vmem:[#allocation5 + $0x1c8] sm:$0xff]   ;;  %v3545_v11 = vld [vmem:[#allocation5 + $0x118] sm:$0xff]  }
  0x3a   :  { %v2740_v46 = vcombine.high %v60_v44, %v68_v45  ;;  %v2739_v51 = vcombine.low %v60_v44, %v68_v45  ;;  %v3539_v55 = vld [vmem:[#allocation5 + $0x188] sm:$0xff]   ;;  %v76_v56 = vld [vmem:[#allocation2 + $0x100] sm:$0xff]  ;;  %v3546_v12 = vld [vmem:[#allocation5 + $0x1d8] sm:$0xff]  }
  0x3b   :  { %2988 = vmatpush3.bf16.msra.mxu0 %v3518_v18  ;;  %v84_v57 = vld [vmem:[#allocation2 + $0x140] sm:$0xff]  ;;  %v77_v58 = vld [vmem:[#allocation2 + $0x108] sm:$0xff]  ;;  %v3547_v13 = vld [vmem:[#allocation5 + $0x198] sm:$0xff]  }
  0x3c   :  { %3052 = vmatpush3.bf16.msra.mxu1 %v3519_v19  ;;  %2989 = vmatprep.subr.bf16.mxu0 %v3520_v20  ;;  %v85_v59 = vld [vmem:[#allocation2 + $0x148] sm:$0xff]  ;;  %v2756_v60 = vcombine.high %v76_v56, %v84_v57  ;;  %v2755_v2 = vcombine.low %v76_v56, %v84_v57  ;;  %v92_v3 = vld [vmem:[#allocation2 + $0x180] sm:$0xff]  ;;  %v3557_v39 = vld [vmem:[#allocation5 + $0x130] sm:$0xff]  }
  0x3d   :  { %3053 = vmatprep.subr.bf16.mxu1 %v3521_v21  ;;  %v2758_v61 = vcombine.high %v77_v58, %v85_v59  ;;  %v100_v4 = vld [vmem:[#allocation2 + $0x1c0] sm:$0xff]  ;;  %v93_v5 = vld [vmem:[#allocation2 + $0x188] sm:$0xff]  ;;  %v2757_v6 = vcombine.low %v77_v58, %v85_v59  ;;  %v3561_v48 = vld [vmem:[#allocation5 + $0x138] sm:$0xff]  }
  0x3e   :  { %v2772_v7 = vcombine.high %v92_v3, %v100_v4  ;;  %v101_v8 = vld [vmem:[#allocation2 + $0x1c8] sm:$0xff]  ;;  %v108_v14 = vld [vmem:[#allocation2 + $0x200] sm:$0xff]  ;;  %v2771_v19 = vcombine.low %v92_v3, %v100_v4  ;;  %v55_v3 = vld [vmem:[#allocation2 + $0x58] sm:$0xff] }
  0x3f   :  { %2990 = vmatpush3.bf16.msra.mxu0 %v3522_v22  ;;  %v2774_v9 = vcombine.high %v93_v5, %v101_v8  ;;  %v116_v15 = vld [vmem:[#allocation2 + $0x240] sm:$0xff]  ;;  %v109_v16 = vld [vmem:[#allocation2 + $0x208] sm:$0xff]  ;;  %v2773_v21 = vcombine.low %v93_v5, %v101_v8  ;;  %v62_v8 = vld [vmem:[#allocation2 + $0x90] sm:$0xff] }
  0x40   :  { %3054 = vmatpush3.bf16.msra.mxu1 %v3523_v23  ;;  %2991 = vmatprep.subr.bf16.mxu0 %v3524_v24  ;;  %v117_v17 = vld [vmem:[#allocation2 + $0x248] sm:$0xff]  ;;  %v3548_v18 = vld [vmem:[#allocation5 + $0x160] sm:$0xff]   ;;  %v2788_v22 = vcombine.high %v108_v14, %v116_v15  ;;  %v2787_v34 = vcombine.low %v108_v14, %v116_v15 }
  0x41   :  { %3055 = vmatprep.subr.bf16.mxu1 %v3525_v25  ;;  %v3549_v20 = vld [vmem:[#allocation5 + $0x120] sm:$0xff]   ;;  %v2790_v24 = vcombine.high %v109_v16, %v117_v17  ;;  %v3554_v32 = vld [vmem:[#allocation5 + $0x1e8] sm:$0xff]  }
  0x42   :  { %v3550_v23 = vld [vmem:[#allocation5 + $0x1e0] sm:$0xff]   ;;  %v3555_v33 = vld [vmem:[#allocation5 + $0x1a8] sm:$0xff]  }
  0x43   :  { %2992 = vmatpush3.bf16.msra.mxu0 %v3526_v26  ;;  %v3551_v25 = vld [vmem:[#allocation5 + $0x1a0] sm:$0xff]   ;;  %v141_v44 = vld [vmem:[#allocation2 + $0x308] sm:$0xff] }
  0x44   :  { %3056 = vmatpush3.bf16.msra.mxu1 %v3527_v27  ;;  %2993 = vmatprep.subr.bf16.mxu0 %v3528_v28  ;;  %v124_v26 = vld [vmem:[#allocation2 + $0x280] sm:$0xff]  ;;  %v3552_v28 = vld [vmem:[#allocation5 + $0x168] sm:$0xff]  }
  0x45   :  { %3057 = vmatprep.subr.bf16.mxu1 %v3529_v29  ;;  %v132_v27 = vld [vmem:[#allocation2 + $0x2c0] sm:$0xff]  ;;  %v125_v29 = vld [vmem:[#allocation2 + $0x288] sm:$0xff] }
  0x46   :  { %v2804_v36 = vcombine.high %v124_v26, %v132_v27  ;;  %v149_v45 = vld [vmem:[#allocation2 + $0x348] sm:$0xff]  ;;  %v2803_v47 = vcombine.low %v124_v26, %v132_v27  ;;  %v3564_v56 = vld [vmem:[#allocation5 + $0x240] sm:$0xff]   ;;  %v3572_v26 = vld [vmem:[#allocation5 + $0x250] sm:$0xff]  }
  0x47   :  { %2994 = vmatpush3.bf16.msra.mxu0 %v3530_v30  ;;  %v133_v30 = vld [vmem:[#allocation2 + $0x2c8] sm:$0xff]  ;;  %v3566_v58 = vld [vmem:[#allocation5 + $0x2c0] sm:$0xff]   ;;  %v3574_v27 = vld [vmem:[#allocation5 + $0x2d0] sm:$0xff]  }
  0x48   :  { %3058 = vmatpush3.bf16.msra.mxu1 %v3531_v31  ;;  %3107 = vmatprep.subr.bf16.mxu0 %v3532_v40  ;;  %v3553_v31 = vld [vmem:[#allocation5 + $0x128] sm:$0xff]   ;;  %v2806_v37 = vcombine.high %v125_v29, %v133_v30  ;;  %v3558_v40 = vld [vmem:[#allocation5 + $0x1f0] sm:$0xff]   ;;  %v3567_v15 = vld [vmem:[#allocation5 + $0x280] sm:$0xff]  }
  0x49   :  { %3171 = vmatprep.subr.bf16.mxu1 %v3534_v42  ;;  %v148_v42 = vld [vmem:[#allocation2 + $0x340] sm:$0xff]  ;;  %v157_v57 = vld [vmem:[#allocation2 + $0x388] sm:$0xff] }
  0x4a   :  { %1869 = vmatmul.mubr.bf16.vlgmr.msra.gmra.mrb[0].mxu0 %v2723_v35  ;;  %v2789_v35 = vcombine.low %v109_v16, %v117_v17  ;;  %v165_v59 = vld [vmem:[#allocation2 + $0x3c8] sm:$0xff] }
  0x4b   :  { %1966 = vmatmul.mubr.bf16.vlgmr.msra.gmra.mrb[0].mxu1 %v2725_v38  ;;  %3108 = vmatpush3.bf16.msra.mxu0 %v3533_v41  ;;  %v3556_v38 = vld [vmem:[#allocation5 + $0x170] sm:$0xff]   ;;  %v140_v41 = vld [vmem:[#allocation2 + $0x300] sm:$0xff]  ;;  %v2837_v5 = vcombine.low %v157_v57, %v165_v59  ;;  %v3568_v17 = vld [vmem:[#allocation5 + $0x248] sm:$0xff]  }
  0x4c   :  { %3172 = vmatpush3.bf16.msra.mxu1 %v3535_v43  ;;  %1876 = vmatprep.mubr.bf16.mxu0 %v2740_v46  ;;  %v3559_v43 = vld [vmem:[#allocation5 + $0x1b0] sm:$0xff]   ;;  %v3560_v46 = vld [vmem:[#allocation5 + $0x178] sm:$0xff]  }
  0x4d   :  { %1973 = vmatprep.mubr.bf16.mxu1 %v2742_v49  ;;  %3109 = vmatprep.subr.bf16.mxu0 %v3536_v50  ;;  %v2805_v49 = vcombine.low %v125_v29, %v133_v30  ;;  %v2820_v50 = vcombine.high %v140_v41, %v148_v42 }
  0x4e   :  { %3173 = vmatprep.subr.bf16.mxu1 %v3538_v54  ;;  %v156_v54 = vld [vmem:[#allocation2 + $0x380] sm:$0xff] }
  0x4f   :  { %3110 = vmatpush3.bf16.msra.mxu0 %v3537_v52  ;;  %v2822_v52 = vcombine.high %v141_v44, %v149_v45 }
  0x50   :  { %3174 = vmatpush3.bf16.msra.mxu1 %v3539_v55  ;;  %3111 = vmatprep.subr.bf16.mxu0 %v3540_v62  ;;  %v164_v55 = vld [vmem:[#allocation2 + $0x3c0] sm:$0xff] }
  0x51   :  { %3175 = vmatprep.subr.bf16.mxu1 %v3542_v0  ;;  %v2836_v62 = vcombine.high %v156_v54, %v164_v55  ;;  %v46_v0 = vld [vmem:[#allocation2 + $0x10] sm:$0xff]  ;;  %v2835_v4 = vcombine.low %v156_v54, %v164_v55  ;;  %v111_v54 = vld [vmem:[#allocation2 + $0x218] sm:$0xff] }
  0x52   :  { %1877 = vmatmul.mubr.bf16.gmra.mrb[4].mxu0 %v2739_v51  ;;  %v3562_v51 = vld [vmem:[#allocation5 + $0x1f8] sm:$0xff]  }
  0x53   :  { %1974 = vmatmul.mubr.bf16.gmra.mrb[4].mxu1 %v2741_v53  ;;  %1884 = vmatprep.mubr.bf16.mxu0 %v2756_v60  ;;  %v3563_v53 = vld [vmem:[#allocation5 + $0x1b8] sm:$0xff]   ;;  %v2819_v60 = vcombine.low %v140_v41, %v148_v42  ;;  %v3580_v42 = vld [vmem:[#allocation5 + $0x260] sm:$0xff]  }
  0x54   :  { %1981 = vmatprep.mubr.bf16.mxu1 %v2758_v61  ;;  %3112 = vmatpush3.bf16.msra.mxu0 %v3541_v63  ;;  %v2821_v61 = vcombine.low %v141_v44, %v149_v45  ;;  %v2838_v63 = vcombine.high %v157_v57, %v165_v59  ;;  %v3579_v41 = vld [vmem:[#allocation5 + $0x298] sm:$0xff]   ;;  %v3582_v44 = vld [vmem:[#allocation5 + $0x2e0] sm:$0xff]   ;;  %v3587_v57 = vld [vmem:[#allocation5 + $0x2a8] sm:$0xff]  }
  0x55   :  { %3176 = vmatpush3.bf16.msra.mxu1 %v3543_v1  ;;  %3113 = vmatprep.subr.bf16.mxu0 %v3544_v10  ;;  %v54_v1 = vld [vmem:[#allocation2 + $0x50] sm:$0xff]  ;;  %v119_v55 = vld [vmem:[#allocation2 + $0x258] sm:$0xff] }
  0x56   :  { %3177 = vmatprep.subr.bf16.mxu1 %v3546_v12  ;;  %v2727_v10 = vcombine.low %v46_v0, %v54_v1  ;;  %v63_v12 = vld [vmem:[#allocation2 + $0x98] sm:$0xff] }
  0x58   :  { %3114 = vmatpush3.bf16.msra.mxu0 %v3545_v11  ;;  %v3565_v11 = vld [vmem:[#allocation5 + $0x200] sm:$0xff]  }
  0x59   :  { %3178 = vmatpush3.bf16.msra.mxu1 %v3547_v13  ;;  %3115 = vmatprep.subr.bf16.mxu0 %v3548_v18  ;;  %v71_v13 = vld [vmem:[#allocation2 + $0xd8] sm:$0xff] }
  0x5a   :  { %1885 = vmatmul.mubr.bf16.gmra.mrb[8].mxu0 %v2755_v2  ;;  %3179 = vmatprep.subr.bf16.mxu1 %v3550_v23  ;;  %v47_v2 = vld [vmem:[#allocation2 + $0x18] sm:$0xff]  ;;  %v2746_v18 = vcombine.high %v63_v12, %v71_v13  ;;  %v86_v23 = vld [vmem:[#allocation2 + $0x150] sm:$0xff]  ;;  %v2745_v29 = vcombine.low %v63_v12, %v71_v13  ;;  %v3598_v12 = vld [vmem:[#allocation5 + $0x3c0] sm:$0xff]   ;;  %v2793_v13 = vcombine.low %v111_v54, %v119_v55 }
  0x5b   :  { %1982 = vmatmul.mubr.bf16.gmra.mrb[8].mxu1 %v2757_v6  ;;  %1892 = vmatprep.mubr.bf16.mxu0 %v2772_v7  ;;  %v2728_v6 = vcombine.high %v46_v0, %v54_v1  ;;  %v2730_v7 = vcombine.high %v47_v2, %v55_v3  ;;  %v2729_v14 = vcombine.low %v47_v2, %v55_v3  ;;  %v3589_v0 = vld [vmem:[#allocation5 + $0x230] sm:$0xff]   ;;  %v3592_v2 = vld [vmem:[#allocation5 + $0x278] sm:$0xff]  }
  0x5c   :  { %1989 = vmatprep.mubr.bf16.mxu1 %v2774_v9  ;;  %3116 = vmatpush3.bf16.msra.mxu0 %v3549_v20  ;;  %v70_v9 = vld [vmem:[#allocation2 + $0xd0] sm:$0xff]  ;;  %v3570_v20 = vld [vmem:[#allocation5 + $0x2c8] sm:$0xff]  }
  0x5d   :  { %3180 = vmatpush3.bf16.msra.mxu1 %v3551_v25  ;;  %3117 = vmatprep.subr.bf16.mxu0 %v3552_v28  ;;  %v2744_v16 = vcombine.high %v62_v8, %v70_v9  ;;  %v87_v25 = vld [vmem:[#allocation2 + $0x158] sm:$0xff]  ;;  %v2743_v28 = vcombine.low %v62_v8, %v70_v9  ;;  %v3591_v1 = vld [vmem:[#allocation5 + $0x2b0] sm:$0xff]  }
  0x5e   :  { %3181 = vmatprep.subr.bf16.mxu1 %v3554_v32  ;;  %v3573_v32 = vld [vmem:[#allocation5 + $0x210] sm:$0xff]   ;;  %v3593_v8 = vld [vmem:[#allocation5 + $0x238] sm:$0xff]  }
  0x5f   :  { %v126_v3 = vld [vmem:[#allocation2 + $0x290] sm:$0xff]  ;;  %v3595_v9 = vld [vmem:[#allocation5 + $0x2b8] sm:$0xff]  }
  0x60   :  { %3118 = vmatpush3.bf16.msra.mxu0 %v3553_v31 }
  0x61   :  { %3182 = vmatpush3.bf16.msra.mxu1 %v3555_v33  ;;  %3119 = vmatprep.subr.bf16.mxu0 %v3556_v38  ;;  %v3575_v33 = vld [vmem:[#allocation5 + $0x290] sm:$0xff]   ;;  %v95_v38 = vld [vmem:[#allocation2 + $0x198] sm:$0xff] }
  0x62   :  { %1893 = vmatmul.mubr.bf16.gmra.mrb[12].mxu0 %v2771_v19  ;;  %3183 = vmatprep.subr.bf16.mxu1 %v3558_v40  ;;  %v3569_v19 = vld [vmem:[#allocation5 + $0x208] sm:$0xff]   ;;  %v3577_v40 = vld [vmem:[#allocation5 + $0x218] sm:$0xff]  }
  0x63   :  { %1990 = vmatmul.mubr.bf16.gmra.mrb[12].mxu1 %v2773_v21  ;;  %1900 = vmatprep.mubr.bf16.mxu0 %v2788_v22  ;;  %v3571_v21 = vld [vmem:[#allocation5 + $0x288] sm:$0xff]   ;;  %v78_v22 = vld [vmem:[#allocation2 + $0x110] sm:$0xff] }
  0x64   :  { %1997 = vmatprep.mubr.bf16.mxu1 %v2790_v24  ;;  %3120 = vmatpush3.bf16.msra.mxu0 %v3557_v39  ;;  %v79_v24 = vld [vmem:[#allocation2 + $0x118] sm:$0xff]  ;;  %v2760_v30 = vcombine.high %v78_v22, %v86_v23 }
  0x65   :  { %3184 = vmatpush3.bf16.msra.mxu1 %v3559_v43  ;;  %3121 = vmatprep.subr.bf16.mxu0 %v3560_v46  ;;  %v2762_v31 = vcombine.high %v79_v24, %v87_v25  ;;  %v103_v39 = vld [vmem:[#allocation2 + $0x1d8] sm:$0xff]  ;;  %v2759_v43 = vcombine.low %v78_v22, %v86_v23  ;;  %v2761_v45 = vcombine.low %v79_v24, %v87_v25  ;;  %v158_v24 = vld [vmem:[#allocation2 + $0x390] sm:$0xff] }
  0x66   :  { %3185 = vmatprep.subr.bf16.mxu1 %v3562_v51  ;;  %v110_v51 = vld [vmem:[#allocation2 + $0x210] sm:$0xff] }
  0x67   :  { %v166_v25 = vld [vmem:[#allocation2 + $0x3d0] sm:$0xff] }
  0x68   :  { %3122 = vmatpush3.bf16.msra.mxu0 %v3561_v48  ;;  %v2778_v48 = vcombine.high %v95_v38, %v103_v39 }
  0x69   :  { %3186 = vmatpush3.bf16.msra.mxu1 %v3563_v53  ;;  %3235 = vmatprep.subr.bf16.mxu0 %v3564_v56  ;;  %v118_v53 = vld [vmem:[#allocation2 + $0x250] sm:$0xff]  ;;  %v3585_v56 = vld [vmem:[#allocation5 + $0x228] sm:$0xff]  }
  0x6a   :  { %1901 = vmatmul.mubr.bf16.gmra.mrb[16].mxu0 %v2787_v34  ;;  %3299 = vmatprep.subr.bf16.mxu1 %v3566_v58  ;;  %v3576_v34 = vld [vmem:[#allocation5 + $0x258] sm:$0xff]   ;;  %v3588_v58 = vld [vmem:[#allocation5 + $0x270] sm:$0xff]  }
  0x6b   :  { %1998 = vmatmul.mubr.bf16.gmra.mrb[16].mxu1 %v2789_v35  ;;  %1908 = vmatprep.mubr.bf16.mxu0 %v2804_v36  ;;  %v94_v35 = vld [vmem:[#allocation2 + $0x190] sm:$0xff] }
  0x6c   :  { %2005 = vmatprep.mubr.bf16.mxu1 %v2806_v37  ;;  %v102_v36 = vld [vmem:[#allocation2 + $0x1d0] sm:$0xff]  ;;  %v3578_v37 = vld [vmem:[#allocation5 + $0x2d8] sm:$0xff]  }
  0x6d   :  { %v2776_v46 = vcombine.high %v94_v35, %v102_v36  ;;  %v2775_v59 = vcombine.low %v94_v35, %v102_v36  ;;  %v57_v35 = vld [vmem:[#allocation2 + $0x68] sm:$0xff]  ;;  %v2839_v36 = vcombine.low %v158_v24, %v166_v25 }
  0x72   :  { %1909 = vmatmul.mubr.bf16.gmra.mrb[20].mxu0 %v2803_v47  ;;  %v3581_v47 = vld [vmem:[#allocation5 + $0x220] sm:$0xff]  }
  0x73   :  { %2006 = vmatmul.mubr.bf16.gmra.mrb[20].mxu1 %v2805_v49  ;;  %1916 = vmatprep.mubr.bf16.mxu0 %v2820_v50  ;;  %v3583_v49 = vld [vmem:[#allocation5 + $0x2a0] sm:$0xff]   ;;  %v3584_v50 = vld [vmem:[#allocation5 + $0x268] sm:$0xff]  }
  0x74   :  { %2013 = vmatprep.mubr.bf16.mxu1 %v2822_v52  ;;  %v3586_v52 = vld [vmem:[#allocation5 + $0x2e8] sm:$0xff]  }
  0x7a   :  { %1917 = vmatmul.mubr.bf16.gmra.mrb[24].mxu0 %v2819_v60  ;;  %v3590_v60 = vld [vmem:[#allocation5 + $0x2f0] sm:$0xff]  }
  0x7b   :  { %2014 = vmatmul.mubr.bf16.gmra.mrb[24].mxu1 %v2821_v61  ;;  %1924 = vmatprep.mubr.bf16.mxu0 %v2836_v62  ;;  %v2777_v61 = vcombine.low %v95_v38, %v103_v39  ;;  %v2792_v62 = vcombine.high %v110_v51, %v118_v53 }
  0x7c   :  { %2021 = vmatprep.mubr.bf16.mxu1 %v2838_v63  ;;  %v2794_v63 = vcombine.high %v111_v54, %v119_v55  ;;  %v80_v54 = vld [vmem:[#allocation2 + $0x120] sm:$0xff] }
  0x7d   :  { %v88_v55 = vld [vmem:[#allocation2 + $0x160] sm:$0xff] }
  0x82   :  { %1925 = vmatmul.mubr.bf16.gmra.mrb[28].mxu0 %v2835_v4  ;;  %v134_v4 = vld [vmem:[#allocation2 + $0x2d0] sm:$0xff] }
  0x83   :  { %2022 = vmatmul.mubr.bf16.gmra.mrb[28].mxu1 %v2837_v5  ;;  %2062 = vmatprep.mubr.bf16.mxu0 %v2728_v6  ;;  %v3594_v5 = vld [vmem:[#allocation5 + $0x2f8] sm:$0xff]  }
  0x84   :  { %2159 = vmatprep.mubr.bf16.mxu1 %v2730_v7  ;;  %v127_v6 = vld [vmem:[#allocation2 + $0x298] sm:$0xff] }
  0x85   :  { %v135_v7 = vld [vmem:[#allocation2 + $0x2d8] sm:$0xff] }
  0x8a   :  { %2063 = vmatmul.mubr.bf16.vlgmr.msra.gmra.mrb[32].mxu0 %v2727_v10  ;;  %v3596_v10 = vld [vmem:[#allocation5 + $0x340] sm:$0xff]  }
  0x8b   :  { %2160 = vmatmul.mubr.bf16.vlgmr.msra.gmra.mrb[32].mxu1 %v2729_v14  ;;  %3236 = vmatpush3.bf16.msra.mxu0 %v3565_v11  ;;  %v2791_v11 = vcombine.low %v110_v51, %v118_v53  ;;  %v2808_v14 = vcombine.high %v126_v3, %v134_v4  ;;  %v3602_v51 = vld [vmem:[#allocation5 + $0x3c8] sm:$0xff]  }
  0x8c   :  { %3300 = vmatpush3.bf16.msra.mxu1 %v3567_v15  ;;  %2070 = vmatprep.mubr.bf16.mxu0 %v2744_v16  ;;  %v2810_v15 = vcombine.high %v127_v6, %v135_v7  ;;  %v142_v16 = vld [vmem:[#allocation2 + $0x310] sm:$0xff]  ;;  %v3603_v53 = vld [vmem:[#allocation5 + $0x388] sm:$0xff]  }
  0x8d   :  { %2167 = vmatprep.mubr.bf16.mxu1 %v2746_v18  ;;  %3237 = vmatprep.subr.bf16.mxu0 %v3568_v17  ;;  %v150_v17 = vld [vmem:[#allocation2 + $0x350] sm:$0xff]  ;;  %v143_v18 = vld [vmem:[#allocation2 + $0x318] sm:$0xff] }
  0x8e   :  { %3301 = vmatprep.subr.bf16.mxu1 %v3570_v20  ;;  %v2807_v20 = vcombine.low %v126_v3, %v134_v4  ;;  %v2824_v22 = vcombine.high %v142_v16, %v150_v17  ;;  %v3610_v3 = vld [vmem:[#allocation5 + $0x3d8] sm:$0xff]   ;;  %v96_v4 = vld [vmem:[#allocation2 + $0x1a0] sm:$0xff] }
  0x8f   :  { %3238 = vmatpush3.bf16.msra.mxu0 %v3569_v19  ;;  %v151_v19 = vld [vmem:[#allocation2 + $0x358] sm:$0xff] }
  0x90   :  { %3302 = vmatpush3.bf16.msra.mxu1 %v3571_v21  ;;  %3239 = vmatprep.subr.bf16.mxu0 %v3572_v26  ;;  %v2809_v21 = vcombine.low %v127_v6, %v135_v7  ;;  %v2826_v23 = vcombine.high %v143_v18, %v151_v19  ;;  %v159_v26 = vld [vmem:[#allocation2 + $0x398] sm:$0xff]  ;;  %v97_v6 = vld [vmem:[#allocation2 + $0x1a8] sm:$0xff] }
  0x91   :  { %3303 = vmatprep.subr.bf16.mxu1 %v3574_v27  ;;  %v167_v27 = vld [vmem:[#allocation2 + $0x3d8] sm:$0xff] }
  0x92   :  { %2071 = vmatmul.mubr.bf16.gmra.mrb[36].mxu0 %v2743_v28  ;;  %v2823_v28 = vcombine.low %v142_v16, %v150_v17  ;;  %v3609_v7 = vld [vmem:[#allocation5 + $0x318] sm:$0xff]   ;;  %v3613_v16 = vld [vmem:[#allocation5 + $0x320] sm:$0xff]  }
  0x93   :  { %2168 = vmatmul.mubr.bf16.gmra.mrb[36].mxu1 %v2745_v29  ;;  %2078 = vmatprep.mubr.bf16.mxu0 %v2760_v30  ;;  %v2825_v29 = vcombine.low %v143_v18, %v151_v19  ;;  %v2840_v30 = vcombine.high %v158_v24, %v166_v25  ;;  %v3615_v17 = vld [vmem:[#allocation5 + $0x3a0] sm:$0xff]   ;;  %v3616_v18 = vld [vmem:[#allocation5 + $0x368] sm:$0xff]  }
  0x94   :  { %2175 = vmatprep.mubr.bf16.mxu1 %v2762_v31  ;;  %3240 = vmatpush3.bf16.msra.mxu0 %v3573_v32  ;;  %v2842_v31 = vcombine.high %v159_v26, %v167_v27  ;;  %v48_v32 = vld [vmem:[#allocation2 + $0x20] sm:$0xff]  ;;  %v3618_v19 = vld [vmem:[#allocation5 + $0x3e8] sm:$0xff]  }
  0x95   :  { %3304 = vmatpush3.bf16.msra.mxu1 %v3575_v33  ;;  %3241 = vmatprep.subr.bf16.mxu0 %v3576_v34  ;;  %v56_v33 = vld [vmem:[#allocation2 + $0x60] sm:$0xff]  ;;  %v49_v34 = vld [vmem:[#allocation2 + $0x28] sm:$0xff] }
  0x96   :  { %3305 = vmatprep.subr.bf16.mxu1 %v3578_v37  ;;  %v2841_v37 = vcombine.low %v159_v26, %v167_v27  ;;  %v2732_v38 = vcombine.high %v48_v32, %v56_v33  ;;  %v2734_v39 = vcombine.high %v49_v34, %v57_v35  ;;  %v121_v24 = vld [vmem:[#allocation2 + $0x268] sm:$0xff]  ;;  %v3620_v26 = vld [vmem:[#allocation5 + $0x370] sm:$0xff]  }
  0x97   :  { %v3619_v25 = vld [vmem:[#allocation5 + $0x3a8] sm:$0xff]  }
  0x98   :  { %3242 = vmatpush3.bf16.msra.mxu0 %v3577_v40  ;;  %v64_v40 = vld [vmem:[#allocation2 + $0xa0] sm:$0xff] }
  0x99   :  { %3306 = vmatpush3.bf16.msra.mxu1 %v3579_v41  ;;  %3243 = vmatprep.subr.bf16.mxu0 %v3580_v42  ;;  %v72_v41 = vld [vmem:[#allocation2 + $0xe0] sm:$0xff]  ;;  %v2731_v42 = vcombine.low %v48_v32, %v56_v33  ;;  %v3621_v32 = vld [vmem:[#allocation5 + $0x330] sm:$0xff]  }
  0x9a   :  { %2079 = vmatmul.mubr.bf16.gmra.mrb[40].mxu0 %v2759_v43  ;;  %3307 = vmatprep.subr.bf16.mxu1 %v3582_v44  ;;  %v65_v43 = vld [vmem:[#allocation2 + $0xa8] sm:$0xff]  ;;  %v3623_v33 = vld [vmem:[#allocation5 + $0x3b0] sm:$0xff]  }
  0x9b   :  { %2176 = vmatmul.mubr.bf16.gmra.mrb[40].mxu1 %v2761_v45  ;;  %2086 = vmatprep.mubr.bf16.mxu0 %v2776_v46  ;;  %v73_v44 = vld [vmem:[#allocation2 + $0xe8] sm:$0xff]  ;;  %v2733_v45 = vcombine.low %v49_v34, %v57_v35  ;;  %v3597_v46 = vld [vmem:[#allocation5 + $0x300] sm:$0xff]   ;;  %v3624_v34 = vld [vmem:[#allocation5 + $0x378] sm:$0xff]  }
  0x9c   :  { %2183 = vmatprep.mubr.bf16.mxu1 %v2778_v48  ;;  %3244 = vmatpush3.bf16.msra.mxu0 %v3581_v47  ;;  %v3599_v47 = vld [vmem:[#allocation5 + $0x380] sm:$0xff]   ;;  %v2748_v48 = vcombine.high %v64_v40, %v72_v41  ;;  %v3626_v35 = vld [vmem:[#allocation5 + $0x3f8] sm:$0xff]  }
  0x9d   :  { %3308 = vmatpush3.bf16.msra.mxu1 %v3583_v49  ;;  %3245 = vmatprep.subr.bf16.mxu0 %v3584_v50  ;;  %v2750_v49 = vcombine.high %v65_v43, %v73_v44  ;;  %v3600_v50 = vld [vmem:[#allocation5 + $0x348] sm:$0xff]  }
  0x9e   :  { %3309 = vmatprep.subr.bf16.mxu1 %v3586_v52  ;;  %v3601_v52 = vld [vmem:[#allocation5 + $0x308] sm:$0xff]  }
  0xa0   :  { %3246 = vmatpush3.bf16.msra.mxu0 %v3585_v56  ;;  %v3604_v56 = vld [vmem:[#allocation5 + $0x350] sm:$0xff]  }
  0xa1   :  { %3310 = vmatpush3.bf16.msra.mxu1 %v3587_v57  ;;  %3247 = vmatprep.subr.bf16.mxu0 %v3588_v58  ;;  %v81_v57 = vld [vmem:[#allocation2 + $0x128] sm:$0xff] }
  0xa2   :  { %2087 = vmatmul.mubr.bf16.gmra.mrb[44].mxu0 %v2775_v59  ;;  %3311 = vmatprep.subr.bf16.mxu1 %v3590_v60  ;;  %v89_v58 = vld [vmem:[#allocation2 + $0x168] sm:$0xff]  ;;  %v3606_v59 = vld [vmem:[#allocation5 + $0x3d0] sm:$0xff]   ;;  %v2747_v60 = vcombine.low %v64_v40, %v72_v41  ;;  %v3627_v41 = vld [vmem:[#allocation5 + $0x3b8] sm:$0xff]  }
  0xa3   :  { %2184 = vmatmul.mubr.bf16.gmra.mrb[44].mxu1 %v2777_v61  ;;  %2094 = vmatprep.mubr.bf16.mxu0 %v2792_v62  ;;  %v2749_v61 = vcombine.low %v65_v43, %v73_v44  ;;  %v2764_v62 = vcombine.high %v80_v54, %v88_v55  ;;  %v137_v40 = vld [vmem:[#allocation2 + $0x2e8] sm:$0xff] }
  0xa4   :  { %2191 = vmatprep.mubr.bf16.mxu1 %v2794_v63  ;;  %3248 = vmatpush3.bf16.msra.mxu0 %v3589_v0  ;;  %v2766_v63 = vcombine.high %v81_v57, %v89_v58  ;;  %v3605_v0 = vld [vmem:[#allocation5 + $0x310] sm:$0xff]  }
  0xa5   :  { %3312 = vmatpush3.bf16.msra.mxu1 %v3591_v1  ;;  %3249 = vmatprep.subr.bf16.mxu0 %v3592_v2  ;;  %v3607_v1 = vld [vmem:[#allocation5 + $0x390] sm:$0xff]   ;;  %v3608_v2 = vld [vmem:[#allocation5 + $0x358] sm:$0xff]  }
  0xa6   :  { %3313 = vmatprep.subr.bf16.mxu1 %v3594_v5  ;;  %v104_v5 = vld [vmem:[#allocation2 + $0x1e0] sm:$0xff] }
  0xa7   :  { %v2779_v27 = vcombine.low %v96_v4, %v104_v5 }
  0xa8   :  { %3250 = vmatpush3.bf16.msra.mxu0 %v3593_v8  ;;  %v105_v8 = vld [vmem:[#allocation2 + $0x1e8] sm:$0xff] }
  0xa9   :  { %3314 = vmatpush3.bf16.msra.mxu1 %v3595_v9  ;;  %3363 = vmatprep.subr.bf16.mxu0 %v3596_v10  ;;  %v3611_v9 = vld [vmem:[#allocation5 + $0x398] sm:$0xff]   ;;  %v3612_v10 = vld [vmem:[#allocation5 + $0x360] sm:$0xff]  }
  0xaa   :  { %2095 = vmatmul.mubr.bf16.gmra.mrb[48].mxu0 %v2791_v11  ;;  %3427 = vmatprep.subr.bf16.mxu1 %v3598_v12  ;;  %v2763_v11 = vcombine.low %v80_v54, %v88_v55  ;;  %v3614_v12 = vld [vmem:[#allocation5 + $0x3e0] sm:$0xff]  }
  0xab   :  { %2192 = vmatmul.mubr.bf16.gmra.mrb[48].mxu1 %v2793_v13  ;;  %2102 = vmatprep.mubr.bf16.mxu0 %v2808_v14  ;;  %v2765_v13 = vcombine.low %v81_v57, %v89_v58  ;;  %v2780_v14 = vcombine.high %v96_v4, %v104_v5  ;;  %v160_v54 = vld [vmem:[#allocation2 + $0x3a0] sm:$0xff]  ;;  %v169_v57 = vld [vmem:[#allocation2 + $0x3e8] sm:$0xff] }
  0xac   :  { %2199 = vmatprep.mubr.bf16.mxu1 %v2810_v15  ;;  %v2782_v15 = vcombine.high %v97_v6, %v105_v8  ;;  %v168_v55 = vld [vmem:[#allocation2 + $0x3e0] sm:$0xff] }
  0xb2   :  { %2103 = vmatmul.mubr.bf16.gmra.mrb[52].mxu0 %v2807_v20  ;;  %v112_v20 = vld [vmem:[#allocation2 + $0x220] sm:$0xff] }
  0xb3   :  { %2200 = vmatmul.mubr.bf16.gmra.mrb[52].mxu1 %v2809_v21  ;;  %2110 = vmatprep.mubr.bf16.mxu0 %v2824_v22  ;;  %v120_v21 = vld [vmem:[#allocation2 + $0x260] sm:$0xff]  ;;  %v113_v22 = vld [vmem:[#allocation2 + $0x228] sm:$0xff] }
  0xb4   :  { %2207 = vmatprep.mubr.bf16.mxu1 %v2826_v23  ;;  %v3617_v23 = vld [vmem:[#allocation5 + $0x328] sm:$0xff]   ;;  %v2797_v43 = vcombine.low %v113_v22, %v121_v24 }
  0xba   :  { %2111 = vmatmul.mubr.bf16.gmra.mrb[56].mxu0 %v2823_v28  ;;  %v3622_v28 = vld [vmem:[#allocation5 + $0x3f0] sm:$0xff]  }
  0xbb   :  { %2208 = vmatmul.mubr.bf16.gmra.mrb[56].mxu1 %v2825_v29  ;;  %2118 = vmatprep.mubr.bf16.mxu0 %v2840_v30  ;;  %v2781_v29 = vcombine.low %v97_v6, %v105_v8  ;;  %v2796_v30 = vcombine.high %v112_v20, %v120_v21  ;;  %v66_v6 = vld [vmem:[#allocation2 + $0xb0] sm:$0xff]  ;;  %v67_v8 = vld [vmem:[#allocation2 + $0xb8] sm:$0xff] }
  0xbc   :  { %2215 = vmatprep.mubr.bf16.mxu1 %v2842_v31  ;;  %v2798_v31 = vcombine.high %v113_v22, %v121_v24  ;;  %v98_v22 = vld [vmem:[#allocation2 + $0x1b0] sm:$0xff]  ;;  %v99_v24 = vld [vmem:[#allocation2 + $0x1b8] sm:$0xff] }
  0xc2   :  { %2119 = vmatmul.mubr.bf16.gmra.mrb[60].mxu0 %v2839_v36  ;;  %v128_v36 = vld [vmem:[#allocation2 + $0x2a0] sm:$0xff] }
  0xc3   :  { %2216 = vmatmul.mubr.bf16.gmra.mrb[60].mxu1 %v2841_v37  ;;  %2256 = vmatprep.mubr.bf16.mxu0 %v2732_v38  ;;  %v136_v37 = vld [vmem:[#allocation2 + $0x2e0] sm:$0xff]  ;;  %v3625_v38 = vld [vmem:[#allocation5 + $0x338] sm:$0xff]  }
  0xc4   :  { %2353 = vmatprep.mubr.bf16.mxu1 %v2734_v39  ;;  %v129_v39 = vld [vmem:[#allocation2 + $0x2a8] sm:$0xff]  ;;  %v2812_v44 = vcombine.high %v128_v36, %v136_v37 }
  0xca   :  { %2257 = vmatmul.mubr.bf16.vlgmr.msra.gmra.mrb[64].mxu0 %v2731_v42  ;;  %v2795_v42 = vcombine.low %v112_v20, %v120_v21 }
  0xcb   :  { %2354 = vmatmul.mubr.bf16.vlgmr.msra.gmra.mrb[64].mxu1 %v2733_v45  ;;  %3364 = vmatpush3.bf16.msra.mxu0 %v3597_v46  ;;  %v2814_v45 = vcombine.high %v129_v39, %v137_v40  ;;  %v144_v46 = vld [vmem:[#allocation2 + $0x320] sm:$0xff] }
  0xcc   :  { %3428 = vmatpush3.bf16.msra.mxu1 %v3599_v47  ;;  %2264 = vmatprep.mubr.bf16.mxu0 %v2748_v48  ;;  %v152_v47 = vld [vmem:[#allocation2 + $0x360] sm:$0xff]  ;;  %v145_v48 = vld [vmem:[#allocation2 + $0x328] sm:$0xff] }
  0xcd   :  { %2361 = vmatprep.mubr.bf16.mxu1 %v2750_v49  ;;  %3365 = vmatprep.subr.bf16.mxu0 %v3600_v50  ;;  %v153_v49 = vld [vmem:[#allocation2 + $0x368] sm:$0xff]  ;;  %v2811_v50 = vcombine.low %v128_v36, %v136_v37  ;;  %v2827_v58 = vcombine.low %v144_v46, %v152_v47 }
  0xce   :  { %3429 = vmatprep.subr.bf16.mxu1 %v3602_v51  ;;  %v2813_v51 = vcombine.low %v129_v39, %v137_v40 }
  0xcf   :  { %3366 = vmatpush3.bf16.msra.mxu0 %v3601_v52  ;;  %v2828_v52 = vcombine.high %v144_v46, %v152_v47 }
  0xd0   :  { %3430 = vmatpush3.bf16.msra.mxu1 %v3603_v53  ;;  %3367 = vmatprep.subr.bf16.mxu0 %v3604_v56  ;;  %v2830_v53 = vcombine.high %v145_v48, %v153_v49  ;;  %v161_v56 = vld [vmem:[#allocation2 + $0x3a8] sm:$0xff] }
  0xd1   :  { %3431 = vmatprep.subr.bf16.mxu1 %v3606_v59  ;;  %v2829_v59 = vcombine.low %v145_v48, %v153_v49 }
  0xd2   :  { %2265 = vmatmul.mubr.bf16.gmra.mrb[68].mxu0 %v2747_v60  ;;  %v2844_v60 = vcombine.high %v160_v54, %v168_v55 }
  0xd3   :  { %2362 = vmatmul.mubr.bf16.gmra.mrb[68].mxu1 %v2749_v61  ;;  %2272 = vmatprep.mubr.bf16.mxu0 %v2764_v62  ;;  %v2846_v61 = vcombine.high %v161_v56, %v169_v57  ;;  %v50_v62 = vld [vmem:[#allocation2 + $0x30] sm:$0xff] }
  0xd4   :  { %2369 = vmatprep.mubr.bf16.mxu1 %v2766_v63  ;;  %3368 = vmatpush3.bf16.msra.mxu0 %v3605_v0  ;;  %v58_v63 = vld [vmem:[#allocation2 + $0x70] sm:$0xff]  ;;  %v51_v0 = vld [vmem:[#allocation2 + $0x38] sm:$0xff] }
  0xd5   :  { %3432 = vmatpush3.bf16.msra.mxu1 %v3607_v1  ;;  %3369 = vmatprep.subr.bf16.mxu0 %v3608_v2  ;;  %v59_v1 = vld [vmem:[#allocation2 + $0x78] sm:$0xff]  ;;  %v2843_v2 = vcombine.low %v160_v54, %v168_v55  ;;  %v2736_v4 = vcombine.high %v50_v62, %v58_v63 }
  0xd6   :  { %3433 = vmatprep.subr.bf16.mxu1 %v3610_v3  ;;  %v2845_v3 = vcombine.low %v161_v56, %v169_v57  ;;  %v2738_v5 = vcombine.high %v51_v0, %v59_v1  ;;  %v131_v55 = vld [vmem:[#allocation2 + $0x2b8] sm:$0xff] }
  0xd7   :  { %v139_v56 = vld [vmem:[#allocation2 + $0x2f8] sm:$0xff] }
  0xd8   :  { %3370 = vmatpush3.bf16.msra.mxu0 %v3609_v7  ;;  %v74_v7 = vld [vmem:[#allocation2 + $0xf0] sm:$0xff] }
  0xd9   :  { %3434 = vmatpush3.bf16.msra.mxu1 %v3611_v9  ;;  %3371 = vmatprep.subr.bf16.mxu0 %v3612_v10  ;;  %v75_v9 = vld [vmem:[#allocation2 + $0xf8] sm:$0xff]  ;;  %v2735_v10 = vcombine.low %v50_v62, %v58_v63 }
  0xda   :  { %2273 = vmatmul.mubr.bf16.gmra.mrb[72].mxu0 %v2763_v11  ;;  %3435 = vmatprep.subr.bf16.mxu1 %v3614_v12  ;;  %v2737_v11 = vcombine.low %v51_v0, %v59_v1  ;;  %v2752_v12 = vcombine.high %v66_v6, %v74_v7 }
  0xdb   :  { %2370 = vmatmul.mubr.bf16.gmra.mrb[72].mxu1 %v2765_v13  ;;  %2280 = vmatprep.mubr.bf16.mxu0 %v2780_v14  ;;  %v2754_v13 = vcombine.high %v67_v8, %v75_v9  ;;  %v82_v14 = vld [vmem:[#allocation2 + $0x130] sm:$0xff] }
  0xdc   :  { %2377 = vmatprep.mubr.bf16.mxu1 %v2782_v15  ;;  %3372 = vmatpush3.bf16.msra.mxu0 %v3613_v16  ;;  %v90_v15 = vld [vmem:[#allocation2 + $0x170] sm:$0xff]  ;;  %v83_v16 = vld [vmem:[#allocation2 + $0x138] sm:$0xff] }
  0xdd   :  { %3436 = vmatpush3.bf16.msra.mxu1 %v3615_v17  ;;  %3373 = vmatprep.subr.bf16.mxu0 %v3616_v18  ;;  %v91_v17 = vld [vmem:[#allocation2 + $0x178] sm:$0xff]  ;;  %v2751_v18 = vcombine.low %v66_v6, %v74_v7  ;;  %v2768_v20 = vcombine.high %v82_v14, %v90_v15 }
  0xde   :  { %3437 = vmatprep.subr.bf16.mxu1 %v3618_v19  ;;  %v2753_v19 = vcombine.low %v67_v8, %v75_v9  ;;  %v2770_v21 = vcombine.high %v83_v16, %v91_v17 }
  0xe0   :  { %3374 = vmatpush3.bf16.msra.mxu0 %v3617_v23  ;;  %v106_v23 = vld [vmem:[#allocation2 + $0x1f0] sm:$0xff] }
  0xe1   :  { %3438 = vmatpush3.bf16.msra.mxu1 %v3619_v25  ;;  %3375 = vmatprep.subr.bf16.mxu0 %v3620_v26  ;;  %v107_v25 = vld [vmem:[#allocation2 + $0x1f8] sm:$0xff]  ;;  %v2767_v26 = vcombine.low %v82_v14, %v90_v15  ;;  %v2783_v37 = vcombine.low %v98_v22, %v106_v23 }
  0xe2   :  { %2281 = vmatmul.mubr.bf16.gmra.mrb[76].mxu0 %v2779_v27  ;;  %3439 = vmatprep.subr.bf16.mxu1 %v3622_v28  ;;  %v2769_v27 = vcombine.low %v83_v16, %v91_v17  ;;  %v2784_v28 = vcombine.high %v98_v22, %v106_v23  ;;  %v155_v14 = vld [vmem:[#allocation2 + $0x378] sm:$0xff] }
  0xe3   :  { %2378 = vmatmul.mubr.bf16.gmra.mrb[76].mxu1 %v2781_v29  ;;  %2288 = vmatprep.mubr.bf16.mxu0 %v2796_v30  ;;  %v2786_v29 = vcombine.high %v99_v24, %v107_v25  ;;  %v114_v30 = vld [vmem:[#allocation2 + $0x230] sm:$0xff] }
  0xe4   :  { %2385 = vmatprep.mubr.bf16.mxu1 %v2798_v31  ;;  %3376 = vmatpush3.bf16.msra.mxu0 %v3621_v32  ;;  %v122_v31 = vld [vmem:[#allocation2 + $0x270] sm:$0xff] }
  0xe5   :  { %3440 = vmatpush3.bf16.msra.mxu1 %v3623_v33  ;;  %3377 = vmatprep.subr.bf16.mxu0 %v3624_v34  ;;  %v115_v33 = vld [vmem:[#allocation2 + $0x238] sm:$0xff] }
  0xe6   :  { %3441 = vmatprep.subr.bf16.mxu1 %v3626_v35  ;;  %v123_v34 = vld [vmem:[#allocation2 + $0x278] sm:$0xff] }
  0xe7   :  { %v2802_v46 = vcombine.high %v115_v33, %v123_v34  ;;  %v2801_v63 = vcombine.low %v115_v33, %v123_v34  ;;  %v170_v33 = vld [vmem:[#allocation2 + $0x3f0] sm:$0xff] }
  0xe8   :  { %3378 = vmatpush3.bf16.msra.mxu0 %v3625_v38 }
  0xe9   :  { %3442 = vmatpush3.bf16.msra.mxu1 %v3627_v41  ;;  %v2785_v41 = vcombine.low %v99_v24, %v107_v25 }
  0xea   :  { %2289 = vmatmul.mubr.bf16.gmra.mrb[80].mxu0 %v2795_v42  ;;  %v2800_v42 = vcombine.high %v114_v30, %v122_v31 }
  0xeb   :  { %2386 = vmatmul.mubr.bf16.gmra.mrb[80].mxu1 %v2797_v43  ;;  %2296 = vmatprep.mubr.bf16.mxu0 %v2812_v44 }
  0xec   :  { %2393 = vmatprep.mubr.bf16.mxu1 %v2814_v45 }
  0xf2   :  { %2297 = vmatmul.mubr.bf16.gmra.mrb[84].mxu0 %v2811_v50 }
  0xf3   :  { %2394 = vmatmul.mubr.bf16.gmra.mrb[84].mxu1 %v2813_v51  ;;  %2304 = vmatprep.mubr.bf16.mxu0 %v2828_v52  ;;  %v130_v52 = vld [vmem:[#allocation2 + $0x2b0] sm:$0xff] }
  0xf4   :  { %2401 = vmatprep.mubr.bf16.mxu1 %v2830_v53  ;;  %v138_v53 = vld [vmem:[#allocation2 + $0x2f0] sm:$0xff] }
  0xf5   :  { %v2816_v0 = vcombine.high %v130_v52, %v138_v53  ;;  %v2815_v17 = vcombine.low %v130_v52, %v138_v53 }
  0xfa   :  { %2305 = vmatmul.mubr.bf16.gmra.mrb[88].mxu0 %v2827_v58 }
  0xfb   :  { %2402 = vmatmul.mubr.bf16.gmra.mrb[88].mxu1 %v2829_v59  ;;  %2312 = vmatprep.mubr.bf16.mxu0 %v2844_v60  ;;  %v2799_v59 = vcombine.low %v114_v30, %v122_v31 }
  0xfc   :  { %2409 = vmatprep.mubr.bf16.mxu1 %v2846_v61 }
 0x102   :  { %2313 = vmatmul.mubr.bf16.gmra.mrb[92].mxu0 %v2843_v2 }
 0x103   :  { %2410 = vmatmul.mubr.bf16.gmra.mrb[92].mxu1 %v2845_v3  ;;  %2450 = vmatprep.mubr.bf16.mxu0 %v2736_v4  ;;  %v2818_v4 = vcombine.high %v131_v55, %v139_v56 }
 0x104   :  { %2547 = vmatprep.mubr.bf16.mxu1 %v2738_v5 }
 0x10a   :  { %2451 = vmatmul.mubr.bf16.vlgmr.msra.gmra.mrb[96].mxu0 %v2735_v10  ;;  %v146_v10 = vld [vmem:[#allocation2 + $0x330] sm:$0xff] }
 0x10b   :  { %2548 = vmatmul.mubr.bf16.vlgmr.msra.gmra.mrb[96].mxu1 %v2737_v11  ;;  %2458 = vmatprep.mubr.bf16.mxu0 %v2752_v12  ;;  %v154_v11 = vld [vmem:[#allocation2 + $0x370] sm:$0xff] }
 0x10c   :  { %2555 = vmatprep.mubr.bf16.mxu1 %v2754_v13  ;;  %v147_v13 = vld [vmem:[#allocation2 + $0x338] sm:$0xff]  ;;  %v2832_v22 = vcombine.high %v146_v10, %v154_v11 }
 0x112   :  { %2459 = vmatmul.mubr.bf16.gmra.mrb[100].mxu0 %v2751_v18 }
 0x113   :  { %2556 = vmatmul.mubr.bf16.gmra.mrb[100].mxu1 %v2753_v19  ;;  %2466 = vmatprep.mubr.bf16.mxu0 %v2768_v20 }
 0x114   :  { %2563 = vmatprep.mubr.bf16.mxu1 %v2770_v21  ;;  %v2817_v21 = vcombine.low %v131_v55, %v139_v56 }
 0x11a   :  { %2467 = vmatmul.mubr.bf16.gmra.mrb[104].mxu0 %v2767_v26  ;;  %v2834_v26 = vcombine.high %v147_v13, %v155_v14 }
 0x11b   :  { %2564 = vmatmul.mubr.bf16.gmra.mrb[104].mxu1 %v2769_v27  ;;  %2474 = vmatprep.mubr.bf16.mxu0 %v2784_v28 }
 0x11c   :  { %2571 = vmatprep.mubr.bf16.mxu1 %v2786_v29 }
 0x11d   :  { %v2995_v32 = vpop.f32.mrb[0].mxu0 }
 0x11e   :  { %v3059_v35 = vpop.f32.mrb[0].mxu1  ;;  %v2996_v36 = vpop.f32.mrb[1].mxu0 }
 0x11f   :  { %v2997_v38 = vadd.f32 %v2996_v36, %v2995_v32  ;;  %v3060_v39 = vpop.f32.mrb[1].mxu1  ;;  %v2998_v40 = vpop.f32.mrb[2].mxu0  ;;  %v162_v32 = vld [vmem:[#allocation2 + $0x3b0] sm:$0xff]  ;;  %v171_v36 = vld [vmem:[#allocation2 + $0x3f8] sm:$0xff] }
 0x120   :  { %v3061_v43 = vadd.f32 %v3060_v39, %v3059_v35  ;;  %v3062_v44 = vpop.f32.mrb[2].mxu1  ;;  %v2999_v45 = vpop.f32.mrb[3].mxu0  ;;  %v163_v35 = vld [vmem:[#allocation2 + $0x3b8] sm:$0xff]  ;;  %v2831_v39 = vcombine.low %v146_v10, %v154_v11 }
 0x121   :  { %v3000_v47 = vadd.f32 %v2999_v45, %v2998_v40  ;;  %v3063_v48 = vpop.f32.mrb[3].mxu1 }
 0x122   :  { %v3777_v49 = vadd.f32 %v3061_v43, %v2997_v38  ;;  %v3064_v50 = vadd.f32 %v3063_v48, %v3062_v44  ;;  %2475 = vmatmul.mubr.bf16.gmra.mrb[108].mxu0 %v2783_v37  ;;  %v2833_v43 = vcombine.low %v147_v13, %v155_v14  ;;  %v2848_v44 = vcombine.high %v162_v32, %v170_v33 }
 0x123   :  { %2572 = vmatmul.mubr.bf16.gmra.mrb[108].mxu1 %v2785_v41  ;;  %2482 = vmatprep.mubr.bf16.mxu0 %v2800_v42  ;;  %v2850_v48 = vcombine.high %v163_v35, %v171_v36 }
 0x124   :  { %v3779_v51 = vadd.f32 %v3064_v50, %v3000_v47  ;;  %2579 = vmatprep.mubr.bf16.mxu1 %v2802_v46 }
 0x125   :  { %v3001_v54 = vpop.f32.mrb[4].mxu0 }
 0x126   :  { %v3065_v57 = vpop.f32.mrb[4].mxu1  ;;  %v3002_v58 = vpop.f32.mrb[5].mxu0 }
 0x127   :  { %v3003_v60 = vadd.f32 %v3002_v58, %v3001_v54  ;;  %v3066_v61 = vpop.f32.mrb[5].mxu1  ;;  %v3004_v62 = vpop.f32.mrb[6].mxu0 }
 0x128   :  { %v3067_v1 = vadd.f32 %v3066_v61, %v3065_v57  ;;  %v3068_v2 = vpop.f32.mrb[6].mxu1  ;;  %v3005_v3 = vpop.f32.mrb[7].mxu0 }
 0x129   :  { %v3006_v5 = vadd.f32 %v3005_v3, %v3004_v62  ;;  %v3069_v6 = vpop.f32.mrb[7].mxu1 }
 0x12a   :  { %v3781_v7 = vadd.f32 %v3067_v1, %v3003_v60  ;;  %v3070_v8 = vadd.f32 %v3069_v6, %v3068_v2  ;;  %2483 = vmatmul.mubr.bf16.gmra.mrb[112].mxu0 %v2799_v59  ;;  %v2847_v59 = vcombine.low %v162_v32, %v170_v33 }
 0x12b   :  { %2580 = vmatmul.mubr.bf16.gmra.mrb[112].mxu1 %v2801_v63  ;;  %2490 = vmatprep.mubr.bf16.mxu0 %v2816_v0  ;;  %v2849_v63 = vcombine.low %v163_v35, %v171_v36 }
 0x12c   :  { %v3783_v9 = vadd.f32 %v3070_v8, %v3006_v5  ;;  %2587 = vmatprep.mubr.bf16.mxu1 %v2818_v4 }
 0x12d   :  { %v3007_v12 = vpop.f32.mrb[8].mxu0 }
 0x12e   :  { %v3071_v15 = vpop.f32.mrb[8].mxu1  ;;  %v3008_v16 = vpop.f32.mrb[9].mxu0 }
 0x12f   :  { %v3009_v18 = vadd.f32 %v3008_v16, %v3007_v12  ;;  %v3072_v19 = vpop.f32.mrb[9].mxu1  ;;  %v3010_v20 = vpop.f32.mrb[10].mxu0 }
 0x130   :  { %v3073_v23 = vadd.f32 %v3072_v19, %v3071_v15  ;;  %v3074_v24 = vpop.f32.mrb[10].mxu1  ;;  %v3011_v25 = vpop.f32.mrb[11].mxu0 }
 0x131   :  { %v3012_v27 = vadd.f32 %v3011_v25, %v3010_v20  ;;  %v3075_v28 = vpop.f32.mrb[11].mxu1 }
 0x132   :  { %v3785_v29 = vadd.f32 %v3073_v23, %v3009_v18  ;;  %v3076_v30 = vadd.f32 %v3075_v28, %v3074_v24  ;;  %2491 = vmatmul.mubr.bf16.gmra.mrb[116].mxu0 %v2815_v17 }
 0x133   :  { %2588 = vmatmul.mubr.bf16.gmra.mrb[116].mxu1 %v2817_v21  ;;  %2498 = vmatprep.mubr.bf16.mxu0 %v2832_v22 }
 0x134   :  { %v3787_v31 = vadd.f32 %v3076_v30, %v3012_v27  ;;  %2595 = vmatprep.mubr.bf16.mxu1 %v2834_v26 }
 0x135   :  { %v3013_v34 = vpop.f32.mrb[12].mxu0 }
 0x136   :  { %v3077_v37 = vpop.f32.mrb[12].mxu1  ;;  %v3014_v38 = vpop.f32.mrb[13].mxu0 }
 0x137   :  { %v3015_v40 = vadd.f32 %v3014_v38, %v3013_v34  ;;  %v3078_v41 = vpop.f32.mrb[13].mxu1  ;;  %v3016_v42 = vpop.f32.mrb[14].mxu0 }
 0x138   :  { %v3079_v45 = vadd.f32 %v3078_v41, %v3077_v37  ;;  %v3080_v46 = vpop.f32.mrb[14].mxu1  ;;  %v3017_v47 = vpop.f32.mrb[15].mxu0 }
 0x139   :  { %v3018_v50 = vadd.f32 %v3017_v47, %v3016_v42  ;;  %v3081_v52 = vpop.f32.mrb[15].mxu1 }
 0x13a   :  { %v3789_v53 = vadd.f32 %v3079_v45, %v3015_v40  ;;  %v3082_v54 = vadd.f32 %v3081_v52, %v3080_v46  ;;  %2499 = vmatmul.mubr.bf16.gmra.mrb[120].mxu0 %v2831_v39 }
 0x13b   :  { %2596 = vmatmul.mubr.bf16.gmra.mrb[120].mxu1 %v2833_v43  ;;  %2506 = vmatprep.mubr.bf16.mxu0 %v2848_v44 }
 0x13c   :  { %v3791_v55 = vadd.f32 %v3082_v54, %v3018_v50  ;;  %2603 = vmatprep.mubr.bf16.mxu1 %v2850_v48 }
 0x13d   :  { %v3019_v56 = vpop.f32.mrb[16].mxu0 }
 0x13e   :  { %v3083_v57 = vpop.f32.mrb[16].mxu1  ;;  %v3020_v58 = vpop.f32.mrb[17].mxu0 }
 0x13f   :  { %v3021_v60 = vadd.f32 %v3020_v58, %v3019_v56  ;;  %v3084_v61 = vpop.f32.mrb[17].mxu1  ;;  %v3022_v62 = vpop.f32.mrb[18].mxu0 }
 0x140   :  { %v3085_v0 = vadd.f32 %v3084_v61, %v3083_v57  ;;  %v3086_v1 = vpop.f32.mrb[18].mxu1  ;;  %v3023_v2 = vpop.f32.mrb[19].mxu0 }
 0x141   :  { %v3024_v3 = vadd.f32 %v3023_v2, %v3022_v62  ;;  %v3087_v4 = vpop.f32.mrb[19].mxu1 }
 0x142   :  { %v3793_v5 = vadd.f32 %v3085_v0, %v3021_v60  ;;  %v3088_v6 = vadd.f32 %v3087_v4, %v3086_v1  ;;  %2507 = vmatmul.mubr.bf16.gmra.mrb[124].mxu0 %v2847_v59 }
 0x143   :  { %2604 = vmatmul.mubr.bf16.gmra.mrb[124].mxu1 %v2849_v63 }
 0x144   :  { %v3795_v8 = vadd.f32 %v3088_v6, %v3024_v3 }
 0x145   :  { %v3025_v10 = vpop.f32.mrb[20].mxu0 }
 0x146   :  { %v3089_v11 = vpop.f32.mrb[20].mxu1  ;;  %v3026_v12 = vpop.f32.mrb[21].mxu0 }
 0x147   :  { %v3027_v13 = vadd.f32 %v3026_v12, %v3025_v10  ;;  %v3090_v14 = vpop.f32.mrb[21].mxu1  ;;  %v3028_v15 = vpop.f32.mrb[22].mxu0 }
 0x148   :  { %v3091_v16 = vadd.f32 %v3090_v14, %v3089_v11  ;;  %v3092_v17 = vpop.f32.mrb[22].mxu1  ;;  %v3029_v18 = vpop.f32.mrb[23].mxu0 }
 0x149   :  { %v3030_v19 = vadd.f32 %v3029_v18, %v3028_v15  ;;  %v3093_v20 = vpop.f32.mrb[23].mxu1 }
 0x14a   :  { %v3797_v21 = vadd.f32 %v3091_v16, %v3027_v13  ;;  %v3094_v22 = vadd.f32 %v3093_v20, %v3092_v17 }
 0x14c   :  { %v3799_v23 = vadd.f32 %v3094_v22, %v3030_v19 }
 0x14d   :  { %v3031_v24 = vpop.f32.mrb[24].mxu0 }
 0x14e   :  { %v3095_v25 = vpop.f32.mrb[24].mxu1  ;;  %v3032_v26 = vpop.f32.mrb[25].mxu0 }
 0x14f   :  { %v3033_v27 = vadd.f32 %v3032_v26, %v3031_v24  ;;  %v3096_v28 = vpop.f32.mrb[25].mxu1  ;;  %v3034_v30 = vpop.f32.mrb[26].mxu0 }
 0x150   :  { %v3097_v32 = vadd.f32 %v3096_v28, %v3095_v25  ;;  %v3098_v33 = vpop.f32.mrb[26].mxu1  ;;  %v3035_v34 = vpop.f32.mrb[27].mxu0 }
 0x151   :  { %v3036_v35 = vadd.f32 %v3035_v34, %v3034_v30  ;;  %v3099_v36 = vpop.f32.mrb[27].mxu1 }
 0x152   :  { %v3801_v37 = vadd.f32 %v3097_v32, %v3033_v27  ;;  %v3100_v38 = vadd.f32 %v3099_v36, %v3098_v33 }
 0x154   :  { %v3803_v39 = vadd.f32 %v3100_v38, %v3036_v35 }
 0x155   :  { %v3037_v40 = vpop.f32.mrb[28].mxu0 }
 0x156   :  { %v3101_v41 = vpop.f32.mrb[28].mxu1  ;;  %v3038_v42 = vpop.f32.mrb[29].mxu0 }
 0x157   :  { %v3039_v43 = vadd.f32 %v3038_v42, %v3037_v40  ;;  %v3102_v44 = vpop.f32.mrb[29].mxu1  ;;  %v3040_v45 = vpop.f32.mrb[30].mxu0 }
 0x158   :  { %v3103_v46 = vadd.f32 %v3102_v44, %v3101_v41  ;;  %v3104_v47 = vpop.f32.mrb[30].mxu1  ;;  %v3041_v48 = vpop.f32.mrb[31].mxu0 }
 0x159   :  { %v3042_v50 = vadd.f32 %v3041_v48, %v3040_v45  ;;  %v3105_v52 = vpop.f32.mrb[31].mxu1 }
 0x15a   :  { %v3805_v54 = vadd.f32 %v3103_v46, %v3039_v43  ;;  %v3106_v56 = vadd.f32 %v3105_v52, %v3104_v47 }
 0x15c   :  { %v3807_v57 = vadd.f32 %v3106_v56, %v3042_v50 }
 0x15d   :  { %v3123_v58 = vpop.f32.mrb[32].mxu0 }
 0x15e   :  { %v3187_v59 = vpop.f32.mrb[32].mxu1  ;;  %v3124_v60 = vpop.f32.mrb[33].mxu0 }
 0x15f   :  { %v3125_v61 = vadd.f32 %v3124_v60, %v3123_v58  ;;  %v3188_v62 = vpop.f32.mrb[33].mxu1  ;;  %v3126_v63 = vpop.f32.mrb[34].mxu0 }
 0x160   :  { %v3189_v0 = vadd.f32 %v3188_v62, %v3187_v59  ;;  %v3190_v1 = vpop.f32.mrb[34].mxu1  ;;  %v3127_v2 = vpop.f32.mrb[35].mxu0 }
 0x161   :  { %v2065_v3 = vadd.f32 %v3125_v61, %v3777_v49  ;;  %v3128_v4 = vadd.f32 %v3127_v2, %v3126_v63  ;;  %v3191_v6 = vpop.f32.mrb[35].mxu1 }
 0x162   :  { %v3192_v10 = vadd.f32 %v3191_v6, %v3190_v1 }
 0x163   :  { %v3810_v11 = vadd.f32 %v3189_v0, %v2065_v3  ;;  %v2068_v12 = vadd.f32 %v3128_v4, %v3779_v51 }
 0x165   :  { %v3813_v13 = vadd.f32 %v3192_v10, %v2068_v12  ;;  %v3129_v14 = vpop.f32.mrb[36].mxu0 }
 0x166   :  { %v3193_v15 = vpop.f32.mrb[36].mxu1  ;;  %v3130_v16 = vpop.f32.mrb[37].mxu0 }
 0x167   :  { %v3131_v17 = vadd.f32 %v3130_v16, %v3129_v14  ;;  %v3194_v18 = vpop.f32.mrb[37].mxu1  ;;  %v3132_v19 = vpop.f32.mrb[38].mxu0 }
 0x168   :  { %v3195_v20 = vadd.f32 %v3194_v18, %v3193_v15  ;;  %v3196_v22 = vpop.f32.mrb[38].mxu1  ;;  %v3133_v24 = vpop.f32.mrb[39].mxu0 }
 0x169   :  { %v2073_v49 = vadd.f32 %v3131_v17, %v3781_v7  ;;  %v3134_v25 = vadd.f32 %v3133_v24, %v3132_v19  ;;  %v3197_v26 = vpop.f32.mrb[39].mxu1 }
 0x16a   :  { %v3198_v27 = vadd.f32 %v3197_v26, %v3196_v22 }
 0x16b   :  { %v3816_v28 = vadd.f32 %v3195_v20, %v2073_v49  ;;  %v2076_v51 = vadd.f32 %v3134_v25, %v3783_v9 }
 0x16d   :  { %v3819_v30 = vadd.f32 %v3198_v27, %v2076_v51  ;;  %v3135_v32 = vpop.f32.mrb[40].mxu0 }
 0x16e   :  { %v3199_v33 = vpop.f32.mrb[40].mxu1  ;;  %v3136_v34 = vpop.f32.mrb[41].mxu0 }
 0x16f   :  { %v3137_v35 = vadd.f32 %v3136_v34, %v3135_v32  ;;  %v3200_v36 = vpop.f32.mrb[41].mxu1  ;;  %v3138_v38 = vpop.f32.mrb[42].mxu0 }
 0x170   :  { %v3201_v40 = vadd.f32 %v3200_v36, %v3199_v33  ;;  %v3202_v41 = vpop.f32.mrb[42].mxu1  ;;  %v3139_v42 = vpop.f32.mrb[43].mxu0 }
 0x171   :  { %v2081_v7 = vadd.f32 %v3137_v35, %v3785_v29  ;;  %v3140_v43 = vadd.f32 %v3139_v42, %v3138_v38  ;;  %v3203_v44 = vpop.f32.mrb[43].mxu1 }
 0x172   :  { %v3204_v45 = vadd.f32 %v3203_v44, %v3202_v41 }
 0x173   :  { %v3822_v46 = vadd.f32 %v3201_v40, %v2081_v7  ;;  %v2084_v9 = vadd.f32 %v3140_v43, %v3787_v31 }
 0x175   :  { %v3825_v47 = vadd.f32 %v3204_v45, %v2084_v9  ;;  %v3141_v48 = vpop.f32.mrb[44].mxu0 }
 0x176   :  { %v3205_v50 = vpop.f32.mrb[44].mxu1  ;;  %v3142_v52 = vpop.f32.mrb[45].mxu0 }
 0x177   :  { %v3143_v56 = vadd.f32 %v3142_v52, %v3141_v48  ;;  %v3206_v58 = vpop.f32.mrb[45].mxu1  ;;  %v3144_v59 = vpop.f32.mrb[46].mxu0 }
 0x178   :  { %v3207_v60 = vadd.f32 %v3206_v58, %v3205_v50  ;;  %v3208_v61 = vpop.f32.mrb[46].mxu1  ;;  %v3145_v62 = vpop.f32.mrb[47].mxu0 }
 0x179   :  { %v2089_v29 = vadd.f32 %v3143_v56, %v3789_v53  ;;  %v3146_v63 = vadd.f32 %v3145_v62, %v3144_v59  ;;  %v3209_v0 = vpop.f32.mrb[47].mxu1 }
 0x17a   :  { %v3210_v1 = vadd.f32 %v3209_v0, %v3208_v61 }
 0x17b   :  { %v3828_v2 = vadd.f32 %v3207_v60, %v2089_v29  ;;  %v2092_v31 = vadd.f32 %v3146_v63, %v3791_v55 }
 0x17d   :  { %v3831_v3 = vadd.f32 %v3210_v1, %v2092_v31  ;;  %v3147_v4 = vpop.f32.mrb[48].mxu0 }
 0x17e   :  { %v3211_v6 = vpop.f32.mrb[48].mxu1  ;;  %v3148_v10 = vpop.f32.mrb[49].mxu0 }
 0x17f   :  { %v3149_v12 = vadd.f32 %v3148_v10, %v3147_v4  ;;  %v3212_v14 = vpop.f32.mrb[49].mxu1  ;;  %v3150_v15 = vpop.f32.mrb[50].mxu0 }
 0x180   :  { %v3213_v16 = vadd.f32 %v3212_v14, %v3211_v6  ;;  %v3214_v17 = vpop.f32.mrb[50].mxu1  ;;  %v3151_v18 = vpop.f32.mrb[51].mxu0 }
 0x181   :  { %v2097_v53 = vadd.f32 %v3149_v12, %v3793_v5  ;;  %v3152_v19 = vadd.f32 %v3151_v18, %v3150_v15  ;;  %v3215_v20 = vpop.f32.mrb[51].mxu1 }
 0x182   :  { %v3216_v22 = vadd.f32 %v3215_v20, %v3214_v17 }
 0x183   :  { %v3834_v24 = vadd.f32 %v3213_v16, %v2097_v53  ;;  %v2100_v55 = vadd.f32 %v3152_v19, %v3795_v8 }
 0x185   :  { %v3837_v49 = vadd.f32 %v3216_v22, %v2100_v55  ;;  %v3153_v25 = vpop.f32.mrb[52].mxu0 }
 0x186   :  { %v3217_v26 = vpop.f32.mrb[52].mxu1  ;;  %v3154_v27 = vpop.f32.mrb[53].mxu0 }
 0x187   :  { %v3155_v51 = vadd.f32 %v3154_v27, %v3153_v25  ;;  %v3218_v32 = vpop.f32.mrb[53].mxu1  ;;  %v3156_v33 = vpop.f32.mrb[54].mxu0 }
 0x188   :  { %v3219_v34 = vadd.f32 %v3218_v32, %v3217_v26  ;;  %v3220_v35 = vpop.f32.mrb[54].mxu1  ;;  %v3157_v36 = vpop.f32.mrb[55].mxu0 }
 0x189   :  { %v2105_v5 = vadd.f32 %v3155_v51, %v3797_v21  ;;  %v3158_v38 = vadd.f32 %v3157_v36, %v3156_v33  ;;  %v3221_v40 = vpop.f32.mrb[55].mxu1 }
 0x18a   :  { %v3222_v41 = vadd.f32 %v3221_v40, %v3220_v35 }
 0x18b   :  { %v3840_v42 = vadd.f32 %v3219_v34, %v2105_v5  ;;  %v2108_v8 = vadd.f32 %v3158_v38, %v3799_v23 }
 0x18d   :  { %v3843_v7 = vadd.f32 %v3222_v41, %v2108_v8  ;;  %v3159_v43 = vpop.f32.mrb[56].mxu0 }
 0x18e   :  { %v3223_v44 = vpop.f32.mrb[56].mxu1  ;;  %v3160_v45 = vpop.f32.mrb[57].mxu0 }
 0x18f   :  { %v3161_v9 = vadd.f32 %v3160_v45, %v3159_v43  ;;  %v3224_v48 = vpop.f32.mrb[57].mxu1  ;;  %v3162_v50 = vpop.f32.mrb[58].mxu0 }
 0x190   :  { %v3225_v52 = vadd.f32 %v3224_v48, %v3223_v44  ;;  %v3226_v56 = vpop.f32.mrb[58].mxu1  ;;  %v3163_v58 = vpop.f32.mrb[59].mxu0 }
 0x191   :  { %v2113_v21 = vadd.f32 %v3161_v9, %v3801_v37  ;;  %v3164_v59 = vadd.f32 %v3163_v58, %v3162_v50  ;;  %v3227_v60 = vpop.f32.mrb[59].mxu1 }
 0x192   :  { %v3228_v61 = vadd.f32 %v3227_v60, %v3226_v56 }
 0x193   :  { %v3846_v62 = vadd.f32 %v3225_v52, %v2113_v21  ;;  %v2116_v23 = vadd.f32 %v3164_v59, %v3803_v39 }
 0x195   :  { %v3849_v29 = vadd.f32 %v3228_v61, %v2116_v23  ;;  %v3165_v63 = vpop.f32.mrb[60].mxu0 }
 0x196   :  { %v3229_v0 = vpop.f32.mrb[60].mxu1  ;;  %v3166_v1 = vpop.f32.mrb[61].mxu0 }
 0x197   :  { %v3167_v31 = vadd.f32 %v3166_v1, %v3165_v63  ;;  %v3230_v4 = vpop.f32.mrb[61].mxu1  ;;  %v3168_v6 = vpop.f32.mrb[62].mxu0 }
 0x198   :  { %v3231_v10 = vadd.f32 %v3230_v4, %v3229_v0  ;;  %v3232_v12 = vpop.f32.mrb[62].mxu1  ;;  %v3169_v14 = vpop.f32.mrb[63].mxu0 }
 0x199   :  { %v2121_v37 = vadd.f32 %v3167_v31, %v3805_v54  ;;  %v3170_v15 = vadd.f32 %v3169_v14, %v3168_v6  ;;  %v3233_v16 = vpop.f32.mrb[63].mxu1 }
 0x19a   :  { %v3234_v17 = vadd.f32 %v3233_v16, %v3232_v12 }
 0x19b   :  { %v3852_v18 = vadd.f32 %v3231_v10, %v2121_v37  ;;  %v2124_v39 = vadd.f32 %v3170_v15, %v3807_v57 }
 0x19d   :  { %v3855_v53 = vadd.f32 %v3234_v17, %v2124_v39  ;;  %v3251_v19 = vpop.f32.mrb[64].mxu0 }
 0x19e   :  { %v3315_v20 = vpop.f32.mrb[64].mxu1  ;;  %v3252_v22 = vpop.f32.mrb[65].mxu0 }
 0x19f   :  { %v3253_v55 = vadd.f32 %v3252_v22, %v3251_v19  ;;  %v3316_v25 = vpop.f32.mrb[65].mxu1  ;;  %v3254_v26 = vpop.f32.mrb[66].mxu0 }
 0x1a0   :  { %v3317_v27 = vadd.f32 %v3316_v25, %v3315_v20  ;;  %v3318_v51 = vpop.f32.mrb[66].mxu1  ;;  %v3255_v32 = vpop.f32.mrb[67].mxu0 }
 0x1a1   :  { %v2259_v54 = vadd.f32 %v3253_v55, %v3810_v11  ;;  %v3256_v33 = vadd.f32 %v3255_v32, %v3254_v26  ;;  %v3319_v34 = vpop.f32.mrb[67].mxu1 }
 0x1a2   :  { %v3320_v35 = vadd.f32 %v3319_v34, %v3318_v51 }
 0x1a3   :  { %v3858_v36 = vadd.f32 %v3317_v27, %v2259_v54  ;;  %v2262_v57 = vadd.f32 %v3256_v33, %v3813_v13 }
 0x1a5   :  { %v3861_v5 = vadd.f32 %v3320_v35, %v2262_v57  ;;  %v3257_v38 = vpop.f32.mrb[68].mxu0 }
 0x1a6   :  { %v3321_v40 = vpop.f32.mrb[68].mxu1  ;;  %v3258_v41 = vpop.f32.mrb[69].mxu0 }
 0x1a7   :  { %v3259_v8 = vadd.f32 %v3258_v41, %v3257_v38  ;;  %v3322_v43 = vpop.f32.mrb[69].mxu1  ;;  %v3260_v44 = vpop.f32.mrb[70].mxu0 }
 0x1a8   :  { %v3323_v45 = vadd.f32 %v3322_v43, %v3321_v40  ;;  %v3324_v9 = vpop.f32.mrb[70].mxu1  ;;  %v3261_v48 = vpop.f32.mrb[71].mxu0 }
 0x1a9   :  { %v2267_v11 = vadd.f32 %v3259_v8, %v3816_v28  ;;  %v3262_v50 = vadd.f32 %v3261_v48, %v3260_v44  ;;  %v3325_v52 = vpop.f32.mrb[71].mxu1 }
 0x1aa   :  { %v3326_v56 = vadd.f32 %v3325_v52, %v3324_v9 }
 0x1ab   :  { %v3864_v58 = vadd.f32 %v3323_v45, %v2267_v11  ;;  %v2270_v13 = vadd.f32 %v3262_v50, %v3819_v30 }
 0x1ad   :  { %v3867_v21 = vadd.f32 %v3326_v56, %v2270_v13  ;;  %v3263_v59 = vpop.f32.mrb[72].mxu0 }
 0x1ae   :  { %v3327_v60 = vpop.f32.mrb[72].mxu1  ;;  %v3264_v61 = vpop.f32.mrb[73].mxu0 }
 0x1af   :  { %v3265_v23 = vadd.f32 %v3264_v61, %v3263_v59  ;;  %v3328_v63 = vpop.f32.mrb[73].mxu1  ;;  %v3266_v0 = vpop.f32.mrb[74].mxu0 }
 0x1b0   :  { %v3329_v1 = vadd.f32 %v3328_v63, %v3327_v60  ;;  %v3330_v31 = vpop.f32.mrb[74].mxu1  ;;  %v3267_v4 = vpop.f32.mrb[75].mxu0 }
 0x1b1   :  { %v2275_v28 = vadd.f32 %v3265_v23, %v3822_v46  ;;  %v3268_v6 = vadd.f32 %v3267_v4, %v3266_v0  ;;  %v3331_v10 = vpop.f32.mrb[75].mxu1 }
 0x1b2   :  { %v3332_v12 = vadd.f32 %v3331_v10, %v3330_v31 }
 0x1b3   :  { %v3870_v14 = vadd.f32 %v3329_v1, %v2275_v28  ;;  %v2278_v30 = vadd.f32 %v3268_v6, %v3825_v47 }
 0x1b5   :  { %v3873_v37 = vadd.f32 %v3332_v12, %v2278_v30  ;;  %v3269_v15 = vpop.f32.mrb[76].mxu0 }
 0x1b6   :  { %v3333_v16 = vpop.f32.mrb[76].mxu1  ;;  %v3270_v17 = vpop.f32.mrb[77].mxu0 }
 0x1b7   :  { %v3271_v39 = vadd.f32 %v3270_v17, %v3269_v15  ;;  %v3334_v19 = vpop.f32.mrb[77].mxu1  ;;  %v3272_v20 = vpop.f32.mrb[78].mxu0 }
 0x1b8   :  { %v3335_v22 = vadd.f32 %v3334_v19, %v3333_v16  ;;  %v3336_v55 = vpop.f32.mrb[78].mxu1  ;;  %v3273_v25 = vpop.f32.mrb[79].mxu0 }
 0x1b9   :  { %v2283_v46 = vadd.f32 %v3271_v39, %v3828_v2  ;;  %v3274_v26 = vadd.f32 %v3273_v25, %v3272_v20  ;;  %v3337_v27 = vpop.f32.mrb[79].mxu1 }
 0x1ba   :  { %v3338_v51 = vadd.f32 %v3337_v27, %v3336_v55 }
 0x1bb   :  { %v3876_v32 = vadd.f32 %v3335_v22, %v2283_v46  ;;  %v2286_v47 = vadd.f32 %v3274_v26, %v3831_v3 }
 0x1bd   :  { %v3879_v54 = vadd.f32 %v3338_v51, %v2286_v47  ;;  %v3275_v33 = vpop.f32.mrb[80].mxu0 }
 0x1be   :  { %v3339_v34 = vpop.f32.mrb[80].mxu1  ;;  %v3276_v35 = vpop.f32.mrb[81].mxu0 }
 0x1bf   :  { %v3277_v57 = vadd.f32 %v3276_v35, %v3275_v33  ;;  %v3340_v38 = vpop.f32.mrb[81].mxu1  ;;  %v3278_v40 = vpop.f32.mrb[82].mxu0 }
 0x1c0   :  { %v3341_v41 = vadd.f32 %v3340_v38, %v3339_v34  ;;  %v3342_v8 = vpop.f32.mrb[82].mxu1  ;;  %v3279_v43 = vpop.f32.mrb[83].mxu0 }
 0x1c1   :  { %v2291_v2 = vadd.f32 %v3277_v57, %v3834_v24  ;;  %v3280_v44 = vadd.f32 %v3279_v43, %v3278_v40  ;;  %v3343_v45 = vpop.f32.mrb[83].mxu1 }
 0x1c2   :  { %v3344_v9 = vadd.f32 %v3343_v45, %v3342_v8 }
 0x1c3   :  { %v3882_v48 = vadd.f32 %v3341_v41, %v2291_v2  ;;  %v2294_v3 = vadd.f32 %v3280_v44, %v3837_v49 }
 0x1c5   :  { %v3885_v11 = vadd.f32 %v3344_v9, %v2294_v3  ;;  %v3281_v50 = vpop.f32.mrb[84].mxu0 }
 0x1c6   :  { %v3345_v52 = vpop.f32.mrb[84].mxu1  ;;  %v3282_v56 = vpop.f32.mrb[85].mxu0 }
 0x1c7   :  { %v3283_v13 = vadd.f32 %v3282_v56, %v3281_v50  ;;  %v3346_v59 = vpop.f32.mrb[85].mxu1  ;;  %v3284_v60 = vpop.f32.mrb[86].mxu0 }
 0x1c8   :  { %v3347_v61 = vadd.f32 %v3346_v59, %v3345_v52  ;;  %v3348_v23 = vpop.f32.mrb[86].mxu1  ;;  %v3285_v63 = vpop.f32.mrb[87].mxu0 }
 0x1c9   :  { %v2299_v24 = vadd.f32 %v3283_v13, %v3840_v42  ;;  %v3286_v0 = vadd.f32 %v3285_v63, %v3284_v60  ;;  %v3349_v1 = vpop.f32.mrb[87].mxu1 }
 0x1ca   :  { %v3350_v31 = vadd.f32 %v3349_v1, %v3348_v23 }
 0x1cb   :  { %v3888_v4 = vadd.f32 %v3347_v61, %v2299_v24  ;;  %v2302_v49 = vadd.f32 %v3286_v0, %v3843_v7 }
 0x1cd   :  { %v3891_v28 = vadd.f32 %v3350_v31, %v2302_v49  ;;  %v3287_v6 = vpop.f32.mrb[88].mxu0 }
 0x1ce   :  { %v3351_v10 = vpop.f32.mrb[88].mxu1  ;;  %v3288_v12 = vpop.f32.mrb[89].mxu0 }
 0x1cf   :  { %v3289_v30 = vadd.f32 %v3288_v12, %v3287_v6  ;;  %v3352_v15 = vpop.f32.mrb[89].mxu1  ;;  %v3290_v16 = vpop.f32.mrb[90].mxu0 }
 0x1d0   :  { %v3353_v17 = vadd.f32 %v3352_v15, %v3351_v10  ;;  %v3354_v39 = vpop.f32.mrb[90].mxu1  ;;  %v3291_v19 = vpop.f32.mrb[91].mxu0 }
 0x1d1   :  { %v2307_v42 = vadd.f32 %v3289_v30, %v3846_v62  ;;  %v3292_v20 = vadd.f32 %v3291_v19, %v3290_v16  ;;  %v3355_v22 = vpop.f32.mrb[91].mxu1 }
 0x1d2   :  { %v3356_v55 = vadd.f32 %v3355_v22, %v3354_v39 }
 0x1d3   :  { %v3894_v25 = vadd.f32 %v3353_v17, %v2307_v42  ;;  %v2310_v7 = vadd.f32 %v3292_v20, %v3849_v29 }
 0x1d5   :  { %v3897_v46 = vadd.f32 %v3356_v55, %v2310_v7  ;;  %v3293_v26 = vpop.f32.mrb[92].mxu0 }
 0x1d6   :  { %v3357_v27 = vpop.f32.mrb[92].mxu1  ;;  %v3294_v51 = vpop.f32.mrb[93].mxu0 }
 0x1d7   :  { %v3295_v47 = vadd.f32 %v3294_v51, %v3293_v26  ;;  %v3358_v33 = vpop.f32.mrb[93].mxu1  ;;  %v3296_v34 = vpop.f32.mrb[94].mxu0 }
 0x1d8   :  { %v3359_v35 = vadd.f32 %v3358_v33, %v3357_v27  ;;  %v3360_v57 = vpop.f32.mrb[94].mxu1  ;;  %v3297_v38 = vpop.f32.mrb[95].mxu0 }
 0x1d9   :  { %v2315_v62 = vadd.f32 %v3295_v47, %v3852_v18  ;;  %v3298_v40 = vadd.f32 %v3297_v38, %v3296_v34  ;;  %v3361_v41 = vpop.f32.mrb[95].mxu1 }
 0x1da   :  { %v3362_v8 = vadd.f32 %v3361_v41, %v3360_v57 }
 0x1db   :  { %v3900_v43 = vadd.f32 %v3359_v35, %v2315_v62  ;;  %v2318_v29 = vadd.f32 %v3298_v40, %v3855_v53 }
 0x1dd   :  { %v3903_v2 = vadd.f32 %v3362_v8, %v2318_v29  ;;  %v3379_v44 = vpop.f32.mrb[96].mxu0 }
 0x1de   :  { %v3443_v45 = vpop.f32.mrb[96].mxu1  ;;  %v3380_v9 = vpop.f32.mrb[97].mxu0 }
 0x1df   :  { %v3381_v3 = vadd.f32 %v3380_v9, %v3379_v44  ;;  %v3444_v50 = vpop.f32.mrb[97].mxu1  ;;  %v3382_v52 = vpop.f32.mrb[98].mxu0 }
 0x1e0   :  { %v3445_v56 = vadd.f32 %v3444_v50, %v3443_v45  ;;  %v3446_v13 = vpop.f32.mrb[98].mxu1  ;;  %v3383_v59 = vpop.f32.mrb[99].mxu0 }
 0x1e1   :  { %v2453_v18 = vadd.f32 %v3381_v3, %v3858_v36  ;;  %v3384_v60 = vadd.f32 %v3383_v59, %v3382_v52  ;;  %v3447_v61 = vpop.f32.mrb[99].mxu1 }
 0x1e2   :  { %v3448_v23 = vadd.f32 %v3447_v61, %v3446_v13 }
 0x1e3   :  { %v2550_v63 = vadd.f32 %v3445_v56, %v2453_v18  ;;  %v2456_v24 = vadd.f32 %v3384_v60, %v3861_v5 }
 0x1e5   :  { %2612 = vst [vmem:[#allocation7] sm:$0xff] %v2550_v63  ;;  %v2553_v53 = vadd.f32 %v3448_v23, %v2456_v24  ;;  %v3385_v0 = vpop.f32.mrb[100].mxu0  ;;  %v2649_v49 = vmul.f32 %v2550_v63, %v2550_v63 }
 0x1e6   :  { %v3449_v1 = vpop.f32.mrb[100].mxu1  ;;  %v3386_v31 = vpop.f32.mrb[101].mxu0 }
 0x1e7   :  { %2613 = vst [vmem:[#allocation7 + $0x8] sm:$0xff] %v2553_v53  ;;  %v2628_v6 = vadd.f32 %v2553_v53, %v2550_v63  ;;  %v2650_v10 = vmul.f32 %v2553_v53, %v2553_v53  ;;  %v3387_v12 = vadd.f32 %v3386_v31, %v3385_v0  ;;  %v3450_v30 = vpop.f32.mrb[101].mxu1  ;;  %v3388_v15 = vpop.f32.mrb[102].mxu0 }
 0x1e8   :  { %v3451_v16 = vadd.f32 %v3450_v30, %v3449_v1  ;;  %v3452_v36 = vpop.f32.mrb[102].mxu1  ;;  %v3389_v17 = vpop.f32.mrb[103].mxu0 }
 0x1e9   :  { %v2665_v39 = vadd.f32 %v2650_v10, %v2649_v49  ;;  %v2461_v19 = vadd.f32 %v3387_v12, %v3864_v58  ;;  %v3390_v42 = vadd.f32 %v3389_v17, %v3388_v15  ;;  %v3453_v5 = vpop.f32.mrb[103].mxu1 }
 0x1ea   :  { %v3454_v20 = vadd.f32 %v3453_v5, %v3452_v36 }
 0x1eb   :  { %v2558_v22 = vadd.f32 %v3451_v16, %v2461_v19  ;;  %v2464_v55 = vadd.f32 %v3390_v42, %v3867_v21 }
 0x1ed   :  { %2614 = vst [vmem:[#allocation7 + $0x10] sm:$0xff] %v2558_v22  ;;  %v2629_v7 = vadd.f32 %v2628_v6, %v2558_v22  ;;  %v2651_v26 = vmul.f32 %v2558_v22, %v2558_v22  ;;  %v2561_v27 = vadd.f32 %v3454_v20, %v2464_v55  ;;  %v3391_v51 = vpop.f32.mrb[104].mxu0 }
 0x1ee   :  { %v3455_v47 = vpop.f32.mrb[104].mxu1  ;;  %v3392_v33 = vpop.f32.mrb[105].mxu0 }
 0x1ef   :  { %v2666_v34 = vadd.f32 %v2665_v39, %v2651_v26  ;;  %2615 = vst [vmem:[#allocation7 + $0x18] sm:$0xff] %v2561_v27  ;;  %v2630_v35 = vadd.f32 %v2629_v7, %v2561_v27  ;;  %v2652_v57 = vmul.f32 %v2561_v27, %v2561_v27  ;;  %v3393_v38 = vadd.f32 %v3392_v33, %v3391_v51  ;;  %v3456_v62 = vpop.f32.mrb[105].mxu1  ;;  %v3394_v58 = vpop.f32.mrb[106].mxu0 }
 0x1f0   :  { %v3457_v40 = vadd.f32 %v3456_v62, %v3455_v47  ;;  %v3458_v41 = vpop.f32.mrb[106].mxu1  ;;  %v3395_v8 = vpop.f32.mrb[107].mxu0 }
 0x1f1   :  { %v2667_v29 = vadd.f32 %v2666_v34, %v2652_v57  ;;  %v2469_v21 = vadd.f32 %v3393_v38, %v3870_v14  ;;  %v3396_v44 = vadd.f32 %v3395_v8, %v3394_v58  ;;  %v3459_v45 = vpop.f32.mrb[107].mxu1 }
 0x1f2   :  { %v3460_v9 = vadd.f32 %v3459_v45, %v3458_v41 }
 0x1f3   :  { %v2566_v3 = vadd.f32 %v3457_v40, %v2469_v21  ;;  %v2472_v50 = vadd.f32 %v3396_v44, %v3873_v37 }
 0x1f5   :  { %2616 = vst [vmem:[#allocation7 + $0x20] sm:$0xff] %v2566_v3  ;;  %v2631_v52 = vadd.f32 %v2630_v35, %v2566_v3  ;;  %v2653_v56 = vmul.f32 %v2566_v3, %v2566_v3  ;;  %v2569_v13 = vadd.f32 %v3460_v9, %v2472_v50  ;;  %v3397_v59 = vpop.f32.mrb[108].mxu0 }
 0x1f6   :  { %v3461_v18 = vpop.f32.mrb[108].mxu1  ;;  %v3398_v60 = vpop.f32.mrb[109].mxu0 }
 0x1f7   :  { %v2668_v61 = vadd.f32 %v2667_v29, %v2653_v56  ;;  %2617 = vst [vmem:[#allocation7 + $0x28] sm:$0xff] %v2569_v13  ;;  %v2632_v23 = vadd.f32 %v2631_v52, %v2569_v13  ;;  %v2654_v63 = vmul.f32 %v2569_v13, %v2569_v13  ;;  %v3399_v24 = vadd.f32 %v3398_v60, %v3397_v59  ;;  %v3462_v53 = vpop.f32.mrb[109].mxu1  ;;  %v3400_v14 = vpop.f32.mrb[110].mxu0 }
 0x1f8   :  { %v3463_v0 = vadd.f32 %v3462_v53, %v3461_v18  ;;  %v3464_v1 = vpop.f32.mrb[110].mxu1  ;;  %v3401_v31 = vpop.f32.mrb[111].mxu0 }
 0x1f9   :  { %v2669_v49 = vadd.f32 %v2668_v61, %v2654_v63  ;;  %v2477_v37 = vadd.f32 %v3399_v24, %v3876_v32  ;;  %v3402_v6 = vadd.f32 %v3401_v31, %v3400_v14  ;;  %v3465_v10 = vpop.f32.mrb[111].mxu1 }
 0x1fa   :  { %v3466_v12 = vadd.f32 %v3465_v10, %v3464_v1 }
 0x1fb   :  { %v2574_v30 = vadd.f32 %v3463_v0, %v2477_v37  ;;  %v2480_v15 = vadd.f32 %v3402_v6, %v3879_v54 }
 0x1fd   :  { %2618 = vst [vmem:[#allocation7 + $0x30] sm:$0xff] %v2574_v30  ;;  %v2633_v16 = vadd.f32 %v2632_v23, %v2574_v30  ;;  %v2655_v36 = vmul.f32 %v2574_v30, %v2574_v30  ;;  %v2577_v17 = vadd.f32 %v3466_v12, %v2480_v15  ;;  %v3403_v39 = vpop.f32.mrb[112].mxu0 }
 0x1fe   :  { %v3467_v19 = vpop.f32.mrb[112].mxu1  ;;  %v3404_v42 = vpop.f32.mrb[113].mxu0 }
 0x1ff   :  { %v2670_v5 = vadd.f32 %v2669_v49, %v2655_v36  ;;  %2619 = vst [vmem:[#allocation7 + $0x38] sm:$0xff] %v2577_v17  ;;  %v2634_v20 = vadd.f32 %v2633_v16, %v2577_v17  ;;  %v2656_v22 = vmul.f32 %v2577_v17, %v2577_v17  ;;  %v3405_v55 = vadd.f32 %v3404_v42, %v3403_v39  ;;  %v3468_v7 = vpop.f32.mrb[113].mxu1  ;;  %v3406_v32 = vpop.f32.mrb[114].mxu0 }
 0x200   :  { %v3469_v26 = vadd.f32 %v3468_v7, %v3467_v19  ;;  %v3470_v27 = vpop.f32.mrb[114].mxu1  ;;  %v3407_v51 = vpop.f32.mrb[115].mxu0 }
 0x201   :  { %v2671_v47 = vadd.f32 %v2670_v5, %v2656_v22  ;;  %v2485_v54 = vadd.f32 %v3405_v55, %v3882_v48  ;;  %v3408_v33 = vadd.f32 %v3407_v51, %v3406_v32  ;;  %v3471_v34 = vpop.f32.mrb[115].mxu1 }
 0x202   :  { %v3472_v35 = vadd.f32 %v3471_v34, %v3470_v27 }
 0x203   :  { %v2582_v57 = vadd.f32 %v3469_v26, %v2485_v54  ;;  %v2488_v38 = vadd.f32 %v3408_v33, %v3885_v11 }
 0x205   :  { %2620 = vst [vmem:[#allocation7 + $0x40] sm:$0xff] %v2582_v57  ;;  %v2635_v62 = vadd.f32 %v2634_v20, %v2582_v57  ;;  %v2657_v58 = vmul.f32 %v2582_v57, %v2582_v57  ;;  %v2585_v40 = vadd.f32 %v3472_v35, %v2488_v38  ;;  %v3409_v41 = vpop.f32.mrb[116].mxu0 }
 0x206   :  { %v3473_v8 = vpop.f32.mrb[116].mxu1  ;;  %v3410_v29 = vpop.f32.mrb[117].mxu0 }
 0x207   :  { %v2672_v21 = vadd.f32 %v2671_v47, %v2657_v58  ;;  %2621 = vst [vmem:[#allocation7 + $0x48] sm:$0xff] %v2585_v40  ;;  %v2636_v44 = vadd.f32 %v2635_v62, %v2585_v40  ;;  %v2658_v45 = vmul.f32 %v2585_v40, %v2585_v40  ;;  %v3411_v9 = vadd.f32 %v3410_v29, %v3409_v41  ;;  %v3474_v3 = vpop.f32.mrb[117].mxu1  ;;  %v3412_v48 = vpop.f32.mrb[118].mxu0 }
 0x208   :  { %v3475_v50 = vadd.f32 %v3474_v3, %v3473_v8  ;;  %v3476_v52 = vpop.f32.mrb[118].mxu1  ;;  %v3413_v56 = vpop.f32.mrb[119].mxu0 }
 0x209   :  { %v2673_v13 = vadd.f32 %v2672_v21, %v2658_v45  ;;  %v2493_v11 = vadd.f32 %v3411_v9, %v3888_v4  ;;  %v3414_v59 = vadd.f32 %v3413_v56, %v3412_v48  ;;  %v3477_v18 = vpop.f32.mrb[119].mxu1 }
 0x20a   :  { %v3478_v60 = vadd.f32 %v3477_v18, %v3476_v52 }
 0x20b   :  { %v2590_v61 = vadd.f32 %v3475_v50, %v2493_v11  ;;  %v2496_v23 = vadd.f32 %v3414_v59, %v3891_v28 }
 0x20d   :  { %2622 = vst [vmem:[#allocation7 + $0x50] sm:$0xff] %v2590_v61  ;;  %v2637_v63 = vadd.f32 %v2636_v44, %v2590_v61  ;;  %v2659_v24 = vmul.f32 %v2590_v61, %v2590_v61  ;;  %v2593_v53 = vadd.f32 %v3478_v60, %v2496_v23  ;;  %v3415_v14 = vpop.f32.mrb[120].mxu0 }
 0x20e   :  { %v3479_v0 = vpop.f32.mrb[120].mxu1  ;;  %v3416_v1 = vpop.f32.mrb[121].mxu0 }
 0x20f   :  { %v2674_v31 = vadd.f32 %v2673_v13, %v2659_v24  ;;  %2623 = vst [vmem:[#allocation7 + $0x58] sm:$0xff] %v2593_v53  ;;  %v2638_v49 = vadd.f32 %v2637_v63, %v2593_v53  ;;  %v2660_v37 = vmul.f32 %v2593_v53, %v2593_v53  ;;  %v3417_v6 = vadd.f32 %v3416_v1, %v3415_v14  ;;  %v3480_v10 = vpop.f32.mrb[121].mxu1  ;;  %v3418_v4 = vpop.f32.mrb[122].mxu0 }
 0x210   :  { %v3481_v12 = vadd.f32 %v3480_v10, %v3479_v0  ;;  %v3482_v30 = vpop.f32.mrb[122].mxu1  ;;  %v3419_v15 = vpop.f32.mrb[123].mxu0 }
 0x211   :  { %v2675_v16 = vadd.f32 %v2674_v31, %v2660_v37  ;;  %v2501_v28 = vadd.f32 %v3417_v6, %v3894_v25  ;;  %v3420_v36 = vadd.f32 %v3419_v15, %v3418_v4  ;;  %v3483_v17 = vpop.f32.mrb[123].mxu1 }
 0x212   :  { %v3484_v39 = vadd.f32 %v3483_v17, %v3482_v30 }
 0x213   :  { %v2598_v19 = vadd.f32 %v3481_v12, %v2501_v28  ;;  %v2504_v42 = vadd.f32 %v3420_v36, %v3897_v46 }
 0x215   :  { %2624 = vst [vmem:[#allocation7 + $0x60] sm:$0xff] %v2598_v19  ;;  %v2639_v5 = vadd.f32 %v2638_v49, %v2598_v19  ;;  %v2661_v20 = vmul.f32 %v2598_v19, %v2598_v19  ;;  %v2601_v22 = vadd.f32 %v3484_v39, %v2504_v42  ;;  %v3421_v55 = vpop.f32.mrb[124].mxu0 }
 0x216   :  { %v3485_v7 = vpop.f32.mrb[124].mxu1  ;;  %v3422_v32 = vpop.f32.mrb[125].mxu0 }
 0x217   :  { %v2676_v26 = vadd.f32 %v2675_v16, %v2661_v20  ;;  %2625 = vst [vmem:[#allocation7 + $0x68] sm:$0xff] %v2601_v22  ;;  %v2640_v27 = vadd.f32 %v2639_v5, %v2601_v22  ;;  %v2662_v51 = vmul.f32 %v2601_v22, %v2601_v22  ;;  %v3423_v47 = vadd.f32 %v3422_v32, %v3421_v55  ;;  %v3486_v54 = vpop.f32.mrb[125].mxu1  ;;  %v3424_v25 = vpop.f32.mrb[126].mxu0 }
 0x218   :  { %v3487_v33 = vadd.f32 %v3486_v54, %v3485_v7  ;;  %v3488_v34 = vpop.f32.mrb[126].mxu1  ;;  %v3425_v35 = vpop.f32.mrb[127].mxu0 }
 0x219   :  { %v2677_v57 = vadd.f32 %v2676_v26, %v2662_v51  ;;  %v2509_v46 = vadd.f32 %v3423_v47, %v3900_v43  ;;  %v3426_v38 = vadd.f32 %v3425_v35, %v3424_v25  ;;  %v3489_v62 = vpop.f32.mrb[127].mxu1 }
 0x21a   :  { %v3490_v58 = vadd.f32 %v3489_v62, %v3488_v34 }
 0x21b   :  { %v2606_v40 = vadd.f32 %v3487_v33, %v2509_v46  ;;  %v2512_v41 = vadd.f32 %v3426_v38, %v3903_v2 }
 0x21d   :  { %2626 = vst [vmem:[#allocation7 + $0x70] sm:$0xff] %v2606_v40  ;;  %v2641_v8 = vadd.f32 %v2640_v27, %v2606_v40  ;;  %v2663_v29 = vmul.f32 %v2606_v40, %v2606_v40  ;;  %v2609_v21 = vadd.f32 %v3490_v58, %v2512_v41 }
 0x21f   :  { %v2678_v44 = vadd.f32 %v2677_v57, %v2663_v29  ;;  %2627 = vst [vmem:[#allocation7 + $0x78] sm:$0xff] %v2609_v21  ;;  %v2642_v45 = vadd.f32 %v2641_v8, %v2609_v21  ;;  %v2664_v9 = vmul.f32 %v2609_v21, %v2609_v21 }
 0x220   :  { %3683 = shalt.err (!%p3680_p6)
}
 0x221   :  { %s3684_s15 = scalar_lea.hbm %s3947_s2, 2048 }
 0x222   :  { %p3685_p7 = scmp.ne.s32.totalorder %s3947_s2, %s3684_s15  ;;  %p3688_p8 = scmp.lt.u32.totalorder %s3684_s15, %s3947_s2 }
 0x224   :  { %p3690_p9 = pnand %p3688_p8, %p3685_p7 }
 0x226   :  { %3693 = shalt.err (!%p3690_p9)
}
 0x227   :  { %s3730_s20 = smov 128   ;;  %s3731_s21 = smov 8   ;;  %v2643_v43 = vrot.slane %v2642_v45, 4  ;;  %v2679_v2 = vadd.f32 %v2678_v44, %v2664_v9  ;;  %vm2686_vm0 = vcmask 1040384   ;;  %vm2688_vm1 = vcmask 1041408  }
 0x228   :  { %2702 = dma.vmem_to_hbm [thread:$0]  %s2697_s11, 2048, %s3947_s2, [#allocation4], %s3730_s20, %s3730_s20, %s3731_s21  }
 0x229   :  { %v2644_v3 = vadd.f32 %v2643_v43, %v2642_v45  ;;  %v2680_v48 = vrot.slane %v2679_v2, 4  ;;  %s3732_s24 = smov [#allocation8]  }
 0x22a   :  { %s2709_s25 = sshll.u32 %s3732_s24, 4  ;;  %s2710_s25 = int_to_ptr.vmem [resolvable:$true] %s2709_s25 }
 0x22b   :  { %v2645_v50 = vrot.slane %v2644_v3, 2  ;;  %v2681_v52 = vadd.f32 %v2680_v48, %v2679_v2  ;;  %s3694_s2 = scalar_lea.vmem %s2710_s25, 128  ;;  %p3699_p11 = scmp.lt.s32.totalorder %s2710_s25, %s2710_s25 }
 0x22c   :  { %p3695_p10 = scmp.ne.s32.totalorder %s2710_s25, %s3694_s2  ;;  %p3700_p12 = scmp.lt.s32.totalorder %s3694_s2, %s3694_s2 }
 0x22d   :  { %v2646_v56 = vadd.f32 %v2645_v50, %v2644_v3  ;;  %v2682_v13 = vrot.slane %v2681_v52, 2 }
 0x22e   :  { %p3701_p13 = por %p3700_p12, %p3699_p11 }
 0x22f   :  { %v2647_v11 = vrot.slane %v2646_v56, 1  ;;  %v2683_v59 = vadd.f32 %v2682_v13, %v2681_v52 }
 0x230   :  { %p3702_p0 = pnand %p3701_p13, %p3695_p10 }
 0x231   :  { %v2684_v18 = vrot.slane %v2683_v59, 1  ;;  %v2648_v60 = vadd.f32 %v2647_v11, %v2646_v56 }
 0x233   :  { %v2685_v61 = vadd.f32 %v2684_v18, %v2683_v59 }
 0x235   :  { %v2687_v23 = vsel %vm2686_vm0, %v2648_v60, %v2685_v61 }
 0x236   :  { %v2689_v63 = vsel %vm2688_vm1, %v2687_v23, 0.0 }
 0x237   :  { %2690 = vst [vmem:[#allocation8] sm:$0xff] %v2689_v63 }
 0x238   :  { %3705 = shalt.err (!%p3702_p0)
}
 0x239   :  { %s3706_s28 = scalar_lea.hbm %s3948_s3, 128 }
 0x23a   :  { %p3707_p1 = scmp.ne.s32.totalorder %s3948_s3, %s3706_s28  ;;  %p3710_p2 = scmp.lt.u32.totalorder %s3706_s28, %s3948_s3 }
 0x23c   :  { %p3712_p3 = pnand %p3710_p2, %p3707_p1 }
 0x23e   :  { %3715 = shalt.err (!%p3712_p3)
}
 0x23f   :  { %2712 = dma.vmem_to_hbm [thread:$0]  %s2710_s25, 128, %s3948_s3, [#allocation9]  }
 0x240   :  { %3720 = dma.done.wait [#allocation4], 2048  }
 0x241   :  { %3721 = vsyncadd [#allocation4], 4294965248 }
 0x242   :  { %3722 = dma.done.wait [#allocation9], 128  }
 0x243   :  { %3723 = vsyncadd [#allocation9], 4294967168 }
 0x244   :  { %2719 = vsyncpa [#allocation3], 1 }
 0x245   :  { %2720 = vsyncpa [#allocation6], 1 }
 0x246   :  { %2721 = vsyncpa [#allocation4], 1 }
 0x247   :  { %2722 = vsyncpa [#allocation9], 1 }

// kernel: discriminator_forward.9
= control target key start
LH: loop header
LB: loop body
LE: loop exit
PB: predicated region body
PF: predicated region fallthrough
CT: control target
= control target key end

     0   :  { %9 = vsyncpa [#allocation3], 0  ;;  %s8683_s0 = inlined_call_operand.hbm [shape: bf16[512,2048], index: 0, kind: input, shape index: {}]   ;;  %s8684_s1 = inlined_call_operand.hbm [shape: bf16[2048,128], index: 1, kind: input, shape index: {}]   ;;  %s8685_s2 = inlined_call_operand.hbm [shape: f32[512,128], index: 2, kind: output, shape index: {0}]   ;;  %s8686_s3 = inlined_call_operand.hbm [shape: f32[8,128], index: 3, kind: output, shape index: {1}]  }
   0x1   :  { %10 = vsyncpa [#allocation6], 0 }
   0x2   :  { %11 = vsyncpa [#allocation4], 0 }
   0x3   :  { %12 = vsyncpa [#allocation9], 0  ;;  %s8461_s12 = smov [#allocation2]   ;;  %s8365_s16 = scalar_lea.hbm %s8683_s0, 65536 }
   0x4   :  { %s18_s13 = sshll.u32 %s8461_s12, 4  ;;  %p8366_p0 = scmp.ne.s32.totalorder %s8683_s0, %s8365_s16  ;;  %s19_s13 = int_to_ptr.vmem [resolvable:$true] %s18_s13 }
   0x5   :  { %p8369_p1 = scmp.lt.u32.totalorder %s8365_s16, %s8683_s0 }
   0x7   :  { %p8371_p2 = pnand %p8369_p1, %p8366_p0 }
   0x9   :  { %8374 = shalt.err (!%p8371_p2)
}
   0xa   :  { %s8375_s21 = scalar_lea.vmem %s19_s13, 65536  ;;  %p8380_p4 = scmp.lt.s32.totalorder %s19_s13, %s19_s13 }
   0xb   :  { %p8376_p3 = scmp.ne.s32.totalorder %s19_s13, %s8375_s21  ;;  %p8381_p5 = scmp.lt.s32.totalorder %s8375_s21, %s8375_s21 }
   0xd   :  { %p8382_p6 = por %p8381_p5, %p8380_p4 }
   0xf   :  { %p8383_p7 = pnand %p8382_p6, %p8376_p3 }
  0x11   :  { %8386 = shalt.err (!%p8383_p7)
}
  0x12   :  { %s8462_s22 = smov 1024   ;;  %s8463_s23 = smov 64  }
  0x13   :  { %24 = dma.hbm_to_vmem [thread:$0]  %s8683_s0, 65536, %s19_s13, [#allocation3], %s8462_s22, %s8462_s22, %s8463_s23  }
  0x14   :  { %s8464_s26 = smov [#allocation5]   ;;  %s8387_s30 = scalar_lea.hbm %s8684_s1, 16384 }
  0x15   :  { %s30_s27 = sshll.u32 %s8464_s26, 4  ;;  %p8388_p8 = scmp.ne.s32.totalorder %s8684_s1, %s8387_s30  ;;  %s31_s27 = int_to_ptr.vmem [resolvable:$true] %s30_s27 }
  0x16   :  { %p8391_p9 = scmp.lt.u32.totalorder %s8387_s30, %s8684_s1 }
  0x18   :  { %p8393_p10 = pnand %p8391_p9, %p8388_p8 }
  0x1a   :  { %8396 = shalt.err (!%p8393_p10)
}
  0x1b   :  { %s8397_s8 = scalar_lea.vmem %s31_s27, 16384  ;;  %p8402_p12 = scmp.lt.s32.totalorder %s31_s27, %s31_s27 }
  0x1c   :  { %p8398_p11 = scmp.ne.s32.totalorder %s31_s27, %s8397_s8  ;;  %p8403_p13 = scmp.lt.s32.totalorder %s8397_s8, %s8397_s8 }
  0x1e   :  { %p8404_p0 = por %p8403_p13, %p8402_p12 }
  0x20   :  { %p8405_p1 = pnand %p8404_p0, %p8398_p11 }
  0x22   :  { %8408 = shalt.err (!%p8405_p1)
}
  0x23   :  { %s8465_s0 = smov 4  }
  0x24   :  { %36 = dma.hbm_to_vmem [thread:$0]  %s8684_s1, 16384, %s31_s27, [#allocation6], %s8463_s23, %s8463_s23, %s8465_s0  }
  0x25   :  { %8453 = dma.done.wait [#allocation3], 65536  }
  0x26   :  { %8454 = vsyncadd [#allocation3], 4294901760 }
  0x27   :  { %8455 = dma.done.wait [#allocation6], 16384  }
  0x28   :  { %8456 = vsyncadd [#allocation6], 4294950912  ;;  %v8466_v0 = vmov 0   ;;  %v8237_v1 = vld [vmem:[#allocation5] sm:$0xff]   ;;  %v8239_v3 = vld [vmem:[#allocation5 + $0x8] sm:$0xff]   ;;  %s8467_s1 = smov [#allocation7]  }
  0x29   :  { %4140 = vmatprep.subr.bf16.mxu1 %v8466_v0  ;;  %5296 = vmatprep.subr.bf16.mxu0 %v8466_v0  ;;  %v8238_v2 = vld [vmem:[#allocation5 + $0x200] sm:$0xff]   ;;  %v8240_v4 = vld [vmem:[#allocation5 + $0x208] sm:$0xff]   ;;  %v8241_v5 = vld [vmem:[#allocation5 + $0x10] sm:$0xff]   ;;  %s6728_s11 = sshll.u32 %s8467_s1, 4  ;;  %s6729_s11 = int_to_ptr.vmem [resolvable:$true] %s6728_s11 }
  0x2a   :  { %4141 = vmatpush1.bf16.msra.mxu1 %v8237_v1  ;;  %5297 = vmatpush1.bf16.msra.mxu0 %v8238_v2  ;;  %v8242_v6 = vld [vmem:[#allocation5 + $0x210] sm:$0xff]   ;;  %v8243_v7 = vld [vmem:[#allocation5 + $0x18] sm:$0xff]   ;;  %v8245_v9 = vld [vmem:[#allocation5 + $0x20] sm:$0xff]   ;;  %s8409_s12 = scalar_lea.vmem %s6729_s11, 8192  ;;  %p8414_p3 = scmp.lt.s32.totalorder %s6729_s11, %s6729_s11 }
  0x2b   :  { %4142 = vmatprep.subr.bf16.mxu1 %v8466_v0  ;;  %5298 = vmatprep.subr.bf16.mxu0 %v8466_v0  ;;  %v8244_v8 = vld [vmem:[#allocation5 + $0x218] sm:$0xff]   ;;  %v8246_v10 = vld [vmem:[#allocation5 + $0x220] sm:$0xff]   ;;  %v8247_v11 = vld [vmem:[#allocation5 + $0x28] sm:$0xff]   ;;  %p8410_p2 = scmp.ne.s32.totalorder %s6729_s11, %s8409_s12  ;;  %p8415_p4 = scmp.lt.s32.totalorder %s8409_s12, %s8409_s12 }
  0x2c   :  { %v8248_v12 = vld [vmem:[#allocation5 + $0x228] sm:$0xff]   ;;  %v8249_v13 = vld [vmem:[#allocation5 + $0x30] sm:$0xff]   ;;  %v8251_v15 = vld [vmem:[#allocation5 + $0x38] sm:$0xff]  }
  0x2d   :  { %v8250_v14 = vld [vmem:[#allocation5 + $0x230] sm:$0xff]   ;;  %v8252_v16 = vld [vmem:[#allocation5 + $0x238] sm:$0xff]   ;;  %v8253_v17 = vld [vmem:[#allocation5 + $0x40] sm:$0xff]   ;;  %p8416_p5 = por %p8415_p4, %p8414_p3 }
  0x2e   :  { %4143 = vmatpush1.bf16.msra.mxu1 %v8239_v3  ;;  %5299 = vmatpush1.bf16.msra.mxu0 %v8240_v4  ;;  %v8254_v18 = vld [vmem:[#allocation5 + $0x240] sm:$0xff]   ;;  %v8255_v24 = vld [vmem:[#allocation5 + $0x48] sm:$0xff]   ;;  %v8257_v27 = vld [vmem:[#allocation5 + $0x50] sm:$0xff]  }
  0x2f   :  { %4144 = vmatprep.subr.bf16.mxu1 %v8466_v0  ;;  %5300 = vmatprep.subr.bf16.mxu0 %v8466_v0  ;;  %v8533_v19 = vld [vmem:[#allocation2] sm:$0xff]  ;;  %v8256_v26 = vld [vmem:[#allocation5 + $0x248] sm:$0xff]   ;;  %v8258_v28 = vld [vmem:[#allocation5 + $0x250] sm:$0xff]   ;;  %p8417_p6 = pnand %p8416_p5, %p8410_p2 }
  0x30   :  { %v8535_v20 = vld [vmem:[#allocation2 + $0x40] sm:$0xff]  ;;  %v8259_v29 = vld [vmem:[#allocation5 + $0x58] sm:$0xff]   ;;  %v8263_v33 = vld [vmem:[#allocation5 + $0x68] sm:$0xff]  }
  0x31   :  { %v8537_v21 = vld [vmem:[#allocation2 + $0x20] sm:$0xff]  ;;  %v6756_v22 = vcombine.high %v8533_v19, %v8535_v20  ;;  %v8260_v30 = vld [vmem:[#allocation5 + $0x258] sm:$0xff]   ;;  %v8264_v34 = vld [vmem:[#allocation5 + $0x268] sm:$0xff]   ;;  %v6755_v42 = vcombine.low %v8533_v19, %v8535_v20 }
  0x32   :  { %4145 = vmatpush1.bf16.msra.mxu1 %v8241_v5  ;;  %5301 = vmatpush1.bf16.msra.mxu0 %v8242_v6  ;;  %v8541_v23 = vld [vmem:[#allocation2 + $0x60] sm:$0xff]  ;;  %v8265_v35 = vld [vmem:[#allocation5 + $0x70] sm:$0xff]   ;;  %v8267_v37 = vld [vmem:[#allocation5 + $0x78] sm:$0xff]  }
  0x33   :  { %4146 = vmatprep.subr.bf16.mxu1 %v8466_v0  ;;  %5302 = vmatprep.subr.bf16.mxu0 %v8466_v0  ;;  %v6764_v25 = vcombine.high %v8537_v21, %v8541_v23  ;;  %v8261_v31 = vld [vmem:[#allocation5 + $0x60] sm:$0xff]   ;;  %v8266_v36 = vld [vmem:[#allocation5 + $0x270] sm:$0xff]   ;;  %v8268_v38 = vld [vmem:[#allocation5 + $0x278] sm:$0xff]   ;;  %v6763_v44 = vcombine.low %v8537_v21, %v8541_v23 }
  0x34   :  { %4172 = vmatprep.mubr.bf16.mxu1 %v6756_v22  ;;  %v8262_v32 = vld [vmem:[#allocation5 + $0x260] sm:$0xff]   ;;  %v8271_v51 = vld [vmem:[#allocation5 + $0x88] sm:$0xff]   ;;  %v8273_v59 = vld [vmem:[#allocation5 + $0x90] sm:$0xff]  }
  0x35   :  { %5328 = vmatprep.mubr.bf16.mxu0 %v6764_v25  ;;  %v60_v39 = vld [vmem:[#allocation2 + $0x80] sm:$0xff]  ;;  %v8272_v52 = vld [vmem:[#allocation5 + $0x288] sm:$0xff]   ;;  %v8274_v60 = vld [vmem:[#allocation5 + $0x290] sm:$0xff]  }
  0x36   :  { %4147 = vmatpush1.bf16.msra.mxu1 %v8243_v7  ;;  %5303 = vmatpush1.bf16.msra.mxu0 %v8244_v8  ;;  %v68_v40 = vld [vmem:[#allocation2 + $0xc0] sm:$0xff]  ;;  %v8275_v2 = vld [vmem:[#allocation5 + $0x98] sm:$0xff]   ;;  %v8282_v20 = vld [vmem:[#allocation5 + $0x2b0] sm:$0xff]  }
  0x37   :  { %4148 = vmatprep.subr.bf16.mxu1 %v8466_v0  ;;  %5304 = vmatprep.subr.bf16.mxu0 %v8466_v0  ;;  %v64_v41 = vld [vmem:[#allocation2 + $0xa0] sm:$0xff]  ;;  %v6772_v47 = vcombine.high %v60_v39, %v68_v40  ;;  %v6771_v55 = vcombine.low %v60_v39, %v68_v40  ;;  %v8276_v3 = vld [vmem:[#allocation5 + $0x298] sm:$0xff]   ;;  %v8288_v39 = vld [vmem:[#allocation5 + $0x2c8] sm:$0xff]  }
  0x38   :  { %v72_v43 = vld [vmem:[#allocation2 + $0xe0] sm:$0xff] }
  0x39   :  { %v8269_v45 = vld [vmem:[#allocation5 + $0x80] sm:$0xff]   ;;  %v6780_v48 = vcombine.high %v64_v41, %v72_v43  ;;  %v6779_v56 = vcombine.low %v64_v41, %v72_v43  ;;  %v8289_v41 = vld [vmem:[#allocation5 + $0xd0] sm:$0xff]  }
  0x3a   :  { %4149 = vmatpush1.bf16.msra.mxu1 %v8245_v9  ;;  %5305 = vmatpush1.bf16.msra.mxu0 %v8246_v10  ;;  %v8270_v46 = vld [vmem:[#allocation5 + $0x280] sm:$0xff]  }
  0x3b   :  { %4150 = vmatprep.subr.bf16.mxu1 %v8466_v0  ;;  %5306 = vmatprep.subr.bf16.mxu0 %v8466_v0  ;;  %v76_v49 = vld [vmem:[#allocation2 + $0x100] sm:$0xff] }
  0x3c   :  { %v84_v50 = vld [vmem:[#allocation2 + $0x140] sm:$0xff] }
  0x3d   :  { %v80_v53 = vld [vmem:[#allocation2 + $0x120] sm:$0xff]  ;;  %v6788_v57 = vcombine.high %v76_v49, %v84_v50  ;;  %v6787_v4 = vcombine.low %v76_v49, %v84_v50 }
  0x3e   :  { %4151 = vmatpush1.bf16.msra.mxu1 %v8247_v11  ;;  %5307 = vmatpush1.bf16.msra.mxu0 %v8248_v12  ;;  %v88_v54 = vld [vmem:[#allocation2 + $0x160] sm:$0xff] }
  0x3f   :  { %4152 = vmatprep.subr.bf16.mxu1 %v8466_v0  ;;  %5308 = vmatprep.subr.bf16.mxu0 %v8466_v0  ;;  %v6796_v58 = vcombine.high %v80_v53, %v88_v54  ;;  %v92_v61 = vld [vmem:[#allocation2 + $0x180] sm:$0xff]  ;;  %v6795_v6 = vcombine.low %v80_v53, %v88_v54 }
  0x40   :  { %v100_v62 = vld [vmem:[#allocation2 + $0x1c0] sm:$0xff] }
  0x41   :  { %v96_v63 = vld [vmem:[#allocation2 + $0x1a0] sm:$0xff]  ;;  %v6804_v7 = vcombine.high %v92_v61, %v100_v62 }
  0x42   :  { %4153 = vmatpush1.bf16.msra.mxu1 %v8249_v13  ;;  %5309 = vmatpush1.bf16.msra.mxu0 %v8250_v14  ;;  %v104_v1 = vld [vmem:[#allocation2 + $0x1e0] sm:$0xff]  ;;  %v8279_v14 = vld [vmem:[#allocation5 + $0xa8] sm:$0xff]  }
  0x43   :  { %4154 = vmatprep.subr.bf16.mxu1 %v8466_v0  ;;  %5310 = vmatprep.subr.bf16.mxu0 %v8466_v0  ;;  %v8277_v5 = vld [vmem:[#allocation5 + $0xa0] sm:$0xff]   ;;  %v6812_v9 = vcombine.high %v96_v63, %v104_v1 }
  0x44   :  { %v8278_v8 = vld [vmem:[#allocation5 + $0x2a0] sm:$0xff]  }
  0x45   :  { %v108_v10 = vld [vmem:[#allocation2 + $0x200] sm:$0xff] }
  0x46   :  { %4155 = vmatpush1.bf16.msra.mxu1 %v8251_v15  ;;  %5311 = vmatpush1.bf16.msra.mxu0 %v8252_v16  ;;  %v116_v11 = vld [vmem:[#allocation2 + $0x240] sm:$0xff]  ;;  %v8280_v15 = vld [vmem:[#allocation5 + $0x2a8] sm:$0xff]   ;;  %v6803_v16 = vcombine.low %v92_v61, %v100_v62 }
  0x47   :  { %4156 = vmatprep.subr.bf16.mxu1 %v8466_v0  ;;  %5312 = vmatprep.subr.bf16.mxu0 %v8466_v0  ;;  %v112_v12 = vld [vmem:[#allocation2 + $0x220] sm:$0xff]  ;;  %v6820_v19 = vcombine.high %v108_v10, %v116_v11 }
  0x48   :  { %v120_v13 = vld [vmem:[#allocation2 + $0x260] sm:$0xff] }
  0x49   :  { %v6828_v21 = vcombine.high %v112_v12, %v120_v13  ;;  %v124_v22 = vld [vmem:[#allocation2 + $0x280] sm:$0xff] }
  0x4a   :  { %4157 = vmatpush1.bf16.msra.mxu1 %v8253_v17  ;;  %5313 = vmatpush1.bf16.msra.mxu0 %v8254_v18  ;;  %v8281_v17 = vld [vmem:[#allocation5 + $0xb0] sm:$0xff]   ;;  %v6811_v18 = vcombine.low %v96_v63, %v104_v1  ;;  %v132_v23 = vld [vmem:[#allocation2 + $0x2c0] sm:$0xff] }
  0x4b   :  { %4158 = vmatprep.subr.bf16.mxu1 %v8466_v0  ;;  %5314 = vmatprep.subr.bf16.mxu0 %v8466_v0  ;;  %v136_v25 = vld [vmem:[#allocation2 + $0x2e0] sm:$0xff]  ;;  %v6835_v40 = vcombine.low %v124_v22, %v132_v23 }
  0x4c   :  { %v168_v49 = vld [vmem:[#allocation2 + $0x3e0] sm:$0xff] }
  0x4d   :  { %v172_v54 = vld [vmem:[#allocation2 + $0x400] sm:$0xff] }
  0x4e   :  { %4159 = vmatpush1.bf16.msra.mxu1 %v8255_v24  ;;  %5315 = vmatpush1.bf16.msra.mxu0 %v8256_v26  ;;  %v128_v24 = vld [vmem:[#allocation2 + $0x2a0] sm:$0xff]  ;;  %v8283_v26 = vld [vmem:[#allocation5 + $0xb8] sm:$0xff]  }
  0x4f   :  { %4160 = vmatprep.subr.bf16.mxu1 %v8466_v0  ;;  %5316 = vmatprep.subr.bf16.mxu0 %v8466_v0  ;;  %v188_v1 = vld [vmem:[#allocation2 + $0x480] sm:$0xff] }
  0x52   :  { %4161 = vmatpush1.bf16.msra.mxu1 %v8257_v27  ;;  %5317 = vmatpush1.bf16.msra.mxu0 %v8258_v28  ;;  %v8284_v27 = vld [vmem:[#allocation5 + $0x2b8] sm:$0xff]   ;;  %v6819_v28 = vcombine.low %v108_v10, %v116_v11  ;;  %v8293_v10 = vld [vmem:[#allocation5 + $0xe0] sm:$0xff]  }
  0x53   :  { %4162 = vmatprep.subr.bf16.mxu1 %v8466_v0  ;;  %5318 = vmatprep.subr.bf16.mxu0 %v8466_v0  ;;  %v8294_v11 = vld [vmem:[#allocation5 + $0x2e0] sm:$0xff]  }
  0x56   :  { %4163 = vmatpush1.bf16.msra.mxu1 %v8259_v29  ;;  %5319 = vmatpush1.bf16.msra.mxu0 %v8260_v30  ;;  %v8285_v29 = vld [vmem:[#allocation5 + $0xc0] sm:$0xff]   ;;  %v6827_v30 = vcombine.low %v112_v12, %v120_v13 }
  0x57   :  { %4164 = vmatprep.subr.bf16.mxu1 %v8466_v0  ;;  %5320 = vmatprep.subr.bf16.mxu0 %v8466_v0  ;;  %v212_v12 = vld [vmem:[#allocation2 + $0x540] sm:$0xff] }
  0x58   :  { %v208_v13 = vld [vmem:[#allocation2 + $0x520] sm:$0xff] }
  0x5a   :  { %4165 = vmatpush1.bf16.msra.mxu1 %v8261_v31  ;;  %5321 = vmatpush1.bf16.msra.mxu0 %v8262_v32  ;;  %v6836_v31 = vcombine.high %v124_v22, %v132_v23  ;;  %v8286_v32 = vld [vmem:[#allocation5 + $0x2c0] sm:$0xff]  }
  0x5b   :  { %4166 = vmatprep.subr.bf16.mxu1 %v8466_v0  ;;  %5322 = vmatprep.subr.bf16.mxu0 %v8466_v0  ;;  %v232_v22 = vld [vmem:[#allocation2 + $0x5e0] sm:$0xff] }
  0x5e   :  { %4167 = vmatpush1.bf16.msra.mxu1 %v8263_v33  ;;  %5323 = vmatpush1.bf16.msra.mxu0 %v8264_v34  ;;  %v6844_v33 = vcombine.high %v128_v24, %v136_v25  ;;  %v140_v34 = vld [vmem:[#allocation2 + $0x300] sm:$0xff] }
  0x5f   :  { %4168 = vmatprep.subr.bf16.mxu1 %v8466_v0  ;;  %5324 = vmatprep.subr.bf16.mxu0 %v8466_v0 }
  0x62   :  { %4169 = vmatpush1.bf16.msra.mxu1 %v8265_v35  ;;  %5325 = vmatpush1.bf16.msra.mxu0 %v8266_v36  ;;  %v148_v35 = vld [vmem:[#allocation2 + $0x340] sm:$0xff] }
  0x63   :  { %4170 = vmatprep.subr.bf16.mxu1 %v8466_v0  ;;  %5326 = vmatprep.subr.bf16.mxu0 %v8466_v0  ;;  %v144_v36 = vld [vmem:[#allocation2 + $0x320] sm:$0xff]  ;;  %v6852_v43 = vcombine.high %v140_v34, %v148_v35  ;;  %v6851_v50 = vcombine.low %v140_v34, %v148_v35 }
  0x66   :  { %4171 = vmatpush1.bf16.msra.mxu1 %v8267_v37  ;;  %5327 = vmatpush1.bf16.msra.mxu0 %v8268_v38  ;;  %v152_v37 = vld [vmem:[#allocation2 + $0x360] sm:$0xff]  ;;  %v8287_v38 = vld [vmem:[#allocation5 + $0xc8] sm:$0xff]  }
  0x67   :  { %4429 = vmatprep.subr.bf16.mxu1 %v8466_v0  ;;  %5585 = vmatprep.subr.bf16.mxu0 %v8466_v0 }
  0x69   :  { %4173 = vmatmul.mubr.bf16.vlgmr.msra.gmra.mrb[0].mxu1 %v6755_v42  ;;  %5329 = vmatmul.mubr.bf16.vlgmr.msra.gmra.mrb[0].mxu0 %v6763_v44  ;;  %v6843_v42 = vcombine.low %v128_v24, %v136_v25  ;;  %v8290_v44 = vld [vmem:[#allocation5 + $0x2d0] sm:$0xff]  }
  0x6a   :  { %4430 = vmatpush1.bf16.msra.mxu1 %v8269_v45  ;;  %5586 = vmatpush1.bf16.msra.mxu0 %v8270_v46  ;;  %v6860_v45 = vcombine.high %v144_v36, %v152_v37  ;;  %v156_v46 = vld [vmem:[#allocation2 + $0x380] sm:$0xff] }
  0x6b   :  { %4180 = vmatprep.mubr.bf16.mxu1 %v6772_v47  ;;  %5336 = vmatprep.mubr.bf16.mxu0 %v6780_v48  ;;  %v164_v47 = vld [vmem:[#allocation2 + $0x3c0] sm:$0xff] }
  0x6c   :  { %4431 = vmatprep.subr.bf16.mxu1 %v8466_v0  ;;  %5587 = vmatprep.subr.bf16.mxu0 %v8466_v0  ;;  %v160_v48 = vld [vmem:[#allocation2 + $0x3a0] sm:$0xff] }
  0x6d   :  { %v6876_v53 = vcombine.high %v160_v48, %v168_v49  ;;  %v6875_v61 = vcombine.low %v160_v48, %v168_v49  ;;  %v276_v48 = vld [vmem:[#allocation2 + $0x740] sm:$0xff] }
  0x6e   :  { %4432 = vmatpush1.bf16.msra.mxu1 %v8271_v51  ;;  %5588 = vmatpush1.bf16.msra.mxu0 %v8272_v52  ;;  %v6859_v51 = vcombine.low %v144_v36, %v152_v37  ;;  %v6868_v52 = vcombine.high %v156_v46, %v164_v47  ;;  %v252_v37 = vld [vmem:[#allocation2 + $0x680] sm:$0xff] }
  0x6f   :  { %4433 = vmatprep.subr.bf16.mxu1 %v8466_v0  ;;  %5589 = vmatprep.subr.bf16.mxu0 %v8466_v0  ;;  %v272_v49 = vld [vmem:[#allocation2 + $0x720] sm:$0xff] }
  0x71   :  { %4181 = vmatmul.mubr.bf16.gmra.mrb[4].mxu1 %v6771_v55  ;;  %5337 = vmatmul.mubr.bf16.gmra.mrb[4].mxu0 %v6779_v56  ;;  %v8291_v55 = vld [vmem:[#allocation5 + $0xd8] sm:$0xff]  }
  0x72   :  { %4188 = vmatprep.mubr.bf16.mxu1 %v6788_v57  ;;  %5344 = vmatprep.mubr.bf16.mxu0 %v6796_v58  ;;  %v8292_v56 = vld [vmem:[#allocation5 + $0x2d8] sm:$0xff]   ;;  %v180_v57 = vld [vmem:[#allocation2 + $0x440] sm:$0xff] }
  0x73   :  { %4434 = vmatpush1.bf16.msra.mxu1 %v8273_v59  ;;  %5590 = vmatpush1.bf16.msra.mxu0 %v8274_v60  ;;  %v176_v58 = vld [vmem:[#allocation2 + $0x420] sm:$0xff]  ;;  %v6867_v60 = vcombine.low %v156_v46, %v164_v47  ;;  %v6884_v62 = vcombine.high %v172_v54, %v180_v57  ;;  %v8298_v46 = vld [vmem:[#allocation5 + $0x2f0] sm:$0xff]  }
  0x74   :  { %4435 = vmatprep.subr.bf16.mxu1 %v8466_v0  ;;  %5591 = vmatprep.subr.bf16.mxu0 %v8466_v0  ;;  %v184_v59 = vld [vmem:[#allocation2 + $0x460] sm:$0xff] }
  0x75   :  { %v6892_v63 = vcombine.high %v176_v58, %v184_v59  ;;  %v268_v47 = vld [vmem:[#allocation2 + $0x700] sm:$0xff] }
  0x77   :  { %4436 = vmatpush1.bf16.msra.mxu1 %v8275_v2  ;;  %5592 = vmatpush1.bf16.msra.mxu0 %v8276_v3  ;;  %v196_v2 = vld [vmem:[#allocation2 + $0x4c0] sm:$0xff] }
  0x78   :  { %4437 = vmatprep.subr.bf16.mxu1 %v8466_v0  ;;  %5593 = vmatprep.subr.bf16.mxu0 %v8466_v0  ;;  %v192_v3 = vld [vmem:[#allocation2 + $0x4a0] sm:$0xff] }
  0x79   :  { %4189 = vmatmul.mubr.bf16.gmra.mrb[8].mxu1 %v6787_v4  ;;  %5345 = vmatmul.mubr.bf16.gmra.mrb[8].mxu0 %v6795_v6  ;;  %v200_v4 = vld [vmem:[#allocation2 + $0x4e0] sm:$0xff]  ;;  %v6891_v6 = vcombine.low %v176_v58, %v184_v59  ;;  %v6979_v59 = vcombine.low %v268_v47, %v276_v48 }
  0x7a   :  { %4196 = vmatprep.mubr.bf16.mxu1 %v6804_v7  ;;  %5352 = vmatprep.mubr.bf16.mxu0 %v6812_v9  ;;  %v6900_v7 = vcombine.high %v188_v1, %v196_v2  ;;  %v204_v9 = vld [vmem:[#allocation2 + $0x500] sm:$0xff] }
  0x7b   :  { %4438 = vmatpush1.bf16.msra.mxu1 %v8277_v5  ;;  %5594 = vmatpush1.bf16.msra.mxu0 %v8278_v8  ;;  %v6883_v5 = vcombine.low %v172_v54, %v180_v57  ;;  %v6908_v8 = vcombine.high %v192_v3, %v200_v4  ;;  %v6915_v23 = vcombine.low %v204_v9, %v212_v12  ;;  %v288_v57 = vld [vmem:[#allocation2 + $0x7a0] sm:$0xff] }
  0x7c   :  { %4439 = vmatprep.subr.bf16.mxu1 %v8466_v0  ;;  %5595 = vmatprep.subr.bf16.mxu0 %v8466_v0  ;;  %v296_v58 = vld [vmem:[#allocation2 + $0x7e0] sm:$0xff] }
  0x7f   :  { %4440 = vmatpush1.bf16.msra.mxu1 %v8279_v14  ;;  %5596 = vmatpush1.bf16.msra.mxu0 %v8280_v15  ;;  %v216_v14 = vld [vmem:[#allocation2 + $0x560] sm:$0xff]  ;;  %v6899_v15 = vcombine.low %v188_v1, %v196_v2  ;;  %v8300_v1 = vld [vmem:[#allocation5 + $0x2f8] sm:$0xff]  }
  0x80   :  { %4441 = vmatprep.subr.bf16.mxu1 %v8466_v0  ;;  %5597 = vmatprep.subr.bf16.mxu0 %v8466_v0  ;;  %v6923_v24 = vcombine.low %v208_v13, %v216_v14  ;;  %v300_v2 = vld [vmem:[#allocation2 + $0x800] sm:$0xff] }
  0x81   :  { %4197 = vmatmul.mubr.bf16.gmra.mrb[12].mxu1 %v6803_v16  ;;  %5353 = vmatmul.mubr.bf16.gmra.mrb[12].mxu0 %v6811_v18  ;;  %v6907_v16 = vcombine.low %v192_v3, %v200_v4  ;;  %v6924_v18 = vcombine.high %v208_v13, %v216_v14  ;;  %v308_v3 = vld [vmem:[#allocation2 + $0x840] sm:$0xff] }
  0x82   :  { %4204 = vmatprep.mubr.bf16.mxu1 %v6820_v19  ;;  %5360 = vmatprep.mubr.bf16.mxu0 %v6828_v21  ;;  %v220_v19 = vld [vmem:[#allocation2 + $0x580] sm:$0xff]  ;;  %v7011_v14 = vcombine.low %v300_v2, %v308_v3 }
  0x83   :  { %4442 = vmatpush1.bf16.msra.mxu1 %v8281_v17  ;;  %5598 = vmatpush1.bf16.msra.mxu0 %v8282_v20  ;;  %v6916_v17 = vcombine.high %v204_v9, %v212_v12  ;;  %v228_v20 = vld [vmem:[#allocation2 + $0x5c0] sm:$0xff] }
  0x84   :  { %4443 = vmatprep.subr.bf16.mxu1 %v8466_v0  ;;  %5599 = vmatprep.subr.bf16.mxu0 %v8466_v0  ;;  %v224_v21 = vld [vmem:[#allocation2 + $0x5a0] sm:$0xff]  ;;  %v6932_v25 = vcombine.high %v220_v19, %v228_v20 }
  0x85   :  { %v6939_v34 = vcombine.low %v224_v21, %v232_v22  ;;  %v304_v4 = vld [vmem:[#allocation2 + $0x820] sm:$0xff] }
  0x86   :  { %v320_v12 = vld [vmem:[#allocation2 + $0x8a0] sm:$0xff] }
  0x87   :  { %4444 = vmatpush1.bf16.msra.mxu1 %v8283_v26  ;;  %5600 = vmatpush1.bf16.msra.mxu0 %v8284_v27  ;;  %v6940_v26 = vcombine.high %v224_v21, %v232_v22  ;;  %v8295_v27 = vld [vmem:[#allocation5 + $0xe8] sm:$0xff]   ;;  %v328_v13 = vld [vmem:[#allocation2 + $0x8e0] sm:$0xff] }
  0x88   :  { %4445 = vmatprep.subr.bf16.mxu1 %v8466_v0  ;;  %5601 = vmatprep.subr.bf16.mxu0 %v8466_v0  ;;  %v344_v21 = vld [vmem:[#allocation2 + $0x960] sm:$0xff] }
  0x89   :  { %4205 = vmatmul.mubr.bf16.gmra.mrb[16].mxu1 %v6819_v28  ;;  %5361 = vmatmul.mubr.bf16.gmra.mrb[16].mxu0 %v6827_v30  ;;  %v8296_v28 = vld [vmem:[#allocation5 + $0x2e8] sm:$0xff]   ;;  %v244_v30 = vld [vmem:[#allocation2 + $0x640] sm:$0xff] }
  0x8a   :  { %4212 = vmatprep.mubr.bf16.mxu1 %v6836_v31  ;;  %5368 = vmatprep.mubr.bf16.mxu0 %v6844_v33  ;;  %v240_v31 = vld [vmem:[#allocation2 + $0x620] sm:$0xff]  ;;  %v6931_v33 = vcombine.low %v220_v19, %v228_v20 }
  0x8b   :  { %4446 = vmatpush1.bf16.msra.mxu1 %v8285_v29  ;;  %5602 = vmatpush1.bf16.msra.mxu0 %v8286_v32  ;;  %v236_v29 = vld [vmem:[#allocation2 + $0x600] sm:$0xff] }
  0x8c   :  { %4447 = vmatprep.subr.bf16.mxu1 %v8466_v0  ;;  %5603 = vmatprep.subr.bf16.mxu0 %v8466_v0  ;;  %v248_v32 = vld [vmem:[#allocation2 + $0x660] sm:$0xff]  ;;  %v6948_v35 = vcombine.high %v236_v29, %v244_v30 }
  0x8d   :  { %v6956_v36 = vcombine.high %v240_v31, %v248_v32  ;;  %v340_v19 = vld [vmem:[#allocation2 + $0x940] sm:$0xff] }
  0x8e   :  { %v336_v20 = vld [vmem:[#allocation2 + $0x920] sm:$0xff] }
  0x8f   :  { %4448 = vmatpush1.bf16.msra.mxu1 %v8287_v38  ;;  %5604 = vmatpush1.bf16.msra.mxu0 %v8288_v39  ;;  %v260_v38 = vld [vmem:[#allocation2 + $0x6c0] sm:$0xff] }
  0x90   :  { %4449 = vmatprep.subr.bf16.mxu1 %v8466_v0  ;;  %5605 = vmatprep.subr.bf16.mxu0 %v8466_v0  ;;  %v256_v39 = vld [vmem:[#allocation2 + $0x6a0] sm:$0xff] }
  0x91   :  { %4213 = vmatmul.mubr.bf16.gmra.mrb[20].mxu1 %v6835_v40  ;;  %5369 = vmatmul.mubr.bf16.gmra.mrb[20].mxu0 %v6843_v42  ;;  %v264_v40 = vld [vmem:[#allocation2 + $0x6e0] sm:$0xff]  ;;  %v6955_v42 = vcombine.low %v240_v31, %v248_v32  ;;  %v7051_v31 = vcombine.low %v336_v20, %v344_v21 }
  0x92   :  { %4220 = vmatprep.mubr.bf16.mxu1 %v6852_v43  ;;  %5376 = vmatprep.mubr.bf16.mxu0 %v6860_v45  ;;  %v6964_v43 = vcombine.high %v252_v37, %v260_v38  ;;  %v8297_v45 = vld [vmem:[#allocation5 + $0xf0] sm:$0xff]  }
  0x93   :  { %4450 = vmatpush1.bf16.msra.mxu1 %v8289_v41  ;;  %5606 = vmatpush1.bf16.msra.mxu0 %v8290_v44  ;;  %v6947_v41 = vcombine.low %v236_v29, %v244_v30  ;;  %v6972_v44 = vcombine.high %v256_v39, %v264_v40  ;;  %v360_v29 = vld [vmem:[#allocation2 + $0x9e0] sm:$0xff] }
  0x94   :  { %4451 = vmatprep.subr.bf16.mxu1 %v8466_v0  ;;  %5607 = vmatprep.subr.bf16.mxu0 %v8466_v0 }
  0x97   :  { %4452 = vmatpush1.bf16.msra.mxu1 %v8291_v55  ;;  %5608 = vmatpush1.bf16.msra.mxu0 %v8292_v56  ;;  %v284_v55 = vld [vmem:[#allocation2 + $0x780] sm:$0xff] }
  0x98   :  { %4453 = vmatprep.subr.bf16.mxu1 %v8466_v0  ;;  %5609 = vmatprep.subr.bf16.mxu0 %v8466_v0  ;;  %v292_v56 = vld [vmem:[#allocation2 + $0x7c0] sm:$0xff] }
  0x99   :  { %4221 = vmatmul.mubr.bf16.gmra.mrb[24].mxu1 %v6851_v50  ;;  %5377 = vmatmul.mubr.bf16.gmra.mrb[24].mxu0 %v6859_v51  ;;  %v280_v50 = vld [vmem:[#allocation2 + $0x760] sm:$0xff]  ;;  %v6963_v51 = vcombine.low %v252_v37, %v260_v38 }
  0x9a   :  { %4228 = vmatprep.mubr.bf16.mxu1 %v6868_v52  ;;  %5384 = vmatprep.mubr.bf16.mxu0 %v6876_v53  ;;  %v6971_v52 = vcombine.low %v256_v39, %v264_v40  ;;  %v6980_v53 = vcombine.high %v268_v47, %v276_v48  ;;  %v6988_v54 = vcombine.high %v272_v49, %v280_v50  ;;  %v376_v37 = vld [vmem:[#allocation2 + $0xa60] sm:$0xff] }
  0x9b   :  { %4454 = vmatpush1.bf16.msra.mxu1 %v8293_v10  ;;  %5610 = vmatpush1.bf16.msra.mxu0 %v8294_v11  ;;  %v316_v10 = vld [vmem:[#allocation2 + $0x880] sm:$0xff] }
  0x9c   :  { %4455 = vmatprep.subr.bf16.mxu1 %v8466_v0  ;;  %5611 = vmatprep.subr.bf16.mxu0 %v8466_v0  ;;  %v324_v11 = vld [vmem:[#allocation2 + $0x8c0] sm:$0xff] }
  0x9d   :  { %v7027_v22 = vcombine.low %v316_v10, %v324_v11 }
  0x9f   :  { %4456 = vmatpush1.bf16.msra.mxu1 %v8295_v27  ;;  %5612 = vmatpush1.bf16.msra.mxu0 %v8296_v28  ;;  %v356_v27 = vld [vmem:[#allocation2 + $0x9c0] sm:$0xff] }
  0xa0   :  { %4457 = vmatprep.subr.bf16.mxu1 %v8466_v0  ;;  %5613 = vmatprep.subr.bf16.mxu0 %v8466_v0  ;;  %v352_v28 = vld [vmem:[#allocation2 + $0x9a0] sm:$0xff] }
  0xa1   :  { %4229 = vmatmul.mubr.bf16.gmra.mrb[28].mxu1 %v6867_v60  ;;  %5385 = vmatmul.mubr.bf16.gmra.mrb[28].mxu0 %v6875_v61  ;;  %v6987_v60 = vcombine.low %v272_v49, %v280_v50  ;;  %v6996_v61 = vcombine.high %v284_v55, %v292_v56  ;;  %v7067_v39 = vcombine.low %v352_v28, %v360_v29  ;;  %v396_v50 = vld [vmem:[#allocation2 + $0xb00] sm:$0xff] }
  0xa2   :  { %4236 = vmatprep.mubr.bf16.mxu1 %v6884_v62  ;;  %5392 = vmatprep.mubr.bf16.mxu0 %v6892_v63  ;;  %v7004_v62 = vcombine.high %v288_v57, %v296_v58  ;;  %v8299_v63 = vld [vmem:[#allocation5 + $0xf8] sm:$0xff]  }
  0xa3   :  { %4458 = vmatpush1.bf16.msra.mxu1 %v8297_v45  ;;  %5614 = vmatpush1.bf16.msra.mxu0 %v8298_v46  ;;  %v392_v45 = vld [vmem:[#allocation2 + $0xae0] sm:$0xff] }
  0xa4   :  { %4459 = vmatprep.subr.bf16.mxu1 %v8466_v0  ;;  %5615 = vmatprep.subr.bf16.mxu0 %v8466_v0 }
  0xa7   :  { %4460 = vmatpush1.bf16.msra.mxu1 %v8299_v63  ;;  %5616 = vmatpush1.bf16.msra.mxu0 %v8300_v1 }
  0xa8   :  { %4718 = vmatprep.subr.bf16.mxu1 %v8466_v0  ;;  %5874 = vmatprep.subr.bf16.mxu0 %v8466_v0 }
  0xa9   :  { %4237 = vmatmul.mubr.bf16.gmra.mrb[32].mxu1 %v6883_v5  ;;  %5393 = vmatmul.mubr.bf16.gmra.mrb[32].mxu0 %v6891_v6  ;;  %v312_v5 = vld [vmem:[#allocation2 + $0x860] sm:$0xff]  ;;  %v6995_v6 = vcombine.low %v284_v55, %v292_v56 }
  0xaa   :  { %4244 = vmatprep.mubr.bf16.mxu1 %v6900_v7  ;;  %5400 = vmatprep.mubr.bf16.mxu0 %v6908_v8  ;;  %v7003_v7 = vcombine.low %v288_v57, %v296_v58  ;;  %v7012_v8 = vcombine.high %v300_v2, %v308_v3  ;;  %v7020_v9 = vcombine.high %v304_v4, %v312_v5  ;;  %v412_v58 = vld [vmem:[#allocation2 + $0xb80] sm:$0xff] }
  0xab   :  { %v428_v3 = vld [vmem:[#allocation2 + $0xc00] sm:$0xff] }
  0xb1   :  { %4245 = vmatmul.mubr.bf16.gmra.mrb[36].mxu1 %v6899_v15  ;;  %5401 = vmatmul.mubr.bf16.gmra.mrb[36].mxu0 %v6907_v16  ;;  %v7019_v15 = vcombine.low %v304_v4, %v312_v5  ;;  %v7028_v16 = vcombine.high %v316_v10, %v324_v11  ;;  %v436_v4 = vld [vmem:[#allocation2 + $0xc40] sm:$0xff] }
  0xb2   :  { %4252 = vmatprep.mubr.bf16.mxu1 %v6916_v17  ;;  %5408 = vmatprep.mubr.bf16.mxu0 %v6924_v18  ;;  %v7036_v17 = vcombine.high %v320_v12, %v328_v13  ;;  %v332_v18 = vld [vmem:[#allocation2 + $0x900] sm:$0xff] }
  0xb3   :  { %v7043_v30 = vcombine.low %v332_v18, %v340_v19  ;;  %v432_v5 = vld [vmem:[#allocation2 + $0xc20] sm:$0xff] }
  0xb4   :  { %v444_v11 = vld [vmem:[#allocation2 + $0xc80] sm:$0xff] }
  0xb9   :  { %4253 = vmatmul.mubr.bf16.gmra.mrb[40].mxu1 %v6915_v23  ;;  %5409 = vmatmul.mubr.bf16.gmra.mrb[40].mxu0 %v6923_v24  ;;  %v7035_v23 = vcombine.low %v320_v12, %v328_v13  ;;  %v7044_v24 = vcombine.high %v332_v18, %v340_v19  ;;  %v452_v12 = vld [vmem:[#allocation2 + $0xcc0] sm:$0xff] }
  0xba   :  { %4260 = vmatprep.mubr.bf16.mxu1 %v6932_v25  ;;  %5416 = vmatprep.mubr.bf16.mxu0 %v6940_v26  ;;  %v7052_v25 = vcombine.high %v336_v20, %v344_v21  ;;  %v348_v26 = vld [vmem:[#allocation2 + $0x980] sm:$0xff] }
  0xbb   :  { %v7060_v32 = vcombine.high %v348_v26, %v356_v27  ;;  %v7059_v38 = vcombine.low %v348_v26, %v356_v27  ;;  %v448_v13 = vld [vmem:[#allocation2 + $0xca0] sm:$0xff] }
  0xbc   :  { %v460_v19 = vld [vmem:[#allocation2 + $0xd00] sm:$0xff] }
  0xbd   :  { %v468_v20 = vld [vmem:[#allocation2 + $0xd40] sm:$0xff] }
  0xbe   :  { %v464_v21 = vld [vmem:[#allocation2 + $0xd20] sm:$0xff] }
  0xbf   :  { %v476_v27 = vld [vmem:[#allocation2 + $0xd80] sm:$0xff] }
  0xc1   :  { %4261 = vmatmul.mubr.bf16.gmra.mrb[44].mxu1 %v6931_v33  ;;  %5417 = vmatmul.mubr.bf16.gmra.mrb[44].mxu0 %v6939_v34  ;;  %v7068_v33 = vcombine.high %v352_v28, %v360_v29  ;;  %v364_v34 = vld [vmem:[#allocation2 + $0xa00] sm:$0xff] }
  0xc2   :  { %4268 = vmatprep.mubr.bf16.mxu1 %v6948_v35  ;;  %5424 = vmatprep.mubr.bf16.mxu0 %v6956_v36  ;;  %v372_v35 = vld [vmem:[#allocation2 + $0xa40] sm:$0xff] }
  0xc3   :  { %v368_v36 = vld [vmem:[#allocation2 + $0xa20] sm:$0xff]  ;;  %v7076_v40 = vcombine.high %v364_v34, %v372_v35  ;;  %v7075_v46 = vcombine.low %v364_v34, %v372_v35 }
  0xc4   :  { %v7083_v47 = vcombine.low %v368_v36, %v376_v37  ;;  %v484_v28 = vld [vmem:[#allocation2 + $0xdc0] sm:$0xff] }
  0xc5   :  { %v480_v29 = vld [vmem:[#allocation2 + $0xda0] sm:$0xff] }
  0xc6   :  { %v492_v35 = vld [vmem:[#allocation2 + $0xe00] sm:$0xff] }
  0xc9   :  { %4269 = vmatmul.mubr.bf16.gmra.mrb[48].mxu1 %v6947_v41  ;;  %5425 = vmatmul.mubr.bf16.gmra.mrb[48].mxu0 %v6955_v42  ;;  %v7084_v41 = vcombine.high %v368_v36, %v376_v37  ;;  %v380_v42 = vld [vmem:[#allocation2 + $0xa80] sm:$0xff] }
  0xca   :  { %4276 = vmatprep.mubr.bf16.mxu1 %v6964_v43  ;;  %5432 = vmatprep.mubr.bf16.mxu0 %v6972_v44  ;;  %v388_v43 = vld [vmem:[#allocation2 + $0xac0] sm:$0xff] }
  0xcb   :  { %v384_v44 = vld [vmem:[#allocation2 + $0xaa0] sm:$0xff]  ;;  %v7092_v48 = vcombine.high %v380_v42, %v388_v43 }
  0xcc   :  { %v7100_v49 = vcombine.high %v384_v44, %v392_v45  ;;  %v7099_v55 = vcombine.low %v384_v44, %v392_v45  ;;  %v500_v36 = vld [vmem:[#allocation2 + $0xe40] sm:$0xff] }
  0xcd   :  { %v496_v37 = vld [vmem:[#allocation2 + $0xe20] sm:$0xff] }
  0xce   :  { %v516_v44 = vld [vmem:[#allocation2 + $0xec0] sm:$0xff] }
  0xcf   :  { %v512_v45 = vld [vmem:[#allocation2 + $0xea0] sm:$0xff] }
  0xd1   :  { %4277 = vmatmul.mubr.bf16.gmra.mrb[52].mxu1 %v6963_v51  ;;  %5433 = vmatmul.mubr.bf16.gmra.mrb[52].mxu0 %v6971_v52  ;;  %v404_v51 = vld [vmem:[#allocation2 + $0xb40] sm:$0xff] }
  0xd2   :  { %4284 = vmatprep.mubr.bf16.mxu1 %v6980_v53  ;;  %5440 = vmatprep.mubr.bf16.mxu0 %v6988_v54  ;;  %v400_v52 = vld [vmem:[#allocation2 + $0xb20] sm:$0xff]  ;;  %v7091_v54 = vcombine.low %v380_v42, %v388_v43  ;;  %v7108_v56 = vcombine.high %v396_v50, %v404_v51 }
  0xd3   :  { %v408_v53 = vld [vmem:[#allocation2 + $0xb60] sm:$0xff] }
  0xd4   :  { %v7116_v57 = vcombine.high %v400_v52, %v408_v53  ;;  %v7115_v63 = vcombine.low %v400_v52, %v408_v53  ;;  %v508_v43 = vld [vmem:[#allocation2 + $0xe80] sm:$0xff] }
  0xd5   :  { %v532_v52 = vld [vmem:[#allocation2 + $0xf40] sm:$0xff] }
  0xd6   :  { %v528_v53 = vld [vmem:[#allocation2 + $0xf20] sm:$0xff] }
  0xd9   :  { %4285 = vmatmul.mubr.bf16.gmra.mrb[56].mxu1 %v6979_v59  ;;  %5441 = vmatmul.mubr.bf16.gmra.mrb[56].mxu0 %v6987_v60  ;;  %v420_v59 = vld [vmem:[#allocation2 + $0xbc0] sm:$0xff] }
  0xda   :  { %4292 = vmatprep.mubr.bf16.mxu1 %v6996_v61  ;;  %5448 = vmatprep.mubr.bf16.mxu0 %v7004_v62  ;;  %v416_v60 = vld [vmem:[#allocation2 + $0xba0] sm:$0xff]  ;;  %v7107_v62 = vcombine.low %v396_v50, %v404_v51  ;;  %v7124_v1 = vcombine.high %v412_v58, %v420_v59 }
  0xdb   :  { %v424_v61 = vld [vmem:[#allocation2 + $0xbe0] sm:$0xff] }
  0xdc   :  { %v7132_v2 = vcombine.high %v416_v60, %v424_v61  ;;  %v524_v51 = vld [vmem:[#allocation2 + $0xf00] sm:$0xff] }
  0xe1   :  { %4293 = vmatmul.mubr.bf16.gmra.mrb[60].mxu1 %v6995_v6  ;;  %5449 = vmatmul.mubr.bf16.gmra.mrb[60].mxu0 %v7003_v7  ;;  %v440_v6 = vld [vmem:[#allocation2 + $0xc60] sm:$0xff]  ;;  %v7123_v7 = vcombine.low %v412_v58, %v420_v59 }
  0xe2   :  { %4300 = vmatprep.mubr.bf16.mxu1 %v7012_v8  ;;  %5456 = vmatprep.mubr.bf16.mxu0 %v7020_v9  ;;  %v7131_v8 = vcombine.low %v416_v60, %v424_v61  ;;  %v7140_v9 = vcombine.high %v428_v3, %v436_v4  ;;  %v7148_v10 = vcombine.high %v432_v5, %v440_v6  ;;  %v540_v59 = vld [vmem:[#allocation2 + $0xf80] sm:$0xff] }
  0xe3   :  { %v548_v60 = vld [vmem:[#allocation2 + $0xfc0] sm:$0xff] }
  0xe4   :  { %v544_v61 = vld [vmem:[#allocation2 + $0xfa0] sm:$0xff] }
  0xe9   :  { %4301 = vmatmul.mubr.bf16.gmra.mrb[64].mxu1 %v7011_v14  ;;  %5457 = vmatmul.mubr.bf16.gmra.mrb[64].mxu0 %v7019_v15  ;;  %v456_v14 = vld [vmem:[#allocation2 + $0xce0] sm:$0xff]  ;;  %v7139_v15 = vcombine.low %v428_v3, %v436_v4  ;;  %v45_v4 = vld [vmem:[#allocation2 + $0x8] sm:$0xff] }
  0xea   :  { %4308 = vmatprep.mubr.bf16.mxu1 %v7028_v16  ;;  %5464 = vmatprep.mubr.bf16.mxu0 %v7036_v17  ;;  %v7147_v16 = vcombine.low %v432_v5, %v440_v6  ;;  %v7156_v17 = vcombine.high %v444_v11, %v452_v12  ;;  %v7164_v18 = vcombine.high %v448_v13, %v456_v14  ;;  %v53_v5 = vld [vmem:[#allocation2 + $0x48] sm:$0xff] }
  0xeb   :  { %v49_v6 = vld [vmem:[#allocation2 + $0x28] sm:$0xff] }
  0xf1   :  { %4309 = vmatmul.mubr.bf16.gmra.mrb[68].mxu1 %v7027_v22  ;;  %5465 = vmatmul.mubr.bf16.gmra.mrb[68].mxu0 %v7035_v23  ;;  %v472_v22 = vld [vmem:[#allocation2 + $0xd60] sm:$0xff]  ;;  %v7155_v23 = vcombine.low %v444_v11, %v452_v12  ;;  %v61_v12 = vld [vmem:[#allocation2 + $0x88] sm:$0xff] }
  0xf2   :  { %4316 = vmatprep.mubr.bf16.mxu1 %v7044_v24  ;;  %5472 = vmatprep.mubr.bf16.mxu0 %v7052_v25  ;;  %v7163_v24 = vcombine.low %v448_v13, %v456_v14  ;;  %v7172_v25 = vcombine.high %v460_v19, %v468_v20  ;;  %v7180_v26 = vcombine.high %v464_v21, %v472_v22  ;;  %v69_v13 = vld [vmem:[#allocation2 + $0xc8] sm:$0xff] }
  0xf3   :  { %v6757_v14 = vcombine.low %v45_v4, %v53_v5 }
  0xf9   :  { %4317 = vmatmul.mubr.bf16.gmra.mrb[72].mxu1 %v7043_v30  ;;  %5473 = vmatmul.mubr.bf16.gmra.mrb[72].mxu0 %v7051_v31  ;;  %v488_v30 = vld [vmem:[#allocation2 + $0xde0] sm:$0xff]  ;;  %v7171_v31 = vcombine.low %v460_v19, %v468_v20  ;;  %v6774_v20 = vcombine.high %v61_v12, %v69_v13 }
  0xfa   :  { %4324 = vmatprep.mubr.bf16.mxu1 %v7060_v32  ;;  %5480 = vmatprep.mubr.bf16.mxu0 %v7068_v33  ;;  %v7179_v32 = vcombine.low %v464_v21, %v472_v22  ;;  %v7188_v33 = vcombine.high %v476_v27, %v484_v28  ;;  %v7196_v34 = vcombine.high %v480_v29, %v488_v30  ;;  %v8302_v19 = vld [vmem:[#allocation5 + $0x300] sm:$0xff]   ;;  %v8303_v22 = vld [vmem:[#allocation5 + $0x108] sm:$0xff]  }
 0x101   :  { %4325 = vmatmul.mubr.bf16.gmra.mrb[76].mxu1 %v7059_v38  ;;  %5481 = vmatmul.mubr.bf16.gmra.mrb[76].mxu0 %v7067_v39  ;;  %v504_v38 = vld [vmem:[#allocation2 + $0xe60] sm:$0xff]  ;;  %v7187_v39 = vcombine.low %v476_v27, %v484_v28  ;;  %v89_v27 = vld [vmem:[#allocation2 + $0x168] sm:$0xff]  ;;  %v6773_v28 = vcombine.low %v61_v12, %v69_v13 }
 0x102   :  { %4332 = vmatprep.mubr.bf16.mxu1 %v7076_v40  ;;  %5488 = vmatprep.mubr.bf16.mxu0 %v7084_v41  ;;  %v7195_v40 = vcombine.low %v480_v29, %v488_v30  ;;  %v7204_v41 = vcombine.high %v492_v35, %v500_v36  ;;  %v7212_v42 = vcombine.high %v496_v37, %v504_v38  ;;  %v8320_v12 = vld [vmem:[#allocation5 + $0x348] sm:$0xff]  }
 0x109   :  { %4333 = vmatmul.mubr.bf16.gmra.mrb[80].mxu1 %v7075_v46  ;;  %5489 = vmatmul.mubr.bf16.gmra.mrb[80].mxu0 %v7083_v47  ;;  %v520_v46 = vld [vmem:[#allocation2 + $0xee0] sm:$0xff]  ;;  %v7203_v47 = vcombine.low %v492_v35, %v500_v36  ;;  %v101_v35 = vld [vmem:[#allocation2 + $0x1c8] sm:$0xff]  ;;  %v8307_v36 = vld [vmem:[#allocation5 + $0x118] sm:$0xff]  }
 0x10a   :  { %4340 = vmatprep.mubr.bf16.mxu1 %v7092_v48  ;;  %5496 = vmatprep.mubr.bf16.mxu0 %v7100_v49  ;;  %v7211_v48 = vcombine.low %v496_v37, %v504_v38  ;;  %v7220_v49 = vcombine.high %v508_v43, %v516_v44  ;;  %v7228_v50 = vcombine.high %v512_v45, %v520_v46  ;;  %v97_v37 = vld [vmem:[#allocation2 + $0x1a8] sm:$0xff] }
 0x10b   :  { %v105_v38 = vld [vmem:[#allocation2 + $0x1e8] sm:$0xff] }
 0x111   :  { %4341 = vmatmul.mubr.bf16.gmra.mrb[84].mxu1 %v7091_v54  ;;  %5497 = vmatmul.mubr.bf16.gmra.mrb[84].mxu0 %v7099_v55  ;;  %v536_v54 = vld [vmem:[#allocation2 + $0xf60] sm:$0xff]  ;;  %v7219_v55 = vcombine.low %v508_v43, %v516_v44  ;;  %v6814_v43 = vcombine.high %v97_v37, %v105_v38 }
 0x112   :  { %4348 = vmatprep.mubr.bf16.mxu1 %v7108_v56  ;;  %5504 = vmatprep.mubr.bf16.mxu0 %v7116_v57  ;;  %v7227_v56 = vcombine.low %v512_v45, %v520_v46  ;;  %v7236_v57 = vcombine.high %v524_v51, %v532_v52  ;;  %v7244_v58 = vcombine.high %v528_v53, %v536_v54  ;;  %v8309_v44 = vld [vmem:[#allocation5 + $0x120] sm:$0xff]   ;;  %v109_v46 = vld [vmem:[#allocation2 + $0x208] sm:$0xff] }
 0x113   :  { %v8310_v45 = vld [vmem:[#allocation5 + $0x320] sm:$0xff]  }
 0x119   :  { %4349 = vmatmul.mubr.bf16.gmra.mrb[88].mxu1 %v7107_v62  ;;  %5505 = vmatmul.mubr.bf16.gmra.mrb[88].mxu0 %v7115_v63  ;;  %v552_v62 = vld [vmem:[#allocation2 + $0xfe0] sm:$0xff]  ;;  %v7235_v63 = vcombine.low %v524_v51, %v532_v52  ;;  %v8312_v51 = vld [vmem:[#allocation5 + $0x328] sm:$0xff]  }
 0x11a   :  { %4356 = vmatprep.mubr.bf16.mxu1 %v7124_v1  ;;  %5512 = vmatprep.mubr.bf16.mxu0 %v7132_v2  ;;  %v7243_v1 = vcombine.low %v528_v53, %v536_v54  ;;  %v7252_v2 = vcombine.high %v540_v59, %v548_v60  ;;  %v7260_v3 = vcombine.high %v544_v61, %v552_v62 }
 0x11b   :  { %v6813_v53 = vcombine.low %v97_v37, %v105_v38  ;;  %v189_v37 = vld [vmem:[#allocation2 + $0x488] sm:$0xff] }
 0x11c   :  { %v197_v38 = vld [vmem:[#allocation2 + $0x4c8] sm:$0xff] }
 0x121   :  { %4357 = vmatmul.mubr.bf16.gmra.mrb[92].mxu1 %v7123_v7  ;;  %5513 = vmatmul.mubr.bf16.gmra.mrb[92].mxu0 %v7131_v8  ;;  %v57_v7 = vld [vmem:[#allocation2 + $0x68] sm:$0xff]  ;;  %v7251_v8 = vcombine.low %v540_v59, %v548_v60  ;;  %v8315_v60 = vld [vmem:[#allocation5 + $0x138] sm:$0xff]  }
 0x122   :  { %4364 = vmatprep.mubr.bf16.mxu1 %v7140_v9  ;;  %5520 = vmatprep.mubr.bf16.mxu0 %v7148_v10  ;;  %v7259_v9 = vcombine.low %v544_v61, %v552_v62  ;;  %v6758_v10 = vcombine.high %v45_v4, %v53_v5  ;;  %v6766_v11 = vcombine.high %v49_v6, %v57_v7  ;;  %v133_v59 = vld [vmem:[#allocation2 + $0x2c8] sm:$0xff]  ;;  %v8317_v5 = vld [vmem:[#allocation5 + $0x140] sm:$0xff]  }
 0x123   :  { %v129_v61 = vld [vmem:[#allocation2 + $0x2a8] sm:$0xff] }
 0x124   :  { %v137_v62 = vld [vmem:[#allocation2 + $0x2e8] sm:$0xff] }
 0x125   :  { %v6846_v4 = vcombine.high %v129_v61, %v137_v62 }
 0x129   :  { %4365 = vmatmul.mubr.bf16.gmra.mrb[96].mxu1 %v7139_v15  ;;  %5521 = vmatmul.mubr.bf16.gmra.mrb[96].mxu0 %v7147_v16  ;;  %v65_v15 = vld [vmem:[#allocation2 + $0xa8] sm:$0xff] }
 0x12a   :  { %4372 = vmatprep.mubr.bf16.mxu1 %v7156_v17  ;;  %5528 = vmatprep.mubr.bf16.mxu0 %v7164_v18  ;;  %v73_v16 = vld [vmem:[#allocation2 + $0xe8] sm:$0xff]  ;;  %v6765_v17 = vcombine.low %v49_v6, %v57_v7  ;;  %v8301_v18 = vld [vmem:[#allocation5 + $0x100] sm:$0xff]  }
 0x12b   :  { %v6782_v21 = vcombine.high %v65_v15, %v73_v16  ;;  %v6781_v29 = vcombine.low %v65_v15, %v73_v16  ;;  %v8318_v6 = vld [vmem:[#allocation5 + $0x340] sm:$0xff]   ;;  %v141_v7 = vld [vmem:[#allocation2 + $0x308] sm:$0xff] }
 0x131   :  { %4373 = vmatmul.mubr.bf16.gmra.mrb[100].mxu1 %v7155_v23  ;;  %5529 = vmatmul.mubr.bf16.gmra.mrb[100].mxu0 %v7163_v24  ;;  %v77_v23 = vld [vmem:[#allocation2 + $0x108] sm:$0xff] }
 0x132   :  { %4380 = vmatprep.mubr.bf16.mxu1 %v7172_v25  ;;  %5536 = vmatprep.mubr.bf16.mxu0 %v7180_v26  ;;  %v85_v24 = vld [vmem:[#allocation2 + $0x148] sm:$0xff] }
 0x133   :  { %v8304_v25 = vld [vmem:[#allocation5 + $0x308] sm:$0xff]   ;;  %v6790_v30 = vcombine.high %v77_v23, %v85_v24 }
 0x134   :  { %v81_v26 = vld [vmem:[#allocation2 + $0x128] sm:$0xff] }
 0x139   :  { %4381 = vmatmul.mubr.bf16.gmra.mrb[104].mxu1 %v7171_v31  ;;  %5537 = vmatmul.mubr.bf16.gmra.mrb[104].mxu0 %v7179_v32  ;;  %v6798_v31 = vcombine.high %v81_v26, %v89_v27  ;;  %v8305_v32 = vld [vmem:[#allocation5 + $0x110] sm:$0xff]  }
 0x13a   :  { %4388 = vmatprep.mubr.bf16.mxu1 %v7188_v33  ;;  %5544 = vmatprep.mubr.bf16.mxu0 %v7196_v34  ;;  %v8306_v33 = vld [vmem:[#allocation5 + $0x310] sm:$0xff]   ;;  %v93_v34 = vld [vmem:[#allocation2 + $0x188] sm:$0xff] }
 0x13b   :  { %v6805_v52 = vcombine.low %v93_v34, %v101_v35 }
 0x141   :  { %4389 = vmatmul.mubr.bf16.gmra.mrb[108].mxu1 %v7187_v39  ;;  %5545 = vmatmul.mubr.bf16.gmra.mrb[108].mxu0 %v7195_v40  ;;  %v8308_v39 = vld [vmem:[#allocation5 + $0x318] sm:$0xff]   ;;  %v6789_v40 = vcombine.low %v77_v23, %v85_v24 }
 0x142   :  { %4396 = vmatprep.mubr.bf16.mxu1 %v7204_v41  ;;  %5552 = vmatprep.mubr.bf16.mxu0 %v7212_v42  ;;  %v6797_v41 = vcombine.low %v81_v26, %v89_v27  ;;  %v6806_v42 = vcombine.high %v93_v34, %v101_v35  ;;  %v8323_v27 = vld [vmem:[#allocation5 + $0x158] sm:$0xff]  }
 0x149   :  { %4397 = vmatmul.mubr.bf16.gmra.mrb[112].mxu1 %v7203_v47  ;;  %5553 = vmatmul.mubr.bf16.gmra.mrb[112].mxu0 %v7211_v48  ;;  %v117_v47 = vld [vmem:[#allocation2 + $0x248] sm:$0xff] }
 0x14a   :  { %4404 = vmatprep.mubr.bf16.mxu1 %v7220_v49  ;;  %5560 = vmatprep.mubr.bf16.mxu0 %v7228_v50  ;;  %v8311_v48 = vld [vmem:[#allocation5 + $0x128] sm:$0xff]   ;;  %v6822_v54 = vcombine.high %v109_v46, %v117_v47 }
 0x14b   :  { %v113_v49 = vld [vmem:[#allocation2 + $0x228] sm:$0xff] }
 0x14c   :  { %v121_v50 = vld [vmem:[#allocation2 + $0x268] sm:$0xff] }
 0x151   :  { %4405 = vmatmul.mubr.bf16.gmra.mrb[116].mxu1 %v7219_v55  ;;  %5561 = vmatmul.mubr.bf16.gmra.mrb[116].mxu0 %v7227_v56  ;;  %v6830_v55 = vcombine.high %v113_v49, %v121_v50  ;;  %v8313_v56 = vld [vmem:[#allocation5 + $0x130] sm:$0xff]  }
 0x152   :  { %4412 = vmatprep.mubr.bf16.mxu1 %v7236_v57  ;;  %5568 = vmatprep.mubr.bf16.mxu0 %v7244_v58  ;;  %v8314_v57 = vld [vmem:[#allocation5 + $0x330] sm:$0xff]   ;;  %v125_v58 = vld [vmem:[#allocation2 + $0x288] sm:$0xff] }
 0x153   :  { %v6837_v13 = vcombine.low %v125_v58, %v133_v59 }
 0x159   :  { %4413 = vmatmul.mubr.bf16.gmra.mrb[120].mxu1 %v7235_v63  ;;  %5569 = vmatmul.mubr.bf16.gmra.mrb[120].mxu0 %v7243_v1  ;;  %v8316_v63 = vld [vmem:[#allocation5 + $0x338] sm:$0xff]   ;;  %v6821_v1 = vcombine.low %v109_v46, %v117_v47  ;;  %v8326_v46 = vld [vmem:[#allocation5 + $0x360] sm:$0xff]   ;;  %v205_v47 = vld [vmem:[#allocation2 + $0x508] sm:$0xff] }
 0x15a   :  { %4420 = vmatprep.mubr.bf16.mxu1 %v7252_v2  ;;  %5576 = vmatprep.mubr.bf16.mxu0 %v7260_v3  ;;  %v6829_v2 = vcombine.low %v113_v49, %v121_v50  ;;  %v6838_v3 = vcombine.high %v125_v58, %v133_v59  ;;  %v209_v49 = vld [vmem:[#allocation2 + $0x528] sm:$0xff] }
 0x15b   :  { %v217_v50 = vld [vmem:[#allocation2 + $0x568] sm:$0xff] }
 0x15c   :  { %v233_v58 = vld [vmem:[#allocation2 + $0x5e8] sm:$0xff] }
 0x161   :  { %4421 = vmatmul.mubr.bf16.gmra.mrb[124].mxu1 %v7251_v8  ;;  %5577 = vmatmul.mubr.bf16.gmra.mrb[124].mxu0 %v7259_v9  ;;  %v149_v8 = vld [vmem:[#allocation2 + $0x348] sm:$0xff] }
 0x162   :  { %4461 = vmatprep.mubr.bf16.mxu1 %v6758_v10  ;;  %5617 = vmatprep.mubr.bf16.mxu0 %v6766_v11  ;;  %v8319_v9 = vld [vmem:[#allocation5 + $0x148] sm:$0xff]   ;;  %v6854_v15 = vcombine.high %v141_v7, %v149_v8  ;;  %v6853_v23 = vcombine.low %v141_v7, %v149_v8 }
 0x163   :  { %v145_v10 = vld [vmem:[#allocation2 + $0x328] sm:$0xff] }
 0x164   :  { %v153_v11 = vld [vmem:[#allocation2 + $0x368] sm:$0xff] }
 0x165   :  { %v6862_v16 = vcombine.high %v145_v10, %v153_v11  ;;  %v6861_v24 = vcombine.low %v145_v10, %v153_v11  ;;  %v253_v10 = vld [vmem:[#allocation2 + $0x688] sm:$0xff] }
 0x166   :  { %v261_v11 = vld [vmem:[#allocation2 + $0x6c8] sm:$0xff] }
 0x169   :  { %4462 = vmatmul.mubr.bf16.vlgmr.msra.gmra.mrb[0].mxu1 %v6757_v14  ;;  %5618 = vmatmul.mubr.bf16.vlgmr.msra.gmra.mrb[0].mxu0 %v6765_v17  ;;  %v6845_v14 = vcombine.low %v129_v61, %v137_v62  ;;  %v8321_v17 = vld [vmem:[#allocation5 + $0x150] sm:$0xff]  }
 0x16a   :  { %4719 = vmatpush1.bf16.msra.mxu1 %v8301_v18  ;;  %5875 = vmatpush1.bf16.msra.mxu0 %v8302_v19  ;;  %v8322_v18 = vld [vmem:[#allocation5 + $0x350] sm:$0xff]   ;;  %v157_v19 = vld [vmem:[#allocation2 + $0x388] sm:$0xff] }
 0x16b   :  { %4469 = vmatprep.mubr.bf16.mxu1 %v6774_v20  ;;  %5625 = vmatprep.mubr.bf16.mxu0 %v6782_v21  ;;  %v165_v20 = vld [vmem:[#allocation2 + $0x3c8] sm:$0xff] }
 0x16c   :  { %4720 = vmatprep.subr.bf16.mxu1 %v8466_v0  ;;  %5876 = vmatprep.subr.bf16.mxu0 %v8466_v0  ;;  %v161_v21 = vld [vmem:[#allocation2 + $0x3a8] sm:$0xff] }
 0x16e   :  { %4721 = vmatpush1.bf16.msra.mxu1 %v8303_v22  ;;  %5877 = vmatpush1.bf16.msra.mxu0 %v8304_v25  ;;  %v169_v22 = vld [vmem:[#allocation2 + $0x3e8] sm:$0xff]  ;;  %v6870_v25 = vcombine.high %v157_v19, %v165_v20 }
 0x16f   :  { %4722 = vmatprep.subr.bf16.mxu1 %v8466_v0  ;;  %5878 = vmatprep.subr.bf16.mxu0 %v8466_v0  ;;  %v6878_v26 = vcombine.high %v161_v21, %v169_v22  ;;  %v6877_v34 = vcombine.low %v161_v21, %v169_v22  ;;  %v277_v21 = vld [vmem:[#allocation2 + $0x748] sm:$0xff] }
 0x170   :  { %v273_v22 = vld [vmem:[#allocation2 + $0x728] sm:$0xff] }
 0x171   :  { %4470 = vmatmul.mubr.bf16.gmra.mrb[4].mxu1 %v6773_v28  ;;  %5626 = vmatmul.mubr.bf16.gmra.mrb[4].mxu0 %v6781_v29  ;;  %v8324_v28 = vld [vmem:[#allocation5 + $0x358] sm:$0xff]   ;;  %v173_v29 = vld [vmem:[#allocation2 + $0x408] sm:$0xff] }
 0x172   :  { %4477 = vmatprep.mubr.bf16.mxu1 %v6790_v30  ;;  %5633 = vmatprep.mubr.bf16.mxu0 %v6798_v31  ;;  %v181_v30 = vld [vmem:[#allocation2 + $0x448] sm:$0xff] }
 0x173   :  { %4723 = vmatpush1.bf16.msra.mxu1 %v8305_v32  ;;  %5879 = vmatpush1.bf16.msra.mxu0 %v8306_v33  ;;  %v177_v31 = vld [vmem:[#allocation2 + $0x428] sm:$0xff]  ;;  %v6869_v33 = vcombine.low %v157_v19, %v165_v20  ;;  %v6886_v35 = vcombine.high %v173_v29, %v181_v30  ;;  %v8330_v19 = vld [vmem:[#allocation5 + $0x370] sm:$0xff]  }
 0x174   :  { %4724 = vmatprep.subr.bf16.mxu1 %v8466_v0  ;;  %5880 = vmatprep.subr.bf16.mxu0 %v8466_v0  ;;  %v185_v32 = vld [vmem:[#allocation2 + $0x468] sm:$0xff] }
 0x175   :  { %v269_v20 = vld [vmem:[#allocation2 + $0x708] sm:$0xff] }
 0x177   :  { %4725 = vmatpush1.bf16.msra.mxu1 %v8307_v36  ;;  %5881 = vmatpush1.bf16.msra.mxu0 %v8308_v39  ;;  %v6894_v36 = vcombine.high %v177_v31, %v185_v32  ;;  %v193_v39 = vld [vmem:[#allocation2 + $0x4a8] sm:$0xff] }
 0x178   :  { %4726 = vmatprep.subr.bf16.mxu1 %v8466_v0  ;;  %5882 = vmatprep.subr.bf16.mxu0 %v8466_v0 }
 0x179   :  { %4478 = vmatmul.mubr.bf16.gmra.mrb[8].mxu1 %v6789_v40  ;;  %5634 = vmatmul.mubr.bf16.gmra.mrb[8].mxu0 %v6797_v41  ;;  %v201_v40 = vld [vmem:[#allocation2 + $0x4e8] sm:$0xff]  ;;  %v6885_v41 = vcombine.low %v173_v29, %v181_v30 }
 0x17a   :  { %4485 = vmatprep.mubr.bf16.mxu1 %v6806_v42  ;;  %5641 = vmatprep.mubr.bf16.mxu0 %v6814_v43  ;;  %v6893_v42 = vcombine.low %v177_v31, %v185_v32  ;;  %v6902_v43 = vcombine.high %v189_v37, %v197_v38  ;;  %v293_v29 = vld [vmem:[#allocation2 + $0x7c8] sm:$0xff]  ;;  %v6981_v32 = vcombine.low %v269_v20, %v277_v21 }
 0x17b   :  { %4727 = vmatpush1.bf16.msra.mxu1 %v8309_v44  ;;  %5883 = vmatpush1.bf16.msra.mxu0 %v8310_v45  ;;  %v6910_v44 = vcombine.high %v193_v39, %v201_v40  ;;  %v8325_v45 = vld [vmem:[#allocation5 + $0x160] sm:$0xff]   ;;  %v289_v30 = vld [vmem:[#allocation2 + $0x7a8] sm:$0xff] }
 0x17c   :  { %4728 = vmatprep.subr.bf16.mxu1 %v8466_v0  ;;  %5884 = vmatprep.subr.bf16.mxu0 %v8466_v0  ;;  %v297_v31 = vld [vmem:[#allocation2 + $0x7e8] sm:$0xff] }
 0x17f   :  { %4729 = vmatpush1.bf16.msra.mxu1 %v8311_v48  ;;  %5885 = vmatpush1.bf16.msra.mxu0 %v8312_v51  ;;  %v213_v48 = vld [vmem:[#allocation2 + $0x548] sm:$0xff]  ;;  %v6901_v51 = vcombine.low %v189_v37, %v197_v38  ;;  %v8332_v37 = vld [vmem:[#allocation5 + $0x378] sm:$0xff]  }
 0x180   :  { %4730 = vmatprep.subr.bf16.mxu1 %v8466_v0  ;;  %5886 = vmatprep.subr.bf16.mxu0 %v8466_v0  ;;  %v6917_v59 = vcombine.low %v205_v47, %v213_v48  ;;  %v301_v38 = vld [vmem:[#allocation2 + $0x808] sm:$0xff] }
 0x181   :  { %4486 = vmatmul.mubr.bf16.gmra.mrb[12].mxu1 %v6805_v52  ;;  %5642 = vmatmul.mubr.bf16.gmra.mrb[12].mxu0 %v6813_v53  ;;  %v6909_v52 = vcombine.low %v193_v39, %v201_v40  ;;  %v6918_v53 = vcombine.high %v205_v47, %v213_v48  ;;  %v309_v39 = vld [vmem:[#allocation2 + $0x848] sm:$0xff] }
 0x182   :  { %4493 = vmatprep.mubr.bf16.mxu1 %v6822_v54  ;;  %5649 = vmatprep.mubr.bf16.mxu0 %v6830_v55  ;;  %v6926_v54 = vcombine.high %v209_v49, %v217_v50  ;;  %v221_v55 = vld [vmem:[#allocation2 + $0x588] sm:$0xff] }
 0x183   :  { %4731 = vmatpush1.bf16.msra.mxu1 %v8313_v56  ;;  %5887 = vmatpush1.bf16.msra.mxu0 %v8314_v57  ;;  %v229_v56 = vld [vmem:[#allocation2 + $0x5c8] sm:$0xff] }
 0x184   :  { %4732 = vmatprep.subr.bf16.mxu1 %v8466_v0  ;;  %5888 = vmatprep.subr.bf16.mxu0 %v8466_v0  ;;  %v225_v57 = vld [vmem:[#allocation2 + $0x5a8] sm:$0xff]  ;;  %v6934_v61 = vcombine.high %v221_v55, %v229_v56 }
 0x185   :  { %v6942_v62 = vcombine.high %v225_v57, %v233_v58  ;;  %v6941_v7 = vcombine.low %v225_v57, %v233_v58  ;;  %v305_v40 = vld [vmem:[#allocation2 + $0x828] sm:$0xff] }
 0x186   :  { %v325_v47 = vld [vmem:[#allocation2 + $0x8c8] sm:$0xff] }
 0x187   :  { %4733 = vmatpush1.bf16.msra.mxu1 %v8315_v60  ;;  %5889 = vmatpush1.bf16.msra.mxu0 %v8316_v63  ;;  %v6925_v60 = vcombine.low %v209_v49, %v217_v50  ;;  %v8327_v63 = vld [vmem:[#allocation5 + $0x168] sm:$0xff]   ;;  %v7013_v50 = vcombine.low %v301_v38, %v309_v39 }
 0x188   :  { %4734 = vmatprep.subr.bf16.mxu1 %v8466_v0  ;;  %5890 = vmatprep.subr.bf16.mxu0 %v8466_v0  ;;  %v321_v48 = vld [vmem:[#allocation2 + $0x8a8] sm:$0xff] }
 0x189   :  { %4494 = vmatmul.mubr.bf16.gmra.mrb[16].mxu1 %v6821_v1  ;;  %5650 = vmatmul.mubr.bf16.gmra.mrb[16].mxu0 %v6829_v2  ;;  %v8328_v1 = vld [vmem:[#allocation5 + $0x368] sm:$0xff]  }
 0x18a   :  { %4501 = vmatprep.mubr.bf16.mxu1 %v6838_v3  ;;  %5657 = vmatprep.mubr.bf16.mxu0 %v6846_v4  ;;  %v237_v2 = vld [vmem:[#allocation2 + $0x608] sm:$0xff] }
 0x18b   :  { %4735 = vmatpush1.bf16.msra.mxu1 %v8317_v5  ;;  %5891 = vmatpush1.bf16.msra.mxu0 %v8318_v6  ;;  %v245_v3 = vld [vmem:[#allocation2 + $0x648] sm:$0xff]  ;;  %v6933_v6 = vcombine.low %v221_v55, %v229_v56 }
 0x18c   :  { %4736 = vmatprep.subr.bf16.mxu1 %v8466_v0  ;;  %5892 = vmatprep.subr.bf16.mxu0 %v8466_v0  ;;  %v241_v4 = vld [vmem:[#allocation2 + $0x628] sm:$0xff]  ;;  %v6950_v8 = vcombine.high %v237_v2, %v245_v3 }
 0x18d   :  { %v249_v5 = vld [vmem:[#allocation2 + $0x668] sm:$0xff] }
 0x18e   :  { %v329_v49 = vld [vmem:[#allocation2 + $0x8e8] sm:$0xff] }
 0x18f   :  { %4737 = vmatpush1.bf16.msra.mxu1 %v8319_v9  ;;  %5893 = vmatpush1.bf16.msra.mxu0 %v8320_v12  ;;  %v6958_v9 = vcombine.high %v241_v4, %v249_v5  ;;  %v257_v12 = vld [vmem:[#allocation2 + $0x6a8] sm:$0xff] }
 0x190   :  { %4738 = vmatprep.subr.bf16.mxu1 %v8466_v0  ;;  %5894 = vmatprep.subr.bf16.mxu0 %v8466_v0  ;;  %v341_v55 = vld [vmem:[#allocation2 + $0x948] sm:$0xff] }
 0x191   :  { %4502 = vmatmul.mubr.bf16.gmra.mrb[20].mxu1 %v6837_v13  ;;  %5658 = vmatmul.mubr.bf16.gmra.mrb[20].mxu0 %v6845_v14  ;;  %v265_v13 = vld [vmem:[#allocation2 + $0x6e8] sm:$0xff]  ;;  %v6949_v14 = vcombine.low %v237_v2, %v245_v3 }
 0x192   :  { %4509 = vmatprep.mubr.bf16.mxu1 %v6854_v15  ;;  %5665 = vmatprep.mubr.bf16.mxu0 %v6862_v16  ;;  %v6957_v15 = vcombine.low %v241_v4, %v249_v5  ;;  %v6966_v16 = vcombine.high %v253_v10, %v261_v11  ;;  %v337_v56 = vld [vmem:[#allocation2 + $0x928] sm:$0xff] }
 0x193   :  { %4739 = vmatpush1.bf16.msra.mxu1 %v8321_v17  ;;  %5895 = vmatpush1.bf16.msra.mxu0 %v8322_v18  ;;  %v6974_v17 = vcombine.high %v257_v12, %v265_v13  ;;  %v8329_v18 = vld [vmem:[#allocation5 + $0x170] sm:$0xff]   ;;  %v345_v57 = vld [vmem:[#allocation2 + $0x968] sm:$0xff] }
 0x194   :  { %4740 = vmatprep.subr.bf16.mxu1 %v8466_v0  ;;  %5896 = vmatprep.subr.bf16.mxu0 %v8466_v0  ;;  %v361_v2 = vld [vmem:[#allocation2 + $0x9e8] sm:$0xff]  ;;  %v7053_v4 = vcombine.low %v337_v56, %v345_v57 }
 0x197   :  { %4741 = vmatpush1.bf16.msra.mxu1 %v8323_v27  ;;  %5897 = vmatpush1.bf16.msra.mxu0 %v8324_v28  ;;  %v285_v28 = vld [vmem:[#allocation2 + $0x788] sm:$0xff] }
 0x198   :  { %4742 = vmatprep.subr.bf16.mxu1 %v8466_v0  ;;  %5898 = vmatprep.subr.bf16.mxu0 %v8466_v0 }
 0x199   :  { %4510 = vmatmul.mubr.bf16.gmra.mrb[24].mxu1 %v6853_v23  ;;  %5666 = vmatmul.mubr.bf16.gmra.mrb[24].mxu0 %v6861_v24  ;;  %v281_v23 = vld [vmem:[#allocation2 + $0x768] sm:$0xff]  ;;  %v6965_v24 = vcombine.low %v253_v10, %v261_v11 }
 0x19a   :  { %4517 = vmatprep.mubr.bf16.mxu1 %v6870_v25  ;;  %5673 = vmatprep.mubr.bf16.mxu0 %v6878_v26  ;;  %v6973_v25 = vcombine.low %v257_v12, %v265_v13  ;;  %v6982_v26 = vcombine.high %v269_v20, %v277_v21  ;;  %v6990_v27 = vcombine.high %v273_v22, %v281_v23  ;;  %v377_v10 = vld [vmem:[#allocation2 + $0xa68] sm:$0xff] }
 0x19b   :  { %4743 = vmatpush1.bf16.msra.mxu1 %v8325_v45  ;;  %5899 = vmatpush1.bf16.msra.mxu0 %v8326_v46  ;;  %v317_v46 = vld [vmem:[#allocation2 + $0x888] sm:$0xff] }
 0x19c   :  { %4744 = vmatprep.subr.bf16.mxu1 %v8466_v0  ;;  %5900 = vmatprep.subr.bf16.mxu0 %v8466_v0  ;;  %v7029_v58 = vcombine.low %v317_v46, %v325_v47 }
 0x19f   :  { %4745 = vmatpush1.bf16.msra.mxu1 %v8327_v63  ;;  %5901 = vmatpush1.bf16.msra.mxu0 %v8328_v1  ;;  %v357_v63 = vld [vmem:[#allocation2 + $0x9c8] sm:$0xff] }
 0x1a0   :  { %4746 = vmatprep.subr.bf16.mxu1 %v8466_v0  ;;  %5902 = vmatprep.subr.bf16.mxu0 %v8466_v0  ;;  %v353_v1 = vld [vmem:[#allocation2 + $0x9a8] sm:$0xff] }
 0x1a1   :  { %4518 = vmatmul.mubr.bf16.gmra.mrb[28].mxu1 %v6869_v33  ;;  %5674 = vmatmul.mubr.bf16.gmra.mrb[28].mxu0 %v6877_v34  ;;  %v6989_v33 = vcombine.low %v273_v22, %v281_v23  ;;  %v6998_v34 = vcombine.high %v285_v28, %v293_v29  ;;  %v7069_v12 = vcombine.low %v353_v1, %v361_v2  ;;  %v397_v23 = vld [vmem:[#allocation2 + $0xb08] sm:$0xff] }
 0x1a2   :  { %4525 = vmatprep.mubr.bf16.mxu1 %v6886_v35  ;;  %5681 = vmatprep.mubr.bf16.mxu0 %v6894_v36  ;;  %v7006_v35 = vcombine.high %v289_v30, %v297_v31  ;;  %v8331_v36 = vld [vmem:[#allocation5 + $0x178] sm:$0xff]  }
 0x1a3   :  { %4747 = vmatpush1.bf16.msra.mxu1 %v8329_v18  ;;  %5903 = vmatpush1.bf16.msra.mxu0 %v8330_v19  ;;  %v393_v18 = vld [vmem:[#allocation2 + $0xae8] sm:$0xff] }
 0x1a4   :  { %4748 = vmatprep.subr.bf16.mxu1 %v8466_v0  ;;  %5904 = vmatprep.subr.bf16.mxu0 %v8466_v0 }
 0x1a7   :  { %4749 = vmatpush1.bf16.msra.mxu1 %v8331_v36  ;;  %5905 = vmatpush1.bf16.msra.mxu0 %v8332_v37 }
 0x1a8   :  { %5007 = vmatprep.subr.bf16.mxu1 %v8466_v0  ;;  %6163 = vmatprep.subr.bf16.mxu0 %v8466_v0 }
 0x1a9   :  { %4526 = vmatmul.mubr.bf16.gmra.mrb[32].mxu1 %v6885_v41  ;;  %5682 = vmatmul.mubr.bf16.gmra.mrb[32].mxu0 %v6893_v42  ;;  %v313_v41 = vld [vmem:[#allocation2 + $0x868] sm:$0xff]  ;;  %v6997_v42 = vcombine.low %v285_v28, %v293_v29 }
 0x1aa   :  { %4533 = vmatprep.mubr.bf16.mxu1 %v6902_v43  ;;  %5689 = vmatprep.mubr.bf16.mxu0 %v6910_v44  ;;  %v7005_v43 = vcombine.low %v289_v30, %v297_v31  ;;  %v7014_v44 = vcombine.high %v301_v38, %v309_v39  ;;  %v7022_v45 = vcombine.high %v305_v40, %v313_v41  ;;  %v413_v31 = vld [vmem:[#allocation2 + $0xb88] sm:$0xff] }
 0x1ab   :  { %v429_v39 = vld [vmem:[#allocation2 + $0xc08] sm:$0xff] }
 0x1b1   :  { %4534 = vmatmul.mubr.bf16.gmra.mrb[36].mxu1 %v6901_v51  ;;  %5690 = vmatmul.mubr.bf16.gmra.mrb[36].mxu0 %v6909_v52  ;;  %v7021_v51 = vcombine.low %v305_v40, %v313_v41  ;;  %v7030_v52 = vcombine.high %v317_v46, %v325_v47  ;;  %v437_v40 = vld [vmem:[#allocation2 + $0xc48] sm:$0xff] }
 0x1b2   :  { %4541 = vmatprep.mubr.bf16.mxu1 %v6918_v53  ;;  %5697 = vmatprep.mubr.bf16.mxu0 %v6926_v54  ;;  %v7038_v53 = vcombine.high %v321_v48, %v329_v49  ;;  %v333_v54 = vld [vmem:[#allocation2 + $0x908] sm:$0xff] }
 0x1b3   :  { %v7045_v3 = vcombine.low %v333_v54, %v341_v55  ;;  %v433_v41 = vld [vmem:[#allocation2 + $0xc28] sm:$0xff] }
 0x1b4   :  { %v445_v47 = vld [vmem:[#allocation2 + $0xc88] sm:$0xff] }
 0x1b9   :  { %4542 = vmatmul.mubr.bf16.gmra.mrb[40].mxu1 %v6917_v59  ;;  %5698 = vmatmul.mubr.bf16.gmra.mrb[40].mxu0 %v6925_v60  ;;  %v7037_v59 = vcombine.low %v321_v48, %v329_v49  ;;  %v7046_v60 = vcombine.high %v333_v54, %v341_v55  ;;  %v453_v48 = vld [vmem:[#allocation2 + $0xcc8] sm:$0xff] }
 0x1ba   :  { %4549 = vmatprep.mubr.bf16.mxu1 %v6934_v61  ;;  %5705 = vmatprep.mubr.bf16.mxu0 %v6942_v62  ;;  %v7054_v61 = vcombine.high %v337_v56, %v345_v57  ;;  %v349_v62 = vld [vmem:[#allocation2 + $0x988] sm:$0xff] }
 0x1bb   :  { %v7062_v5 = vcombine.high %v349_v62, %v357_v63  ;;  %v7061_v11 = vcombine.low %v349_v62, %v357_v63  ;;  %v449_v49 = vld [vmem:[#allocation2 + $0xca8] sm:$0xff] }
 0x1bc   :  { %v461_v55 = vld [vmem:[#allocation2 + $0xd08] sm:$0xff] }
 0x1bd   :  { %v469_v56 = vld [vmem:[#allocation2 + $0xd48] sm:$0xff] }
 0x1be   :  { %v465_v57 = vld [vmem:[#allocation2 + $0xd28] sm:$0xff] }
 0x1bf   :  { %v477_v63 = vld [vmem:[#allocation2 + $0xd88] sm:$0xff] }
 0x1c1   :  { %4550 = vmatmul.mubr.bf16.gmra.mrb[44].mxu1 %v6933_v6  ;;  %5706 = vmatmul.mubr.bf16.gmra.mrb[44].mxu0 %v6941_v7  ;;  %v7070_v6 = vcombine.high %v353_v1, %v361_v2  ;;  %v365_v7 = vld [vmem:[#allocation2 + $0xa08] sm:$0xff] }
 0x1c2   :  { %4557 = vmatprep.mubr.bf16.mxu1 %v6950_v8  ;;  %5713 = vmatprep.mubr.bf16.mxu0 %v6958_v9  ;;  %v373_v8 = vld [vmem:[#allocation2 + $0xa48] sm:$0xff] }
 0x1c3   :  { %v369_v9 = vld [vmem:[#allocation2 + $0xa28] sm:$0xff]  ;;  %v7078_v13 = vcombine.high %v365_v7, %v373_v8  ;;  %v7077_v19 = vcombine.low %v365_v7, %v373_v8 }
 0x1c4   :  { %v7085_v20 = vcombine.low %v369_v9, %v377_v10  ;;  %v485_v1 = vld [vmem:[#allocation2 + $0xdc8] sm:$0xff] }
 0x1c5   :  { %v481_v2 = vld [vmem:[#allocation2 + $0xda8] sm:$0xff] }
 0x1c6   :  { %v493_v8 = vld [vmem:[#allocation2 + $0xe08] sm:$0xff] }
 0x1c9   :  { %4558 = vmatmul.mubr.bf16.gmra.mrb[48].mxu1 %v6949_v14  ;;  %5714 = vmatmul.mubr.bf16.gmra.mrb[48].mxu0 %v6957_v15  ;;  %v7086_v14 = vcombine.high %v369_v9, %v377_v10  ;;  %v381_v15 = vld [vmem:[#allocation2 + $0xa88] sm:$0xff] }
 0x1ca   :  { %4565 = vmatprep.mubr.bf16.mxu1 %v6966_v16  ;;  %5721 = vmatprep.mubr.bf16.mxu0 %v6974_v17  ;;  %v389_v16 = vld [vmem:[#allocation2 + $0xac8] sm:$0xff] }
 0x1cb   :  { %v385_v17 = vld [vmem:[#allocation2 + $0xaa8] sm:$0xff]  ;;  %v7094_v21 = vcombine.high %v381_v15, %v389_v16 }
 0x1cc   :  { %v7102_v22 = vcombine.high %v385_v17, %v393_v18  ;;  %v7101_v28 = vcombine.low %v385_v17, %v393_v18  ;;  %v501_v9 = vld [vmem:[#allocation2 + $0xe48] sm:$0xff] }
 0x1cd   :  { %v497_v10 = vld [vmem:[#allocation2 + $0xe28] sm:$0xff] }
 0x1ce   :  { %v517_v17 = vld [vmem:[#allocation2 + $0xec8] sm:$0xff] }
 0x1cf   :  { %v513_v18 = vld [vmem:[#allocation2 + $0xea8] sm:$0xff] }
 0x1d1   :  { %4566 = vmatmul.mubr.bf16.gmra.mrb[52].mxu1 %v6965_v24  ;;  %5722 = vmatmul.mubr.bf16.gmra.mrb[52].mxu0 %v6973_v25  ;;  %v405_v24 = vld [vmem:[#allocation2 + $0xb48] sm:$0xff] }
 0x1d2   :  { %4573 = vmatprep.mubr.bf16.mxu1 %v6982_v26  ;;  %5729 = vmatprep.mubr.bf16.mxu0 %v6990_v27  ;;  %v401_v25 = vld [vmem:[#allocation2 + $0xb28] sm:$0xff]  ;;  %v7093_v27 = vcombine.low %v381_v15, %v389_v16  ;;  %v7110_v29 = vcombine.high %v397_v23, %v405_v24 }
 0x1d3   :  { %v409_v26 = vld [vmem:[#allocation2 + $0xb68] sm:$0xff] }
 0x1d4   :  { %v7118_v30 = vcombine.high %v401_v25, %v409_v26  ;;  %v7117_v36 = vcombine.low %v401_v25, %v409_v26  ;;  %v509_v16 = vld [vmem:[#allocation2 + $0xe88] sm:$0xff] }
 0x1d5   :  { %v533_v25 = vld [vmem:[#allocation2 + $0xf48] sm:$0xff] }
 0x1d6   :  { %v529_v26 = vld [vmem:[#allocation2 + $0xf28] sm:$0xff] }
 0x1d9   :  { %4574 = vmatmul.mubr.bf16.gmra.mrb[56].mxu1 %v6981_v32  ;;  %5730 = vmatmul.mubr.bf16.gmra.mrb[56].mxu0 %v6989_v33  ;;  %v421_v32 = vld [vmem:[#allocation2 + $0xbc8] sm:$0xff] }
 0x1da   :  { %4581 = vmatprep.mubr.bf16.mxu1 %v6998_v34  ;;  %5737 = vmatprep.mubr.bf16.mxu0 %v7006_v35  ;;  %v417_v33 = vld [vmem:[#allocation2 + $0xba8] sm:$0xff]  ;;  %v7109_v35 = vcombine.low %v397_v23, %v405_v24  ;;  %v7126_v37 = vcombine.high %v413_v31, %v421_v32 }
 0x1db   :  { %v425_v34 = vld [vmem:[#allocation2 + $0xbe8] sm:$0xff] }
 0x1dc   :  { %v7134_v38 = vcombine.high %v417_v33, %v425_v34  ;;  %v525_v24 = vld [vmem:[#allocation2 + $0xf08] sm:$0xff] }
 0x1e1   :  { %4582 = vmatmul.mubr.bf16.gmra.mrb[60].mxu1 %v6997_v42  ;;  %5738 = vmatmul.mubr.bf16.gmra.mrb[60].mxu0 %v7005_v43  ;;  %v441_v42 = vld [vmem:[#allocation2 + $0xc68] sm:$0xff]  ;;  %v7125_v43 = vcombine.low %v413_v31, %v421_v32 }
 0x1e2   :  { %4589 = vmatprep.mubr.bf16.mxu1 %v7014_v44  ;;  %5745 = vmatprep.mubr.bf16.mxu0 %v7022_v45  ;;  %v7133_v44 = vcombine.low %v417_v33, %v425_v34  ;;  %v7142_v45 = vcombine.high %v429_v39, %v437_v40  ;;  %v7150_v46 = vcombine.high %v433_v41, %v441_v42  ;;  %v541_v32 = vld [vmem:[#allocation2 + $0xf88] sm:$0xff] }
 0x1e3   :  { %v549_v33 = vld [vmem:[#allocation2 + $0xfc8] sm:$0xff] }
 0x1e4   :  { %v545_v34 = vld [vmem:[#allocation2 + $0xfa8] sm:$0xff] }
 0x1e9   :  { %4590 = vmatmul.mubr.bf16.gmra.mrb[64].mxu1 %v7013_v50  ;;  %5746 = vmatmul.mubr.bf16.gmra.mrb[64].mxu0 %v7021_v51  ;;  %v457_v50 = vld [vmem:[#allocation2 + $0xce8] sm:$0xff]  ;;  %v7141_v51 = vcombine.low %v429_v39, %v437_v40  ;;  %v46_v40 = vld [vmem:[#allocation2 + $0x10] sm:$0xff] }
 0x1ea   :  { %4597 = vmatprep.mubr.bf16.mxu1 %v7030_v52  ;;  %5753 = vmatprep.mubr.bf16.mxu0 %v7038_v53  ;;  %v7149_v52 = vcombine.low %v433_v41, %v441_v42  ;;  %v7158_v53 = vcombine.high %v445_v47, %v453_v48  ;;  %v7166_v54 = vcombine.high %v449_v49, %v457_v50  ;;  %v54_v41 = vld [vmem:[#allocation2 + $0x50] sm:$0xff] }
 0x1eb   :  { %v50_v42 = vld [vmem:[#allocation2 + $0x30] sm:$0xff] }
 0x1f1   :  { %4598 = vmatmul.mubr.bf16.gmra.mrb[68].mxu1 %v7029_v58  ;;  %5754 = vmatmul.mubr.bf16.gmra.mrb[68].mxu0 %v7037_v59  ;;  %v473_v58 = vld [vmem:[#allocation2 + $0xd68] sm:$0xff]  ;;  %v7157_v59 = vcombine.low %v445_v47, %v453_v48  ;;  %v62_v48 = vld [vmem:[#allocation2 + $0x90] sm:$0xff] }
 0x1f2   :  { %4605 = vmatprep.mubr.bf16.mxu1 %v7046_v60  ;;  %5761 = vmatprep.mubr.bf16.mxu0 %v7054_v61  ;;  %v7165_v60 = vcombine.low %v449_v49, %v457_v50  ;;  %v7174_v61 = vcombine.high %v461_v55, %v469_v56  ;;  %v7182_v62 = vcombine.high %v465_v57, %v473_v58  ;;  %v70_v49 = vld [vmem:[#allocation2 + $0xd0] sm:$0xff] }
 0x1f3   :  { %v6759_v50 = vcombine.low %v46_v40, %v54_v41 }
 0x1f9   :  { %4606 = vmatmul.mubr.bf16.gmra.mrb[72].mxu1 %v7045_v3  ;;  %5762 = vmatmul.mubr.bf16.gmra.mrb[72].mxu0 %v7053_v4  ;;  %v489_v3 = vld [vmem:[#allocation2 + $0xde8] sm:$0xff]  ;;  %v7173_v4 = vcombine.low %v461_v55, %v469_v56  ;;  %v8334_v55 = vld [vmem:[#allocation5 + $0x380] sm:$0xff]   ;;  %v6776_v56 = vcombine.high %v62_v48, %v70_v49 }
 0x1fa   :  { %4613 = vmatprep.mubr.bf16.mxu1 %v7062_v5  ;;  %5769 = vmatprep.mubr.bf16.mxu0 %v7070_v6  ;;  %v7181_v5 = vcombine.low %v465_v57, %v473_v58  ;;  %v7190_v6 = vcombine.high %v477_v63, %v485_v1  ;;  %v7198_v7 = vcombine.high %v481_v2, %v489_v3  ;;  %v8335_v58 = vld [vmem:[#allocation5 + $0x188] sm:$0xff]  }
 0x201   :  { %4614 = vmatmul.mubr.bf16.gmra.mrb[76].mxu1 %v7061_v11  ;;  %5770 = vmatmul.mubr.bf16.gmra.mrb[76].mxu0 %v7069_v12  ;;  %v505_v11 = vld [vmem:[#allocation2 + $0xe68] sm:$0xff]  ;;  %v7189_v12 = vcombine.low %v477_v63, %v485_v1  ;;  %v90_v63 = vld [vmem:[#allocation2 + $0x170] sm:$0xff]  ;;  %v6775_v1 = vcombine.low %v62_v48, %v70_v49 }
 0x202   :  { %4621 = vmatprep.mubr.bf16.mxu1 %v7078_v13  ;;  %5777 = vmatprep.mubr.bf16.mxu0 %v7086_v14  ;;  %v7197_v13 = vcombine.low %v481_v2, %v489_v3  ;;  %v7206_v14 = vcombine.high %v493_v8, %v501_v9  ;;  %v7214_v15 = vcombine.high %v497_v10, %v505_v11  ;;  %v8352_v48 = vld [vmem:[#allocation5 + $0x3c8] sm:$0xff]  }
 0x209   :  { %4622 = vmatmul.mubr.bf16.gmra.mrb[80].mxu1 %v7077_v19  ;;  %5778 = vmatmul.mubr.bf16.gmra.mrb[80].mxu0 %v7085_v20  ;;  %v521_v19 = vld [vmem:[#allocation2 + $0xee8] sm:$0xff]  ;;  %v7205_v20 = vcombine.low %v493_v8, %v501_v9  ;;  %v102_v8 = vld [vmem:[#allocation2 + $0x1d0] sm:$0xff]  ;;  %v8339_v9 = vld [vmem:[#allocation5 + $0x198] sm:$0xff]  }
 0x20a   :  { %4629 = vmatprep.mubr.bf16.mxu1 %v7094_v21  ;;  %5785 = vmatprep.mubr.bf16.mxu0 %v7102_v22  ;;  %v7213_v21 = vcombine.low %v497_v10, %v505_v11  ;;  %v7222_v22 = vcombine.high %v509_v16, %v517_v17  ;;  %v7230_v23 = vcombine.high %v513_v18, %v521_v19  ;;  %v98_v10 = vld [vmem:[#allocation2 + $0x1b0] sm:$0xff] }
 0x20b   :  { %v106_v11 = vld [vmem:[#allocation2 + $0x1f0] sm:$0xff] }
 0x211   :  { %4630 = vmatmul.mubr.bf16.gmra.mrb[84].mxu1 %v7093_v27  ;;  %5786 = vmatmul.mubr.bf16.gmra.mrb[84].mxu0 %v7101_v28  ;;  %v537_v27 = vld [vmem:[#allocation2 + $0xf68] sm:$0xff]  ;;  %v7221_v28 = vcombine.low %v509_v16, %v517_v17  ;;  %v6816_v16 = vcombine.high %v98_v10, %v106_v11  ;;  %v8341_v17 = vld [vmem:[#allocation5 + $0x1a0] sm:$0xff]  }
 0x212   :  { %4637 = vmatprep.mubr.bf16.mxu1 %v7110_v29  ;;  %5793 = vmatprep.mubr.bf16.mxu0 %v7118_v30  ;;  %v7229_v29 = vcombine.low %v513_v18, %v521_v19  ;;  %v7238_v30 = vcombine.high %v525_v24, %v533_v25  ;;  %v7246_v31 = vcombine.high %v529_v26, %v537_v27  ;;  %v8342_v18 = vld [vmem:[#allocation5 + $0x3a0] sm:$0xff]   ;;  %v110_v19 = vld [vmem:[#allocation2 + $0x210] sm:$0xff] }
 0x219   :  { %4638 = vmatmul.mubr.bf16.gmra.mrb[88].mxu1 %v7109_v35  ;;  %5794 = vmatmul.mubr.bf16.gmra.mrb[88].mxu0 %v7117_v36  ;;  %v553_v35 = vld [vmem:[#allocation2 + $0xfe8] sm:$0xff]  ;;  %v7237_v36 = vcombine.low %v525_v24, %v533_v25 }
 0x21a   :  { %4645 = vmatprep.mubr.bf16.mxu1 %v7126_v37  ;;  %5801 = vmatprep.mubr.bf16.mxu0 %v7134_v38  ;;  %v7245_v37 = vcombine.low %v529_v26, %v537_v27  ;;  %v7254_v38 = vcombine.high %v541_v32, %v549_v33  ;;  %v7262_v39 = vcombine.high %v545_v34, %v553_v35  ;;  %v8344_v24 = vld [vmem:[#allocation5 + $0x3a8] sm:$0xff]  }
 0x21b   :  { %v6815_v26 = vcombine.low %v98_v10, %v106_v11  ;;  %v190_v10 = vld [vmem:[#allocation2 + $0x490] sm:$0xff] }
 0x21c   :  { %v198_v11 = vld [vmem:[#allocation2 + $0x4d0] sm:$0xff] }
 0x221   :  { %4646 = vmatmul.mubr.bf16.gmra.mrb[92].mxu1 %v7125_v43  ;;  %5802 = vmatmul.mubr.bf16.gmra.mrb[92].mxu0 %v7133_v44  ;;  %v58_v43 = vld [vmem:[#allocation2 + $0x70] sm:$0xff]  ;;  %v7253_v44 = vcombine.low %v541_v32, %v549_v33  ;;  %v8347_v33 = vld [vmem:[#allocation5 + $0x1b8] sm:$0xff]  }
 0x222   :  { %4653 = vmatprep.mubr.bf16.mxu1 %v7142_v45  ;;  %5809 = vmatprep.mubr.bf16.mxu0 %v7150_v46  ;;  %v7261_v45 = vcombine.low %v545_v34, %v553_v35  ;;  %v6760_v46 = vcombine.high %v46_v40, %v54_v41  ;;  %v6768_v47 = vcombine.high %v50_v42, %v58_v43  ;;  %v134_v32 = vld [vmem:[#allocation2 + $0x2d0] sm:$0xff]  ;;  %v8349_v41 = vld [vmem:[#allocation5 + $0x1c0] sm:$0xff]  }
 0x223   :  { %v130_v34 = vld [vmem:[#allocation2 + $0x2b0] sm:$0xff] }
 0x224   :  { %v138_v35 = vld [vmem:[#allocation2 + $0x2f0] sm:$0xff] }
 0x225   :  { %v6848_v40 = vcombine.high %v130_v34, %v138_v35 }
 0x229   :  { %4654 = vmatmul.mubr.bf16.gmra.mrb[96].mxu1 %v7141_v51  ;;  %5810 = vmatmul.mubr.bf16.gmra.mrb[96].mxu0 %v7149_v52  ;;  %v66_v51 = vld [vmem:[#allocation2 + $0xb0] sm:$0xff] }
 0x22a   :  { %4661 = vmatprep.mubr.bf16.mxu1 %v7158_v53  ;;  %5817 = vmatprep.mubr.bf16.mxu0 %v7166_v54  ;;  %v74_v52 = vld [vmem:[#allocation2 + $0xf0] sm:$0xff]  ;;  %v6767_v53 = vcombine.low %v50_v42, %v58_v43  ;;  %v8333_v54 = vld [vmem:[#allocation5 + $0x180] sm:$0xff]  }
 0x22b   :  { %v6784_v57 = vcombine.high %v66_v51, %v74_v52  ;;  %v6783_v2 = vcombine.low %v66_v51, %v74_v52  ;;  %v8350_v42 = vld [vmem:[#allocation5 + $0x3c0] sm:$0xff]   ;;  %v142_v43 = vld [vmem:[#allocation2 + $0x310] sm:$0xff] }
 0x231   :  { %4662 = vmatmul.mubr.bf16.gmra.mrb[100].mxu1 %v7157_v59  ;;  %5818 = vmatmul.mubr.bf16.gmra.mrb[100].mxu0 %v7165_v60  ;;  %v78_v59 = vld [vmem:[#allocation2 + $0x110] sm:$0xff] }
 0x232   :  { %4669 = vmatprep.mubr.bf16.mxu1 %v7174_v61  ;;  %5825 = vmatprep.mubr.bf16.mxu0 %v7182_v62  ;;  %v86_v60 = vld [vmem:[#allocation2 + $0x150] sm:$0xff]  ;;  %v8336_v61 = vld [vmem:[#allocation5 + $0x388] sm:$0xff]  }
 0x233   :  { %v82_v62 = vld [vmem:[#allocation2 + $0x130] sm:$0xff]  ;;  %v6792_v3 = vcombine.high %v78_v59, %v86_v60 }
 0x239   :  { %4670 = vmatmul.mubr.bf16.gmra.mrb[104].mxu1 %v7173_v4  ;;  %5826 = vmatmul.mubr.bf16.gmra.mrb[104].mxu0 %v7181_v5  ;;  %v6800_v4 = vcombine.high %v82_v62, %v90_v63  ;;  %v8337_v5 = vld [vmem:[#allocation5 + $0x190] sm:$0xff]  }
 0x23a   :  { %4677 = vmatprep.mubr.bf16.mxu1 %v7190_v6  ;;  %5833 = vmatprep.mubr.bf16.mxu0 %v7198_v7  ;;  %v8338_v6 = vld [vmem:[#allocation5 + $0x390] sm:$0xff]  }
 0x23b   :  { %v94_v7 = vld [vmem:[#allocation2 + $0x190] sm:$0xff] }
 0x23c   :  { %v6807_v25 = vcombine.low %v94_v7, %v102_v8 }
 0x241   :  { %4678 = vmatmul.mubr.bf16.gmra.mrb[108].mxu1 %v7189_v12  ;;  %5834 = vmatmul.mubr.bf16.gmra.mrb[108].mxu0 %v7197_v13  ;;  %v8340_v12 = vld [vmem:[#allocation5 + $0x398] sm:$0xff]   ;;  %v6791_v13 = vcombine.low %v78_v59, %v86_v60 }
 0x242   :  { %4685 = vmatprep.mubr.bf16.mxu1 %v7206_v14  ;;  %5841 = vmatprep.mubr.bf16.mxu0 %v7214_v15  ;;  %v6799_v14 = vcombine.low %v82_v62, %v90_v63  ;;  %v6808_v15 = vcombine.high %v94_v7, %v102_v8  ;;  %v8355_v63 = vld [vmem:[#allocation5 + $0x1d8] sm:$0xff]  }
 0x249   :  { %4686 = vmatmul.mubr.bf16.gmra.mrb[112].mxu1 %v7205_v20  ;;  %5842 = vmatmul.mubr.bf16.gmra.mrb[112].mxu0 %v7213_v21  ;;  %v118_v20 = vld [vmem:[#allocation2 + $0x250] sm:$0xff]  ;;  %v8343_v21 = vld [vmem:[#allocation5 + $0x1a8] sm:$0xff]  }
 0x24a   :  { %4693 = vmatprep.mubr.bf16.mxu1 %v7222_v22  ;;  %5849 = vmatprep.mubr.bf16.mxu0 %v7230_v23  ;;  %v114_v22 = vld [vmem:[#allocation2 + $0x230] sm:$0xff]  ;;  %v6824_v27 = vcombine.high %v110_v19, %v118_v20 }
 0x24b   :  { %v122_v23 = vld [vmem:[#allocation2 + $0x270] sm:$0xff] }
 0x251   :  { %4694 = vmatmul.mubr.bf16.gmra.mrb[116].mxu1 %v7221_v28  ;;  %5850 = vmatmul.mubr.bf16.gmra.mrb[116].mxu0 %v7229_v29  ;;  %v6832_v28 = vcombine.high %v114_v22, %v122_v23  ;;  %v8345_v29 = vld [vmem:[#allocation5 + $0x1b0] sm:$0xff]  }
 0x252   :  { %4701 = vmatprep.mubr.bf16.mxu1 %v7238_v30  ;;  %5857 = vmatprep.mubr.bf16.mxu0 %v7246_v31  ;;  %v8346_v30 = vld [vmem:[#allocation5 + $0x3b0] sm:$0xff]  }
 0x253   :  { %v126_v31 = vld [vmem:[#allocation2 + $0x290] sm:$0xff] }
 0x254   :  { %v6839_v49 = vcombine.low %v126_v31, %v134_v32 }
 0x259   :  { %4702 = vmatmul.mubr.bf16.gmra.mrb[120].mxu1 %v7237_v36  ;;  %5858 = vmatmul.mubr.bf16.gmra.mrb[120].mxu0 %v7245_v37  ;;  %v8348_v36 = vld [vmem:[#allocation5 + $0x3b8] sm:$0xff]   ;;  %v6823_v37 = vcombine.low %v110_v19, %v118_v20  ;;  %v8358_v19 = vld [vmem:[#allocation5 + $0x3e0] sm:$0xff]   ;;  %v206_v20 = vld [vmem:[#allocation2 + $0x510] sm:$0xff] }
 0x25a   :  { %4709 = vmatprep.mubr.bf16.mxu1 %v7254_v38  ;;  %5865 = vmatprep.mubr.bf16.mxu0 %v7262_v39  ;;  %v6831_v38 = vcombine.low %v114_v22, %v122_v23  ;;  %v6840_v39 = vcombine.high %v126_v31, %v134_v32  ;;  %v210_v22 = vld [vmem:[#allocation2 + $0x530] sm:$0xff] }
 0x25b   :  { %v218_v23 = vld [vmem:[#allocation2 + $0x570] sm:$0xff] }
 0x25c   :  { %v234_v31 = vld [vmem:[#allocation2 + $0x5f0] sm:$0xff] }
 0x261   :  { %4710 = vmatmul.mubr.bf16.gmra.mrb[124].mxu1 %v7253_v44  ;;  %5866 = vmatmul.mubr.bf16.gmra.mrb[124].mxu0 %v7261_v45  ;;  %v150_v44 = vld [vmem:[#allocation2 + $0x350] sm:$0xff]  ;;  %v8351_v45 = vld [vmem:[#allocation5 + $0x1c8] sm:$0xff]  }
 0x262   :  { %4750 = vmatprep.mubr.bf16.mxu1 %v6760_v46  ;;  %5906 = vmatprep.mubr.bf16.mxu0 %v6768_v47  ;;  %v146_v46 = vld [vmem:[#allocation2 + $0x330] sm:$0xff]  ;;  %v6856_v51 = vcombine.high %v142_v43, %v150_v44  ;;  %v6855_v59 = vcombine.low %v142_v43, %v150_v44 }
 0x263   :  { %v154_v47 = vld [vmem:[#allocation2 + $0x370] sm:$0xff] }
 0x264   :  { %v6864_v52 = vcombine.high %v146_v46, %v154_v47  ;;  %v6863_v60 = vcombine.low %v146_v46, %v154_v47  ;;  %v254_v46 = vld [vmem:[#allocation2 + $0x690] sm:$0xff] }
 0x265   :  { %v262_v47 = vld [vmem:[#allocation2 + $0x6d0] sm:$0xff] }
 0x269   :  { %4751 = vmatmul.mubr.bf16.vlgmr.msra.gmra.mrb[0].mxu1 %v6759_v50  ;;  %5907 = vmatmul.mubr.bf16.vlgmr.msra.gmra.mrb[0].mxu0 %v6767_v53  ;;  %v6847_v50 = vcombine.low %v130_v34, %v138_v35  ;;  %v8353_v53 = vld [vmem:[#allocation5 + $0x1d0] sm:$0xff]  }
 0x26a   :  { %5008 = vmatpush1.bf16.msra.mxu1 %v8333_v54  ;;  %6164 = vmatpush1.bf16.msra.mxu0 %v8334_v55  ;;  %v8354_v54 = vld [vmem:[#allocation5 + $0x3d0] sm:$0xff]  }
 0x26b   :  { %4758 = vmatprep.mubr.bf16.mxu1 %v6776_v56  ;;  %5914 = vmatprep.mubr.bf16.mxu0 %v6784_v57  ;;  %v158_v55 = vld [vmem:[#allocation2 + $0x390] sm:$0xff] }
 0x26c   :  { %5009 = vmatprep.subr.bf16.mxu1 %v8466_v0  ;;  %6165 = vmatprep.subr.bf16.mxu0 %v8466_v0  ;;  %v166_v56 = vld [vmem:[#allocation2 + $0x3d0] sm:$0xff] }
 0x26d   :  { %v162_v57 = vld [vmem:[#allocation2 + $0x3b0] sm:$0xff] }
 0x26e   :  { %5010 = vmatpush1.bf16.msra.mxu1 %v8335_v58  ;;  %6166 = vmatpush1.bf16.msra.mxu0 %v8336_v61  ;;  %v170_v58 = vld [vmem:[#allocation2 + $0x3f0] sm:$0xff]  ;;  %v6872_v61 = vcombine.high %v158_v55, %v166_v56 }
 0x26f   :  { %5011 = vmatprep.subr.bf16.mxu1 %v8466_v0  ;;  %6167 = vmatprep.subr.bf16.mxu0 %v8466_v0  ;;  %v6880_v62 = vcombine.high %v162_v57, %v170_v58  ;;  %v6879_v7 = vcombine.low %v162_v57, %v170_v58  ;;  %v278_v57 = vld [vmem:[#allocation2 + $0x750] sm:$0xff] }
 0x270   :  { %v274_v58 = vld [vmem:[#allocation2 + $0x730] sm:$0xff] }
 0x271   :  { %4759 = vmatmul.mubr.bf16.gmra.mrb[4].mxu1 %v6775_v1  ;;  %5915 = vmatmul.mubr.bf16.gmra.mrb[4].mxu0 %v6783_v2  ;;  %v8356_v1 = vld [vmem:[#allocation5 + $0x3d8] sm:$0xff]   ;;  %v174_v2 = vld [vmem:[#allocation2 + $0x410] sm:$0xff] }
 0x272   :  { %4766 = vmatprep.mubr.bf16.mxu1 %v6792_v3  ;;  %5922 = vmatprep.mubr.bf16.mxu0 %v6800_v4  ;;  %v182_v3 = vld [vmem:[#allocation2 + $0x450] sm:$0xff] }
 0x273   :  { %5012 = vmatpush1.bf16.msra.mxu1 %v8337_v5  ;;  %6168 = vmatpush1.bf16.msra.mxu0 %v8338_v6  ;;  %v178_v4 = vld [vmem:[#allocation2 + $0x430] sm:$0xff]  ;;  %v6871_v6 = vcombine.low %v158_v55, %v166_v56  ;;  %v6888_v8 = vcombine.high %v174_v2, %v182_v3 }
 0x274   :  { %5013 = vmatprep.subr.bf16.mxu1 %v8466_v0  ;;  %6169 = vmatprep.subr.bf16.mxu0 %v8466_v0  ;;  %v186_v5 = vld [vmem:[#allocation2 + $0x470] sm:$0xff] }
 0x275   :  { %v8362_v55 = vld [vmem:[#allocation5 + $0x3f0] sm:$0xff]  }
 0x276   :  { %v270_v56 = vld [vmem:[#allocation2 + $0x710] sm:$0xff] }
 0x277   :  { %5014 = vmatpush1.bf16.msra.mxu1 %v8339_v9  ;;  %6170 = vmatpush1.bf16.msra.mxu0 %v8340_v12  ;;  %v6896_v9 = vcombine.high %v178_v4, %v186_v5  ;;  %v194_v12 = vld [vmem:[#allocation2 + $0x4b0] sm:$0xff] }
 0x278   :  { %5015 = vmatprep.subr.bf16.mxu1 %v8466_v0  ;;  %6171 = vmatprep.subr.bf16.mxu0 %v8466_v0 }
 0x279   :  { %4767 = vmatmul.mubr.bf16.gmra.mrb[8].mxu1 %v6791_v13  ;;  %5923 = vmatmul.mubr.bf16.gmra.mrb[8].mxu0 %v6799_v14  ;;  %v202_v13 = vld [vmem:[#allocation2 + $0x4f0] sm:$0xff]  ;;  %v6887_v14 = vcombine.low %v174_v2, %v182_v3 }
 0x27a   :  { %4774 = vmatprep.mubr.bf16.mxu1 %v6808_v15  ;;  %5930 = vmatprep.mubr.bf16.mxu0 %v6816_v16  ;;  %v6895_v15 = vcombine.low %v178_v4, %v186_v5  ;;  %v6904_v16 = vcombine.high %v190_v10, %v198_v11  ;;  %v294_v2 = vld [vmem:[#allocation2 + $0x7d0] sm:$0xff]  ;;  %v6983_v5 = vcombine.low %v270_v56, %v278_v57 }
 0x27b   :  { %5016 = vmatpush1.bf16.msra.mxu1 %v8341_v17  ;;  %6172 = vmatpush1.bf16.msra.mxu0 %v8342_v18  ;;  %v6912_v17 = vcombine.high %v194_v12, %v202_v13  ;;  %v8357_v18 = vld [vmem:[#allocation5 + $0x1e0] sm:$0xff]   ;;  %v290_v3 = vld [vmem:[#allocation2 + $0x7b0] sm:$0xff] }
 0x27c   :  { %5017 = vmatprep.subr.bf16.mxu1 %v8466_v0  ;;  %6173 = vmatprep.subr.bf16.mxu0 %v8466_v0  ;;  %v298_v4 = vld [vmem:[#allocation2 + $0x7f0] sm:$0xff] }
 0x27f   :  { %5018 = vmatpush1.bf16.msra.mxu1 %v8343_v21  ;;  %6174 = vmatpush1.bf16.msra.mxu0 %v8344_v24  ;;  %v214_v21 = vld [vmem:[#allocation2 + $0x550] sm:$0xff]  ;;  %v6903_v24 = vcombine.low %v190_v10, %v198_v11 }
 0x280   :  { %5019 = vmatprep.subr.bf16.mxu1 %v8466_v0  ;;  %6175 = vmatprep.subr.bf16.mxu0 %v8466_v0  ;;  %v6919_v32 = vcombine.low %v206_v20, %v214_v21  ;;  %v302_v10 = vld [vmem:[#allocation2 + $0x810] sm:$0xff] }
 0x281   :  { %4775 = vmatmul.mubr.bf16.gmra.mrb[12].mxu1 %v6807_v25  ;;  %5931 = vmatmul.mubr.bf16.gmra.mrb[12].mxu0 %v6815_v26  ;;  %v6911_v25 = vcombine.low %v194_v12, %v202_v13  ;;  %v6920_v26 = vcombine.high %v206_v20, %v214_v21  ;;  %v310_v11 = vld [vmem:[#allocation2 + $0x850] sm:$0xff] }
 0x282   :  { %4782 = vmatprep.mubr.bf16.mxu1 %v6824_v27  ;;  %5938 = vmatprep.mubr.bf16.mxu0 %v6832_v28  ;;  %v6928_v27 = vcombine.high %v210_v22, %v218_v23  ;;  %v222_v28 = vld [vmem:[#allocation2 + $0x590] sm:$0xff] }
 0x283   :  { %5020 = vmatpush1.bf16.msra.mxu1 %v8345_v29  ;;  %6176 = vmatpush1.bf16.msra.mxu0 %v8346_v30  ;;  %v230_v29 = vld [vmem:[#allocation2 + $0x5d0] sm:$0xff] }
 0x284   :  { %5021 = vmatprep.subr.bf16.mxu1 %v8466_v0  ;;  %6177 = vmatprep.subr.bf16.mxu0 %v8466_v0  ;;  %v226_v30 = vld [vmem:[#allocation2 + $0x5b0] sm:$0xff]  ;;  %v6936_v34 = vcombine.high %v222_v28, %v230_v29 }
 0x285   :  { %v6944_v35 = vcombine.high %v226_v30, %v234_v31  ;;  %v6943_v43 = vcombine.low %v226_v30, %v234_v31  ;;  %v306_v12 = vld [vmem:[#allocation2 + $0x830] sm:$0xff] }
 0x286   :  { %v314_v13 = vld [vmem:[#allocation2 + $0x870] sm:$0xff] }
 0x287   :  { %5022 = vmatpush1.bf16.msra.mxu1 %v8347_v33  ;;  %6178 = vmatpush1.bf16.msra.mxu0 %v8348_v36  ;;  %v6927_v33 = vcombine.low %v210_v22, %v218_v23  ;;  %v8359_v36 = vld [vmem:[#allocation5 + $0x1e8] sm:$0xff]   ;;  %v322_v20 = vld [vmem:[#allocation2 + $0x8b0] sm:$0xff]  ;;  %v7015_v22 = vcombine.low %v302_v10, %v310_v11  ;;  %v7023_v23 = vcombine.low %v306_v12, %v314_v13 }
 0x288   :  { %5023 = vmatprep.subr.bf16.mxu1 %v8466_v0  ;;  %6179 = vmatprep.subr.bf16.mxu0 %v8466_v0  ;;  %v330_v21 = vld [vmem:[#allocation2 + $0x8f0] sm:$0xff] }
 0x289   :  { %4783 = vmatmul.mubr.bf16.gmra.mrb[16].mxu1 %v6823_v37  ;;  %5939 = vmatmul.mubr.bf16.gmra.mrb[16].mxu0 %v6831_v38  ;;  %v8360_v37 = vld [vmem:[#allocation5 + $0x3e8] sm:$0xff]   ;;  %v238_v38 = vld [vmem:[#allocation2 + $0x610] sm:$0xff]  ;;  %v7039_v31 = vcombine.low %v322_v20, %v330_v21 }
 0x28a   :  { %4790 = vmatprep.mubr.bf16.mxu1 %v6840_v39  ;;  %5946 = vmatprep.mubr.bf16.mxu0 %v6848_v40  ;;  %v246_v39 = vld [vmem:[#allocation2 + $0x650] sm:$0xff] }
 0x28b   :  { %5024 = vmatpush1.bf16.msra.mxu1 %v8349_v41  ;;  %6180 = vmatpush1.bf16.msra.mxu0 %v8350_v42  ;;  %v242_v40 = vld [vmem:[#allocation2 + $0x630] sm:$0xff]  ;;  %v6935_v42 = vcombine.low %v222_v28, %v230_v29  ;;  %v6952_v44 = vcombine.high %v238_v38, %v246_v39 }
 0x28c   :  { %5025 = vmatprep.subr.bf16.mxu1 %v8466_v0  ;;  %6181 = vmatprep.subr.bf16.mxu0 %v8466_v0  ;;  %v250_v41 = vld [vmem:[#allocation2 + $0x670] sm:$0xff] }
 0x28d   :  { %v338_v28 = vld [vmem:[#allocation2 + $0x930] sm:$0xff] }
 0x28e   :  { %v346_v29 = vld [vmem:[#allocation2 + $0x970] sm:$0xff] }
 0x28f   :  { %5026 = vmatpush1.bf16.msra.mxu1 %v8351_v45  ;;  %6182 = vmatpush1.bf16.msra.mxu0 %v8352_v48  ;;  %v6960_v45 = vcombine.high %v242_v40, %v250_v41  ;;  %v258_v48 = vld [vmem:[#allocation2 + $0x6b0] sm:$0xff] }
 0x290   :  { %5027 = vmatprep.subr.bf16.mxu1 %v8466_v0  ;;  %6183 = vmatprep.subr.bf16.mxu0 %v8466_v0 }
 0x291   :  { %4791 = vmatmul.mubr.bf16.gmra.mrb[20].mxu1 %v6839_v49  ;;  %5947 = vmatmul.mubr.bf16.gmra.mrb[20].mxu0 %v6847_v50  ;;  %v266_v49 = vld [vmem:[#allocation2 + $0x6f0] sm:$0xff]  ;;  %v6951_v50 = vcombine.low %v238_v38, %v246_v39  ;;  %v7055_v39 = vcombine.low %v338_v28, %v346_v29 }
 0x292   :  { %4798 = vmatprep.mubr.bf16.mxu1 %v6856_v51  ;;  %5954 = vmatprep.mubr.bf16.mxu0 %v6864_v52  ;;  %v6959_v51 = vcombine.low %v242_v40, %v250_v41  ;;  %v6968_v52 = vcombine.high %v254_v46, %v262_v47 }
 0x293   :  { %5028 = vmatpush1.bf16.msra.mxu1 %v8353_v53  ;;  %6184 = vmatpush1.bf16.msra.mxu0 %v8354_v54  ;;  %v6976_v53 = vcombine.high %v258_v48, %v266_v49  ;;  %v8361_v54 = vld [vmem:[#allocation5 + $0x1f0] sm:$0xff]  }
 0x294   :  { %5029 = vmatprep.subr.bf16.mxu1 %v8466_v0  ;;  %6185 = vmatprep.subr.bf16.mxu0 %v8466_v0 }
 0x297   :  { %5030 = vmatpush1.bf16.msra.mxu1 %v8355_v63  ;;  %6186 = vmatpush1.bf16.msra.mxu0 %v8356_v1  ;;  %v286_v1 = vld [vmem:[#allocation2 + $0x790] sm:$0xff] }
 0x298   :  { %5031 = vmatprep.subr.bf16.mxu1 %v8466_v0  ;;  %6187 = vmatprep.subr.bf16.mxu0 %v8466_v0 }
 0x299   :  { %4799 = vmatmul.mubr.bf16.gmra.mrb[24].mxu1 %v6855_v59  ;;  %5955 = vmatmul.mubr.bf16.gmra.mrb[24].mxu0 %v6863_v60  ;;  %v282_v59 = vld [vmem:[#allocation2 + $0x770] sm:$0xff]  ;;  %v6967_v60 = vcombine.low %v254_v46, %v262_v47 }
 0x29a   :  { %4806 = vmatprep.mubr.bf16.mxu1 %v6872_v61  ;;  %5962 = vmatprep.mubr.bf16.mxu0 %v6880_v62  ;;  %v6975_v61 = vcombine.low %v258_v48, %v266_v49  ;;  %v6984_v62 = vcombine.high %v270_v56, %v278_v57  ;;  %v6992_v63 = vcombine.high %v274_v58, %v282_v59 }
 0x29b   :  { %5032 = vmatpush1.bf16.msra.mxu1 %v8357_v18  ;;  %6188 = vmatpush1.bf16.msra.mxu0 %v8358_v19  ;;  %v318_v18 = vld [vmem:[#allocation2 + $0x890] sm:$0xff] }
 0x29c   :  { %5033 = vmatprep.subr.bf16.mxu1 %v8466_v0  ;;  %6189 = vmatprep.subr.bf16.mxu0 %v8466_v0  ;;  %v326_v19 = vld [vmem:[#allocation2 + $0x8d0] sm:$0xff] }
 0x29d   :  { %v7031_v30 = vcombine.low %v318_v18, %v326_v19 }
 0x29f   :  { %5034 = vmatpush1.bf16.msra.mxu1 %v8359_v36  ;;  %6190 = vmatpush1.bf16.msra.mxu0 %v8360_v37  ;;  %v354_v36 = vld [vmem:[#allocation2 + $0x9b0] sm:$0xff] }
 0x2a0   :  { %5035 = vmatprep.subr.bf16.mxu1 %v8466_v0  ;;  %6191 = vmatprep.subr.bf16.mxu0 %v8466_v0  ;;  %v362_v37 = vld [vmem:[#allocation2 + $0x9f0] sm:$0xff] }
 0x2a1   :  { %4807 = vmatmul.mubr.bf16.gmra.mrb[28].mxu1 %v6871_v6  ;;  %5963 = vmatmul.mubr.bf16.gmra.mrb[28].mxu0 %v6879_v7  ;;  %v6991_v6 = vcombine.low %v274_v58, %v282_v59  ;;  %v7000_v7 = vcombine.high %v286_v1, %v294_v2  ;;  %v7072_v41 = vcombine.high %v354_v36, %v362_v37  ;;  %v398_v58 = vld [vmem:[#allocation2 + $0xb10] sm:$0xff] }
 0x2a2   :  { %4814 = vmatprep.mubr.bf16.mxu1 %v6888_v8  ;;  %5970 = vmatprep.mubr.bf16.mxu0 %v6896_v9  ;;  %v7008_v8 = vcombine.high %v290_v3, %v298_v4  ;;  %v8363_v9 = vld [vmem:[#allocation5 + $0x1f8] sm:$0xff]   ;;  %v7071_v47 = vcombine.low %v354_v36, %v362_v37  ;;  %v406_v59 = vld [vmem:[#allocation2 + $0xb50] sm:$0xff] }
 0x2a3   :  { %5036 = vmatpush1.bf16.msra.mxu1 %v8361_v54  ;;  %6192 = vmatpush1.bf16.msra.mxu0 %v8362_v55  ;;  %v482_v36 = vld [vmem:[#allocation2 + $0xdb0] sm:$0xff] }
 0x2a4   :  { %5037 = vmatprep.subr.bf16.mxu1 %v8466_v0  ;;  %6193 = vmatprep.subr.bf16.mxu0 %v8466_v0  ;;  %v8364_v0 = vld [vmem:[#allocation5 + $0x3f8] sm:$0xff]   ;;  %v490_v37 = vld [vmem:[#allocation2 + $0xdf0] sm:$0xff] }
 0x2a7   :  { %5038 = vmatpush1.bf16.msra.mxu1 %v8363_v9  ;;  %6194 = vmatpush1.bf16.msra.mxu0 %v8364_v0 }
 0x2a9   :  { %4815 = vmatmul.mubr.bf16.gmra.mrb[32].mxu1 %v6887_v14  ;;  %5971 = vmatmul.mubr.bf16.gmra.mrb[32].mxu0 %v6895_v15  ;;  %v6999_v14 = vcombine.low %v286_v1, %v294_v2  ;;  %v7007_v15 = vcombine.low %v290_v3, %v298_v4  ;;  %v7112_v1 = vcombine.high %v398_v58, %v406_v59  ;;  %v414_v3 = vld [vmem:[#allocation2 + $0xb90] sm:$0xff] }
 0x2aa   :  { %4822 = vmatprep.mubr.bf16.mxu1 %v6904_v16  ;;  %5978 = vmatprep.mubr.bf16.mxu0 %v6912_v17  ;;  %v7016_v16 = vcombine.high %v302_v10, %v310_v11  ;;  %v7024_v17 = vcombine.high %v306_v12, %v314_v13  ;;  %v422_v4 = vld [vmem:[#allocation2 + $0xbd0] sm:$0xff] }
 0x2ab   :  { %v7128_v9 = vcombine.high %v414_v3, %v422_v4  ;;  %v430_v10 = vld [vmem:[#allocation2 + $0xc10] sm:$0xff] }
 0x2ac   :  { %v438_v11 = vld [vmem:[#allocation2 + $0xc50] sm:$0xff] }
 0x2ad   :  { %v434_v12 = vld [vmem:[#allocation2 + $0xc30] sm:$0xff] }
 0x2ae   :  { %v442_v13 = vld [vmem:[#allocation2 + $0xc70] sm:$0xff] }
 0x2b1   :  { %4823 = vmatmul.mubr.bf16.gmra.mrb[36].mxu1 %v6903_v24  ;;  %5979 = vmatmul.mubr.bf16.gmra.mrb[36].mxu0 %v6911_v25  ;;  %v7032_v24 = vcombine.high %v318_v18, %v326_v19  ;;  %v7040_v25 = vcombine.high %v322_v20, %v330_v21  ;;  %v446_v18 = vld [vmem:[#allocation2 + $0xc90] sm:$0xff] }
 0x2b2   :  { %4830 = vmatprep.mubr.bf16.mxu1 %v6920_v26  ;;  %5986 = vmatprep.mubr.bf16.mxu0 %v6928_v27  ;;  %v334_v26 = vld [vmem:[#allocation2 + $0x910] sm:$0xff] }
 0x2b3   :  { %v342_v27 = vld [vmem:[#allocation2 + $0x950] sm:$0xff] }
 0x2b4   :  { %v7047_v38 = vcombine.low %v334_v26, %v342_v27  ;;  %v454_v19 = vld [vmem:[#allocation2 + $0xcd0] sm:$0xff] }
 0x2b5   :  { %v450_v20 = vld [vmem:[#allocation2 + $0xcb0] sm:$0xff] }
 0x2b6   :  { %v458_v21 = vld [vmem:[#allocation2 + $0xcf0] sm:$0xff] }
 0x2b9   :  { %4831 = vmatmul.mubr.bf16.gmra.mrb[40].mxu1 %v6919_v32  ;;  %5987 = vmatmul.mubr.bf16.gmra.mrb[40].mxu0 %v6927_v33  ;;  %v7048_v32 = vcombine.high %v334_v26, %v342_v27  ;;  %v7056_v33 = vcombine.high %v338_v28, %v346_v29  ;;  %v462_v26 = vld [vmem:[#allocation2 + $0xd10] sm:$0xff] }
 0x2ba   :  { %4838 = vmatprep.mubr.bf16.mxu1 %v6936_v34  ;;  %5994 = vmatprep.mubr.bf16.mxu0 %v6944_v35  ;;  %v350_v34 = vld [vmem:[#allocation2 + $0x990] sm:$0xff] }
 0x2bb   :  { %v358_v35 = vld [vmem:[#allocation2 + $0x9d0] sm:$0xff] }
 0x2bc   :  { %v7064_v40 = vcombine.high %v350_v34, %v358_v35  ;;  %v7063_v46 = vcombine.low %v350_v34, %v358_v35  ;;  %v470_v27 = vld [vmem:[#allocation2 + $0xd50] sm:$0xff] }
 0x2bd   :  { %v466_v28 = vld [vmem:[#allocation2 + $0xd30] sm:$0xff] }
 0x2be   :  { %v474_v29 = vld [vmem:[#allocation2 + $0xd70] sm:$0xff] }
 0x2bf   :  { %v478_v34 = vld [vmem:[#allocation2 + $0xd90] sm:$0xff] }
 0x2c0   :  { %v486_v35 = vld [vmem:[#allocation2 + $0xdd0] sm:$0xff] }
 0x2c1   :  { %4839 = vmatmul.mubr.bf16.gmra.mrb[44].mxu1 %v6935_v42  ;;  %5995 = vmatmul.mubr.bf16.gmra.mrb[44].mxu0 %v6943_v43  ;;  %v366_v42 = vld [vmem:[#allocation2 + $0xa10] sm:$0xff] }
 0x2c2   :  { %4846 = vmatprep.mubr.bf16.mxu1 %v6952_v44  ;;  %6002 = vmatprep.mubr.bf16.mxu0 %v6960_v45  ;;  %v374_v43 = vld [vmem:[#allocation2 + $0xa50] sm:$0xff] }
 0x2c3   :  { %v370_v44 = vld [vmem:[#allocation2 + $0xa30] sm:$0xff]  ;;  %v7080_v48 = vcombine.high %v366_v42, %v374_v43  ;;  %v7079_v54 = vcombine.low %v366_v42, %v374_v43 }
 0x2c4   :  { %v378_v45 = vld [vmem:[#allocation2 + $0xa70] sm:$0xff] }
 0x2c5   :  { %v7088_v49 = vcombine.high %v370_v44, %v378_v45  ;;  %v7087_v55 = vcombine.low %v370_v44, %v378_v45  ;;  %v494_v42 = vld [vmem:[#allocation2 + $0xe10] sm:$0xff] }
 0x2c6   :  { %v502_v43 = vld [vmem:[#allocation2 + $0xe50] sm:$0xff] }
 0x2c7   :  { %v498_v44 = vld [vmem:[#allocation2 + $0xe30] sm:$0xff] }
 0x2c8   :  { %v506_v45 = vld [vmem:[#allocation2 + $0xe70] sm:$0xff] }
 0x2c9   :  { %4847 = vmatmul.mubr.bf16.gmra.mrb[48].mxu1 %v6951_v50  ;;  %6003 = vmatmul.mubr.bf16.gmra.mrb[48].mxu0 %v6959_v51  ;;  %v382_v50 = vld [vmem:[#allocation2 + $0xa90] sm:$0xff] }
 0x2ca   :  { %4854 = vmatprep.mubr.bf16.mxu1 %v6968_v52  ;;  %6010 = vmatprep.mubr.bf16.mxu0 %v6976_v53  ;;  %v390_v51 = vld [vmem:[#allocation2 + $0xad0] sm:$0xff] }
 0x2cb   :  { %v386_v52 = vld [vmem:[#allocation2 + $0xab0] sm:$0xff]  ;;  %v7096_v56 = vcombine.high %v382_v50, %v390_v51 }
 0x2cc   :  { %v394_v53 = vld [vmem:[#allocation2 + $0xaf0] sm:$0xff] }
 0x2cd   :  { %v7104_v57 = vcombine.high %v386_v52, %v394_v53 }
 0x2d1   :  { %4855 = vmatmul.mubr.bf16.gmra.mrb[52].mxu1 %v6967_v60  ;;  %6011 = vmatmul.mubr.bf16.gmra.mrb[52].mxu0 %v6975_v61  ;;  %v402_v60 = vld [vmem:[#allocation2 + $0xb30] sm:$0xff] }
 0x2d2   :  { %4862 = vmatprep.mubr.bf16.mxu1 %v6984_v62  ;;  %6018 = vmatprep.mubr.bf16.mxu0 %v6992_v63  ;;  %v410_v61 = vld [vmem:[#allocation2 + $0xb70] sm:$0xff]  ;;  %v7095_v62 = vcombine.low %v382_v50, %v390_v51  ;;  %v7103_v63 = vcombine.low %v386_v52, %v394_v53 }
 0x2d3   :  { %v7120_v2 = vcombine.high %v402_v60, %v410_v61  ;;  %v510_v50 = vld [vmem:[#allocation2 + $0xe90] sm:$0xff] }
 0x2d4   :  { %v518_v51 = vld [vmem:[#allocation2 + $0xed0] sm:$0xff] }
 0x2d5   :  { %v514_v52 = vld [vmem:[#allocation2 + $0xeb0] sm:$0xff] }
 0x2d6   :  { %v522_v53 = vld [vmem:[#allocation2 + $0xef0] sm:$0xff] }
 0x2d9   :  { %4863 = vmatmul.mubr.bf16.gmra.mrb[56].mxu1 %v6983_v5  ;;  %6019 = vmatmul.mubr.bf16.gmra.mrb[56].mxu0 %v6991_v6  ;;  %v418_v5 = vld [vmem:[#allocation2 + $0xbb0] sm:$0xff] }
 0x2da   :  { %4870 = vmatprep.mubr.bf16.mxu1 %v7000_v7  ;;  %6026 = vmatprep.mubr.bf16.mxu0 %v7008_v8  ;;  %v426_v6 = vld [vmem:[#allocation2 + $0xbf0] sm:$0xff]  ;;  %v7111_v7 = vcombine.low %v398_v58, %v406_v59  ;;  %v7119_v8 = vcombine.low %v402_v60, %v410_v61 }
 0x2db   :  { %v7136_v0 = vcombine.high %v418_v5, %v426_v6  ;;  %v526_v58 = vld [vmem:[#allocation2 + $0xf10] sm:$0xff] }
 0x2dc   :  { %v534_v59 = vld [vmem:[#allocation2 + $0xf50] sm:$0xff] }
 0x2dd   :  { %v530_v60 = vld [vmem:[#allocation2 + $0xf30] sm:$0xff] }
 0x2de   :  { %v538_v61 = vld [vmem:[#allocation2 + $0xf70] sm:$0xff] }
 0x2e1   :  { %4871 = vmatmul.mubr.bf16.gmra.mrb[60].mxu1 %v6999_v14  ;;  %6027 = vmatmul.mubr.bf16.gmra.mrb[60].mxu0 %v7007_v15  ;;  %v7127_v14 = vcombine.low %v414_v3, %v422_v4  ;;  %v7135_v15 = vcombine.low %v418_v5, %v426_v6  ;;  %v542_v3 = vld [vmem:[#allocation2 + $0xf90] sm:$0xff] }
 0x2e2   :  { %4878 = vmatprep.mubr.bf16.mxu1 %v7016_v16  ;;  %6034 = vmatprep.mubr.bf16.mxu0 %v7024_v17  ;;  %v7144_v16 = vcombine.high %v430_v10, %v438_v11  ;;  %v7152_v17 = vcombine.high %v434_v12, %v442_v13  ;;  %v550_v4 = vld [vmem:[#allocation2 + $0xfd0] sm:$0xff] }
 0x2e3   :  { %v546_v5 = vld [vmem:[#allocation2 + $0xfb0] sm:$0xff] }
 0x2e4   :  { %v554_v6 = vld [vmem:[#allocation2 + $0xff0] sm:$0xff] }
 0x2e9   :  { %4879 = vmatmul.mubr.bf16.gmra.mrb[64].mxu1 %v7015_v22  ;;  %6035 = vmatmul.mubr.bf16.gmra.mrb[64].mxu0 %v7023_v23  ;;  %v7143_v22 = vcombine.low %v430_v10, %v438_v11  ;;  %v7151_v23 = vcombine.low %v434_v12, %v442_v13  ;;  %v47_v10 = vld [vmem:[#allocation2 + $0x18] sm:$0xff] }
 0x2ea   :  { %4886 = vmatprep.mubr.bf16.mxu1 %v7032_v24  ;;  %6042 = vmatprep.mubr.bf16.mxu0 %v7040_v25  ;;  %v7160_v24 = vcombine.high %v446_v18, %v454_v19  ;;  %v7168_v25 = vcombine.high %v450_v20, %v458_v21  ;;  %v55_v11 = vld [vmem:[#allocation2 + $0x58] sm:$0xff] }
 0x2eb   :  { %v51_v12 = vld [vmem:[#allocation2 + $0x38] sm:$0xff] }
 0x2ec   :  { %v59_v13 = vld [vmem:[#allocation2 + $0x78] sm:$0xff] }
 0x2f1   :  { %4887 = vmatmul.mubr.bf16.gmra.mrb[68].mxu1 %v7031_v30  ;;  %6043 = vmatmul.mubr.bf16.gmra.mrb[68].mxu0 %v7039_v31  ;;  %v7159_v30 = vcombine.low %v446_v18, %v454_v19  ;;  %v7167_v31 = vcombine.low %v450_v20, %v458_v21  ;;  %v63_v18 = vld [vmem:[#allocation2 + $0x98] sm:$0xff] }
 0x2f2   :  { %4894 = vmatprep.mubr.bf16.mxu1 %v7048_v32  ;;  %6050 = vmatprep.mubr.bf16.mxu0 %v7056_v33  ;;  %v7176_v32 = vcombine.high %v462_v26, %v470_v27  ;;  %v7184_v33 = vcombine.high %v466_v28, %v474_v29  ;;  %v71_v19 = vld [vmem:[#allocation2 + $0xd8] sm:$0xff] }
 0x2f3   :  { %v67_v20 = vld [vmem:[#allocation2 + $0xb8] sm:$0xff] }
 0x2f4   :  { %v75_v21 = vld [vmem:[#allocation2 + $0xf8] sm:$0xff] }
 0x2f9   :  { %4895 = vmatmul.mubr.bf16.gmra.mrb[72].mxu1 %v7047_v38  ;;  %6051 = vmatmul.mubr.bf16.gmra.mrb[72].mxu0 %v7055_v39  ;;  %v7175_v38 = vcombine.low %v462_v26, %v470_v27  ;;  %v7183_v39 = vcombine.low %v466_v28, %v474_v29  ;;  %v79_v26 = vld [vmem:[#allocation2 + $0x118] sm:$0xff] }
 0x2fa   :  { %4902 = vmatprep.mubr.bf16.mxu1 %v7064_v40  ;;  %6058 = vmatprep.mubr.bf16.mxu0 %v7072_v41  ;;  %v7192_v40 = vcombine.high %v478_v34, %v486_v35  ;;  %v7200_v41 = vcombine.high %v482_v36, %v490_v37  ;;  %v87_v27 = vld [vmem:[#allocation2 + $0x158] sm:$0xff] }
 0x2fb   :  { %v83_v28 = vld [vmem:[#allocation2 + $0x138] sm:$0xff] }
 0x2fc   :  { %v91_v29 = vld [vmem:[#allocation2 + $0x178] sm:$0xff] }
 0x301   :  { %4903 = vmatmul.mubr.bf16.gmra.mrb[76].mxu1 %v7063_v46  ;;  %6059 = vmatmul.mubr.bf16.gmra.mrb[76].mxu0 %v7071_v47  ;;  %v7191_v46 = vcombine.low %v478_v34, %v486_v35  ;;  %v7199_v47 = vcombine.low %v482_v36, %v490_v37  ;;  %v95_v34 = vld [vmem:[#allocation2 + $0x198] sm:$0xff] }
 0x302   :  { %4910 = vmatprep.mubr.bf16.mxu1 %v7080_v48  ;;  %6066 = vmatprep.mubr.bf16.mxu0 %v7088_v49  ;;  %v7208_v48 = vcombine.high %v494_v42, %v502_v43  ;;  %v7216_v49 = vcombine.high %v498_v44, %v506_v45  ;;  %v103_v35 = vld [vmem:[#allocation2 + $0x1d8] sm:$0xff] }
 0x303   :  { %v99_v36 = vld [vmem:[#allocation2 + $0x1b8] sm:$0xff] }
 0x304   :  { %v107_v37 = vld [vmem:[#allocation2 + $0x1f8] sm:$0xff] }
 0x309   :  { %4911 = vmatmul.mubr.bf16.gmra.mrb[80].mxu1 %v7079_v54  ;;  %6067 = vmatmul.mubr.bf16.gmra.mrb[80].mxu0 %v7087_v55  ;;  %v7207_v54 = vcombine.low %v494_v42, %v502_v43  ;;  %v7215_v55 = vcombine.low %v498_v44, %v506_v45  ;;  %v111_v42 = vld [vmem:[#allocation2 + $0x218] sm:$0xff] }
 0x30a   :  { %4918 = vmatprep.mubr.bf16.mxu1 %v7096_v56  ;;  %6074 = vmatprep.mubr.bf16.mxu0 %v7104_v57  ;;  %v7224_v56 = vcombine.high %v510_v50, %v518_v51  ;;  %v7232_v57 = vcombine.high %v514_v52, %v522_v53  ;;  %v119_v43 = vld [vmem:[#allocation2 + $0x258] sm:$0xff] }
 0x30b   :  { %v115_v44 = vld [vmem:[#allocation2 + $0x238] sm:$0xff] }
 0x30c   :  { %v123_v45 = vld [vmem:[#allocation2 + $0x278] sm:$0xff] }
 0x311   :  { %4919 = vmatmul.mubr.bf16.gmra.mrb[84].mxu1 %v7095_v62  ;;  %6075 = vmatmul.mubr.bf16.gmra.mrb[84].mxu0 %v7103_v63  ;;  %v7223_v62 = vcombine.low %v510_v50, %v518_v51  ;;  %v7231_v63 = vcombine.low %v514_v52, %v522_v53  ;;  %v127_v50 = vld [vmem:[#allocation2 + $0x298] sm:$0xff] }
 0x312   :  { %4926 = vmatprep.mubr.bf16.mxu1 %v7112_v1  ;;  %6082 = vmatprep.mubr.bf16.mxu0 %v7120_v2  ;;  %v7240_v1 = vcombine.high %v526_v58, %v534_v59  ;;  %v7248_v2 = vcombine.high %v530_v60, %v538_v61  ;;  %v135_v51 = vld [vmem:[#allocation2 + $0x2d8] sm:$0xff] }
 0x313   :  { %v131_v52 = vld [vmem:[#allocation2 + $0x2b8] sm:$0xff] }
 0x314   :  { %v139_v53 = vld [vmem:[#allocation2 + $0x2f8] sm:$0xff] }
 0x319   :  { %4927 = vmatmul.mubr.bf16.gmra.mrb[88].mxu1 %v7111_v7  ;;  %6083 = vmatmul.mubr.bf16.gmra.mrb[88].mxu0 %v7119_v8  ;;  %v7239_v7 = vcombine.low %v526_v58, %v534_v59  ;;  %v7247_v8 = vcombine.low %v530_v60, %v538_v61  ;;  %v143_v58 = vld [vmem:[#allocation2 + $0x318] sm:$0xff] }
 0x31a   :  { %4934 = vmatprep.mubr.bf16.mxu1 %v7128_v9  ;;  %6090 = vmatprep.mubr.bf16.mxu0 %v7136_v0  ;;  %v7256_v9 = vcombine.high %v542_v3, %v550_v4  ;;  %v7264_v0 = vcombine.high %v546_v5, %v554_v6  ;;  %v151_v59 = vld [vmem:[#allocation2 + $0x358] sm:$0xff] }
 0x31b   :  { %v147_v60 = vld [vmem:[#allocation2 + $0x338] sm:$0xff] }
 0x31c   :  { %v155_v61 = vld [vmem:[#allocation2 + $0x378] sm:$0xff] }
 0x321   :  { %4935 = vmatmul.mubr.bf16.gmra.mrb[92].mxu1 %v7127_v14  ;;  %6091 = vmatmul.mubr.bf16.gmra.mrb[92].mxu0 %v7135_v15  ;;  %v7255_v14 = vcombine.low %v542_v3, %v550_v4  ;;  %v7263_v15 = vcombine.low %v546_v5, %v554_v6  ;;  %v159_v3 = vld [vmem:[#allocation2 + $0x398] sm:$0xff] }
 0x322   :  { %4942 = vmatprep.mubr.bf16.mxu1 %v7144_v16  ;;  %6098 = vmatprep.mubr.bf16.mxu0 %v7152_v17  ;;  %v6762_v16 = vcombine.high %v47_v10, %v55_v11  ;;  %v6770_v17 = vcombine.high %v51_v12, %v59_v13  ;;  %v167_v4 = vld [vmem:[#allocation2 + $0x3d8] sm:$0xff] }
 0x323   :  { %v163_v5 = vld [vmem:[#allocation2 + $0x3b8] sm:$0xff] }
 0x324   :  { %v171_v6 = vld [vmem:[#allocation2 + $0x3f8] sm:$0xff] }
 0x329   :  { %4943 = vmatmul.mubr.bf16.gmra.mrb[96].mxu1 %v7143_v22  ;;  %6099 = vmatmul.mubr.bf16.gmra.mrb[96].mxu0 %v7151_v23  ;;  %v6761_v22 = vcombine.low %v47_v10, %v55_v11  ;;  %v6769_v23 = vcombine.low %v51_v12, %v59_v13  ;;  %v175_v10 = vld [vmem:[#allocation2 + $0x418] sm:$0xff] }
 0x32a   :  { %4950 = vmatprep.mubr.bf16.mxu1 %v7160_v24  ;;  %6106 = vmatprep.mubr.bf16.mxu0 %v7168_v25  ;;  %v6778_v24 = vcombine.high %v63_v18, %v71_v19  ;;  %v6786_v25 = vcombine.high %v67_v20, %v75_v21  ;;  %v183_v11 = vld [vmem:[#allocation2 + $0x458] sm:$0xff] }
 0x32b   :  { %v179_v12 = vld [vmem:[#allocation2 + $0x438] sm:$0xff] }
 0x32c   :  { %v187_v13 = vld [vmem:[#allocation2 + $0x478] sm:$0xff] }
 0x331   :  { %4951 = vmatmul.mubr.bf16.gmra.mrb[100].mxu1 %v7159_v30  ;;  %6107 = vmatmul.mubr.bf16.gmra.mrb[100].mxu0 %v7167_v31  ;;  %v6777_v30 = vcombine.low %v63_v18, %v71_v19  ;;  %v6785_v31 = vcombine.low %v67_v20, %v75_v21  ;;  %v191_v18 = vld [vmem:[#allocation2 + $0x498] sm:$0xff] }
 0x332   :  { %4958 = vmatprep.mubr.bf16.mxu1 %v7176_v32  ;;  %6114 = vmatprep.mubr.bf16.mxu0 %v7184_v33  ;;  %v6794_v32 = vcombine.high %v79_v26, %v87_v27  ;;  %v6802_v33 = vcombine.high %v83_v28, %v91_v29  ;;  %v199_v19 = vld [vmem:[#allocation2 + $0x4d8] sm:$0xff] }
 0x333   :  { %v195_v20 = vld [vmem:[#allocation2 + $0x4b8] sm:$0xff] }
 0x334   :  { %v203_v21 = vld [vmem:[#allocation2 + $0x4f8] sm:$0xff] }
 0x339   :  { %4959 = vmatmul.mubr.bf16.gmra.mrb[104].mxu1 %v7175_v38  ;;  %6115 = vmatmul.mubr.bf16.gmra.mrb[104].mxu0 %v7183_v39  ;;  %v6793_v38 = vcombine.low %v79_v26, %v87_v27  ;;  %v6801_v39 = vcombine.low %v83_v28, %v91_v29  ;;  %v207_v26 = vld [vmem:[#allocation2 + $0x518] sm:$0xff] }
 0x33a   :  { %4966 = vmatprep.mubr.bf16.mxu1 %v7192_v40  ;;  %6122 = vmatprep.mubr.bf16.mxu0 %v7200_v41  ;;  %v6810_v40 = vcombine.high %v95_v34, %v103_v35  ;;  %v6818_v41 = vcombine.high %v99_v36, %v107_v37  ;;  %v215_v27 = vld [vmem:[#allocation2 + $0x558] sm:$0xff] }
 0x33b   :  { %v211_v28 = vld [vmem:[#allocation2 + $0x538] sm:$0xff] }
 0x33c   :  { %v219_v29 = vld [vmem:[#allocation2 + $0x578] sm:$0xff] }
 0x341   :  { %4967 = vmatmul.mubr.bf16.gmra.mrb[108].mxu1 %v7191_v46  ;;  %6123 = vmatmul.mubr.bf16.gmra.mrb[108].mxu0 %v7199_v47  ;;  %v6809_v46 = vcombine.low %v95_v34, %v103_v35  ;;  %v6817_v47 = vcombine.low %v99_v36, %v107_v37  ;;  %v223_v34 = vld [vmem:[#allocation2 + $0x598] sm:$0xff] }
 0x342   :  { %4974 = vmatprep.mubr.bf16.mxu1 %v7208_v48  ;;  %6130 = vmatprep.mubr.bf16.mxu0 %v7216_v49  ;;  %v6826_v48 = vcombine.high %v111_v42, %v119_v43  ;;  %v6834_v49 = vcombine.high %v115_v44, %v123_v45  ;;  %v231_v35 = vld [vmem:[#allocation2 + $0x5d8] sm:$0xff] }
 0x343   :  { %v227_v36 = vld [vmem:[#allocation2 + $0x5b8] sm:$0xff] }
 0x344   :  { %v235_v37 = vld [vmem:[#allocation2 + $0x5f8] sm:$0xff] }
 0x349   :  { %4975 = vmatmul.mubr.bf16.gmra.mrb[112].mxu1 %v7207_v54  ;;  %6131 = vmatmul.mubr.bf16.gmra.mrb[112].mxu0 %v7215_v55  ;;  %v6825_v54 = vcombine.low %v111_v42, %v119_v43  ;;  %v6833_v55 = vcombine.low %v115_v44, %v123_v45  ;;  %v239_v42 = vld [vmem:[#allocation2 + $0x618] sm:$0xff] }
 0x34a   :  { %4982 = vmatprep.mubr.bf16.mxu1 %v7224_v56  ;;  %6138 = vmatprep.mubr.bf16.mxu0 %v7232_v57  ;;  %v6842_v56 = vcombine.high %v127_v50, %v135_v51  ;;  %v6850_v57 = vcombine.high %v131_v52, %v139_v53  ;;  %v247_v43 = vld [vmem:[#allocation2 + $0x658] sm:$0xff] }
 0x34b   :  { %v243_v44 = vld [vmem:[#allocation2 + $0x638] sm:$0xff] }
 0x34c   :  { %v251_v45 = vld [vmem:[#allocation2 + $0x678] sm:$0xff] }
 0x351   :  { %4983 = vmatmul.mubr.bf16.gmra.mrb[116].mxu1 %v7223_v62  ;;  %6139 = vmatmul.mubr.bf16.gmra.mrb[116].mxu0 %v7231_v63  ;;  %v6841_v62 = vcombine.low %v127_v50, %v135_v51  ;;  %v6849_v63 = vcombine.low %v131_v52, %v139_v53  ;;  %v255_v50 = vld [vmem:[#allocation2 + $0x698] sm:$0xff] }
 0x352   :  { %4990 = vmatprep.mubr.bf16.mxu1 %v7240_v1  ;;  %6146 = vmatprep.mubr.bf16.mxu0 %v7248_v2  ;;  %v6858_v1 = vcombine.high %v143_v58, %v151_v59  ;;  %v6866_v2 = vcombine.high %v147_v60, %v155_v61  ;;  %v263_v51 = vld [vmem:[#allocation2 + $0x6d8] sm:$0xff] }
 0x353   :  { %v259_v52 = vld [vmem:[#allocation2 + $0x6b8] sm:$0xff] }
 0x354   :  { %v267_v53 = vld [vmem:[#allocation2 + $0x6f8] sm:$0xff] }
 0x359   :  { %4991 = vmatmul.mubr.bf16.gmra.mrb[120].mxu1 %v7239_v7  ;;  %6147 = vmatmul.mubr.bf16.gmra.mrb[120].mxu0 %v7247_v8  ;;  %v6857_v7 = vcombine.low %v143_v58, %v151_v59  ;;  %v6865_v8 = vcombine.low %v147_v60, %v155_v61  ;;  %v271_v58 = vld [vmem:[#allocation2 + $0x718] sm:$0xff] }
 0x35a   :  { %4998 = vmatprep.mubr.bf16.mxu1 %v7256_v9  ;;  %6154 = vmatprep.mubr.bf16.mxu0 %v7264_v0  ;;  %v6874_v9 = vcombine.high %v159_v3, %v167_v4  ;;  %v6882_v0 = vcombine.high %v163_v5, %v171_v6  ;;  %v279_v59 = vld [vmem:[#allocation2 + $0x758] sm:$0xff] }
 0x35b   :  { %v275_v60 = vld [vmem:[#allocation2 + $0x738] sm:$0xff] }
 0x35c   :  { %v283_v61 = vld [vmem:[#allocation2 + $0x778] sm:$0xff] }
 0x361   :  { %4999 = vmatmul.mubr.bf16.gmra.mrb[124].mxu1 %v7255_v14  ;;  %6155 = vmatmul.mubr.bf16.gmra.mrb[124].mxu0 %v7263_v15  ;;  %v6873_v14 = vcombine.low %v159_v3, %v167_v4  ;;  %v6881_v15 = vcombine.low %v163_v5, %v171_v6  ;;  %v287_v3 = vld [vmem:[#allocation2 + $0x798] sm:$0xff] }
 0x362   :  { %5039 = vmatprep.mubr.bf16.mxu1 %v6762_v16  ;;  %6195 = vmatprep.mubr.bf16.mxu0 %v6770_v17  ;;  %v6890_v16 = vcombine.high %v175_v10, %v183_v11  ;;  %v6898_v17 = vcombine.high %v179_v12, %v187_v13  ;;  %v295_v4 = vld [vmem:[#allocation2 + $0x7d8] sm:$0xff] }
 0x363   :  { %v291_v5 = vld [vmem:[#allocation2 + $0x7b8] sm:$0xff] }
 0x364   :  { %v299_v6 = vld [vmem:[#allocation2 + $0x7f8] sm:$0xff] }
 0x369   :  { %5040 = vmatmul.mubr.bf16.vlgmr.msra.gmra.mrb[0].mxu1 %v6761_v22  ;;  %6196 = vmatmul.mubr.bf16.vlgmr.msra.gmra.mrb[0].mxu0 %v6769_v23  ;;  %v6889_v22 = vcombine.low %v175_v10, %v183_v11  ;;  %v6897_v23 = vcombine.low %v179_v12, %v187_v13  ;;  %v303_v10 = vld [vmem:[#allocation2 + $0x818] sm:$0xff] }
 0x36a   :  { %5047 = vmatprep.mubr.bf16.mxu1 %v6778_v24  ;;  %6203 = vmatprep.mubr.bf16.mxu0 %v6786_v25  ;;  %v6906_v24 = vcombine.high %v191_v18, %v199_v19  ;;  %v6914_v25 = vcombine.high %v195_v20, %v203_v21  ;;  %v311_v11 = vld [vmem:[#allocation2 + $0x858] sm:$0xff] }
 0x36b   :  { %v307_v12 = vld [vmem:[#allocation2 + $0x838] sm:$0xff] }
 0x36c   :  { %v315_v13 = vld [vmem:[#allocation2 + $0x878] sm:$0xff] }
 0x371   :  { %5048 = vmatmul.mubr.bf16.gmra.mrb[4].mxu1 %v6777_v30  ;;  %6204 = vmatmul.mubr.bf16.gmra.mrb[4].mxu0 %v6785_v31  ;;  %v6905_v30 = vcombine.low %v191_v18, %v199_v19  ;;  %v6913_v31 = vcombine.low %v195_v20, %v203_v21  ;;  %v319_v18 = vld [vmem:[#allocation2 + $0x898] sm:$0xff] }
 0x372   :  { %5055 = vmatprep.mubr.bf16.mxu1 %v6794_v32  ;;  %6211 = vmatprep.mubr.bf16.mxu0 %v6802_v33  ;;  %v6922_v32 = vcombine.high %v207_v26, %v215_v27  ;;  %v6930_v33 = vcombine.high %v211_v28, %v219_v29  ;;  %v327_v19 = vld [vmem:[#allocation2 + $0x8d8] sm:$0xff] }
 0x373   :  { %v323_v20 = vld [vmem:[#allocation2 + $0x8b8] sm:$0xff] }
 0x374   :  { %v331_v21 = vld [vmem:[#allocation2 + $0x8f8] sm:$0xff] }
 0x379   :  { %5056 = vmatmul.mubr.bf16.gmra.mrb[8].mxu1 %v6793_v38  ;;  %6212 = vmatmul.mubr.bf16.gmra.mrb[8].mxu0 %v6801_v39  ;;  %v6921_v38 = vcombine.low %v207_v26, %v215_v27  ;;  %v6929_v39 = vcombine.low %v211_v28, %v219_v29  ;;  %v335_v26 = vld [vmem:[#allocation2 + $0x918] sm:$0xff] }
 0x37a   :  { %5063 = vmatprep.mubr.bf16.mxu1 %v6810_v40  ;;  %6219 = vmatprep.mubr.bf16.mxu0 %v6818_v41  ;;  %v6938_v40 = vcombine.high %v223_v34, %v231_v35  ;;  %v6946_v41 = vcombine.high %v227_v36, %v235_v37  ;;  %v343_v27 = vld [vmem:[#allocation2 + $0x958] sm:$0xff] }
 0x37b   :  { %v339_v28 = vld [vmem:[#allocation2 + $0x938] sm:$0xff] }
 0x37c   :  { %v347_v29 = vld [vmem:[#allocation2 + $0x978] sm:$0xff] }
 0x381   :  { %5064 = vmatmul.mubr.bf16.gmra.mrb[12].mxu1 %v6809_v46  ;;  %6220 = vmatmul.mubr.bf16.gmra.mrb[12].mxu0 %v6817_v47  ;;  %v6937_v46 = vcombine.low %v223_v34, %v231_v35  ;;  %v6945_v47 = vcombine.low %v227_v36, %v235_v37  ;;  %v351_v34 = vld [vmem:[#allocation2 + $0x998] sm:$0xff] }
 0x382   :  { %5071 = vmatprep.mubr.bf16.mxu1 %v6826_v48  ;;  %6227 = vmatprep.mubr.bf16.mxu0 %v6834_v49  ;;  %v6954_v48 = vcombine.high %v239_v42, %v247_v43  ;;  %v6962_v49 = vcombine.high %v243_v44, %v251_v45  ;;  %v359_v35 = vld [vmem:[#allocation2 + $0x9d8] sm:$0xff] }
 0x383   :  { %v355_v36 = vld [vmem:[#allocation2 + $0x9b8] sm:$0xff] }
 0x384   :  { %v363_v37 = vld [vmem:[#allocation2 + $0x9f8] sm:$0xff] }
 0x389   :  { %5072 = vmatmul.mubr.bf16.gmra.mrb[16].mxu1 %v6825_v54  ;;  %6228 = vmatmul.mubr.bf16.gmra.mrb[16].mxu0 %v6833_v55  ;;  %v6953_v54 = vcombine.low %v239_v42, %v247_v43  ;;  %v6961_v55 = vcombine.low %v243_v44, %v251_v45  ;;  %v367_v42 = vld [vmem:[#allocation2 + $0xa18] sm:$0xff] }
 0x38a   :  { %5079 = vmatprep.mubr.bf16.mxu1 %v6842_v56  ;;  %6235 = vmatprep.mubr.bf16.mxu0 %v6850_v57  ;;  %v6970_v56 = vcombine.high %v255_v50, %v263_v51  ;;  %v6978_v57 = vcombine.high %v259_v52, %v267_v53  ;;  %v375_v43 = vld [vmem:[#allocation2 + $0xa58] sm:$0xff] }
 0x38b   :  { %v371_v44 = vld [vmem:[#allocation2 + $0xa38] sm:$0xff] }
 0x38c   :  { %v379_v45 = vld [vmem:[#allocation2 + $0xa78] sm:$0xff] }
 0x391   :  { %5080 = vmatmul.mubr.bf16.gmra.mrb[20].mxu1 %v6841_v62  ;;  %6236 = vmatmul.mubr.bf16.gmra.mrb[20].mxu0 %v6849_v63  ;;  %v6969_v62 = vcombine.low %v255_v50, %v263_v51  ;;  %v6977_v63 = vcombine.low %v259_v52, %v267_v53  ;;  %v383_v50 = vld [vmem:[#allocation2 + $0xa98] sm:$0xff] }
 0x392   :  { %5087 = vmatprep.mubr.bf16.mxu1 %v6858_v1  ;;  %6243 = vmatprep.mubr.bf16.mxu0 %v6866_v2  ;;  %v6986_v1 = vcombine.high %v271_v58, %v279_v59  ;;  %v6994_v2 = vcombine.high %v275_v60, %v283_v61  ;;  %v391_v51 = vld [vmem:[#allocation2 + $0xad8] sm:$0xff] }
 0x393   :  { %v387_v52 = vld [vmem:[#allocation2 + $0xab8] sm:$0xff] }
 0x394   :  { %v395_v53 = vld [vmem:[#allocation2 + $0xaf8] sm:$0xff] }
 0x399   :  { %5088 = vmatmul.mubr.bf16.gmra.mrb[24].mxu1 %v6857_v7  ;;  %6244 = vmatmul.mubr.bf16.gmra.mrb[24].mxu0 %v6865_v8  ;;  %v6985_v7 = vcombine.low %v271_v58, %v279_v59  ;;  %v6993_v8 = vcombine.low %v275_v60, %v283_v61  ;;  %v399_v58 = vld [vmem:[#allocation2 + $0xb18] sm:$0xff] }
 0x39a   :  { %5095 = vmatprep.mubr.bf16.mxu1 %v6874_v9  ;;  %6251 = vmatprep.mubr.bf16.mxu0 %v6882_v0  ;;  %v7002_v9 = vcombine.high %v287_v3, %v295_v4  ;;  %v7010_v0 = vcombine.high %v291_v5, %v299_v6  ;;  %v407_v59 = vld [vmem:[#allocation2 + $0xb58] sm:$0xff] }
 0x39b   :  { %v403_v60 = vld [vmem:[#allocation2 + $0xb38] sm:$0xff] }
 0x39c   :  { %v411_v61 = vld [vmem:[#allocation2 + $0xb78] sm:$0xff] }
 0x3a1   :  { %5096 = vmatmul.mubr.bf16.gmra.mrb[28].mxu1 %v6873_v14  ;;  %6252 = vmatmul.mubr.bf16.gmra.mrb[28].mxu0 %v6881_v15  ;;  %v7001_v14 = vcombine.low %v287_v3, %v295_v4  ;;  %v7009_v15 = vcombine.low %v291_v5, %v299_v6  ;;  %v415_v3 = vld [vmem:[#allocation2 + $0xb98] sm:$0xff] }
 0x3a2   :  { %5103 = vmatprep.mubr.bf16.mxu1 %v6890_v16  ;;  %6259 = vmatprep.mubr.bf16.mxu0 %v6898_v17  ;;  %v7018_v16 = vcombine.high %v303_v10, %v311_v11  ;;  %v7026_v17 = vcombine.high %v307_v12, %v315_v13  ;;  %v423_v4 = vld [vmem:[#allocation2 + $0xbd8] sm:$0xff] }
 0x3a3   :  { %v419_v5 = vld [vmem:[#allocation2 + $0xbb8] sm:$0xff] }
 0x3a4   :  { %v427_v6 = vld [vmem:[#allocation2 + $0xbf8] sm:$0xff] }
 0x3a9   :  { %5104 = vmatmul.mubr.bf16.gmra.mrb[32].mxu1 %v6889_v22  ;;  %6260 = vmatmul.mubr.bf16.gmra.mrb[32].mxu0 %v6897_v23  ;;  %v7017_v22 = vcombine.low %v303_v10, %v311_v11  ;;  %v7025_v23 = vcombine.low %v307_v12, %v315_v13  ;;  %v431_v10 = vld [vmem:[#allocation2 + $0xc18] sm:$0xff] }
 0x3aa   :  { %5111 = vmatprep.mubr.bf16.mxu1 %v6906_v24  ;;  %6267 = vmatprep.mubr.bf16.mxu0 %v6914_v25  ;;  %v7034_v24 = vcombine.high %v319_v18, %v327_v19  ;;  %v7042_v25 = vcombine.high %v323_v20, %v331_v21  ;;  %v439_v11 = vld [vmem:[#allocation2 + $0xc58] sm:$0xff] }
 0x3ab   :  { %v435_v12 = vld [vmem:[#allocation2 + $0xc38] sm:$0xff] }
 0x3ac   :  { %v443_v13 = vld [vmem:[#allocation2 + $0xc78] sm:$0xff] }
 0x3b1   :  { %5112 = vmatmul.mubr.bf16.gmra.mrb[36].mxu1 %v6905_v30  ;;  %6268 = vmatmul.mubr.bf16.gmra.mrb[36].mxu0 %v6913_v31  ;;  %v7033_v30 = vcombine.low %v319_v18, %v327_v19  ;;  %v7041_v31 = vcombine.low %v323_v20, %v331_v21  ;;  %v447_v18 = vld [vmem:[#allocation2 + $0xc98] sm:$0xff] }
 0x3b2   :  { %5119 = vmatprep.mubr.bf16.mxu1 %v6922_v32  ;;  %6275 = vmatprep.mubr.bf16.mxu0 %v6930_v33  ;;  %v7050_v32 = vcombine.high %v335_v26, %v343_v27  ;;  %v7058_v33 = vcombine.high %v339_v28, %v347_v29  ;;  %v455_v19 = vld [vmem:[#allocation2 + $0xcd8] sm:$0xff] }
 0x3b3   :  { %v451_v20 = vld [vmem:[#allocation2 + $0xcb8] sm:$0xff] }
 0x3b4   :  { %v459_v21 = vld [vmem:[#allocation2 + $0xcf8] sm:$0xff] }
 0x3b9   :  { %5120 = vmatmul.mubr.bf16.gmra.mrb[40].mxu1 %v6921_v38  ;;  %6276 = vmatmul.mubr.bf16.gmra.mrb[40].mxu0 %v6929_v39  ;;  %v7049_v38 = vcombine.low %v335_v26, %v343_v27  ;;  %v7057_v39 = vcombine.low %v339_v28, %v347_v29  ;;  %v463_v26 = vld [vmem:[#allocation2 + $0xd18] sm:$0xff] }
 0x3ba   :  { %5127 = vmatprep.mubr.bf16.mxu1 %v6938_v40  ;;  %6283 = vmatprep.mubr.bf16.mxu0 %v6946_v41  ;;  %v7066_v40 = vcombine.high %v351_v34, %v359_v35  ;;  %v7074_v41 = vcombine.high %v355_v36, %v363_v37  ;;  %v471_v27 = vld [vmem:[#allocation2 + $0xd58] sm:$0xff] }
 0x3bb   :  { %v467_v28 = vld [vmem:[#allocation2 + $0xd38] sm:$0xff] }
 0x3bc   :  { %v475_v29 = vld [vmem:[#allocation2 + $0xd78] sm:$0xff] }
 0x3c1   :  { %5128 = vmatmul.mubr.bf16.gmra.mrb[44].mxu1 %v6937_v46  ;;  %6284 = vmatmul.mubr.bf16.gmra.mrb[44].mxu0 %v6945_v47  ;;  %v7065_v46 = vcombine.low %v351_v34, %v359_v35  ;;  %v7073_v47 = vcombine.low %v355_v36, %v363_v37  ;;  %v479_v34 = vld [vmem:[#allocation2 + $0xd98] sm:$0xff] }
 0x3c2   :  { %5135 = vmatprep.mubr.bf16.mxu1 %v6954_v48  ;;  %6291 = vmatprep.mubr.bf16.mxu0 %v6962_v49  ;;  %v7082_v48 = vcombine.high %v367_v42, %v375_v43  ;;  %v7090_v49 = vcombine.high %v371_v44, %v379_v45  ;;  %v487_v35 = vld [vmem:[#allocation2 + $0xdd8] sm:$0xff] }
 0x3c3   :  { %v483_v36 = vld [vmem:[#allocation2 + $0xdb8] sm:$0xff] }
 0x3c4   :  { %v491_v37 = vld [vmem:[#allocation2 + $0xdf8] sm:$0xff] }
 0x3c9   :  { %5136 = vmatmul.mubr.bf16.gmra.mrb[48].mxu1 %v6953_v54  ;;  %6292 = vmatmul.mubr.bf16.gmra.mrb[48].mxu0 %v6961_v55  ;;  %v7081_v54 = vcombine.low %v367_v42, %v375_v43  ;;  %v7089_v55 = vcombine.low %v371_v44, %v379_v45  ;;  %v495_v42 = vld [vmem:[#allocation2 + $0xe18] sm:$0xff] }
 0x3ca   :  { %5143 = vmatprep.mubr.bf16.mxu1 %v6970_v56  ;;  %6299 = vmatprep.mubr.bf16.mxu0 %v6978_v57  ;;  %v7098_v56 = vcombine.high %v383_v50, %v391_v51  ;;  %v7106_v57 = vcombine.high %v387_v52, %v395_v53  ;;  %v503_v43 = vld [vmem:[#allocation2 + $0xe58] sm:$0xff] }
 0x3cb   :  { %v499_v45 = vld [vmem:[#allocation2 + $0xe38] sm:$0xff] }
 0x3d1   :  { %5144 = vmatmul.mubr.bf16.gmra.mrb[52].mxu1 %v6969_v62  ;;  %6300 = vmatmul.mubr.bf16.gmra.mrb[52].mxu0 %v6977_v63  ;;  %v7097_v62 = vcombine.low %v383_v50, %v391_v51  ;;  %v7105_v63 = vcombine.low %v387_v52, %v395_v53  ;;  %v7201_v53 = vcombine.low %v483_v36, %v491_v37 }
 0x3d2   :  { %5151 = vmatprep.mubr.bf16.mxu1 %v6986_v1  ;;  %6307 = vmatprep.mubr.bf16.mxu0 %v6994_v2  ;;  %v7114_v1 = vcombine.high %v399_v58, %v407_v59  ;;  %v7122_v2 = vcombine.high %v403_v60, %v411_v61 }
 0x3d9   :  { %5152 = vmatmul.mubr.bf16.gmra.mrb[56].mxu1 %v6985_v7  ;;  %6308 = vmatmul.mubr.bf16.gmra.mrb[56].mxu0 %v6993_v8  ;;  %v7113_v7 = vcombine.low %v399_v58, %v407_v59  ;;  %v7121_v8 = vcombine.low %v403_v60, %v411_v61 }
 0x3da   :  { %5159 = vmatprep.mubr.bf16.mxu1 %v7002_v9  ;;  %6315 = vmatprep.mubr.bf16.mxu0 %v7010_v0  ;;  %v7130_v9 = vcombine.high %v415_v3, %v423_v4  ;;  %v7138_v0 = vcombine.high %v419_v5, %v427_v6 }
 0x3e1   :  { %5160 = vmatmul.mubr.bf16.gmra.mrb[60].mxu1 %v7001_v14  ;;  %6316 = vmatmul.mubr.bf16.gmra.mrb[60].mxu0 %v7009_v15  ;;  %v7129_v14 = vcombine.low %v415_v3, %v423_v4  ;;  %v7137_v15 = vcombine.low %v419_v5, %v427_v6  ;;  %v515_v4 = vld [vmem:[#allocation2 + $0xeb8] sm:$0xff] }
 0x3e2   :  { %5167 = vmatprep.mubr.bf16.mxu1 %v7018_v16  ;;  %6323 = vmatprep.mubr.bf16.mxu0 %v7026_v17  ;;  %v7146_v16 = vcombine.high %v431_v10, %v439_v11  ;;  %v7154_v17 = vcombine.high %v435_v12, %v443_v13  ;;  %v523_v5 = vld [vmem:[#allocation2 + $0xef8] sm:$0xff] }
 0x3e9   :  { %5168 = vmatmul.mubr.bf16.gmra.mrb[64].mxu1 %v7017_v22  ;;  %6324 = vmatmul.mubr.bf16.gmra.mrb[64].mxu0 %v7025_v23  ;;  %v7145_v22 = vcombine.low %v431_v10, %v439_v11  ;;  %v7153_v23 = vcombine.low %v435_v12, %v443_v13 }
 0x3ea   :  { %5175 = vmatprep.mubr.bf16.mxu1 %v7034_v24  ;;  %6331 = vmatprep.mubr.bf16.mxu0 %v7042_v25  ;;  %v7162_v24 = vcombine.high %v447_v18, %v455_v19  ;;  %v7170_v25 = vcombine.high %v451_v20, %v459_v21 }
 0x3f1   :  { %5176 = vmatmul.mubr.bf16.gmra.mrb[68].mxu1 %v7033_v30  ;;  %6332 = vmatmul.mubr.bf16.gmra.mrb[68].mxu0 %v7041_v31  ;;  %v7161_v30 = vcombine.low %v447_v18, %v455_v19  ;;  %v7169_v31 = vcombine.low %v451_v20, %v459_v21 }
 0x3f2   :  { %5183 = vmatprep.mubr.bf16.mxu1 %v7050_v32  ;;  %6339 = vmatprep.mubr.bf16.mxu0 %v7058_v33  ;;  %v7178_v32 = vcombine.high %v463_v26, %v471_v27  ;;  %v7186_v33 = vcombine.high %v467_v28, %v475_v29 }
 0x3f9   :  { %5184 = vmatmul.mubr.bf16.gmra.mrb[72].mxu1 %v7049_v38  ;;  %6340 = vmatmul.mubr.bf16.gmra.mrb[72].mxu0 %v7057_v39  ;;  %v7177_v38 = vcombine.low %v463_v26, %v471_v27  ;;  %v7185_v39 = vcombine.low %v467_v28, %v475_v29  ;;  %v531_v27 = vld [vmem:[#allocation2 + $0xf38] sm:$0xff] }
 0x3fa   :  { %5191 = vmatprep.mubr.bf16.mxu1 %v7066_v40  ;;  %6347 = vmatprep.mubr.bf16.mxu0 %v7074_v41  ;;  %v7194_v40 = vcombine.high %v479_v34, %v487_v35  ;;  %v7202_v41 = vcombine.high %v483_v36, %v491_v37  ;;  %v539_v28 = vld [vmem:[#allocation2 + $0xf78] sm:$0xff] }
 0x401   :  { %5192 = vmatmul.mubr.bf16.gmra.mrb[76].mxu1 %v7065_v46  ;;  %6348 = vmatmul.mubr.bf16.gmra.mrb[76].mxu0 %v7073_v47  ;;  %v507_v46 = vld [vmem:[#allocation2 + $0xe78] sm:$0xff] }
 0x402   :  { %5199 = vmatprep.mubr.bf16.mxu1 %v7082_v48  ;;  %6355 = vmatprep.mubr.bf16.mxu0 %v7090_v49  ;;  %v7193_v49 = vcombine.low %v479_v34, %v487_v35  ;;  %v7217_v11 = vcombine.low %v499_v45, %v507_v46  ;;  %v7233_v35 = vcombine.low %v515_v4, %v523_v5 }
 0x409   :  { %5200 = vmatmul.mubr.bf16.gmra.mrb[80].mxu1 %v7081_v54  ;;  %6356 = vmatmul.mubr.bf16.gmra.mrb[80].mxu0 %v7089_v55  ;;  %v7210_v54 = vcombine.high %v495_v42, %v503_v43 }
 0x40a   :  { %5207 = vmatprep.mubr.bf16.mxu1 %v7098_v56  ;;  %6363 = vmatprep.mubr.bf16.mxu0 %v7106_v57  ;;  %v7218_v57 = vcombine.high %v499_v45, %v507_v46 }
 0x411   :  { %5208 = vmatmul.mubr.bf16.gmra.mrb[84].mxu1 %v7097_v62  ;;  %6364 = vmatmul.mubr.bf16.gmra.mrb[84].mxu0 %v7105_v63  ;;  %v511_v63 = vld [vmem:[#allocation2 + $0xe98] sm:$0xff] }
 0x412   :  { %5215 = vmatprep.mubr.bf16.mxu1 %v7114_v1  ;;  %6371 = vmatprep.mubr.bf16.mxu0 %v7122_v2  ;;  %v519_v1 = vld [vmem:[#allocation2 + $0xed8] sm:$0xff] }
 0x413   :  { %v7226_v12 = vcombine.high %v511_v63, %v519_v1 }
 0x419   :  { %5216 = vmatmul.mubr.bf16.gmra.mrb[88].mxu1 %v7113_v7  ;;  %6372 = vmatmul.mubr.bf16.gmra.mrb[88].mxu0 %v7121_v8  ;;  %v7209_v8 = vcombine.low %v495_v42, %v503_v43 }
 0x41a   :  { %5223 = vmatprep.mubr.bf16.mxu1 %v7130_v9  ;;  %6379 = vmatprep.mubr.bf16.mxu0 %v7138_v0 }
 0x421   :  { %5224 = vmatmul.mubr.bf16.gmra.mrb[92].mxu1 %v7129_v14  ;;  %6380 = vmatmul.mubr.bf16.gmra.mrb[92].mxu0 %v7137_v15  ;;  %v7234_v15 = vcombine.high %v515_v4, %v523_v5 }
 0x422   :  { %5231 = vmatprep.mubr.bf16.mxu1 %v7146_v16  ;;  %6387 = vmatprep.mubr.bf16.mxu0 %v7154_v17 }
 0x429   :  { %5232 = vmatmul.mubr.bf16.gmra.mrb[96].mxu1 %v7145_v22  ;;  %6388 = vmatmul.mubr.bf16.gmra.mrb[96].mxu0 %v7153_v23  ;;  %v527_v23 = vld [vmem:[#allocation2 + $0xf18] sm:$0xff] }
 0x42a   :  { %5239 = vmatprep.mubr.bf16.mxu1 %v7162_v24  ;;  %6395 = vmatprep.mubr.bf16.mxu0 %v7170_v25  ;;  %v535_v24 = vld [vmem:[#allocation2 + $0xf58] sm:$0xff] }
 0x42b   :  { %v7242_v36 = vcombine.high %v527_v23, %v535_v24 }
 0x431   :  { %5240 = vmatmul.mubr.bf16.gmra.mrb[100].mxu1 %v7161_v30  ;;  %6396 = vmatmul.mubr.bf16.gmra.mrb[100].mxu0 %v7169_v31  ;;  %v7225_v31 = vcombine.low %v511_v63, %v519_v1 }
 0x432   :  { %5247 = vmatprep.mubr.bf16.mxu1 %v7178_v32  ;;  %6403 = vmatprep.mubr.bf16.mxu0 %v7186_v33 }
 0x439   :  { %5248 = vmatmul.mubr.bf16.gmra.mrb[104].mxu1 %v7177_v38  ;;  %6404 = vmatmul.mubr.bf16.gmra.mrb[104].mxu0 %v7185_v39  ;;  %v7250_v39 = vcombine.high %v531_v27, %v539_v28 }
 0x43a   :  { %5255 = vmatprep.mubr.bf16.mxu1 %v7194_v40  ;;  %6411 = vmatprep.mubr.bf16.mxu0 %v7202_v41 }
 0x43c   :  { %v5041_v44 = vpop.f32.mrb[0].mxu1  ;;  %v6197_v47 = vpop.f32.mrb[0].mxu0 }
 0x43d   :  { %v5043_v48 = vpop.f32.mrb[1].mxu1  ;;  %v7395_v50 = vadd.f32 %v6197_v47, %v5041_v44  ;;  %v6199_v51 = vpop.f32.mrb[1].mxu0  ;;  %v543_v47 = vld [vmem:[#allocation2 + $0xf98] sm:$0xff] }
 0x43e   :  { %v5044_v52 = vpop.f32.mrb[2].mxu1  ;;  %v6200_v55 = vpop.f32.mrb[2].mxu0  ;;  %v551_v48 = vld [vmem:[#allocation2 + $0xfd8] sm:$0xff] }
 0x43f   :  { %v5046_v56 = vpop.f32.mrb[3].mxu1  ;;  %6452 = vst [vmem:[#allocation7] sm:$0xff] %v7395_v50  ;;  %v7396_v58 = vadd.f32 %v6200_v55, %v5044_v52  ;;  %v6202_v59 = vpop.f32.mrb[3].mxu0  ;;  %v6585_v60 = vmul.f32 %v7395_v50, %v7395_v50  ;;  %v547_v51 = vld [vmem:[#allocation2 + $0xfb8] sm:$0xff]  ;;  %v7241_v55 = vcombine.low %v527_v23, %v535_v24 }
 0x440   :  { %v555_v52 = vld [vmem:[#allocation2 + $0xff8] sm:$0xff]  ;;  %v7249_v59 = vcombine.low %v531_v27, %v539_v28 }
 0x441   :  { %5256 = vmatmul.mubr.bf16.gmra.mrb[108].mxu1 %v7193_v49  ;;  %6453 = vst [vmem:[#allocation7 + $0x8] sm:$0xff] %v7396_v58  ;;  %v6516_v61 = vadd.f32 %v7396_v58, %v7395_v50  ;;  %v6586_v62 = vmul.f32 %v7396_v58, %v7396_v58  ;;  %6412 = vmatmul.mubr.bf16.gmra.mrb[108].mxu0 %v7201_v53 }
 0x442   :  { %5263 = vmatprep.mubr.bf16.mxu1 %v7210_v54  ;;  %6419 = vmatprep.mubr.bf16.mxu0 %v7218_v57  ;;  %v7266_v63 = vcombine.high %v547_v51, %v555_v52 }
 0x443   :  { %v6649_v2 = vadd.f32 %v6586_v62, %v6585_v60  ;;  %v7258_v60 = vcombine.high %v543_v47, %v551_v48 }
 0x444   :  { %v5049_v3 = vpop.f32.mrb[4].mxu1  ;;  %v6205_v6 = vpop.f32.mrb[4].mxu0 }
 0x445   :  { %v5051_v7 = vpop.f32.mrb[5].mxu1  ;;  %v7397_v9 = vadd.f32 %v6205_v6, %v5049_v3  ;;  %v6207_v0 = vpop.f32.mrb[5].mxu0 }
 0x446   :  { %v5052_v10 = vpop.f32.mrb[6].mxu1  ;;  %v6208_v13 = vpop.f32.mrb[6].mxu0 }
 0x447   :  { %v5054_v14 = vpop.f32.mrb[7].mxu1  ;;  %6454 = vst [vmem:[#allocation7 + $0x10] sm:$0xff] %v7397_v9  ;;  %v6517_v16 = vadd.f32 %v7397_v9, %v6516_v61  ;;  %v6587_v17 = vmul.f32 %v7397_v9, %v7397_v9  ;;  %v7398_v18 = vadd.f32 %v6208_v13, %v5052_v10  ;;  %v6210_v19 = vpop.f32.mrb[7].mxu0 }
 0x449   :  { %5264 = vmatmul.mubr.bf16.gmra.mrb[112].mxu1 %v7209_v8  ;;  %v6650_v20 = vadd.f32 %v6649_v2, %v6587_v17  ;;  %6455 = vst [vmem:[#allocation7 + $0x18] sm:$0xff] %v7398_v18  ;;  %v6518_v21 = vadd.f32 %v7398_v18, %v6517_v16  ;;  %v6588_v22 = vmul.f32 %v7398_v18, %v7398_v18 }
 0x44a   :  { %6420 = vmatmul.mubr.bf16.gmra.mrb[112].mxu0 %v7217_v11  ;;  %5271 = vmatprep.mubr.bf16.mxu1 %v7226_v12  ;;  %v7257_v11 = vcombine.low %v543_v47, %v551_v48 }
 0x44b   :  { %6427 = vmatprep.mubr.bf16.mxu0 %v7234_v15  ;;  %v6651_v25 = vadd.f32 %v6650_v20, %v6588_v22  ;;  %v7265_v15 = vcombine.low %v547_v51, %v555_v52 }
 0x44c   :  { %v5057_v26 = vpop.f32.mrb[8].mxu1  ;;  %v6213_v29 = vpop.f32.mrb[8].mxu0 }
 0x44d   :  { %v5059_v30 = vpop.f32.mrb[9].mxu1  ;;  %v7399_v32 = vadd.f32 %v6213_v29, %v5057_v26  ;;  %v6215_v33 = vpop.f32.mrb[9].mxu0 }
 0x44e   :  { %v5060_v34 = vpop.f32.mrb[10].mxu1  ;;  %v6216_v37 = vpop.f32.mrb[10].mxu0 }
 0x44f   :  { %v5062_v38 = vpop.f32.mrb[11].mxu1  ;;  %6456 = vst [vmem:[#allocation7 + $0x20] sm:$0xff] %v7399_v32  ;;  %v6519_v40 = vadd.f32 %v7399_v32, %v6518_v21  ;;  %v6589_v41 = vmul.f32 %v7399_v32, %v7399_v32  ;;  %v7400_v42 = vadd.f32 %v6216_v37, %v5060_v34  ;;  %v6218_v43 = vpop.f32.mrb[11].mxu0 }
 0x451   :  { %5272 = vmatmul.mubr.bf16.gmra.mrb[116].mxu1 %v7225_v31  ;;  %v6652_v44 = vadd.f32 %v6651_v25, %v6589_v41  ;;  %6457 = vst [vmem:[#allocation7 + $0x28] sm:$0xff] %v7400_v42  ;;  %v6520_v45 = vadd.f32 %v7400_v42, %v6519_v40  ;;  %v6590_v46 = vmul.f32 %v7400_v42, %v7400_v42 }
 0x452   :  { %6428 = vmatmul.mubr.bf16.gmra.mrb[116].mxu0 %v7233_v35  ;;  %5279 = vmatprep.mubr.bf16.mxu1 %v7242_v36 }
 0x453   :  { %6435 = vmatprep.mubr.bf16.mxu0 %v7250_v39  ;;  %v6653_v49 = vadd.f32 %v6652_v44, %v6590_v46 }
 0x454   :  { %v5065_v50 = vpop.f32.mrb[12].mxu1  ;;  %v6221_v53 = vpop.f32.mrb[12].mxu0 }
 0x455   :  { %v5067_v54 = vpop.f32.mrb[13].mxu1  ;;  %v7401_v56 = vadd.f32 %v6221_v53, %v5065_v50  ;;  %v6223_v57 = vpop.f32.mrb[13].mxu0 }
 0x456   :  { %v5068_v58 = vpop.f32.mrb[14].mxu1  ;;  %v6224_v61 = vpop.f32.mrb[14].mxu0 }
 0x457   :  { %v5070_v62 = vpop.f32.mrb[15].mxu1  ;;  %6458 = vst [vmem:[#allocation7 + $0x30] sm:$0xff] %v7401_v56  ;;  %v6521_v1 = vadd.f32 %v7401_v56, %v6520_v45  ;;  %v6591_v2 = vmul.f32 %v7401_v56, %v7401_v56  ;;  %v7402_v3 = vadd.f32 %v6224_v61, %v5068_v58  ;;  %v6226_v4 = vpop.f32.mrb[15].mxu0 }
 0x459   :  { %5280 = vmatmul.mubr.bf16.gmra.mrb[120].mxu1 %v7241_v55  ;;  %v6654_v5 = vadd.f32 %v6653_v49, %v6591_v2  ;;  %6459 = vst [vmem:[#allocation7 + $0x38] sm:$0xff] %v7402_v3  ;;  %v6522_v6 = vadd.f32 %v7402_v3, %v6521_v1  ;;  %v6592_v7 = vmul.f32 %v7402_v3, %v7402_v3 }
 0x45a   :  { %6436 = vmatmul.mubr.bf16.gmra.mrb[120].mxu0 %v7249_v59  ;;  %5287 = vmatprep.mubr.bf16.mxu1 %v7258_v60 }
 0x45b   :  { %6443 = vmatprep.mubr.bf16.mxu0 %v7266_v63  ;;  %v6655_v8 = vadd.f32 %v6654_v5, %v6592_v7 }
 0x45c   :  { %v5073_v9 = vpop.f32.mrb[16].mxu1  ;;  %v6229_v0 = vpop.f32.mrb[16].mxu0 }
 0x45d   :  { %v5075_v10 = vpop.f32.mrb[17].mxu1  ;;  %v7403_v12 = vadd.f32 %v6229_v0, %v5073_v9  ;;  %v6231_v13 = vpop.f32.mrb[17].mxu0 }
 0x45e   :  { %v5076_v14 = vpop.f32.mrb[18].mxu1  ;;  %v6232_v16 = vpop.f32.mrb[18].mxu0 }
 0x45f   :  { %v5078_v17 = vpop.f32.mrb[19].mxu1  ;;  %6460 = vst [vmem:[#allocation7 + $0x40] sm:$0xff] %v7403_v12  ;;  %v6523_v18 = vadd.f32 %v7403_v12, %v6522_v6  ;;  %v6593_v19 = vmul.f32 %v7403_v12, %v7403_v12  ;;  %v7404_v20 = vadd.f32 %v6232_v16, %v5076_v14  ;;  %v6234_v21 = vpop.f32.mrb[19].mxu0 }
 0x461   :  { %5288 = vmatmul.mubr.bf16.gmra.mrb[124].mxu1 %v7257_v11  ;;  %v6656_v22 = vadd.f32 %v6655_v8, %v6593_v19  ;;  %6461 = vst [vmem:[#allocation7 + $0x48] sm:$0xff] %v7404_v20  ;;  %v6524_v23 = vadd.f32 %v7404_v20, %v6523_v18  ;;  %v6594_v24 = vmul.f32 %v7404_v20, %v7404_v20 }
 0x462   :  { %6444 = vmatmul.mubr.bf16.gmra.mrb[124].mxu0 %v7265_v15 }
 0x463   :  { %v6657_v25 = vadd.f32 %v6656_v22, %v6594_v24 }
 0x464   :  { %v5081_v26 = vpop.f32.mrb[20].mxu1  ;;  %v6237_v27 = vpop.f32.mrb[20].mxu0 }
 0x465   :  { %v5083_v28 = vpop.f32.mrb[21].mxu1  ;;  %v7405_v29 = vadd.f32 %v6237_v27, %v5081_v26  ;;  %v6239_v30 = vpop.f32.mrb[21].mxu0 }
 0x466   :  { %v5084_v31 = vpop.f32.mrb[22].mxu1  ;;  %v6240_v32 = vpop.f32.mrb[22].mxu0 }
 0x467   :  { %v5086_v33 = vpop.f32.mrb[23].mxu1  ;;  %6462 = vst [vmem:[#allocation7 + $0x50] sm:$0xff] %v7405_v29  ;;  %v6525_v34 = vadd.f32 %v7405_v29, %v6524_v23  ;;  %v6595_v35 = vmul.f32 %v7405_v29, %v7405_v29  ;;  %v7406_v36 = vadd.f32 %v6240_v32, %v5084_v31  ;;  %v6242_v37 = vpop.f32.mrb[23].mxu0 }
 0x469   :  { %v6658_v38 = vadd.f32 %v6657_v25, %v6595_v35  ;;  %6463 = vst [vmem:[#allocation7 + $0x58] sm:$0xff] %v7406_v36  ;;  %v6526_v39 = vadd.f32 %v7406_v36, %v6525_v34  ;;  %v6596_v40 = vmul.f32 %v7406_v36, %v7406_v36 }
 0x46b   :  { %v6659_v41 = vadd.f32 %v6658_v38, %v6596_v40 }
 0x46c   :  { %v5089_v42 = vpop.f32.mrb[24].mxu1  ;;  %v6245_v43 = vpop.f32.mrb[24].mxu0 }
 0x46d   :  { %v5091_v44 = vpop.f32.mrb[25].mxu1  ;;  %v7407_v45 = vadd.f32 %v6245_v43, %v5089_v42  ;;  %v6247_v46 = vpop.f32.mrb[25].mxu0 }
 0x46e   :  { %v5092_v47 = vpop.f32.mrb[26].mxu1  ;;  %v6248_v48 = vpop.f32.mrb[26].mxu0 }
 0x46f   :  { %v5094_v49 = vpop.f32.mrb[27].mxu1  ;;  %6464 = vst [vmem:[#allocation7 + $0x60] sm:$0xff] %v7407_v45  ;;  %v6527_v50 = vadd.f32 %v7407_v45, %v6526_v39  ;;  %v6597_v51 = vmul.f32 %v7407_v45, %v7407_v45  ;;  %v7408_v52 = vadd.f32 %v6248_v48, %v5092_v47  ;;  %v6250_v53 = vpop.f32.mrb[27].mxu0 }
 0x471   :  { %v6660_v54 = vadd.f32 %v6659_v41, %v6597_v51  ;;  %6465 = vst [vmem:[#allocation7 + $0x68] sm:$0xff] %v7408_v52  ;;  %v6528_v55 = vadd.f32 %v7408_v52, %v6527_v50  ;;  %v6598_v56 = vmul.f32 %v7408_v52, %v7408_v52 }
 0x473   :  { %v6661_v57 = vadd.f32 %v6660_v54, %v6598_v56 }
 0x474   :  { %v5097_v58 = vpop.f32.mrb[28].mxu1  ;;  %v6253_v59 = vpop.f32.mrb[28].mxu0 }
 0x475   :  { %v5099_v60 = vpop.f32.mrb[29].mxu1  ;;  %v7409_v61 = vadd.f32 %v6253_v59, %v5097_v58  ;;  %v6255_v62 = vpop.f32.mrb[29].mxu0 }
 0x476   :  { %v5100_v63 = vpop.f32.mrb[30].mxu1  ;;  %v6256_v1 = vpop.f32.mrb[30].mxu0 }
 0x477   :  { %v5102_v2 = vpop.f32.mrb[31].mxu1  ;;  %6466 = vst [vmem:[#allocation7 + $0x70] sm:$0xff] %v7409_v61  ;;  %v6529_v3 = vadd.f32 %v7409_v61, %v6528_v55  ;;  %v6599_v4 = vmul.f32 %v7409_v61, %v7409_v61  ;;  %v7410_v5 = vadd.f32 %v6256_v1, %v5100_v63  ;;  %v6258_v6 = vpop.f32.mrb[31].mxu0 }
 0x479   :  { %v6662_v7 = vadd.f32 %v6661_v57, %v6599_v4  ;;  %6467 = vst [vmem:[#allocation7 + $0x78] sm:$0xff] %v7410_v5  ;;  %v6530_v8 = vadd.f32 %v7410_v5, %v6529_v3  ;;  %v6600_v9 = vmul.f32 %v7410_v5, %v7410_v5 }
 0x47b   :  { %v6663_v0 = vadd.f32 %v6662_v7, %v6600_v9 }
 0x47c   :  { %v5105_v10 = vpop.f32.mrb[32].mxu1  ;;  %v6261_v11 = vpop.f32.mrb[32].mxu0 }
 0x47d   :  { %v5107_v12 = vpop.f32.mrb[33].mxu1  ;;  %v7411_v13 = vadd.f32 %v6261_v11, %v5105_v10  ;;  %v6263_v14 = vpop.f32.mrb[33].mxu0 }
 0x47e   :  { %v5108_v15 = vpop.f32.mrb[34].mxu1  ;;  %v6264_v16 = vpop.f32.mrb[34].mxu0 }
 0x47f   :  { %v5110_v17 = vpop.f32.mrb[35].mxu1  ;;  %6468 = vst [vmem:[#allocation7 + $0x80] sm:$0xff] %v7411_v13  ;;  %v6531_v18 = vadd.f32 %v7411_v13, %v6530_v8  ;;  %v6601_v19 = vmul.f32 %v7411_v13, %v7411_v13  ;;  %v7412_v20 = vadd.f32 %v6264_v16, %v5108_v15  ;;  %v6266_v21 = vpop.f32.mrb[35].mxu0 }
 0x481   :  { %v6664_v22 = vadd.f32 %v6663_v0, %v6601_v19  ;;  %6469 = vst [vmem:[#allocation7 + $0x88] sm:$0xff] %v7412_v20  ;;  %v6532_v23 = vadd.f32 %v7412_v20, %v6531_v18  ;;  %v6602_v24 = vmul.f32 %v7412_v20, %v7412_v20 }
 0x483   :  { %v6665_v25 = vadd.f32 %v6664_v22, %v6602_v24 }
 0x484   :  { %v5113_v26 = vpop.f32.mrb[36].mxu1  ;;  %v6269_v27 = vpop.f32.mrb[36].mxu0 }
 0x485   :  { %v5115_v28 = vpop.f32.mrb[37].mxu1  ;;  %v7413_v29 = vadd.f32 %v6269_v27, %v5113_v26  ;;  %v6271_v30 = vpop.f32.mrb[37].mxu0 }
 0x486   :  { %v5116_v31 = vpop.f32.mrb[38].mxu1  ;;  %v6272_v32 = vpop.f32.mrb[38].mxu0 }
 0x487   :  { %v5118_v33 = vpop.f32.mrb[39].mxu1  ;;  %6470 = vst [vmem:[#allocation7 + $0x90] sm:$0xff] %v7413_v29  ;;  %v6533_v34 = vadd.f32 %v7413_v29, %v6532_v23  ;;  %v6603_v35 = vmul.f32 %v7413_v29, %v7413_v29  ;;  %v7414_v36 = vadd.f32 %v6272_v32, %v5116_v31  ;;  %v6274_v37 = vpop.f32.mrb[39].mxu0 }
 0x489   :  { %v6666_v38 = vadd.f32 %v6665_v25, %v6603_v35  ;;  %6471 = vst [vmem:[#allocation7 + $0x98] sm:$0xff] %v7414_v36  ;;  %v6534_v39 = vadd.f32 %v7414_v36, %v6533_v34  ;;  %v6604_v40 = vmul.f32 %v7414_v36, %v7414_v36 }
 0x48b   :  { %v6667_v41 = vadd.f32 %v6666_v38, %v6604_v40 }
 0x48c   :  { %v5121_v42 = vpop.f32.mrb[40].mxu1  ;;  %v6277_v43 = vpop.f32.mrb[40].mxu0 }
 0x48d   :  { %v5123_v44 = vpop.f32.mrb[41].mxu1  ;;  %v7415_v45 = vadd.f32 %v6277_v43, %v5121_v42  ;;  %v6279_v46 = vpop.f32.mrb[41].mxu0 }
 0x48e   :  { %v5124_v47 = vpop.f32.mrb[42].mxu1  ;;  %v6280_v48 = vpop.f32.mrb[42].mxu0 }
 0x48f   :  { %v5126_v49 = vpop.f32.mrb[43].mxu1  ;;  %6472 = vst [vmem:[#allocation7 + $0xa0] sm:$0xff] %v7415_v45  ;;  %v6535_v50 = vadd.f32 %v7415_v45, %v6534_v39  ;;  %v6605_v51 = vmul.f32 %v7415_v45, %v7415_v45  ;;  %v7416_v52 = vadd.f32 %v6280_v48, %v5124_v47  ;;  %v6282_v53 = vpop.f32.mrb[43].mxu0 }
 0x491   :  { %v6668_v54 = vadd.f32 %v6667_v41, %v6605_v51  ;;  %6473 = vst [vmem:[#allocation7 + $0xa8] sm:$0xff] %v7416_v52  ;;  %v6536_v55 = vadd.f32 %v7416_v52, %v6535_v50  ;;  %v6606_v56 = vmul.f32 %v7416_v52, %v7416_v52 }
 0x493   :  { %v6669_v57 = vadd.f32 %v6668_v54, %v6606_v56 }
 0x494   :  { %v5129_v58 = vpop.f32.mrb[44].mxu1  ;;  %v6285_v59 = vpop.f32.mrb[44].mxu0 }
 0x495   :  { %v5131_v60 = vpop.f32.mrb[45].mxu1  ;;  %v7417_v61 = vadd.f32 %v6285_v59, %v5129_v58  ;;  %v6287_v62 = vpop.f32.mrb[45].mxu0 }
 0x496   :  { %v5132_v63 = vpop.f32.mrb[46].mxu1  ;;  %v6288_v1 = vpop.f32.mrb[46].mxu0 }
 0x497   :  { %v5134_v2 = vpop.f32.mrb[47].mxu1  ;;  %6474 = vst [vmem:[#allocation7 + $0xb0] sm:$0xff] %v7417_v61  ;;  %v6537_v3 = vadd.f32 %v7417_v61, %v6536_v55  ;;  %v6607_v4 = vmul.f32 %v7417_v61, %v7417_v61  ;;  %v7418_v5 = vadd.f32 %v6288_v1, %v5132_v63  ;;  %v6290_v6 = vpop.f32.mrb[47].mxu0 }
 0x499   :  { %v6670_v7 = vadd.f32 %v6669_v57, %v6607_v4  ;;  %6475 = vst [vmem:[#allocation7 + $0xb8] sm:$0xff] %v7418_v5  ;;  %v6538_v8 = vadd.f32 %v7418_v5, %v6537_v3  ;;  %v6608_v9 = vmul.f32 %v7418_v5, %v7418_v5 }
 0x49b   :  { %v6671_v0 = vadd.f32 %v6670_v7, %v6608_v9 }
 0x49c   :  { %v5137_v10 = vpop.f32.mrb[48].mxu1  ;;  %v6293_v11 = vpop.f32.mrb[48].mxu0 }
 0x49d   :  { %v5139_v12 = vpop.f32.mrb[49].mxu1  ;;  %v7419_v13 = vadd.f32 %v6293_v11, %v5137_v10  ;;  %v6295_v14 = vpop.f32.mrb[49].mxu0 }
 0x49e   :  { %v5140_v15 = vpop.f32.mrb[50].mxu1  ;;  %v6296_v16 = vpop.f32.mrb[50].mxu0 }
 0x49f   :  { %v5142_v17 = vpop.f32.mrb[51].mxu1  ;;  %6476 = vst [vmem:[#allocation7 + $0xc0] sm:$0xff] %v7419_v13  ;;  %v6539_v18 = vadd.f32 %v7419_v13, %v6538_v8  ;;  %v6609_v19 = vmul.f32 %v7419_v13, %v7419_v13  ;;  %v7420_v20 = vadd.f32 %v6296_v16, %v5140_v15  ;;  %v6298_v21 = vpop.f32.mrb[51].mxu0 }
 0x4a1   :  { %v6672_v22 = vadd.f32 %v6671_v0, %v6609_v19  ;;  %6477 = vst [vmem:[#allocation7 + $0xc8] sm:$0xff] %v7420_v20  ;;  %v6540_v23 = vadd.f32 %v7420_v20, %v6539_v18  ;;  %v6610_v24 = vmul.f32 %v7420_v20, %v7420_v20 }
 0x4a3   :  { %v6673_v25 = vadd.f32 %v6672_v22, %v6610_v24 }
 0x4a4   :  { %v5145_v26 = vpop.f32.mrb[52].mxu1  ;;  %v6301_v27 = vpop.f32.mrb[52].mxu0 }
 0x4a5   :  { %v5147_v28 = vpop.f32.mrb[53].mxu1  ;;  %v7421_v29 = vadd.f32 %v6301_v27, %v5145_v26  ;;  %v6303_v30 = vpop.f32.mrb[53].mxu0 }
 0x4a6   :  { %v5148_v31 = vpop.f32.mrb[54].mxu1  ;;  %v6304_v32 = vpop.f32.mrb[54].mxu0 }
 0x4a7   :  { %v5150_v33 = vpop.f32.mrb[55].mxu1  ;;  %6478 = vst [vmem:[#allocation7 + $0xd0] sm:$0xff] %v7421_v29  ;;  %v6541_v34 = vadd.f32 %v7421_v29, %v6540_v23  ;;  %v6611_v35 = vmul.f32 %v7421_v29, %v7421_v29  ;;  %v7422_v36 = vadd.f32 %v6304_v32, %v5148_v31  ;;  %v6306_v37 = vpop.f32.mrb[55].mxu0 }
 0x4a9   :  { %v6674_v38 = vadd.f32 %v6673_v25, %v6611_v35  ;;  %6479 = vst [vmem:[#allocation7 + $0xd8] sm:$0xff] %v7422_v36  ;;  %v6542_v39 = vadd.f32 %v7422_v36, %v6541_v34  ;;  %v6612_v40 = vmul.f32 %v7422_v36, %v7422_v36 }
 0x4ab   :  { %v6675_v41 = vadd.f32 %v6674_v38, %v6612_v40 }
 0x4ac   :  { %v5153_v42 = vpop.f32.mrb[56].mxu1  ;;  %v6309_v43 = vpop.f32.mrb[56].mxu0 }
 0x4ad   :  { %v5155_v44 = vpop.f32.mrb[57].mxu1  ;;  %v7423_v45 = vadd.f32 %v6309_v43, %v5153_v42  ;;  %v6311_v46 = vpop.f32.mrb[57].mxu0 }
 0x4ae   :  { %v5156_v47 = vpop.f32.mrb[58].mxu1  ;;  %v6312_v48 = vpop.f32.mrb[58].mxu0 }
 0x4af   :  { %v5158_v49 = vpop.f32.mrb[59].mxu1  ;;  %6480 = vst [vmem:[#allocation7 + $0xe0] sm:$0xff] %v7423_v45  ;;  %v6543_v50 = vadd.f32 %v7423_v45, %v6542_v39  ;;  %v6613_v51 = vmul.f32 %v7423_v45, %v7423_v45  ;;  %v7424_v52 = vadd.f32 %v6312_v48, %v5156_v47  ;;  %v6314_v53 = vpop.f32.mrb[59].mxu0 }
 0x4b1   :  { %v6676_v54 = vadd.f32 %v6675_v41, %v6613_v51  ;;  %6481 = vst [vmem:[#allocation7 + $0xe8] sm:$0xff] %v7424_v52  ;;  %v6544_v55 = vadd.f32 %v7424_v52, %v6543_v50  ;;  %v6614_v56 = vmul.f32 %v7424_v52, %v7424_v52 }
 0x4b3   :  { %v6677_v57 = vadd.f32 %v6676_v54, %v6614_v56 }
 0x4b4   :  { %v5161_v58 = vpop.f32.mrb[60].mxu1  ;;  %v6317_v59 = vpop.f32.mrb[60].mxu0 }
 0x4b5   :  { %v5163_v60 = vpop.f32.mrb[61].mxu1  ;;  %v7425_v61 = vadd.f32 %v6317_v59, %v5161_v58  ;;  %v6319_v62 = vpop.f32.mrb[61].mxu0 }
 0x4b6   :  { %v5164_v63 = vpop.f32.mrb[62].mxu1  ;;  %v6320_v1 = vpop.f32.mrb[62].mxu0 }
 0x4b7   :  { %v5166_v2 = vpop.f32.mrb[63].mxu1  ;;  %6482 = vst [vmem:[#allocation7 + $0xf0] sm:$0xff] %v7425_v61  ;;  %v6545_v3 = vadd.f32 %v7425_v61, %v6544_v55  ;;  %v6615_v4 = vmul.f32 %v7425_v61, %v7425_v61  ;;  %v7426_v5 = vadd.f32 %v6320_v1, %v5164_v63  ;;  %v6322_v6 = vpop.f32.mrb[63].mxu0 }
 0x4b9   :  { %v6678_v7 = vadd.f32 %v6677_v57, %v6615_v4  ;;  %6483 = vst [vmem:[#allocation7 + $0xf8] sm:$0xff] %v7426_v5  ;;  %v6546_v8 = vadd.f32 %v7426_v5, %v6545_v3  ;;  %v6616_v9 = vmul.f32 %v7426_v5, %v7426_v5 }
 0x4bb   :  { %v6679_v0 = vadd.f32 %v6678_v7, %v6616_v9 }
 0x4bc   :  { %v5169_v10 = vpop.f32.mrb[64].mxu1  ;;  %v6325_v11 = vpop.f32.mrb[64].mxu0 }
 0x4bd   :  { %v5171_v12 = vpop.f32.mrb[65].mxu1  ;;  %v7427_v13 = vadd.f32 %v6325_v11, %v5169_v10  ;;  %v6327_v14 = vpop.f32.mrb[65].mxu0 }
 0x4be   :  { %v5172_v15 = vpop.f32.mrb[66].mxu1  ;;  %v6328_v16 = vpop.f32.mrb[66].mxu0 }
 0x4bf   :  { %v5174_v17 = vpop.f32.mrb[67].mxu1  ;;  %6484 = vst [vmem:[#allocation7 + $0x100] sm:$0xff] %v7427_v13  ;;  %v6547_v18 = vadd.f32 %v7427_v13, %v6546_v8  ;;  %v6617_v19 = vmul.f32 %v7427_v13, %v7427_v13  ;;  %v7428_v20 = vadd.f32 %v6328_v16, %v5172_v15  ;;  %v6330_v21 = vpop.f32.mrb[67].mxu0 }
 0x4c1   :  { %v6680_v22 = vadd.f32 %v6679_v0, %v6617_v19  ;;  %6485 = vst [vmem:[#allocation7 + $0x108] sm:$0xff] %v7428_v20  ;;  %v6548_v23 = vadd.f32 %v7428_v20, %v6547_v18  ;;  %v6618_v24 = vmul.f32 %v7428_v20, %v7428_v20 }
 0x4c3   :  { %v6681_v25 = vadd.f32 %v6680_v22, %v6618_v24 }
 0x4c4   :  { %v5177_v26 = vpop.f32.mrb[68].mxu1  ;;  %v6333_v27 = vpop.f32.mrb[68].mxu0 }
 0x4c5   :  { %v5179_v28 = vpop.f32.mrb[69].mxu1  ;;  %v7429_v29 = vadd.f32 %v6333_v27, %v5177_v26  ;;  %v6335_v30 = vpop.f32.mrb[69].mxu0 }
 0x4c6   :  { %v5180_v31 = vpop.f32.mrb[70].mxu1  ;;  %v6336_v32 = vpop.f32.mrb[70].mxu0 }
 0x4c7   :  { %v5182_v33 = vpop.f32.mrb[71].mxu1  ;;  %6486 = vst [vmem:[#allocation7 + $0x110] sm:$0xff] %v7429_v29  ;;  %v6549_v34 = vadd.f32 %v7429_v29, %v6548_v23  ;;  %v6619_v35 = vmul.f32 %v7429_v29, %v7429_v29  ;;  %v7430_v36 = vadd.f32 %v6336_v32, %v5180_v31  ;;  %v6338_v37 = vpop.f32.mrb[71].mxu0 }
 0x4c9   :  { %v6682_v38 = vadd.f32 %v6681_v25, %v6619_v35  ;;  %6487 = vst [vmem:[#allocation7 + $0x118] sm:$0xff] %v7430_v36  ;;  %v6550_v39 = vadd.f32 %v7430_v36, %v6549_v34  ;;  %v6620_v40 = vmul.f32 %v7430_v36, %v7430_v36 }
 0x4cb   :  { %v6683_v41 = vadd.f32 %v6682_v38, %v6620_v40 }
 0x4cc   :  { %v5185_v42 = vpop.f32.mrb[72].mxu1  ;;  %v6341_v43 = vpop.f32.mrb[72].mxu0 }
 0x4cd   :  { %v5187_v44 = vpop.f32.mrb[73].mxu1  ;;  %v7431_v45 = vadd.f32 %v6341_v43, %v5185_v42  ;;  %v6343_v46 = vpop.f32.mrb[73].mxu0 }
 0x4ce   :  { %v5188_v47 = vpop.f32.mrb[74].mxu1  ;;  %v6344_v48 = vpop.f32.mrb[74].mxu0 }
 0x4cf   :  { %v5190_v49 = vpop.f32.mrb[75].mxu1  ;;  %6488 = vst [vmem:[#allocation7 + $0x120] sm:$0xff] %v7431_v45  ;;  %v6551_v50 = vadd.f32 %v7431_v45, %v6550_v39  ;;  %v6621_v51 = vmul.f32 %v7431_v45, %v7431_v45  ;;  %v7432_v52 = vadd.f32 %v6344_v48, %v5188_v47  ;;  %v6346_v53 = vpop.f32.mrb[75].mxu0 }
 0x4d1   :  { %v6684_v54 = vadd.f32 %v6683_v41, %v6621_v51  ;;  %6489 = vst [vmem:[#allocation7 + $0x128] sm:$0xff] %v7432_v52  ;;  %v6552_v55 = vadd.f32 %v7432_v52, %v6551_v50  ;;  %v6622_v56 = vmul.f32 %v7432_v52, %v7432_v52 }
 0x4d3   :  { %v6685_v57 = vadd.f32 %v6684_v54, %v6622_v56 }
 0x4d4   :  { %v5193_v58 = vpop.f32.mrb[76].mxu1  ;;  %v6349_v59 = vpop.f32.mrb[76].mxu0 }
 0x4d5   :  { %v5195_v60 = vpop.f32.mrb[77].mxu1  ;;  %v7433_v61 = vadd.f32 %v6349_v59, %v5193_v58  ;;  %v6351_v62 = vpop.f32.mrb[77].mxu0 }
 0x4d6   :  { %v5196_v63 = vpop.f32.mrb[78].mxu1  ;;  %v6352_v1 = vpop.f32.mrb[78].mxu0 }
 0x4d7   :  { %v5198_v2 = vpop.f32.mrb[79].mxu1  ;;  %6490 = vst [vmem:[#allocation7 + $0x130] sm:$0xff] %v7433_v61  ;;  %v6553_v3 = vadd.f32 %v7433_v61, %v6552_v55  ;;  %v6623_v4 = vmul.f32 %v7433_v61, %v7433_v61  ;;  %v7434_v5 = vadd.f32 %v6352_v1, %v5196_v63  ;;  %v6354_v6 = vpop.f32.mrb[79].mxu0 }
 0x4d9   :  { %v6686_v7 = vadd.f32 %v6685_v57, %v6623_v4  ;;  %6491 = vst [vmem:[#allocation7 + $0x138] sm:$0xff] %v7434_v5  ;;  %v6554_v8 = vadd.f32 %v7434_v5, %v6553_v3  ;;  %v6624_v9 = vmul.f32 %v7434_v5, %v7434_v5 }
 0x4db   :  { %v6687_v0 = vadd.f32 %v6686_v7, %v6624_v9 }
 0x4dc   :  { %v5201_v10 = vpop.f32.mrb[80].mxu1  ;;  %v6357_v11 = vpop.f32.mrb[80].mxu0 }
 0x4dd   :  { %v5203_v12 = vpop.f32.mrb[81].mxu1  ;;  %v7435_v13 = vadd.f32 %v6357_v11, %v5201_v10  ;;  %v6359_v14 = vpop.f32.mrb[81].mxu0 }
 0x4de   :  { %v5204_v15 = vpop.f32.mrb[82].mxu1  ;;  %v6360_v16 = vpop.f32.mrb[82].mxu0 }
 0x4df   :  { %v5206_v17 = vpop.f32.mrb[83].mxu1  ;;  %6492 = vst [vmem:[#allocation7 + $0x140] sm:$0xff] %v7435_v13  ;;  %v6555_v18 = vadd.f32 %v7435_v13, %v6554_v8  ;;  %v6625_v19 = vmul.f32 %v7435_v13, %v7435_v13  ;;  %v7436_v20 = vadd.f32 %v6360_v16, %v5204_v15  ;;  %v6362_v21 = vpop.f32.mrb[83].mxu0 }
 0x4e1   :  { %v6688_v22 = vadd.f32 %v6687_v0, %v6625_v19  ;;  %6493 = vst [vmem:[#allocation7 + $0x148] sm:$0xff] %v7436_v20  ;;  %v6556_v23 = vadd.f32 %v7436_v20, %v6555_v18  ;;  %v6626_v24 = vmul.f32 %v7436_v20, %v7436_v20 }
 0x4e3   :  { %v6689_v25 = vadd.f32 %v6688_v22, %v6626_v24 }
 0x4e4   :  { %v5209_v26 = vpop.f32.mrb[84].mxu1  ;;  %v6365_v27 = vpop.f32.mrb[84].mxu0 }
 0x4e5   :  { %v5211_v28 = vpop.f32.mrb[85].mxu1  ;;  %v7437_v29 = vadd.f32 %v6365_v27, %v5209_v26  ;;  %v6367_v30 = vpop.f32.mrb[85].mxu0 }
 0x4e6   :  { %v5212_v31 = vpop.f32.mrb[86].mxu1  ;;  %v6368_v32 = vpop.f32.mrb[86].mxu0 }
 0x4e7   :  { %v5214_v33 = vpop.f32.mrb[87].mxu1  ;;  %6494 = vst [vmem:[#allocation7 + $0x150] sm:$0xff] %v7437_v29  ;;  %v6557_v34 = vadd.f32 %v7437_v29, %v6556_v23  ;;  %v6627_v35 = vmul.f32 %v7437_v29, %v7437_v29  ;;  %v7438_v36 = vadd.f32 %v6368_v32, %v5212_v31  ;;  %v6370_v37 = vpop.f32.mrb[87].mxu0 }
 0x4e9   :  { %v6690_v38 = vadd.f32 %v6689_v25, %v6627_v35  ;;  %6495 = vst [vmem:[#allocation7 + $0x158] sm:$0xff] %v7438_v36  ;;  %v6558_v39 = vadd.f32 %v7438_v36, %v6557_v34  ;;  %v6628_v40 = vmul.f32 %v7438_v36, %v7438_v36 }
 0x4eb   :  { %v6691_v41 = vadd.f32 %v6690_v38, %v6628_v40 }
 0x4ec   :  { %v5217_v42 = vpop.f32.mrb[88].mxu1  ;;  %v6373_v43 = vpop.f32.mrb[88].mxu0 }
 0x4ed   :  { %v5219_v44 = vpop.f32.mrb[89].mxu1  ;;  %v7439_v45 = vadd.f32 %v6373_v43, %v5217_v42  ;;  %v6375_v46 = vpop.f32.mrb[89].mxu0 }
 0x4ee   :  { %v5220_v47 = vpop.f32.mrb[90].mxu1  ;;  %v6376_v48 = vpop.f32.mrb[90].mxu0 }
 0x4ef   :  { %v5222_v49 = vpop.f32.mrb[91].mxu1  ;;  %6496 = vst [vmem:[#allocation7 + $0x160] sm:$0xff] %v7439_v45  ;;  %v6559_v50 = vadd.f32 %v7439_v45, %v6558_v39  ;;  %v6629_v51 = vmul.f32 %v7439_v45, %v7439_v45  ;;  %v7440_v52 = vadd.f32 %v6376_v48, %v5220_v47  ;;  %v6378_v53 = vpop.f32.mrb[91].mxu0 }
 0x4f1   :  { %v6692_v54 = vadd.f32 %v6691_v41, %v6629_v51  ;;  %6497 = vst [vmem:[#allocation7 + $0x168] sm:$0xff] %v7440_v52  ;;  %v6560_v55 = vadd.f32 %v7440_v52, %v6559_v50  ;;  %v6630_v56 = vmul.f32 %v7440_v52, %v7440_v52 }
 0x4f3   :  { %v6693_v57 = vadd.f32 %v6692_v54, %v6630_v56 }
 0x4f4   :  { %v5225_v58 = vpop.f32.mrb[92].mxu1  ;;  %v6381_v59 = vpop.f32.mrb[92].mxu0 }
 0x4f5   :  { %v5227_v60 = vpop.f32.mrb[93].mxu1  ;;  %v7441_v61 = vadd.f32 %v6381_v59, %v5225_v58  ;;  %v6383_v62 = vpop.f32.mrb[93].mxu0 }
 0x4f6   :  { %v5228_v63 = vpop.f32.mrb[94].mxu1  ;;  %v6384_v1 = vpop.f32.mrb[94].mxu0 }
 0x4f7   :  { %v5230_v2 = vpop.f32.mrb[95].mxu1  ;;  %6498 = vst [vmem:[#allocation7 + $0x170] sm:$0xff] %v7441_v61  ;;  %v6561_v3 = vadd.f32 %v7441_v61, %v6560_v55  ;;  %v6631_v4 = vmul.f32 %v7441_v61, %v7441_v61  ;;  %v7442_v5 = vadd.f32 %v6384_v1, %v5228_v63  ;;  %v6386_v6 = vpop.f32.mrb[95].mxu0 }
 0x4f9   :  { %v6694_v7 = vadd.f32 %v6693_v57, %v6631_v4  ;;  %6499 = vst [vmem:[#allocation7 + $0x178] sm:$0xff] %v7442_v5  ;;  %v6562_v8 = vadd.f32 %v7442_v5, %v6561_v3  ;;  %v6632_v9 = vmul.f32 %v7442_v5, %v7442_v5 }
 0x4fb   :  { %v6695_v0 = vadd.f32 %v6694_v7, %v6632_v9 }
 0x4fc   :  { %v5233_v10 = vpop.f32.mrb[96].mxu1  ;;  %v6389_v11 = vpop.f32.mrb[96].mxu0 }
 0x4fd   :  { %v5235_v12 = vpop.f32.mrb[97].mxu1  ;;  %v7443_v13 = vadd.f32 %v6389_v11, %v5233_v10  ;;  %v6391_v14 = vpop.f32.mrb[97].mxu0 }
 0x4fe   :  { %v5236_v15 = vpop.f32.mrb[98].mxu1  ;;  %v6392_v16 = vpop.f32.mrb[98].mxu0 }
 0x4ff   :  { %v5238_v17 = vpop.f32.mrb[99].mxu1  ;;  %6500 = vst [vmem:[#allocation7 + $0x180] sm:$0xff] %v7443_v13  ;;  %v6563_v18 = vadd.f32 %v7443_v13, %v6562_v8  ;;  %v6633_v19 = vmul.f32 %v7443_v13, %v7443_v13  ;;  %v7444_v20 = vadd.f32 %v6392_v16, %v5236_v15  ;;  %v6394_v21 = vpop.f32.mrb[99].mxu0 }
 0x501   :  { %v6696_v22 = vadd.f32 %v6695_v0, %v6633_v19  ;;  %6501 = vst [vmem:[#allocation7 + $0x188] sm:$0xff] %v7444_v20  ;;  %v6564_v23 = vadd.f32 %v7444_v20, %v6563_v18  ;;  %v6634_v24 = vmul.f32 %v7444_v20, %v7444_v20 }
 0x503   :  { %v6697_v25 = vadd.f32 %v6696_v22, %v6634_v24 }
 0x504   :  { %v5241_v26 = vpop.f32.mrb[100].mxu1  ;;  %v6397_v27 = vpop.f32.mrb[100].mxu0 }
 0x505   :  { %v5243_v28 = vpop.f32.mrb[101].mxu1  ;;  %v7445_v29 = vadd.f32 %v6397_v27, %v5241_v26  ;;  %v6399_v30 = vpop.f32.mrb[101].mxu0 }
 0x506   :  { %v5244_v31 = vpop.f32.mrb[102].mxu1  ;;  %v6400_v32 = vpop.f32.mrb[102].mxu0 }
 0x507   :  { %v5246_v33 = vpop.f32.mrb[103].mxu1  ;;  %6502 = vst [vmem:[#allocation7 + $0x190] sm:$0xff] %v7445_v29  ;;  %v6565_v34 = vadd.f32 %v7445_v29, %v6564_v23  ;;  %v6635_v35 = vmul.f32 %v7445_v29, %v7445_v29  ;;  %v7446_v36 = vadd.f32 %v6400_v32, %v5244_v31  ;;  %v6402_v37 = vpop.f32.mrb[103].mxu0 }
 0x509   :  { %v6698_v38 = vadd.f32 %v6697_v25, %v6635_v35  ;;  %6503 = vst [vmem:[#allocation7 + $0x198] sm:$0xff] %v7446_v36  ;;  %v6566_v39 = vadd.f32 %v7446_v36, %v6565_v34  ;;  %v6636_v40 = vmul.f32 %v7446_v36, %v7446_v36 }
 0x50b   :  { %v6699_v41 = vadd.f32 %v6698_v38, %v6636_v40 }
 0x50c   :  { %v5249_v42 = vpop.f32.mrb[104].mxu1  ;;  %v6405_v43 = vpop.f32.mrb[104].mxu0 }
 0x50d   :  { %v5251_v44 = vpop.f32.mrb[105].mxu1  ;;  %v7447_v45 = vadd.f32 %v6405_v43, %v5249_v42  ;;  %v6407_v46 = vpop.f32.mrb[105].mxu0 }
 0x50e   :  { %v5252_v47 = vpop.f32.mrb[106].mxu1  ;;  %v6408_v48 = vpop.f32.mrb[106].mxu0 }
 0x50f   :  { %v5254_v49 = vpop.f32.mrb[107].mxu1  ;;  %6504 = vst [vmem:[#allocation7 + $0x1a0] sm:$0xff] %v7447_v45  ;;  %v6567_v50 = vadd.f32 %v7447_v45, %v6566_v39  ;;  %v6637_v51 = vmul.f32 %v7447_v45, %v7447_v45  ;;  %v7448_v52 = vadd.f32 %v6408_v48, %v5252_v47  ;;  %v6410_v53 = vpop.f32.mrb[107].mxu0 }
 0x511   :  { %v6700_v54 = vadd.f32 %v6699_v41, %v6637_v51  ;;  %6505 = vst [vmem:[#allocation7 + $0x1a8] sm:$0xff] %v7448_v52  ;;  %v6568_v55 = vadd.f32 %v7448_v52, %v6567_v50  ;;  %v6638_v56 = vmul.f32 %v7448_v52, %v7448_v52 }
 0x513   :  { %v6701_v57 = vadd.f32 %v6700_v54, %v6638_v56 }
 0x514   :  { %v5257_v58 = vpop.f32.mrb[108].mxu1  ;;  %v6413_v59 = vpop.f32.mrb[108].mxu0 }
 0x515   :  { %v5259_v60 = vpop.f32.mrb[109].mxu1  ;;  %v7449_v61 = vadd.f32 %v6413_v59, %v5257_v58  ;;  %v6415_v62 = vpop.f32.mrb[109].mxu0 }
 0x516   :  { %v5260_v63 = vpop.f32.mrb[110].mxu1  ;;  %v6416_v1 = vpop.f32.mrb[110].mxu0 }
 0x517   :  { %v5262_v2 = vpop.f32.mrb[111].mxu1  ;;  %6506 = vst [vmem:[#allocation7 + $0x1b0] sm:$0xff] %v7449_v61  ;;  %v6569_v3 = vadd.f32 %v7449_v61, %v6568_v55  ;;  %v6639_v4 = vmul.f32 %v7449_v61, %v7449_v61  ;;  %v7450_v5 = vadd.f32 %v6416_v1, %v5260_v63  ;;  %v6418_v6 = vpop.f32.mrb[111].mxu0 }
 0x519   :  { %v6702_v7 = vadd.f32 %v6701_v57, %v6639_v4  ;;  %6507 = vst [vmem:[#allocation7 + $0x1b8] sm:$0xff] %v7450_v5  ;;  %v6570_v8 = vadd.f32 %v7450_v5, %v6569_v3  ;;  %v6640_v9 = vmul.f32 %v7450_v5, %v7450_v5 }
 0x51b   :  { %v6703_v0 = vadd.f32 %v6702_v7, %v6640_v9 }
 0x51c   :  { %v5265_v10 = vpop.f32.mrb[112].mxu1 }
 0x51d   :  { %v6421_v11 = vpop.f32.mrb[112].mxu0  ;;  %v5267_v12 = vpop.f32.mrb[113].mxu1 }
 0x51e   :  { %v7451_v13 = vadd.f32 %v6421_v11, %v5265_v10  ;;  %v6423_v14 = vpop.f32.mrb[113].mxu0  ;;  %v5268_v15 = vpop.f32.mrb[114].mxu1 }
 0x51f   :  { %v6424_v16 = vpop.f32.mrb[114].mxu0  ;;  %v5270_v17 = vpop.f32.mrb[115].mxu1 }
 0x520   :  { %6508 = vst [vmem:[#allocation7 + $0x1c0] sm:$0xff] %v7451_v13  ;;  %v6571_v18 = vadd.f32 %v7451_v13, %v6570_v8  ;;  %v6641_v19 = vmul.f32 %v7451_v13, %v7451_v13  ;;  %v7452_v20 = vadd.f32 %v6424_v16, %v5268_v15  ;;  %v6426_v21 = vpop.f32.mrb[115].mxu0 }
 0x522   :  { %v6704_v22 = vadd.f32 %v6703_v0, %v6641_v19  ;;  %6509 = vst [vmem:[#allocation7 + $0x1c8] sm:$0xff] %v7452_v20  ;;  %v6572_v23 = vadd.f32 %v7452_v20, %v6571_v18  ;;  %v6642_v24 = vmul.f32 %v7452_v20, %v7452_v20 }
 0x524   :  { %v6705_v25 = vadd.f32 %v6704_v22, %v6642_v24  ;;  %v5273_v26 = vpop.f32.mrb[116].mxu1 }
 0x525   :  { %v6429_v27 = vpop.f32.mrb[116].mxu0  ;;  %v5275_v28 = vpop.f32.mrb[117].mxu1 }
 0x526   :  { %v7453_v29 = vadd.f32 %v6429_v27, %v5273_v26  ;;  %v6431_v30 = vpop.f32.mrb[117].mxu0  ;;  %v5276_v31 = vpop.f32.mrb[118].mxu1 }
 0x527   :  { %v6432_v32 = vpop.f32.mrb[118].mxu0  ;;  %v5278_v33 = vpop.f32.mrb[119].mxu1 }
 0x528   :  { %6510 = vst [vmem:[#allocation7 + $0x1d0] sm:$0xff] %v7453_v29  ;;  %v6573_v34 = vadd.f32 %v7453_v29, %v6572_v23  ;;  %v6643_v35 = vmul.f32 %v7453_v29, %v7453_v29  ;;  %v7454_v36 = vadd.f32 %v6432_v32, %v5276_v31  ;;  %v6434_v37 = vpop.f32.mrb[119].mxu0 }
 0x52a   :  { %v6706_v38 = vadd.f32 %v6705_v25, %v6643_v35  ;;  %6511 = vst [vmem:[#allocation7 + $0x1d8] sm:$0xff] %v7454_v36  ;;  %v6574_v39 = vadd.f32 %v7454_v36, %v6573_v34  ;;  %v6644_v40 = vmul.f32 %v7454_v36, %v7454_v36 }
 0x52c   :  { %v6707_v41 = vadd.f32 %v6706_v38, %v6644_v40  ;;  %v5281_v42 = vpop.f32.mrb[120].mxu1 }
 0x52d   :  { %v6437_v43 = vpop.f32.mrb[120].mxu0  ;;  %v5283_v44 = vpop.f32.mrb[121].mxu1 }
 0x52e   :  { %v7455_v45 = vadd.f32 %v6437_v43, %v5281_v42  ;;  %v6439_v46 = vpop.f32.mrb[121].mxu0  ;;  %v5284_v47 = vpop.f32.mrb[122].mxu1 }
 0x52f   :  { %v6440_v48 = vpop.f32.mrb[122].mxu0  ;;  %v5286_v49 = vpop.f32.mrb[123].mxu1 }
 0x530   :  { %6512 = vst [vmem:[#allocation7 + $0x1e0] sm:$0xff] %v7455_v45  ;;  %v6575_v50 = vadd.f32 %v7455_v45, %v6574_v39  ;;  %v6645_v51 = vmul.f32 %v7455_v45, %v7455_v45  ;;  %v7456_v52 = vadd.f32 %v6440_v48, %v5284_v47  ;;  %v6442_v53 = vpop.f32.mrb[123].mxu0 }
 0x532   :  { %v6708_v54 = vadd.f32 %v6707_v41, %v6645_v51  ;;  %6513 = vst [vmem:[#allocation7 + $0x1e8] sm:$0xff] %v7456_v52  ;;  %v6576_v55 = vadd.f32 %v7456_v52, %v6575_v50  ;;  %v6646_v56 = vmul.f32 %v7456_v52, %v7456_v52 }
 0x534   :  { %v6709_v57 = vadd.f32 %v6708_v54, %v6646_v56  ;;  %v5289_v58 = vpop.f32.mrb[124].mxu1 }
 0x535   :  { %v6445_v59 = vpop.f32.mrb[124].mxu0  ;;  %v5291_v60 = vpop.f32.mrb[125].mxu1 }
 0x536   :  { %v7457_v61 = vadd.f32 %v6445_v59, %v5289_v58  ;;  %v6447_v62 = vpop.f32.mrb[125].mxu0  ;;  %v5292_v63 = vpop.f32.mrb[126].mxu1 }
 0x537   :  { %v6448_v1 = vpop.f32.mrb[126].mxu0  ;;  %v5294_v2 = vpop.f32.mrb[127].mxu1 }
 0x538   :  { %6514 = vst [vmem:[#allocation7 + $0x1f0] sm:$0xff] %v7457_v61  ;;  %v6577_v3 = vadd.f32 %v7457_v61, %v6576_v55  ;;  %v6647_v4 = vmul.f32 %v7457_v61, %v7457_v61  ;;  %v7458_v5 = vadd.f32 %v6448_v1, %v5292_v63  ;;  %v6450_v6 = vpop.f32.mrb[127].mxu0 }
 0x53a   :  { %v6710_v7 = vadd.f32 %v6709_v57, %v6647_v4  ;;  %6515 = vst [vmem:[#allocation7 + $0x1f8] sm:$0xff] %v7458_v5  ;;  %v6578_v8 = vadd.f32 %v7458_v5, %v6577_v3  ;;  %v6648_v9 = vmul.f32 %v7458_v5, %v7458_v5 }
 0x53b   :  { %8420 = shalt.err (!%p8417_p6)
}
 0x53c   :  { %s8421_s15 = scalar_lea.hbm %s8685_s2, 8192 }
 0x53d   :  { %p8422_p7 = scmp.ne.s32.totalorder %s8685_s2, %s8421_s15  ;;  %p8425_p8 = scmp.lt.u32.totalorder %s8421_s15, %s8685_s2 }
 0x53f   :  { %p8427_p9 = pnand %p8425_p8, %p8422_p7 }
 0x541   :  { %8430 = shalt.err (!%p8427_p9)
}
 0x542   :  { %s8468_s20 = smov 128   ;;  %s8469_s21 = smov 8   ;;  %v6579_v0 = vrot.slane %v6578_v8, 4  ;;  %v6711_v10 = vadd.f32 %v6710_v7, %v6648_v9  ;;  %vm6718_vm0 = vcmask 1040384   ;;  %vm6720_vm1 = vcmask 1041408  }
 0x543   :  { %6734 = dma.vmem_to_hbm [thread:$0]  %s6729_s11, 8192, %s8685_s2, [#allocation4], %s8468_s20, %s8468_s20, %s8469_s21  }
 0x544   :  { %v6580_v11 = vadd.f32 %v6579_v0, %v6578_v8  ;;  %v6712_v12 = vrot.slane %v6711_v10, 4  ;;  %s8470_s24 = smov [#allocation8]  }
 0x545   :  { %s6741_s25 = sshll.u32 %s8470_s24, 4  ;;  %s6742_s25 = int_to_ptr.vmem [resolvable:$true] %s6741_s25 }
 0x546   :  { %v6581_v13 = vrot.slane %v6580_v11, 2  ;;  %v6713_v14 = vadd.f32 %v6712_v12, %v6711_v10  ;;  %s8431_s2 = scalar_lea.vmem %s6742_s25, 128  ;;  %p8436_p11 = scmp.lt.s32.totalorder %s6742_s25, %s6742_s25 }
 0x547   :  { %p8432_p10 = scmp.ne.s32.totalorder %s6742_s25, %s8431_s2  ;;  %p8437_p12 = scmp.lt.s32.totalorder %s8431_s2, %s8431_s2 }
 0x548   :  { %v6582_v15 = vadd.f32 %v6581_v13, %v6580_v11  ;;  %v6714_v16 = vrot.slane %v6713_v14, 2 }
 0x549   :  { %p8438_p13 = por %p8437_p12, %p8436_p11 }
 0x54a   :  { %v6583_v17 = vrot.slane %v6582_v15, 1  ;;  %v6715_v18 = vadd.f32 %v6714_v16, %v6713_v14 }
 0x54b   :  { %p8439_p0 = pnand %p8438_p13, %p8432_p10 }
 0x54c   :  { %v6716_v19 = vrot.slane %v6715_v18, 1  ;;  %v6584_v20 = vadd.f32 %v6583_v17, %v6582_v15 }
 0x54e   :  { %v6717_v21 = vadd.f32 %v6716_v19, %v6715_v18 }
 0x550   :  { %v6719_v22 = vsel %vm6718_vm0, %v6584_v20, %v6717_v21 }
 0x551   :  { %v6721_v23 = vsel %vm6720_vm1, %v6719_v22, 0.0 }
 0x552   :  { %6722 = vst [vmem:[#allocation8] sm:$0xff] %v6721_v23 }
 0x553   :  { %8442 = shalt.err (!%p8439_p0)
}
 0x554   :  { %s8443_s28 = scalar_lea.hbm %s8686_s3, 128 }
 0x555   :  { %p8444_p1 = scmp.ne.s32.totalorder %s8686_s3, %s8443_s28  ;;  %p8447_p2 = scmp.lt.u32.totalorder %s8443_s28, %s8686_s3 }
 0x557   :  { %p8449_p3 = pnand %p8447_p2, %p8444_p1 }
 0x559   :  { %8452 = shalt.err (!%p8449_p3)
}
 0x55a   :  { %6744 = dma.vmem_to_hbm [thread:$0]  %s6742_s25, 128, %s8686_s3, [#allocation9]  }
 0x55b   :  { %8457 = dma.done.wait [#allocation4], 8192  }
 0x55c   :  { %8458 = vsyncadd [#allocation4], 4294959104 }
 0x55d   :  { %8459 = dma.done.wait [#allocation9], 128  }
 0x55e   :  { %8460 = vsyncadd [#allocation9], 4294967168 }
 0x55f   :  { %6751 = vsyncpa [#allocation3], 1 }
 0x560   :  { %6752 = vsyncpa [#allocation6], 1 }
 0x561   :  { %6753 = vsyncpa [#allocation4], 1 }
 0x562   :  { %6754 = vsyncpa [#allocation9], 1 }

// kernel: discriminator_forward.13
= control target key start
LH: loop header
LB: loop body
LE: loop exit
PB: predicated region body
PF: predicated region fallthrough
CT: control target
= control target key end

     0   :  { %9 = vsyncpa [#allocation3], 0  ;;  %s2409_s0 = inlined_call_operand.hbm [shape: bf16[32,2048], index: 0, kind: input, shape index: {}]   ;;  %s2410_s1 = inlined_call_operand.hbm [shape: bf16[2048,128], index: 1, kind: input, shape index: {}]   ;;  %s2411_s2 = inlined_call_operand.hbm [shape: f32[32,128], index: 2, kind: output, shape index: {0}]   ;;  %s2412_s3 = inlined_call_operand.hbm [shape: f32[8,128], index: 3, kind: output, shape index: {1}]  }
   0x1   :  { %10 = vsyncpa [#allocation6], 0 }
   0x2   :  { %11 = vsyncpa [#allocation4], 0 }
   0x3   :  { %12 = vsyncpa [#allocation9], 0  ;;  %s2332_s12 = smov [#allocation2]   ;;  %s2236_s16 = scalar_lea.hbm %s2409_s0, 4096 }
   0x4   :  { %s18_s13 = sshll.u32 %s2332_s12, 4  ;;  %p2237_p0 = scmp.ne.s32.totalorder %s2409_s0, %s2236_s16  ;;  %s19_s13 = int_to_ptr.vmem [resolvable:$true] %s18_s13 }
   0x5   :  { %p2240_p1 = scmp.lt.u32.totalorder %s2236_s16, %s2409_s0 }
   0x7   :  { %p2242_p2 = pnand %p2240_p1, %p2237_p0 }
   0x9   :  { %2245 = shalt.err (!%p2242_p2)
}
   0xa   :  { %s2246_s21 = scalar_lea.vmem %s19_s13, 4096  ;;  %p2251_p4 = scmp.lt.s32.totalorder %s19_s13, %s19_s13 }
   0xb   :  { %p2247_p3 = scmp.ne.s32.totalorder %s19_s13, %s2246_s21  ;;  %p2252_p5 = scmp.lt.s32.totalorder %s2246_s21, %s2246_s21 }
   0xd   :  { %p2253_p6 = por %p2252_p5, %p2251_p4 }
   0xf   :  { %p2254_p7 = pnand %p2253_p6, %p2247_p3 }
  0x11   :  { %2257 = shalt.err (!%p2254_p7)
}
  0x12   :  { %s2333_s22 = smov 1024   ;;  %s2334_s23 = smov 64  }
  0x13   :  { %24 = dma.hbm_to_vmem [thread:$0]  %s2409_s0, 4096, %s19_s13, [#allocation3], %s2333_s22, %s2333_s22, %s2334_s23  }
  0x14   :  { %s2335_s26 = smov [#allocation5]   ;;  %s2258_s30 = scalar_lea.hbm %s2410_s1, 16384 }
  0x15   :  { %s30_s27 = sshll.u32 %s2335_s26, 4  ;;  %p2259_p8 = scmp.ne.s32.totalorder %s2410_s1, %s2258_s30  ;;  %s31_s27 = int_to_ptr.vmem [resolvable:$true] %s30_s27 }
  0x16   :  { %p2262_p9 = scmp.lt.u32.totalorder %s2258_s30, %s2410_s1 }
  0x18   :  { %p2264_p10 = pnand %p2262_p9, %p2259_p8 }
  0x1a   :  { %2267 = shalt.err (!%p2264_p10)
}
  0x1b   :  { %s2268_s8 = scalar_lea.vmem %s31_s27, 16384  ;;  %p2273_p12 = scmp.lt.s32.totalorder %s31_s27, %s31_s27 }
  0x1c   :  { %p2269_p11 = scmp.ne.s32.totalorder %s31_s27, %s2268_s8  ;;  %p2274_p13 = scmp.lt.s32.totalorder %s2268_s8, %s2268_s8 }
  0x1e   :  { %p2275_p0 = por %p2274_p13, %p2273_p12 }
  0x20   :  { %p2276_p1 = pnand %p2275_p0, %p2269_p11 }
  0x22   :  { %2279 = shalt.err (!%p2276_p1)
}
  0x23   :  { %s2336_s0 = smov 4  }
  0x24   :  { %36 = dma.hbm_to_vmem [thread:$0]  %s2410_s1, 16384, %s31_s27, [#allocation6], %s2334_s23, %s2334_s23, %s2336_s0  }
  0x25   :  { %2324 = dma.done.wait [#allocation3], 4096  }
  0x26   :  { %2325 = vsyncadd [#allocation3], 4294963200 }
  0x27   :  { %2326 = dma.done.wait [#allocation6], 16384  }
  0x28   :  { %2327 = vsyncadd [#allocation6], 4294950912  ;;  %v2108_v0 = vld [vmem:[#allocation5 + $0x40] sm:$0xff]   ;;  %v2112_v4 = vld [vmem:[#allocation5 + $0x48] sm:$0xff]   ;;  %s2337_s1 = smov [#allocation7]  }
  0x29   :  { %v2109_v1 = vld [vmem:[#allocation5 + $0xc0] sm:$0xff]   ;;  %1875 = vmatprep.subr.bf16.mxu0 %v2108_v0  ;;  %v2113_v5 = vld [vmem:[#allocation5 + $0xc8] sm:$0xff]   ;;  %v2116_v8 = vld [vmem:[#allocation5 + $0x50] sm:$0xff]   ;;  %s1688_s11 = sshll.u32 %s2337_s1, 4  ;;  %s1689_s11 = int_to_ptr.vmem [resolvable:$true] %s1688_s11 }
  0x2a   :  { %v2110_v2 = vld [vmem:[#allocation5] sm:$0xff]   ;;  %1903 = vmatprep.subr.bf16.mxu1 %v2109_v1  ;;  %v2114_v6 = vld [vmem:[#allocation5 + $0x8] sm:$0xff]   ;;  %v2117_v9 = vld [vmem:[#allocation5 + $0xd0] sm:$0xff]   ;;  %s2280_s12 = scalar_lea.vmem %s1689_s11, 512  ;;  %p2285_p3 = scmp.lt.s32.totalorder %s1689_s11, %s1689_s11 }
  0x2b   :  { %v2111_v3 = vld [vmem:[#allocation5 + $0x80] sm:$0xff]   ;;  %1876 = vmatpush3.bf16.msra.mxu0 %v2110_v2  ;;  %v2115_v7 = vld [vmem:[#allocation5 + $0x88] sm:$0xff]   ;;  %v2118_v10 = vld [vmem:[#allocation5 + $0x10] sm:$0xff]   ;;  %p2281_p2 = scmp.ne.s32.totalorder %s1689_s11, %s2280_s12  ;;  %p2286_p4 = scmp.lt.s32.totalorder %s2280_s12, %s2280_s12 }
  0x2c   :  { %1904 = vmatpush3.bf16.msra.mxu1 %v2111_v3  ;;  %1877 = vmatprep.subr.bf16.mxu0 %v2112_v4  ;;  %v2119_v11 = vld [vmem:[#allocation5 + $0x90] sm:$0xff]   ;;  %v2120_v12 = vld [vmem:[#allocation5 + $0x58] sm:$0xff]   ;;  %v2124_v16 = vld [vmem:[#allocation5 + $0x60] sm:$0xff]  }
  0x2d   :  { %1905 = vmatprep.subr.bf16.mxu1 %v2113_v5  ;;  %v2121_v13 = vld [vmem:[#allocation5 + $0xd8] sm:$0xff]   ;;  %v2125_v17 = vld [vmem:[#allocation5 + $0xe0] sm:$0xff]   ;;  %v2128_v20 = vld [vmem:[#allocation5 + $0x68] sm:$0xff]   ;;  %p2287_p5 = por %p2286_p4, %p2285_p3 }
  0x2e   :  { %v2122_v14 = vld [vmem:[#allocation5 + $0x18] sm:$0xff]   ;;  %v2126_v18 = vld [vmem:[#allocation5 + $0x20] sm:$0xff]   ;;  %v2129_v21 = vld [vmem:[#allocation5 + $0xe8] sm:$0xff]  }
  0x2f   :  { %1878 = vmatpush3.bf16.msra.mxu0 %v2114_v6  ;;  %v2123_v15 = vld [vmem:[#allocation5 + $0x98] sm:$0xff]   ;;  %v2127_v19 = vld [vmem:[#allocation5 + $0xa0] sm:$0xff]   ;;  %v2130_v22 = vld [vmem:[#allocation5 + $0x28] sm:$0xff]   ;;  %p2288_p6 = pnand %p2287_p5, %p2281_p2 }
  0x30   :  { %1906 = vmatpush3.bf16.msra.mxu1 %v2115_v7  ;;  %1879 = vmatprep.subr.bf16.mxu0 %v2116_v8  ;;  %v2131_v23 = vld [vmem:[#allocation5 + $0xa8] sm:$0xff]   ;;  %v2132_v24 = vld [vmem:[#allocation5 + $0x70] sm:$0xff]   ;;  %v2136_v28 = vld [vmem:[#allocation5 + $0x78] sm:$0xff]  }
  0x31   :  { %1907 = vmatprep.subr.bf16.mxu1 %v2117_v9  ;;  %v2133_v25 = vld [vmem:[#allocation5 + $0xf0] sm:$0xff]   ;;  %v2137_v29 = vld [vmem:[#allocation5 + $0xf8] sm:$0xff]   ;;  %v44_v32 = vld [vmem:[#allocation2] sm:$0xff] }
  0x32   :  { %v2134_v26 = vld [vmem:[#allocation5 + $0x30] sm:$0xff]   ;;  %v2138_v30 = vld [vmem:[#allocation5 + $0x38] sm:$0xff]   ;;  %v52_v33 = vld [vmem:[#allocation2 + $0x40] sm:$0xff] }
  0x33   :  { %1880 = vmatpush3.bf16.msra.mxu0 %v2118_v10  ;;  %v2135_v27 = vld [vmem:[#allocation5 + $0xb0] sm:$0xff]   ;;  %v2139_v31 = vld [vmem:[#allocation5 + $0xb8] sm:$0xff]   ;;  %v45_v34 = vld [vmem:[#allocation2 + $0x8] sm:$0xff]  ;;  %v1715_v35 = vcombine.low %v44_v32, %v52_v33  ;;  %v1716_v36 = vcombine.high %v44_v32, %v52_v33 }
  0x34   :  { %1908 = vmatpush3.bf16.msra.mxu1 %v2119_v11  ;;  %1881 = vmatprep.subr.bf16.mxu0 %v2120_v12  ;;  %v53_v37 = vld [vmem:[#allocation2 + $0x48] sm:$0xff]  ;;  %v2140_v40 = vld [vmem:[#allocation5 + $0x140] sm:$0xff]   ;;  %v2148_v48 = vld [vmem:[#allocation5 + $0x150] sm:$0xff]  }
  0x35   :  { %1909 = vmatprep.subr.bf16.mxu1 %v2121_v13  ;;  %v1717_v38 = vcombine.low %v45_v34, %v53_v37  ;;  %v1718_v39 = vcombine.high %v45_v34, %v53_v37  ;;  %1292 = vmatprep.mubr.bf16.mxu0 %v1716_v36  ;;  %v2141_v41 = vld [vmem:[#allocation5 + $0x1c0] sm:$0xff]   ;;  %v2144_v44 = vld [vmem:[#allocation5 + $0x148] sm:$0xff]   ;;  %v2149_v49 = vld [vmem:[#allocation5 + $0x1d0] sm:$0xff]  }
  0x36   :  { %v2142_v42 = vld [vmem:[#allocation5 + $0x100] sm:$0xff]   ;;  %v2145_v45 = vld [vmem:[#allocation5 + $0x1c8] sm:$0xff]   ;;  %v2150_v50 = vld [vmem:[#allocation5 + $0x110] sm:$0xff]  }
  0x37   :  { %1882 = vmatpush3.bf16.msra.mxu0 %v2122_v14  ;;  %1341 = vmatprep.mubr.bf16.mxu1 %v1718_v39  ;;  %v2143_v43 = vld [vmem:[#allocation5 + $0x180] sm:$0xff]   ;;  %v2146_v46 = vld [vmem:[#allocation5 + $0x108] sm:$0xff]   ;;  %v2151_v51 = vld [vmem:[#allocation5 + $0x190] sm:$0xff]  }
  0x38   :  { %1910 = vmatpush3.bf16.msra.mxu1 %v2123_v15  ;;  %1883 = vmatprep.subr.bf16.mxu0 %v2124_v16  ;;  %v2147_v47 = vld [vmem:[#allocation5 + $0x188] sm:$0xff]   ;;  %v2152_v52 = vld [vmem:[#allocation5 + $0x158] sm:$0xff]   ;;  %v2156_v56 = vld [vmem:[#allocation5 + $0x160] sm:$0xff]  }
  0x39   :  { %1911 = vmatprep.subr.bf16.mxu1 %v2125_v17  ;;  %v2153_v53 = vld [vmem:[#allocation5 + $0x1d8] sm:$0xff]   ;;  %v2157_v57 = vld [vmem:[#allocation5 + $0x1e0] sm:$0xff]   ;;  %v2160_v60 = vld [vmem:[#allocation5 + $0x168] sm:$0xff]  }
  0x3a   :  { %v2154_v54 = vld [vmem:[#allocation5 + $0x118] sm:$0xff]   ;;  %v2158_v58 = vld [vmem:[#allocation5 + $0x120] sm:$0xff]   ;;  %v2161_v61 = vld [vmem:[#allocation5 + $0x1e8] sm:$0xff]  }
  0x3b   :  { %1884 = vmatpush3.bf16.msra.mxu0 %v2126_v18  ;;  %v2155_v55 = vld [vmem:[#allocation5 + $0x198] sm:$0xff]   ;;  %v2159_v59 = vld [vmem:[#allocation5 + $0x1a0] sm:$0xff]   ;;  %v61_v1 = vld [vmem:[#allocation2 + $0x88] sm:$0xff] }
  0x3c   :  { %1912 = vmatpush3.bf16.msra.mxu1 %v2127_v19  ;;  %1885 = vmatprep.subr.bf16.mxu0 %v2128_v20  ;;  %v60_v62 = vld [vmem:[#allocation2 + $0x80] sm:$0xff]  ;;  %v69_v2 = vld [vmem:[#allocation2 + $0xc8] sm:$0xff]  ;;  %v2164_v8 = vld [vmem:[#allocation5 + $0x170] sm:$0xff]  }
  0x3d   :  { %1913 = vmatprep.subr.bf16.mxu1 %v2129_v21  ;;  %v68_v63 = vld [vmem:[#allocation2 + $0xc0] sm:$0xff]  ;;  %v1734_v4 = vcombine.high %v61_v1, %v69_v2  ;;  %v2162_v5 = vld [vmem:[#allocation5 + $0x128] sm:$0xff]   ;;  %v1733_v6 = vcombine.low %v61_v1, %v69_v2  ;;  %v2165_v9 = vld [vmem:[#allocation5 + $0x1f0] sm:$0xff]  }
  0x3e   :  { %v1732_v0 = vcombine.high %v60_v62, %v68_v63  ;;  %v1731_v3 = vcombine.low %v60_v62, %v68_v63  ;;  %v2163_v7 = vld [vmem:[#allocation5 + $0x1a8] sm:$0xff]   ;;  %v2166_v10 = vld [vmem:[#allocation5 + $0x130] sm:$0xff]   ;;  %v2168_v12 = vld [vmem:[#allocation5 + $0x178] sm:$0xff]  }
  0x3f   :  { %1886 = vmatpush3.bf16.msra.mxu0 %v2130_v22  ;;  %v2167_v11 = vld [vmem:[#allocation5 + $0x1b0] sm:$0xff]   ;;  %v2169_v13 = vld [vmem:[#allocation5 + $0x1f8] sm:$0xff]   ;;  %v56_v1 = vld [vmem:[#allocation2 + $0x60] sm:$0xff] }
  0x40   :  { %1914 = vmatpush3.bf16.msra.mxu1 %v2131_v23  ;;  %1887 = vmatprep.subr.bf16.mxu0 %v2132_v24  ;;  %v2170_v14 = vld [vmem:[#allocation5 + $0x138] sm:$0xff]   ;;  %v46_v16 = vld [vmem:[#allocation2 + $0x10] sm:$0xff]  ;;  %v2172_v24 = vld [vmem:[#allocation5 + $0x240] sm:$0xff]  }
  0x41   :  { %1915 = vmatprep.subr.bf16.mxu1 %v2133_v25  ;;  %v2171_v15 = vld [vmem:[#allocation5 + $0x1b8] sm:$0xff]   ;;  %v54_v17 = vld [vmem:[#allocation2 + $0x50] sm:$0xff]  ;;  %v2173_v25 = vld [vmem:[#allocation5 + $0x2c0] sm:$0xff]  }
  0x42   :  { %v47_v18 = vld [vmem:[#allocation2 + $0x18] sm:$0xff]  ;;  %v1719_v20 = vcombine.low %v46_v16, %v54_v17  ;;  %v1720_v21 = vcombine.high %v46_v16, %v54_v17  ;;  %v62_v32 = vld [vmem:[#allocation2 + $0x90] sm:$0xff]  ;;  %v64_v16 = vld [vmem:[#allocation2 + $0xa0] sm:$0xff] }
  0x43   :  { %1888 = vmatpush3.bf16.msra.mxu0 %v2134_v26  ;;  %v55_v19 = vld [vmem:[#allocation2 + $0x58] sm:$0xff]  ;;  %v2174_v26 = vld [vmem:[#allocation5 + $0x200] sm:$0xff]   ;;  %v70_v33 = vld [vmem:[#allocation2 + $0xd0] sm:$0xff] }
  0x44   :  { %1916 = vmatpush3.bf16.msra.mxu1 %v2135_v27  ;;  %1889 = vmatprep.subr.bf16.mxu0 %v2136_v28  ;;  %v1721_v22 = vcombine.low %v47_v18, %v55_v19  ;;  %v1722_v23 = vcombine.high %v47_v18, %v55_v19  ;;  %v2175_v27 = vld [vmem:[#allocation5 + $0x280] sm:$0xff]   ;;  %v2176_v28 = vld [vmem:[#allocation5 + $0x248] sm:$0xff]   ;;  %v1736_v34 = vcombine.high %v62_v32, %v70_v33  ;;  %v2180_v36 = vld [vmem:[#allocation5 + $0x250] sm:$0xff]  }
  0x45   :  { %1917 = vmatprep.subr.bf16.mxu1 %v2137_v29  ;;  %v2177_v29 = vld [vmem:[#allocation5 + $0x2c8] sm:$0xff]   ;;  %v2181_v37 = vld [vmem:[#allocation5 + $0x2d0] sm:$0xff]   ;;  %v71_v39 = vld [vmem:[#allocation2 + $0xd8] sm:$0xff] }
  0x46   :  { %v2202_v62 = vld [vmem:[#allocation5 + $0x238] sm:$0xff]   ;;  %v72_v17 = vld [vmem:[#allocation2 + $0xe0] sm:$0xff] }
  0x47   :  { %1890 = vmatpush3.bf16.msra.mxu0 %v2138_v30  ;;  %v2178_v30 = vld [vmem:[#allocation5 + $0x208] sm:$0xff]   ;;  %v2203_v63 = vld [vmem:[#allocation5 + $0x2b8] sm:$0xff]   ;;  %v1740_v18 = vcombine.high %v64_v16, %v72_v17  ;;  %v1739_v19 = vcombine.low %v64_v16, %v72_v17 }
  0x48   :  { %1918 = vmatpush3.bf16.msra.mxu1 %v2139_v31  ;;  %1931 = vmatprep.subr.bf16.mxu0 %v2140_v40  ;;  %v2179_v31 = vld [vmem:[#allocation5 + $0x288] sm:$0xff]  }
  0x49   :  { %1959 = vmatprep.subr.bf16.mxu1 %v2141_v41  ;;  %v2182_v41 = vld [vmem:[#allocation5 + $0x210] sm:$0xff]  }
  0x4a   :  { %1293 = vmatmul.mubr.bf16.vlgmr.msra.gmra.mrb[0].mxu0 %v1715_v35  ;;  %v1735_v35 = vcombine.low %v62_v32, %v70_v33  ;;  %v2220_v32 = vld [vmem:[#allocation5 + $0x360] sm:$0xff]  }
  0x4b   :  { %1342 = vmatmul.mubr.bf16.vlgmr.msra.gmra.mrb[0].mxu1 %v1717_v38  ;;  %1932 = vmatpush3.bf16.msra.mxu0 %v2142_v42  ;;  %v63_v38 = vld [vmem:[#allocation2 + $0x98] sm:$0xff]  ;;  %v2221_v33 = vld [vmem:[#allocation5 + $0x3e0] sm:$0xff]  }
  0x4c   :  { %1960 = vmatpush3.bf16.msra.mxu1 %v2143_v43  ;;  %1933 = vmatprep.subr.bf16.mxu0 %v2144_v44  ;;  %v1738_v40 = vcombine.high %v63_v38, %v71_v39  ;;  %v1737_v42 = vcombine.low %v63_v38, %v71_v39  ;;  %v2183_v43 = vld [vmem:[#allocation5 + $0x290] sm:$0xff]   ;;  %v2184_v44 = vld [vmem:[#allocation5 + $0x258] sm:$0xff]   ;;  %v2226_v38 = vld [vmem:[#allocation5 + $0x328] sm:$0xff]  }
  0x4d   :  { %1961 = vmatprep.subr.bf16.mxu1 %v2145_v45  ;;  %1300 = vmatprep.mubr.bf16.mxu0 %v1732_v0  ;;  %v2185_v45 = vld [vmem:[#allocation5 + $0x2d8] sm:$0xff]   ;;  %v48_v0 = vld [vmem:[#allocation2 + $0x20] sm:$0xff]  ;;  %v2227_v39 = vld [vmem:[#allocation5 + $0x3a8] sm:$0xff]  }
  0x4e   :  { %1349 = vmatprep.mubr.bf16.mxu1 %v1734_v4  ;;  %v1723_v2 = vcombine.low %v48_v0, %v56_v1  ;;  %v49_v4 = vld [vmem:[#allocation2 + $0x28] sm:$0xff] }
  0x4f   :  { %1934 = vmatpush3.bf16.msra.mxu0 %v2146_v46  ;;  %v2186_v46 = vld [vmem:[#allocation5 + $0x218] sm:$0xff]  }
  0x50   :  { %1962 = vmatpush3.bf16.msra.mxu1 %v2147_v47  ;;  %1935 = vmatprep.subr.bf16.mxu0 %v2148_v48  ;;  %v2187_v47 = vld [vmem:[#allocation5 + $0x298] sm:$0xff]   ;;  %v2188_v48 = vld [vmem:[#allocation5 + $0x260] sm:$0xff]  }
  0x51   :  { %1963 = vmatprep.subr.bf16.mxu1 %v2149_v49  ;;  %v2189_v49 = vld [vmem:[#allocation5 + $0x2e0] sm:$0xff]  }
  0x52   :  { %1301 = vmatmul.mubr.bf16.gmra.mrb[4].mxu0 %v1731_v3  ;;  %v1724_v3 = vcombine.high %v48_v0, %v56_v1 }
  0x53   :  { %1936 = vmatpush3.bf16.msra.mxu0 %v2150_v50  ;;  %1350 = vmatmul.mubr.bf16.gmra.mrb[4].mxu1 %v1733_v6  ;;  %v2190_v50 = vld [vmem:[#allocation5 + $0x220] sm:$0xff]  }
  0x54   :  { %1964 = vmatpush3.bf16.msra.mxu1 %v2151_v51  ;;  %1937 = vmatprep.subr.bf16.mxu0 %v2152_v52  ;;  %v2191_v51 = vld [vmem:[#allocation5 + $0x2a0] sm:$0xff]   ;;  %v2192_v52 = vld [vmem:[#allocation5 + $0x268] sm:$0xff]  }
  0x55   :  { %1965 = vmatprep.subr.bf16.mxu1 %v2153_v53  ;;  %1390 = vmatprep.mubr.bf16.mxu0 %v1720_v21  ;;  %v2193_v53 = vld [vmem:[#allocation5 + $0x2e8] sm:$0xff]   ;;  %v2213_v21 = vld [vmem:[#allocation5 + $0x3d0] sm:$0xff]  }
  0x56   :  { %1439 = vmatprep.mubr.bf16.mxu1 %v1722_v23  ;;  %v73_v23 = vld [vmem:[#allocation2 + $0xe8] sm:$0xff] }
  0x57   :  { %1938 = vmatpush3.bf16.msra.mxu0 %v2154_v54  ;;  %v2194_v54 = vld [vmem:[#allocation5 + $0x228] sm:$0xff]  }
  0x58   :  { %1966 = vmatpush3.bf16.msra.mxu1 %v2155_v55  ;;  %1939 = vmatprep.subr.bf16.mxu0 %v2156_v56  ;;  %v2195_v55 = vld [vmem:[#allocation5 + $0x2a8] sm:$0xff]   ;;  %v2196_v56 = vld [vmem:[#allocation5 + $0x270] sm:$0xff]  }
  0x59   :  { %1967 = vmatprep.subr.bf16.mxu1 %v2157_v57  ;;  %v2197_v57 = vld [vmem:[#allocation5 + $0x2f0] sm:$0xff]  }
  0x5b   :  { %1940 = vmatpush3.bf16.msra.mxu0 %v2158_v58  ;;  %v2198_v58 = vld [vmem:[#allocation5 + $0x230] sm:$0xff]  }
  0x5c   :  { %1968 = vmatpush3.bf16.msra.mxu1 %v2159_v59  ;;  %1941 = vmatprep.subr.bf16.mxu0 %v2160_v60  ;;  %v2199_v59 = vld [vmem:[#allocation5 + $0x2b0] sm:$0xff]   ;;  %v2200_v60 = vld [vmem:[#allocation5 + $0x278] sm:$0xff]  }
  0x5d   :  { %1969 = vmatprep.subr.bf16.mxu1 %v2161_v61  ;;  %v2201_v61 = vld [vmem:[#allocation5 + $0x2f8] sm:$0xff]  }
  0x5f   :  { %1942 = vmatpush3.bf16.msra.mxu0 %v2162_v5  ;;  %v57_v5 = vld [vmem:[#allocation2 + $0x68] sm:$0xff] }
  0x60   :  { %1970 = vmatpush3.bf16.msra.mxu1 %v2163_v7  ;;  %1943 = vmatprep.subr.bf16.mxu0 %v2164_v8  ;;  %v1725_v6 = vcombine.low %v49_v4, %v57_v5  ;;  %v1726_v7 = vcombine.high %v49_v4, %v57_v5  ;;  %v2204_v8 = vld [vmem:[#allocation5 + $0x340] sm:$0xff]  }
  0x61   :  { %1971 = vmatprep.subr.bf16.mxu1 %v2165_v9  ;;  %v2205_v9 = vld [vmem:[#allocation5 + $0x3c0] sm:$0xff]  }
  0x63   :  { %1944 = vmatpush3.bf16.msra.mxu0 %v2166_v10  ;;  %v2206_v10 = vld [vmem:[#allocation5 + $0x300] sm:$0xff]  }
  0x64   :  { %1972 = vmatpush3.bf16.msra.mxu1 %v2167_v11  ;;  %1945 = vmatprep.subr.bf16.mxu0 %v2168_v12  ;;  %v2207_v11 = vld [vmem:[#allocation5 + $0x380] sm:$0xff]   ;;  %v2208_v12 = vld [vmem:[#allocation5 + $0x348] sm:$0xff]  }
  0x65   :  { %1973 = vmatprep.subr.bf16.mxu1 %v2169_v13  ;;  %v2209_v13 = vld [vmem:[#allocation5 + $0x3c8] sm:$0xff]  }
  0x67   :  { %1946 = vmatpush3.bf16.msra.mxu0 %v2170_v14  ;;  %v2210_v14 = vld [vmem:[#allocation5 + $0x308] sm:$0xff]  }
  0x68   :  { %1974 = vmatpush3.bf16.msra.mxu1 %v2171_v15  ;;  %1987 = vmatprep.subr.bf16.mxu0 %v2172_v24  ;;  %v2211_v15 = vld [vmem:[#allocation5 + $0x388] sm:$0xff]  }
  0x69   :  { %2015 = vmatprep.subr.bf16.mxu1 %v2173_v25  ;;  %v2214_v25 = vld [vmem:[#allocation5 + $0x310] sm:$0xff]  }
  0x6a   :  { %1391 = vmatmul.mubr.bf16.vlgmr.msra.gmra.mrb[8].mxu0 %v1719_v20  ;;  %v2212_v20 = vld [vmem:[#allocation5 + $0x350] sm:$0xff]  }
  0x6b   :  { %1440 = vmatmul.mubr.bf16.vlgmr.msra.gmra.mrb[8].mxu1 %v1721_v22  ;;  %1988 = vmatpush3.bf16.msra.mxu0 %v2174_v26  ;;  %v65_v22 = vld [vmem:[#allocation2 + $0xa8] sm:$0xff] }
  0x6c   :  { %2016 = vmatpush3.bf16.msra.mxu1 %v2175_v27  ;;  %1989 = vmatprep.subr.bf16.mxu0 %v2176_v28  ;;  %v1742_v24 = vcombine.high %v65_v22, %v73_v23  ;;  %v1741_v26 = vcombine.low %v65_v22, %v73_v23  ;;  %v2215_v27 = vld [vmem:[#allocation5 + $0x390] sm:$0xff]   ;;  %v2216_v28 = vld [vmem:[#allocation5 + $0x358] sm:$0xff]  }
  0x6d   :  { %2017 = vmatprep.subr.bf16.mxu1 %v2177_v29  ;;  %1398 = vmatprep.mubr.bf16.mxu0 %v1736_v34  ;;  %v2217_v29 = vld [vmem:[#allocation5 + $0x3d8] sm:$0xff]   ;;  %v2222_v34 = vld [vmem:[#allocation5 + $0x320] sm:$0xff]  }
  0x6e   :  { %1447 = vmatprep.mubr.bf16.mxu1 %v1738_v40  ;;  %v2228_v40 = vld [vmem:[#allocation5 + $0x370] sm:$0xff]  }
  0x6f   :  { %1990 = vmatpush3.bf16.msra.mxu0 %v2178_v30  ;;  %v2218_v30 = vld [vmem:[#allocation5 + $0x318] sm:$0xff]  }
  0x70   :  { %2018 = vmatpush3.bf16.msra.mxu1 %v2179_v31  ;;  %1991 = vmatprep.subr.bf16.mxu0 %v2180_v36  ;;  %v2219_v31 = vld [vmem:[#allocation5 + $0x398] sm:$0xff]   ;;  %v2224_v36 = vld [vmem:[#allocation5 + $0x368] sm:$0xff]  }
  0x71   :  { %2019 = vmatprep.subr.bf16.mxu1 %v2181_v37  ;;  %v2225_v37 = vld [vmem:[#allocation5 + $0x3e8] sm:$0xff]  }
  0x72   :  { %1399 = vmatmul.mubr.bf16.gmra.mrb[12].mxu0 %v1735_v35  ;;  %v2223_v35 = vld [vmem:[#allocation5 + $0x3a0] sm:$0xff]  }
  0x73   :  { %1992 = vmatpush3.bf16.msra.mxu0 %v2182_v41  ;;  %1448 = vmatmul.mubr.bf16.gmra.mrb[12].mxu1 %v1737_v42  ;;  %v2229_v41 = vld [vmem:[#allocation5 + $0x3f0] sm:$0xff]  }
  0x74   :  { %2020 = vmatpush3.bf16.msra.mxu1 %v2183_v43  ;;  %1993 = vmatprep.subr.bf16.mxu0 %v2184_v44  ;;  %v2230_v42 = vld [vmem:[#allocation5 + $0x330] sm:$0xff]   ;;  %v2232_v44 = vld [vmem:[#allocation5 + $0x378] sm:$0xff]  }
  0x75   :  { %2021 = vmatprep.subr.bf16.mxu1 %v2185_v45  ;;  %1488 = vmatprep.mubr.bf16.mxu0 %v1724_v3  ;;  %v2231_v43 = vld [vmem:[#allocation5 + $0x3b0] sm:$0xff]   ;;  %v2233_v45 = vld [vmem:[#allocation5 + $0x3f8] sm:$0xff]  }
  0x76   :  { %1537 = vmatprep.mubr.bf16.mxu1 %v1726_v7 }
  0x77   :  { %1994 = vmatpush3.bf16.msra.mxu0 %v2186_v46  ;;  %v2234_v46 = vld [vmem:[#allocation5 + $0x338] sm:$0xff]  }
  0x78   :  { %2022 = vmatpush3.bf16.msra.mxu1 %v2187_v47  ;;  %1995 = vmatprep.subr.bf16.mxu0 %v2188_v48  ;;  %v2235_v47 = vld [vmem:[#allocation5 + $0x3b8] sm:$0xff]   ;;  %v50_v48 = vld [vmem:[#allocation2 + $0x30] sm:$0xff] }
  0x79   :  { %2023 = vmatprep.subr.bf16.mxu1 %v2189_v49  ;;  %v58_v49 = vld [vmem:[#allocation2 + $0x70] sm:$0xff] }
  0x7b   :  { %1996 = vmatpush3.bf16.msra.mxu0 %v2190_v50  ;;  %v51_v50 = vld [vmem:[#allocation2 + $0x38] sm:$0xff] }
  0x7c   :  { %2024 = vmatpush3.bf16.msra.mxu1 %v2191_v51  ;;  %1997 = vmatprep.subr.bf16.mxu0 %v2192_v52  ;;  %v1727_v51 = vcombine.low %v50_v48, %v58_v49  ;;  %v1728_v52 = vcombine.high %v50_v48, %v58_v49 }
  0x7d   :  { %2025 = vmatprep.subr.bf16.mxu1 %v2193_v53  ;;  %v59_v53 = vld [vmem:[#allocation2 + $0x78] sm:$0xff] }
  0x7f   :  { %1998 = vmatpush3.bf16.msra.mxu0 %v2194_v54  ;;  %v66_v54 = vld [vmem:[#allocation2 + $0xb0] sm:$0xff] }
  0x80   :  { %2026 = vmatpush3.bf16.msra.mxu1 %v2195_v55  ;;  %1999 = vmatprep.subr.bf16.mxu0 %v2196_v56  ;;  %v74_v55 = vld [vmem:[#allocation2 + $0xf0] sm:$0xff]  ;;  %v1729_v56 = vcombine.low %v51_v50, %v59_v53 }
  0x81   :  { %2027 = vmatprep.subr.bf16.mxu1 %v2197_v57  ;;  %v1730_v57 = vcombine.high %v51_v50, %v59_v53 }
  0x83   :  { %2000 = vmatpush3.bf16.msra.mxu0 %v2198_v58  ;;  %v1744_v58 = vcombine.high %v66_v54, %v74_v55 }
  0x84   :  { %2028 = vmatpush3.bf16.msra.mxu1 %v2199_v59  ;;  %2001 = vmatprep.subr.bf16.mxu0 %v2200_v60  ;;  %v67_v59 = vld [vmem:[#allocation2 + $0xb8] sm:$0xff] }
  0x85   :  { %2029 = vmatprep.subr.bf16.mxu1 %v2201_v61  ;;  %v75_v60 = vld [vmem:[#allocation2 + $0xf8] sm:$0xff] }
  0x86   :  { %v1746_v61 = vcombine.high %v67_v59, %v75_v60 }
  0x87   :  { %2002 = vmatpush3.bf16.msra.mxu0 %v2202_v62  ;;  %v1743_v62 = vcombine.low %v66_v54, %v74_v55 }
  0x88   :  { %2030 = vmatpush3.bf16.msra.mxu1 %v2203_v63  ;;  %2043 = vmatprep.subr.bf16.mxu0 %v2204_v8  ;;  %v1745_v63 = vcombine.low %v67_v59, %v75_v60 }
  0x89   :  { %2071 = vmatprep.subr.bf16.mxu1 %v2205_v9 }
  0x8a   :  { %1489 = vmatmul.mubr.bf16.vlgmr.msra.gmra.mrb[16].mxu0 %v1723_v2 }
  0x8b   :  { %1538 = vmatmul.mubr.bf16.vlgmr.msra.gmra.mrb[16].mxu1 %v1725_v6  ;;  %2044 = vmatpush3.bf16.msra.mxu0 %v2206_v10 }
  0x8c   :  { %2072 = vmatpush3.bf16.msra.mxu1 %v2207_v11  ;;  %2045 = vmatprep.subr.bf16.mxu0 %v2208_v12 }
  0x8d   :  { %2073 = vmatprep.subr.bf16.mxu1 %v2209_v13  ;;  %1496 = vmatprep.mubr.bf16.mxu0 %v1740_v18 }
  0x8e   :  { %1545 = vmatprep.mubr.bf16.mxu1 %v1742_v24 }
  0x8f   :  { %2046 = vmatpush3.bf16.msra.mxu0 %v2210_v14 }
  0x90   :  { %2074 = vmatpush3.bf16.msra.mxu1 %v2211_v15  ;;  %2047 = vmatprep.subr.bf16.mxu0 %v2212_v20 }
  0x91   :  { %2075 = vmatprep.subr.bf16.mxu1 %v2213_v21 }
  0x92   :  { %1497 = vmatmul.mubr.bf16.gmra.mrb[20].mxu0 %v1739_v19 }
  0x93   :  { %2048 = vmatpush3.bf16.msra.mxu0 %v2214_v25  ;;  %1546 = vmatmul.mubr.bf16.gmra.mrb[20].mxu1 %v1741_v26 }
  0x94   :  { %2076 = vmatpush3.bf16.msra.mxu1 %v2215_v27  ;;  %2049 = vmatprep.subr.bf16.mxu0 %v2216_v28 }
  0x95   :  { %2077 = vmatprep.subr.bf16.mxu1 %v2217_v29  ;;  %1586 = vmatprep.mubr.bf16.mxu0 %v1728_v52 }
  0x96   :  { %1635 = vmatprep.mubr.bf16.mxu1 %v1730_v57 }
  0x97   :  { %2050 = vmatpush3.bf16.msra.mxu0 %v2218_v30 }
  0x98   :  { %2078 = vmatpush3.bf16.msra.mxu1 %v2219_v31  ;;  %2051 = vmatprep.subr.bf16.mxu0 %v2220_v32 }
  0x99   :  { %2079 = vmatprep.subr.bf16.mxu1 %v2221_v33 }
  0x9b   :  { %2052 = vmatpush3.bf16.msra.mxu0 %v2222_v34 }
  0x9c   :  { %2080 = vmatpush3.bf16.msra.mxu1 %v2223_v35  ;;  %2053 = vmatprep.subr.bf16.mxu0 %v2224_v36 }
  0x9d   :  { %2081 = vmatprep.subr.bf16.mxu1 %v2225_v37 }
  0x9f   :  { %2054 = vmatpush3.bf16.msra.mxu0 %v2226_v38 }
  0xa0   :  { %2082 = vmatpush3.bf16.msra.mxu1 %v2227_v39  ;;  %2055 = vmatprep.subr.bf16.mxu0 %v2228_v40 }
  0xa1   :  { %2083 = vmatprep.subr.bf16.mxu1 %v2229_v41 }
  0xa3   :  { %2056 = vmatpush3.bf16.msra.mxu0 %v2230_v42 }
  0xa4   :  { %2084 = vmatpush3.bf16.msra.mxu1 %v2231_v43  ;;  %2057 = vmatprep.subr.bf16.mxu0 %v2232_v44 }
  0xa5   :  { %2085 = vmatprep.subr.bf16.mxu1 %v2233_v45 }
  0xa7   :  { %2058 = vmatpush3.bf16.msra.mxu0 %v2234_v46 }
  0xa8   :  { %2086 = vmatpush3.bf16.msra.mxu1 %v2235_v47 }
  0xaa   :  { %1587 = vmatmul.mubr.bf16.vlgmr.msra.gmra.mrb[24].mxu0 %v1727_v51 }
  0xab   :  { %1636 = vmatmul.mubr.bf16.vlgmr.msra.gmra.mrb[24].mxu1 %v1729_v56  ;;  %1594 = vmatprep.mubr.bf16.mxu0 %v1744_v58 }
  0xac   :  { %1643 = vmatprep.mubr.bf16.mxu1 %v1746_v61 }
  0xb2   :  { %1595 = vmatmul.mubr.bf16.gmra.mrb[28].mxu0 %v1743_v62 }
  0xb3   :  { %1644 = vmatmul.mubr.bf16.gmra.mrb[28].mxu1 %v1745_v63 }
 0x11d   :  { %v1891_v0 = vpop.f32.mrb[0].mxu0 }
 0x11e   :  { %v1919_v1 = vpop.f32.mrb[0].mxu1  ;;  %v1892_v2 = vpop.f32.mrb[1].mxu0 }
 0x11f   :  { %v1893_v3 = vadd.f32 %v1892_v2, %v1891_v0  ;;  %v1920_v4 = vpop.f32.mrb[1].mxu1  ;;  %v1894_v5 = vpop.f32.mrb[2].mxu0 }
 0x120   :  { %v1921_v6 = vadd.f32 %v1920_v4, %v1919_v1  ;;  %v1922_v7 = vpop.f32.mrb[2].mxu1  ;;  %v1895_v8 = vpop.f32.mrb[3].mxu0 }
 0x121   :  { %v1896_v9 = vadd.f32 %v1895_v8, %v1894_v5  ;;  %v1923_v10 = vpop.f32.mrb[3].mxu1 }
 0x122   :  { %v1344_v11 = vadd.f32 %v1921_v6, %v1893_v3  ;;  %v1924_v12 = vadd.f32 %v1923_v10, %v1922_v7 }
 0x124   :  { %v1347_v13 = vadd.f32 %v1924_v12, %v1896_v9 }
 0x125   :  { %v1897_v14 = vpop.f32.mrb[4].mxu0 }
 0x126   :  { %v1925_v15 = vpop.f32.mrb[4].mxu1  ;;  %v1898_v16 = vpop.f32.mrb[5].mxu0 }
 0x127   :  { %v1899_v17 = vadd.f32 %v1898_v16, %v1897_v14  ;;  %v1926_v18 = vpop.f32.mrb[5].mxu1  ;;  %v1900_v19 = vpop.f32.mrb[6].mxu0 }
 0x128   :  { %v1927_v20 = vadd.f32 %v1926_v18, %v1925_v15  ;;  %v1928_v21 = vpop.f32.mrb[6].mxu1  ;;  %v1901_v22 = vpop.f32.mrb[7].mxu0 }
 0x129   :  { %v1902_v23 = vadd.f32 %v1901_v22, %v1900_v19  ;;  %v1929_v24 = vpop.f32.mrb[7].mxu1 }
 0x12a   :  { %v1352_v25 = vadd.f32 %v1927_v20, %v1899_v17  ;;  %v1930_v26 = vadd.f32 %v1929_v24, %v1928_v21 }
 0x12c   :  { %v1355_v27 = vadd.f32 %v1930_v26, %v1902_v23 }
 0x13d   :  { %v1947_v28 = vpop.f32.mrb[8].mxu0 }
 0x13e   :  { %v1975_v29 = vpop.f32.mrb[8].mxu1  ;;  %v1948_v30 = vpop.f32.mrb[9].mxu0 }
 0x13f   :  { %v1976_v31 = vpop.f32.mrb[9].mxu1  ;;  %v1949_v32 = vadd.f32 %v1948_v30, %v1947_v28  ;;  %v1950_v34 = vpop.f32.mrb[10].mxu0 }
 0x140   :  { %v1977_v33 = vadd.f32 %v1976_v31, %v1975_v29  ;;  %v1978_v35 = vpop.f32.mrb[10].mxu1  ;;  %v1951_v36 = vpop.f32.mrb[11].mxu0 }
 0x141   :  { %v1979_v37 = vpop.f32.mrb[11].mxu1  ;;  %v1393_v38 = vadd.f32 %v1949_v32, %v1344_v11  ;;  %v1952_v39 = vadd.f32 %v1951_v36, %v1950_v34 }
 0x142   :  { %v1980_v40 = vadd.f32 %v1979_v37, %v1978_v35 }
 0x143   :  { %v1442_v41 = vadd.f32 %v1977_v33, %v1393_v38  ;;  %v1396_v42 = vadd.f32 %v1952_v39, %v1347_v13 }
 0x145   :  { %v1445_v43 = vadd.f32 %v1980_v40, %v1396_v42  ;;  %v1953_v44 = vpop.f32.mrb[12].mxu0 }
 0x146   :  { %v1954_v45 = vpop.f32.mrb[13].mxu0  ;;  %v1981_v50 = vpop.f32.mrb[12].mxu1 }
 0x147   :  { %v1955_v46 = vadd.f32 %v1954_v45, %v1953_v44  ;;  %v1956_v47 = vpop.f32.mrb[14].mxu0  ;;  %v1982_v52 = vpop.f32.mrb[13].mxu1 }
 0x148   :  { %v1957_v48 = vpop.f32.mrb[15].mxu0  ;;  %v1983_v54 = vadd.f32 %v1982_v52, %v1981_v50  ;;  %v1984_v55 = vpop.f32.mrb[14].mxu1 }
 0x149   :  { %v1401_v49 = vadd.f32 %v1955_v46, %v1352_v25  ;;  %v1958_v51 = vadd.f32 %v1957_v48, %v1956_v47  ;;  %v1985_v56 = vpop.f32.mrb[15].mxu1 }
 0x14a   :  { %v1986_v58 = vadd.f32 %v1985_v56, %v1984_v55 }
 0x14b   :  { %v1404_v53 = vadd.f32 %v1958_v51, %v1355_v27  ;;  %v1450_v57 = vadd.f32 %v1983_v54, %v1401_v49 }
 0x14d   :  { %v1453_v59 = vadd.f32 %v1986_v58, %v1404_v53 }
 0x15d   :  { %v2003_v60 = vpop.f32.mrb[16].mxu0 }
 0x15e   :  { %v2031_v61 = vpop.f32.mrb[16].mxu1  ;;  %v2004_v62 = vpop.f32.mrb[17].mxu0 }
 0x15f   :  { %v2005_v63 = vadd.f32 %v2004_v62, %v2003_v60  ;;  %v2032_v0 = vpop.f32.mrb[17].mxu1  ;;  %v2006_v1 = vpop.f32.mrb[18].mxu0 }
 0x160   :  { %v2033_v2 = vadd.f32 %v2032_v0, %v2031_v61  ;;  %v2034_v3 = vpop.f32.mrb[18].mxu1  ;;  %v2007_v4 = vpop.f32.mrb[19].mxu0 }
 0x161   :  { %v1491_v5 = vadd.f32 %v2005_v63, %v1442_v41  ;;  %v2008_v6 = vadd.f32 %v2007_v4, %v2006_v1  ;;  %v2035_v7 = vpop.f32.mrb[19].mxu1 }
 0x162   :  { %v2036_v8 = vadd.f32 %v2035_v7, %v2034_v3 }
 0x163   :  { %v1540_v9 = vadd.f32 %v2033_v2, %v1491_v5  ;;  %v1494_v10 = vadd.f32 %v2008_v6, %v1445_v43 }
 0x165   :  { %v1543_v11 = vadd.f32 %v2036_v8, %v1494_v10  ;;  %v2009_v12 = vpop.f32.mrb[20].mxu0 }
 0x166   :  { %v2010_v13 = vpop.f32.mrb[21].mxu0  ;;  %v2037_v16 = vpop.f32.mrb[20].mxu1 }
 0x167   :  { %v2011_v14 = vadd.f32 %v2010_v13, %v2009_v12  ;;  %v2012_v15 = vpop.f32.mrb[22].mxu0  ;;  %v2038_v20 = vpop.f32.mrb[21].mxu1 }
 0x168   :  { %v2013_v17 = vpop.f32.mrb[23].mxu0  ;;  %v2039_v21 = vadd.f32 %v2038_v20, %v2037_v16  ;;  %v2040_v22 = vpop.f32.mrb[22].mxu1 }
 0x169   :  { %v1499_v18 = vadd.f32 %v2011_v14, %v1450_v57  ;;  %v2014_v19 = vadd.f32 %v2013_v17, %v2012_v15  ;;  %v2041_v24 = vpop.f32.mrb[23].mxu1 }
 0x16a   :  { %v2042_v26 = vadd.f32 %v2041_v24, %v2040_v22 }
 0x16b   :  { %v1502_v23 = vadd.f32 %v2014_v19, %v1453_v59  ;;  %v1548_v25 = vadd.f32 %v2039_v21, %v1499_v18 }
 0x16d   :  { %v1551_v27 = vadd.f32 %v2042_v26, %v1502_v23 }
 0x17d   :  { %v2059_v28 = vpop.f32.mrb[24].mxu0 }
 0x17e   :  { %v2087_v29 = vpop.f32.mrb[24].mxu1  ;;  %v2060_v30 = vpop.f32.mrb[25].mxu0 }
 0x17f   :  { %v2061_v31 = vadd.f32 %v2060_v30, %v2059_v28  ;;  %v2088_v32 = vpop.f32.mrb[25].mxu1  ;;  %v2062_v33 = vpop.f32.mrb[26].mxu0 }
 0x180   :  { %v2089_v34 = vadd.f32 %v2088_v32, %v2087_v29  ;;  %v2090_v35 = vpop.f32.mrb[26].mxu1  ;;  %v2063_v36 = vpop.f32.mrb[27].mxu0 }
 0x181   :  { %v1589_v37 = vadd.f32 %v2061_v31, %v1540_v9  ;;  %v2064_v38 = vadd.f32 %v2063_v36, %v2062_v33  ;;  %v2091_v39 = vpop.f32.mrb[27].mxu1 }
 0x182   :  { %v2092_v40 = vadd.f32 %v2091_v39, %v2090_v35 }
 0x183   :  { %v1638_v41 = vadd.f32 %v2089_v34, %v1589_v37  ;;  %v1592_v42 = vadd.f32 %v2064_v38, %v1543_v11 }
 0x185   :  { %1652 = vst [vmem:[#allocation7] sm:$0xff] %v1638_v41  ;;  %v1641_v43 = vadd.f32 %v2092_v40, %v1592_v42  ;;  %v2065_v44 = vpop.f32.mrb[28].mxu0  ;;  %v1665_v47 = vmul.f32 %v1638_v41, %v1638_v41 }
 0x186   :  { %v2093_v45 = vpop.f32.mrb[28].mxu1  ;;  %v2066_v46 = vpop.f32.mrb[29].mxu0 }
 0x187   :  { %1653 = vst [vmem:[#allocation7 + $0x8] sm:$0xff] %v1641_v43  ;;  %v1656_v48 = vadd.f32 %v1641_v43, %v1638_v41  ;;  %v1666_v49 = vmul.f32 %v1641_v43, %v1641_v43  ;;  %v2067_v50 = vadd.f32 %v2066_v46, %v2065_v44  ;;  %v2094_v51 = vpop.f32.mrb[29].mxu1  ;;  %v2068_v52 = vpop.f32.mrb[30].mxu0 }
 0x188   :  { %v2095_v53 = vadd.f32 %v2094_v51, %v2093_v45  ;;  %v2096_v54 = vpop.f32.mrb[30].mxu1  ;;  %v2069_v55 = vpop.f32.mrb[31].mxu0 }
 0x189   :  { %v1669_v56 = vadd.f32 %v1666_v49, %v1665_v47  ;;  %v1597_v57 = vadd.f32 %v2067_v50, %v1548_v25  ;;  %v2070_v58 = vadd.f32 %v2069_v55, %v2068_v52  ;;  %v2097_v59 = vpop.f32.mrb[31].mxu1 }
 0x18a   :  { %v2098_v60 = vadd.f32 %v2097_v59, %v2096_v54 }
 0x18b   :  { %v1646_v61 = vadd.f32 %v2095_v53, %v1597_v57  ;;  %v1600_v62 = vadd.f32 %v2070_v58, %v1551_v27 }
 0x18d   :  { %1654 = vst [vmem:[#allocation7 + $0x10] sm:$0xff] %v1646_v61  ;;  %v1657_v63 = vadd.f32 %v1656_v48, %v1646_v61  ;;  %v1667_v0 = vmul.f32 %v1646_v61, %v1646_v61  ;;  %v1649_v1 = vadd.f32 %v2098_v60, %v1600_v62 }
 0x18f   :  { %v1670_v2 = vadd.f32 %v1669_v56, %v1667_v0  ;;  %1655 = vst [vmem:[#allocation7 + $0x18] sm:$0xff] %v1649_v1  ;;  %v1658_v3 = vadd.f32 %v1657_v63, %v1649_v1  ;;  %v1668_v4 = vmul.f32 %v1649_v1, %v1649_v1 }
 0x190   :  { %2291 = shalt.err (!%p2288_p6)
}
 0x191   :  { %s2292_s15 = scalar_lea.hbm %s2411_s2, 512 }
 0x192   :  { %p2293_p7 = scmp.ne.s32.totalorder %s2411_s2, %s2292_s15  ;;  %p2296_p8 = scmp.lt.u32.totalorder %s2292_s15, %s2411_s2 }
 0x194   :  { %p2298_p9 = pnand %p2296_p8, %p2293_p7 }
 0x196   :  { %2301 = shalt.err (!%p2298_p9)
}
 0x197   :  { %s2338_s20 = smov 128   ;;  %s2339_s21 = smov 8   ;;  %v1659_v5 = vrot.slane %v1658_v3, 4  ;;  %v1671_v6 = vadd.f32 %v1670_v2, %v1668_v4  ;;  %vm1678_vm0 = vcmask 1040384   ;;  %vm1680_vm1 = vcmask 1041408  }
 0x198   :  { %1694 = dma.vmem_to_hbm [thread:$0]  %s1689_s11, 512, %s2411_s2, [#allocation4], %s2338_s20, %s2338_s20, %s2339_s21  }
 0x199   :  { %v1660_v7 = vadd.f32 %v1659_v5, %v1658_v3  ;;  %v1672_v8 = vrot.slane %v1671_v6, 4  ;;  %s2340_s24 = smov [#allocation8]  }
 0x19a   :  { %s1701_s25 = sshll.u32 %s2340_s24, 4  ;;  %s1702_s25 = int_to_ptr.vmem [resolvable:$true] %s1701_s25 }
 0x19b   :  { %v1661_v9 = vrot.slane %v1660_v7, 2  ;;  %v1673_v10 = vadd.f32 %v1672_v8, %v1671_v6  ;;  %s2302_s2 = scalar_lea.vmem %s1702_s25, 128  ;;  %p2307_p11 = scmp.lt.s32.totalorder %s1702_s25, %s1702_s25 }
 0x19c   :  { %p2303_p10 = scmp.ne.s32.totalorder %s1702_s25, %s2302_s2  ;;  %p2308_p12 = scmp.lt.s32.totalorder %s2302_s2, %s2302_s2 }
 0x19d   :  { %v1662_v11 = vadd.f32 %v1661_v9, %v1660_v7  ;;  %v1674_v12 = vrot.slane %v1673_v10, 2 }
 0x19e   :  { %p2309_p13 = por %p2308_p12, %p2307_p11 }
 0x19f   :  { %v1663_v13 = vrot.slane %v1662_v11, 1  ;;  %v1675_v14 = vadd.f32 %v1674_v12, %v1673_v10 }
 0x1a0   :  { %p2310_p0 = pnand %p2309_p13, %p2303_p10 }
 0x1a1   :  { %v1676_v15 = vrot.slane %v1675_v14, 1  ;;  %v1664_v16 = vadd.f32 %v1663_v13, %v1662_v11 }
 0x1a3   :  { %v1677_v17 = vadd.f32 %v1676_v15, %v1675_v14 }
 0x1a5   :  { %v1679_v18 = vsel %vm1678_vm0, %v1664_v16, %v1677_v17 }
 0x1a6   :  { %v1681_v19 = vsel %vm1680_vm1, %v1679_v18, 0.0 }
 0x1a7   :  { %1682 = vst [vmem:[#allocation8] sm:$0xff] %v1681_v19 }
 0x1a8   :  { %2313 = shalt.err (!%p2310_p0)
}
 0x1a9   :  { %s2314_s28 = scalar_lea.hbm %s2412_s3, 128 }
 0x1aa   :  { %p2315_p1 = scmp.ne.s32.totalorder %s2412_s3, %s2314_s28  ;;  %p2318_p2 = scmp.lt.u32.totalorder %s2314_s28, %s2412_s3 }
 0x1ac   :  { %p2320_p3 = pnand %p2318_p2, %p2315_p1 }
 0x1ae   :  { %2323 = shalt.err (!%p2320_p3)
}
 0x1af   :  { %1704 = dma.vmem_to_hbm [thread:$0]  %s1702_s25, 128, %s2412_s3, [#allocation9]  }
 0x1b0   :  { %2328 = dma.done.wait [#allocation4], 512  }
 0x1b1   :  { %2329 = vsyncadd [#allocation4], 4294966784 }
 0x1b2   :  { %2330 = dma.done.wait [#allocation9], 128  }
 0x1b3   :  { %2331 = vsyncadd [#allocation9], 4294967168 }
 0x1b4   :  { %1711 = vsyncpa [#allocation3], 1 }
 0x1b5   :  { %1712 = vsyncpa [#allocation6], 1 }
 0x1b6   :  { %1713 = vsyncpa [#allocation4], 1 }
 0x1b7   :  { %1714 = vsyncpa [#allocation9], 1 }

// kernel: discriminator_forward.14
= control target key start
LH: loop header
LB: loop body
LE: loop exit
PB: predicated region body
PF: predicated region fallthrough
CT: control target
= control target key end

     0   :  { %8 = vsyncpa [#allocation3], 0  ;;  %s334_s0 = inlined_call_operand.hbm [shape: f32[32,128], index: 0, kind: input, shape index: {}]   ;;  %s335_s1 = inlined_call_operand.hbm [shape: f32[1,128], index: 1, kind: input, shape index: {}]   ;;  %s336_s2 = inlined_call_operand.hbm [shape: f32[1,128], index: 2, kind: input, shape index: {}]   ;;  %s337_s3 = inlined_call_operand.hbm [shape: bf16[32,128], index: 3, kind: output, shape index: {}]  }
   0x1   :  { %9 = vsyncpa [#allocation6], 0 }
   0x2   :  { %10 = vsyncpa [#allocation4], 0  ;;  %s251_s12 = smov [#allocation5]   ;;  %s252_s14 = smov [#allocation2]  }
   0x3   :  { %s29_s13 = sshll.u32 %s251_s12, 4  ;;  %s16_s15 = sshll.u32 %s252_s14, 4  ;;  %s30_s13 = int_to_ptr.vmem [resolvable:$true] %s29_s13  ;;  %s279_s15 = int_to_ptr.vmem [resolvable:$true] %s16_s15 }
   0x4   :  { %s157_s18 = scalar_lea.hbm %s335_s1, 16 }
   0x5   :  { %p158_p0 = scmp.ne.s32.totalorder %s335_s1, %s157_s18  ;;  %p161_p1 = scmp.lt.u32.totalorder %s157_s18, %s335_s1 }
   0x7   :  { %p163_p2 = pnand %p161_p1, %p158_p0 }
   0x9   :  { %166 = shalt.err (!%p163_p2)
}
   0xa   :  { %s167_s23 = scalar_lea.vmem %s30_s13, 16  ;;  %s171_s24 = scalar_lea.vmem %s30_s13, 32 }
   0xb   :  { %p168_p3 = scmp.ne.s32.totalorder %s30_s13, %s167_s23  ;;  %p172_p4 = scmp.lt.s32.totalorder %s30_s13, %s30_s13 }
   0xc   :  { %p173_p5 = scmp.lt.s32.totalorder %s171_s24, %s167_s23 }
   0xe   :  { %p174_p6 = por %p173_p5, %p172_p4 }
  0x10   :  { %p175_p7 = pnand %p174_p6, %p168_p3 }
  0x12   :  { %178 = shalt.err (!%p175_p7)
}
  0x13   :  { %32 = dma.hbm_to_vmem [thread:$0]  %s335_s1, 16, %s30_s13, [#allocation6]  }
  0x14   :  { %s179_s29 = scalar_lea.hbm %s334_s0, 512 }
  0x15   :  { %p180_p8 = scmp.ne.s32.totalorder %s334_s0, %s179_s29  ;;  %p183_p9 = scmp.lt.u32.totalorder %s179_s29, %s334_s0 }
  0x17   :  { %p185_p10 = pnand %p183_p9, %p180_p8 }
  0x19   :  { %188 = shalt.err (!%p185_p10)
}
  0x1a   :  { %s189_s7 = scalar_lea.vmem %s279_s15, 512  ;;  %p194_p12 = scmp.lt.s32.totalorder %s279_s15, %s279_s15 }
  0x1b   :  { %p190_p11 = scmp.ne.s32.totalorder %s279_s15, %s189_s7  ;;  %p195_p13 = scmp.lt.s32.totalorder %s189_s7, %s189_s7 }
  0x1d   :  { %p196_p0 = por %p195_p13, %p194_p12 }
  0x1f   :  { %p197_p1 = pnand %p196_p0, %p190_p11 }
  0x21   :  { %200 = shalt.err (!%p197_p1)
}
  0x22   :  { %s253_s1 = smov 128   ;;  %s254_s8 = smov 8  }
  0x23   :  { %22 = dma.hbm_to_vmem [thread:$0]  %s334_s0, 512, %s279_s15, [#allocation3], %s253_s1, %s253_s1, %s254_s8  }
  0x24   :  { %s255_s11 = smov [#allocation7]   ;;  %s201_s16 = scalar_lea.hbm %s336_s2, 16 }
  0x25   :  { %s39_s12 = sshll.u32 %s255_s11, 4  ;;  %p202_p2 = scmp.ne.s32.totalorder %s336_s2, %s201_s16  ;;  %s40_s12 = int_to_ptr.vmem [resolvable:$true] %s39_s12 }
  0x26   :  { %p205_p3 = scmp.lt.u32.totalorder %s201_s16, %s336_s2 }
  0x28   :  { %p207_p4 = pnand %p205_p3, %p202_p2 }
  0x2a   :  { %210 = shalt.err (!%p207_p4)
}
  0x2b   :  { %s211_s21 = scalar_lea.vmem %s40_s12, 16  ;;  %s215_s0 = scalar_lea.vmem %s40_s12, 32 }
  0x2c   :  { %p212_p5 = scmp.ne.s32.totalorder %s40_s12, %s211_s21  ;;  %p216_p6 = scmp.lt.s32.totalorder %s40_s12, %s40_s12 }
  0x2d   :  { %p217_p7 = scmp.lt.s32.totalorder %s215_s0, %s211_s21 }
  0x2f   :  { %p218_p8 = por %p217_p7, %p216_p6 }
  0x31   :  { %p219_p9 = pnand %p218_p8, %p212_p5 }
  0x33   :  { %222 = shalt.err (!%p219_p9)
}
  0x34   :  { %42 = dma.hbm_to_vmem [thread:$0]  %s336_s2, 16, %s40_s12, [#allocation6]  }
  0x35   :  { %245 = dma.done.wait [#allocation3], 512  }
  0x36   :  { %246 = vsyncadd [#allocation3], 4294966784 }
  0x37   :  { %247 = dma.done.wait [#allocation6], 32  }
  0x38   :  { %248 = vsyncadd [#allocation6], 4294967264  ;;  %v52_v0 = vld [vmem:[#allocation2] sm:$0xff]  ;;  %v53_v1 = vld [vmem:[#allocation2 + $0x8] sm:$0xff]  ;;  %s256_s23 = smov [#allocation8]  }
  0x39   :  { %v128_v2 = vld [vmem:[#allocation5] ss:$0 sm:$0xff]  ;;  %v129_v5 = vld [vmem:[#allocation7] ss:$0 sm:$0xff]  ;;  %v54_v6 = vld [vmem:[#allocation2 + $0x10] sm:$0xff]  ;;  %s115_s2 = sshll.u32 %s256_s23, 4  ;;  %s116_s2 = int_to_ptr.vmem [resolvable:$true] %s115_s2 }
  0x3a   :  { %v63_v3 = vmul.f32 %v128_v2, %v52_v0  ;;  %v64_v4 = vmul.f32 %v128_v2, %v53_v1  ;;  %v55_v7 = vld [vmem:[#allocation2 + $0x18] sm:$0xff]  ;;  %v65_v8 = vmul.f32 %v128_v2, %v54_v6  ;;  %s223_s24 = scalar_lea.vmem %s116_s2, 256  ;;  %p228_p11 = scmp.lt.s32.totalorder %s116_s2, %s116_s2 }
  0x3b   :  { %v66_v9 = vmul.f32 %v128_v2, %v55_v7  ;;  %p224_p10 = scmp.ne.s32.totalorder %s116_s2, %s223_s24  ;;  %p229_p12 = scmp.lt.s32.totalorder %s223_s24, %s223_s24 }
  0x3c   :  { %v74_v10 = vadd.f32 %v129_v5, %v63_v3  ;;  %v75_v11 = vadd.f32 %v129_v5, %v64_v4  ;;  %v76_v12 = vadd.f32 %v129_v5, %v65_v8 }
  0x3d   :  { %v77_v13 = vadd.f32 %v129_v5, %v66_v9  ;;  %p230_p13 = por %p229_p12, %p228_p11 }
  0x3e   :  { %vm78_vm0 = vcmp.ge.f32.partialorder %v74_v10, 0.0  ;;  %vm79_vm1 = vcmp.ge.f32.partialorder %v75_v11, 0.0  ;;  %v82_v14 = vmul.f32 0.2, %v74_v10  ;;  %v83_v15 = vmul.f32 0.2, %v75_v11 }
  0x3f   :  { %vm80_vm2 = vcmp.ge.f32.partialorder %v76_v12, 0.0  ;;  %vm81_vm3 = vcmp.ge.f32.partialorder %v77_v13, 0.0  ;;  %v84_v16 = vmul.f32 0.2, %v76_v12  ;;  %v85_v17 = vmul.f32 0.2, %v77_v13  ;;  %p231_p0 = pnand %p230_p13, %p224_p10 }
  0x40   :  { %v86_v18 = vsel %vm78_vm0, %v74_v10, %v82_v14  ;;  %v87_v19 = vsel %vm79_vm1, %v75_v11, %v83_v15 }
  0x41   :  { %v141_v20 = vpack.c.bf16 %v87_v19, %v86_v18  ;;  %v88_v21 = vsel %vm80_vm2, %v76_v12, %v84_v16  ;;  %v89_v22 = vsel %vm81_vm3, %v77_v13, %v85_v17 }
  0x42   :  { %v146_v23 = vpack.c.bf16 %v89_v22, %v88_v21 }
  0x43   :  { %142 = vst [vmem:[#allocation8] sm:$0xff] %v141_v20  }
  0x44   :  { %148 = vst [vmem:[#allocation8 + $0x8] sm:$0xff] %v146_v23  }
  0x45   :  { %234 = shalt.err (!%p231_p0)
}
  0x46   :  { %s235_s27 = scalar_lea.hbm %s337_s3, 256 }
  0x47   :  { %p236_p1 = scmp.ne.s32.totalorder %s337_s3, %s235_s27  ;;  %p239_p2 = scmp.lt.u32.totalorder %s235_s27, %s337_s3 }
  0x49   :  { %p241_p3 = pnand %p239_p2, %p236_p1 }
  0x4b   :  { %244 = shalt.err (!%p241_p3)
}
  0x4c   :  { %s257_s5 = smov 64   ;;  %s258_s6 = smov 4  }
  0x4d   :  { %121 = dma.vmem_to_hbm [thread:$0]  %s116_s2, 256, %s337_s3, [#allocation4], %s257_s5, %s257_s5, %s258_s6  }
  0x4e   :  { %249 = dma.done.wait [#allocation4], 256  }
  0x4f   :  { %250 = vsyncadd [#allocation4], 4294967040 }
  0x50   :  { %125 = vsyncpa [#allocation3], 1 }
  0x51   :  { %126 = vsyncpa [#allocation6], 1 }
  0x52   :  { %127 = vsyncpa [#allocation4], 1 }

// kernel: discriminator_forward.15
= control target key start
LH: loop header
LB: loop body
LE: loop exit
PB: predicated region body
PF: predicated region fallthrough
CT: control target
= control target key end

     0   :  { %7 = vsyncpa [#allocation3], 0  ;;  %s2129_s0 = inlined_call_operand.hbm [shape: bf16[2,2048], index: 0, kind: input, shape index: {}]   ;;  %s2130_s1 = inlined_call_operand.hbm [shape: bf16[2048,128], index: 1, kind: input, shape index: {}]   ;;  %s2131_s2 = inlined_call_operand.hbm [shape: f32[2,128], index: 2, kind: output, shape index: {}]  }
   0x1   :  { %8 = vsyncpa [#allocation6], 0 }
   0x2   :  { %9 = vsyncpa [#allocation4], 0  ;;  %s2041_s9 = smov [#allocation2]   ;;  %s2042_s11 = smov [#allocation5]  }
   0x3   :  { %s16_s10 = sshll.u32 %s2041_s9, 4  ;;  %s25_s12 = sshll.u32 %s2042_s11, 4  ;;  %s17_s10 = int_to_ptr.vmem [resolvable:$true] %s16_s10  ;;  %s2062_s12 = int_to_ptr.vmem [resolvable:$true] %s25_s12 }
   0x4   :  { %s1969_s15 = scalar_lea.hbm %s2129_s0, 256 }
   0x5   :  { %p1970_p0 = scmp.ne.s32.totalorder %s2129_s0, %s1969_s15  ;;  %p1973_p1 = scmp.lt.u32.totalorder %s1969_s15, %s2129_s0 }
   0x7   :  { %p1975_p2 = pnand %p1973_p1, %p1970_p0 }
   0x9   :  { %1978 = shalt.err (!%p1975_p2)
}
   0xa   :  { %s1979_s20 = scalar_lea.vmem %s17_s10, 256  ;;  %p1984_p4 = scmp.lt.s32.totalorder %s17_s10, %s17_s10 }
   0xb   :  { %p1980_p3 = scmp.ne.s32.totalorder %s17_s10, %s1979_s20  ;;  %p1985_p5 = scmp.lt.s32.totalorder %s1979_s20, %s1979_s20 }
   0xd   :  { %p1986_p6 = por %p1985_p5, %p1984_p4 }
   0xf   :  { %p1987_p7 = pnand %p1986_p6, %p1980_p3 }
  0x11   :  { %1990 = shalt.err (!%p1987_p7)
}
  0x12   :  { %19 = dma.hbm_to_vmem [thread:$0]  %s2129_s0, 256, %s17_s10, [#allocation3]  }
  0x13   :  { %s1991_s25 = scalar_lea.hbm %s2130_s1, 16384 }
  0x14   :  { %p1992_p8 = scmp.ne.s32.totalorder %s2130_s1, %s1991_s25  ;;  %p1995_p9 = scmp.lt.u32.totalorder %s1991_s25, %s2130_s1 }
  0x16   :  { %p1997_p10 = pnand %p1995_p9, %p1992_p8 }
  0x18   :  { %2000 = shalt.err (!%p1997_p10)
}
  0x19   :  { %s2001_s30 = scalar_lea.vmem %s2062_s12, 16384  ;;  %p2006_p12 = scmp.lt.s32.totalorder %s2062_s12, %s2062_s12 }
  0x1a   :  { %p2002_p11 = scmp.ne.s32.totalorder %s2062_s12, %s2001_s30  ;;  %p2007_p13 = scmp.lt.s32.totalorder %s2001_s30, %s2001_s30 }
  0x1c   :  { %p2008_p0 = por %p2007_p13, %p2006_p12 }
  0x1e   :  { %p2009_p1 = pnand %p2008_p0, %p2002_p11 }
  0x20   :  { %2012 = shalt.err (!%p2009_p1)
}
  0x21   :  { %s2043_s0 = smov 64   ;;  %s2044_s3 = smov 4  }
  0x22   :  { %31 = dma.hbm_to_vmem [thread:$0]  %s2130_s1, 16384, %s2062_s12, [#allocation6], %s2043_s0, %s2043_s0, %s2044_s3  }
  0x23   :  { %2035 = dma.done.wait [#allocation3], 256  }
  0x24   :  { %2036 = vsyncadd [#allocation3], 4294967040 }
  0x25   :  { %2037 = dma.done.wait [#allocation6], 16384  }
  0x26   :  { %2038 = vsyncadd [#allocation6], 4294950912  ;;  %v1835_v0 = vld [vmem:[#allocation5 + $0x40] sm:$0xff]   ;;  %v1839_v4 = vld [vmem:[#allocation5 + $0x48] sm:$0xff]   ;;  %v2045_v22 = vmov 1966171168   ;;  %v303_v24 = vlaneseq }
  0x27   :  { %v1836_v1 = vld [vmem:[#allocation5 + $0xc0] sm:$0xff]   ;;  %1653 = vmatprep.subr.bf16.mxu0 %v1835_v0  ;;  %v1840_v5 = vld [vmem:[#allocation5 + $0xc8] sm:$0xff]   ;;  %v1843_v8 = vld [vmem:[#allocation5 + $0x50] sm:$0xff]   ;;  %v301_v23 = vunpack.c.l.s4 %v2045_v22  ;;  %s2046_s1 = smov [#allocation7]  }
  0x28   :  { %v1837_v2 = vld [vmem:[#allocation5] sm:$0xff]   ;;  %1675 = vmatprep.subr.bf16.mxu1 %v1836_v1  ;;  %v1841_v6 = vld [vmem:[#allocation5 + $0x8] sm:$0xff]   ;;  %v1844_v9 = vld [vmem:[#allocation5 + $0xd0] sm:$0xff]   ;;  %v304_v30 = vshrl.u32 %v303_v24, 7  ;;  %s1515_s6 = sshll.u32 %s2046_s1, 4  ;;  %s1516_s6 = int_to_ptr.vmem [resolvable:$true] %s1515_s6 }
  0x29   :  { %v1838_v3 = vld [vmem:[#allocation5 + $0x80] sm:$0xff]   ;;  %1654 = vmatpush3.bf16.msra.mxu0 %v1837_v2  ;;  %v1842_v7 = vld [vmem:[#allocation5 + $0x88] sm:$0xff]   ;;  %v1845_v10 = vld [vmem:[#allocation5 + $0x10] sm:$0xff]   ;;  %v302_v29 = vunpack.c.0.s8 %v301_v23  ;;  %s2013_s7 = scalar_lea.vmem %s1516_s6, 32  ;;  %p2018_p3 = scmp.lt.s32.totalorder %s1516_s6, %s1516_s6 }
  0x2a   :  { %1676 = vmatpush3.bf16.msra.mxu1 %v1838_v3  ;;  %1655 = vmatprep.subr.bf16.mxu0 %v1839_v4  ;;  %v1846_v11 = vld [vmem:[#allocation5 + $0x90] sm:$0xff]   ;;  %v1847_v12 = vld [vmem:[#allocation5 + $0x58] sm:$0xff]   ;;  %v1851_v16 = vld [vmem:[#allocation5 + $0x60] sm:$0xff]   ;;  %p2014_p2 = scmp.ne.s32.totalorder %s1516_s6, %s2013_s7  ;;  %p2019_p4 = scmp.lt.s32.totalorder %s2013_s7, %s2013_s7 }
  0x2b   :  { %1677 = vmatprep.subr.bf16.mxu1 %v1840_v5  ;;  %v1848_v13 = vld [vmem:[#allocation5 + $0xd8] sm:$0xff]   ;;  %v1852_v17 = vld [vmem:[#allocation5 + $0xe0] sm:$0xff]   ;;  %v1855_v20 = vld [vmem:[#allocation5 + $0x68] sm:$0xff]   ;;  %v2093_v35 = vsub.s32 %v302_v29, %v304_v30 }
  0x2c   :  { %v1849_v14 = vld [vmem:[#allocation5 + $0x18] sm:$0xff]   ;;  %v1853_v18 = vld [vmem:[#allocation5 + $0x20] sm:$0xff]   ;;  %v1856_v21 = vld [vmem:[#allocation5 + $0xe8] sm:$0xff]   ;;  %p2020_p5 = por %p2019_p4, %p2018_p3 }
  0x2d   :  { %1656 = vmatpush3.bf16.msra.mxu0 %v1841_v6  ;;  %v1850_v15 = vld [vmem:[#allocation5 + $0x98] sm:$0xff]   ;;  %v1854_v19 = vld [vmem:[#allocation5 + $0xa0] sm:$0xff]   ;;  %v1857_v25 = vld [vmem:[#allocation5 + $0x28] sm:$0xff]  }
  0x2e   :  { %1678 = vmatpush3.bf16.msra.mxu1 %v1842_v7  ;;  %1657 = vmatprep.subr.bf16.mxu0 %v1843_v8  ;;  %v1858_v26 = vld [vmem:[#allocation5 + $0xa8] sm:$0xff]   ;;  %v1859_v27 = vld [vmem:[#allocation5 + $0x70] sm:$0xff]   ;;  %v1863_v33 = vld [vmem:[#allocation5 + $0x78] sm:$0xff]   ;;  %p2021_p6 = pnand %p2020_p5, %p2014_p2 }
  0x2f   :  { %1679 = vmatprep.subr.bf16.mxu1 %v1844_v9  ;;  %v1860_v28 = vld [vmem:[#allocation5 + $0xf0] sm:$0xff]   ;;  %v1864_v34 = vld [vmem:[#allocation5 + $0xf8] sm:$0xff]   ;;  %v1868_v41 = vld [vmem:[#allocation5 + $0x140] sm:$0xff]  }
  0x30   :  { %v1861_v31 = vld [vmem:[#allocation5 + $0x30] sm:$0xff]   ;;  %v1865_v36 = vld [vmem:[#allocation5 + $0x38] sm:$0xff]   ;;  %v1869_v42 = vld [vmem:[#allocation5 + $0x1c0] sm:$0xff]  }
  0x31   :  { %1658 = vmatpush3.bf16.msra.mxu0 %v1845_v10  ;;  %v1862_v32 = vld [vmem:[#allocation5 + $0xb0] sm:$0xff]   ;;  %v1866_v37 = vld [vmem:[#allocation5 + $0xb8] sm:$0xff]   ;;  %v1870_v47 = vld [vmem:[#allocation5 + $0x100] sm:$0xff]  }
  0x32   :  { %1680 = vmatpush3.bf16.msra.mxu1 %v1846_v11  ;;  %1659 = vmatprep.subr.bf16.mxu0 %v1847_v12  ;;  %v39_v38 = vld [vmem:[#allocation2] sm:$0xff]  ;;  %v1872_v50 = vld [vmem:[#allocation5 + $0x148] sm:$0xff]   ;;  %v1871_v52 = vld [vmem:[#allocation5 + $0x180] sm:$0xff]  }
  0x33   :  { %1681 = vmatprep.subr.bf16.mxu1 %v1848_v13  ;;  %v299_v39 = vcombine.high %v39_v38, %v39_v38  ;;  %v306_v40 = vrot.slane %v39_v38, %v2093_v35  ;;  %v1873_v54 = vld [vmem:[#allocation5 + $0x1c8] sm:$0xff]   ;;  %v1876_v57 = vld [vmem:[#allocation5 + $0x150] sm:$0xff]   ;;  %v1880_v61 = vld [vmem:[#allocation5 + $0x158] sm:$0xff]  }
  0x34   :  { %v1874_v55 = vld [vmem:[#allocation5 + $0x108] sm:$0xff]   ;;  %v1877_v59 = vld [vmem:[#allocation5 + $0x1d0] sm:$0xff]   ;;  %v1881_v63 = vld [vmem:[#allocation5 + $0x1d8] sm:$0xff]  }
  0x35   :  { %1660 = vmatpush3.bf16.msra.mxu0 %v1849_v14  ;;  %v314_v43 = vcombine.high %v306_v40, %v306_v40  ;;  %v322_v44 = vrot.slane %v306_v40, %v2093_v35  ;;  %v2098_v45 = vrot.slane %v299_v39, %v2093_v35  ;;  %v1875_v58 = vld [vmem:[#allocation5 + $0x188] sm:$0xff]   ;;  %v1878_v60 = vld [vmem:[#allocation5 + $0x110] sm:$0xff]   ;;  %v1882_v0 = vld [vmem:[#allocation5 + $0x118] sm:$0xff]  }
  0x36   :  { %1682 = vmatpush3.bf16.msra.mxu1 %v1850_v15  ;;  %1661 = vmatprep.subr.bf16.mxu0 %v1851_v16  ;;  %v1879_v62 = vld [vmem:[#allocation5 + $0x190] sm:$0xff]   ;;  %v1884_v1 = vld [vmem:[#allocation5 + $0x160] sm:$0xff]   ;;  %v1883_v2 = vld [vmem:[#allocation5 + $0x198] sm:$0xff]  }
  0x37   :  { %1683 = vmatprep.subr.bf16.mxu1 %v1852_v17  ;;  %v336_v46 = vrot.slane %v314_v43, %v2093_v35  ;;  %v315_v48 = vcombine.high %v2098_v45, %v2098_v45  ;;  %v344_v49 = vcombine.high %v322_v44, %v322_v44  ;;  %v1885_v3 = vld [vmem:[#allocation5 + $0x1e0] sm:$0xff]   ;;  %v1888_v5 = vld [vmem:[#allocation5 + $0x168] sm:$0xff]   ;;  %v1892_v9 = vld [vmem:[#allocation5 + $0x170] sm:$0xff]   ;;  %v329_v17 = vrot.slane %v2098_v45, %v2093_v35 }
  0x38   :  { %v1886_v4 = vld [vmem:[#allocation5 + $0x120] sm:$0xff]   ;;  %v1889_v7 = vld [vmem:[#allocation5 + $0x1e8] sm:$0xff]   ;;  %v1893_v11 = vld [vmem:[#allocation5 + $0x1f0] sm:$0xff]  }
  0x39   :  { %1662 = vmatpush3.bf16.msra.mxu0 %v1853_v18  ;;  %1213 = vmatprep.mubr.bf16.mxu0 %v336_v46  ;;  %v346_v51 = vcombine.high %v336_v46, %v336_v46  ;;  %v343_v53 = vrot.slane %v315_v48, %v2093_v35  ;;  %v1887_v6 = vld [vmem:[#allocation5 + $0x1a0] sm:$0xff]   ;;  %v1890_v8 = vld [vmem:[#allocation5 + $0x128] sm:$0xff]   ;;  %v1894_v12 = vld [vmem:[#allocation5 + $0x130] sm:$0xff]   ;;  %v345_v22 = vcombine.high %v329_v17, %v329_v17 }
  0x3a   :  { %1684 = vmatpush3.bf16.msra.mxu1 %v1854_v19  ;;  %1663 = vmatprep.subr.bf16.mxu0 %v1855_v20  ;;  %v1891_v10 = vld [vmem:[#allocation5 + $0x1a8] sm:$0xff]   ;;  %v1896_v13 = vld [vmem:[#allocation5 + $0x178] sm:$0xff]   ;;  %v1895_v14 = vld [vmem:[#allocation5 + $0x1b0] sm:$0xff]  }
  0x3b   :  { %1685 = vmatprep.subr.bf16.mxu1 %v1856_v21  ;;  %1253 = vmatprep.mubr.bf16.mxu1 %v346_v51  ;;  %v347_v56 = vcombine.high %v343_v53, %v343_v53  ;;  %v1897_v15 = vld [vmem:[#allocation5 + $0x1f8] sm:$0xff]   ;;  %v1900_v18 = vld [vmem:[#allocation5 + $0x240] sm:$0xff]   ;;  %v1904_v23 = vld [vmem:[#allocation5 + $0x248] sm:$0xff]  }
  0x3c   :  { %v1898_v16 = vld [vmem:[#allocation5 + $0x138] sm:$0xff]   ;;  %v1901_v20 = vld [vmem:[#allocation5 + $0x2c0] sm:$0xff]   ;;  %v1909_v29 = vld [vmem:[#allocation5 + $0x2d0] sm:$0xff]  }
  0x3d   :  { %1664 = vmatpush3.bf16.msra.mxu0 %v1857_v25  ;;  %v1899_v19 = vld [vmem:[#allocation5 + $0x1b8] sm:$0xff]   ;;  %v1902_v21 = vld [vmem:[#allocation5 + $0x200] sm:$0xff]   ;;  %v1905_v25 = vld [vmem:[#allocation5 + $0x2c8] sm:$0xff]  }
  0x3e   :  { %1686 = vmatpush3.bf16.msra.mxu1 %v1858_v26  ;;  %1665 = vmatprep.subr.bf16.mxu0 %v1859_v27  ;;  %v1903_v24 = vld [vmem:[#allocation5 + $0x280] sm:$0xff]   ;;  %v1906_v26 = vld [vmem:[#allocation5 + $0x208] sm:$0xff]   ;;  %v1908_v27 = vld [vmem:[#allocation5 + $0x250] sm:$0xff]  }
  0x3f   :  { %1687 = vmatprep.subr.bf16.mxu1 %v1860_v28  ;;  %v1907_v28 = vld [vmem:[#allocation5 + $0x288] sm:$0xff]   ;;  %v1910_v30 = vld [vmem:[#allocation5 + $0x210] sm:$0xff]   ;;  %v1917_v38 = vld [vmem:[#allocation5 + $0x2e0] sm:$0xff]  }
  0x40   :  { %v1918_v39 = vld [vmem:[#allocation5 + $0x220] sm:$0xff]   ;;  %v1920_v40 = vld [vmem:[#allocation5 + $0x268] sm:$0xff]   ;;  %v1925_v46 = vld [vmem:[#allocation5 + $0x2f0] sm:$0xff]  }
  0x41   :  { %1666 = vmatpush3.bf16.msra.mxu0 %v1861_v31  ;;  %v1912_v31 = vld [vmem:[#allocation5 + $0x258] sm:$0xff]   ;;  %v1922_v43 = vld [vmem:[#allocation5 + $0x228] sm:$0xff]  }
  0x42   :  { %1688 = vmatpush3.bf16.msra.mxu1 %v1862_v32  ;;  %1667 = vmatprep.subr.bf16.mxu0 %v1863_v33  ;;  %v1911_v32 = vld [vmem:[#allocation5 + $0x290] sm:$0xff]   ;;  %v1913_v33 = vld [vmem:[#allocation5 + $0x2d8] sm:$0xff]   ;;  %v1923_v45 = vld [vmem:[#allocation5 + $0x2a8] sm:$0xff]  }
  0x43   :  { %1689 = vmatprep.subr.bf16.mxu1 %v1864_v34  ;;  %v1914_v34 = vld [vmem:[#allocation5 + $0x218] sm:$0xff]  }
  0x44   :  { %v1928_v48 = vld [vmem:[#allocation5 + $0x278] sm:$0xff]  }
  0x45   :  { %1668 = vmatpush3.bf16.msra.mxu0 %v1865_v36  ;;  %v1916_v36 = vld [vmem:[#allocation5 + $0x260] sm:$0xff]   ;;  %v40_v51 = vld [vmem:[#allocation2 + $0x8] sm:$0xff] }
  0x46   :  { %1690 = vmatpush3.bf16.msra.mxu1 %v1866_v37  ;;  %1697 = vmatprep.subr.bf16.mxu0 %v1868_v41  ;;  %v1915_v37 = vld [vmem:[#allocation5 + $0x298] sm:$0xff]   ;;  %v1919_v41 = vld [vmem:[#allocation5 + $0x2a0] sm:$0xff]  }
  0x47   :  { %1719 = vmatprep.subr.bf16.mxu1 %v1869_v42  ;;  %v1921_v42 = vld [vmem:[#allocation5 + $0x2e8] sm:$0xff]  }
  0x48   :  { %1214 = vmatmul.mubr.bf16.vlgmr.msra.gmra.mrb[0].mxu0 %v322_v44  ;;  %v1924_v44 = vld [vmem:[#allocation5 + $0x270] sm:$0xff]  }
  0x49   :  { %1698 = vmatpush3.bf16.msra.mxu0 %v1870_v47  ;;  %1254 = vmatmul.mubr.bf16.vlgmr.msra.gmra.mrb[0].mxu1 %v344_v49  ;;  %v1926_v47 = vld [vmem:[#allocation5 + $0x230] sm:$0xff]  }
  0x4a   :  { %1699 = vmatprep.subr.bf16.mxu0 %v1872_v50  ;;  %1720 = vmatpush3.bf16.msra.mxu1 %v1871_v52  ;;  %v1927_v49 = vld [vmem:[#allocation5 + $0x2b0] sm:$0xff]   ;;  %v1929_v50 = vld [vmem:[#allocation5 + $0x2f8] sm:$0xff]  }
  0x4b   :  { %1293 = vmatprep.mubr.bf16.mxu0 %v343_v53  ;;  %1721 = vmatprep.subr.bf16.mxu1 %v1873_v54  ;;  %v1930_v52 = vld [vmem:[#allocation5 + $0x238] sm:$0xff]   ;;  %v355_v53 = vrot.slane %v40_v51, %v2093_v35  ;;  %v348_v54 = vcombine.high %v40_v51, %v40_v51 }
  0x4c   :  { %1333 = vmatprep.mubr.bf16.mxu1 %v347_v56  ;;  %v1931_v56 = vld [vmem:[#allocation5 + $0x2b8] sm:$0xff]  }
  0x4d   :  { %1700 = vmatpush3.bf16.msra.mxu0 %v1874_v55  ;;  %v1932_v55 = vld [vmem:[#allocation5 + $0x340] sm:$0xff]  }
  0x4e   :  { %1701 = vmatprep.subr.bf16.mxu0 %v1876_v57  ;;  %1722 = vmatpush3.bf16.msra.mxu1 %v1875_v58  ;;  %v363_v57 = vcombine.high %v355_v53, %v355_v53  ;;  %v371_v58 = vrot.slane %v355_v53, %v2093_v35 }
  0x4f   :  { %1723 = vmatprep.subr.bf16.mxu1 %v1877_v59  ;;  %v2109_v59 = vrot.slane %v348_v54, %v2093_v35 }
  0x51   :  { %1702 = vmatpush3.bf16.msra.mxu0 %v1878_v60  ;;  %v1933_v60 = vld [vmem:[#allocation5 + $0x3c0] sm:$0xff]  }
  0x52   :  { %1703 = vmatprep.subr.bf16.mxu0 %v1880_v61  ;;  %1724 = vmatpush3.bf16.msra.mxu1 %v1879_v62  ;;  %v385_v61 = vrot.slane %v363_v57, %v2093_v35  ;;  %v1934_v62 = vld [vmem:[#allocation5 + $0x300] sm:$0xff]  }
  0x53   :  { %1725 = vmatprep.subr.bf16.mxu1 %v1881_v63  ;;  %v364_v63 = vcombine.high %v2109_v59, %v2109_v59 }
  0x55   :  { %1704 = vmatpush3.bf16.msra.mxu0 %v1882_v0  ;;  %v393_v0 = vcombine.high %v371_v58, %v371_v58 }
  0x56   :  { %1705 = vmatprep.subr.bf16.mxu0 %v1884_v1  ;;  %1726 = vmatpush3.bf16.msra.mxu1 %v1883_v2  ;;  %v1936_v1 = vld [vmem:[#allocation5 + $0x348] sm:$0xff]   ;;  %v395_v2 = vcombine.high %v385_v61, %v385_v61 }
  0x57   :  { %1727 = vmatprep.subr.bf16.mxu1 %v1885_v3  ;;  %v1935_v3 = vld [vmem:[#allocation5 + $0x380] sm:$0xff]  }
  0x59   :  { %1706 = vmatpush3.bf16.msra.mxu0 %v1886_v4  ;;  %v392_v4 = vrot.slane %v364_v63, %v2093_v35 }
  0x5a   :  { %1707 = vmatprep.subr.bf16.mxu0 %v1888_v5  ;;  %1728 = vmatpush3.bf16.msra.mxu1 %v1887_v6  ;;  %v1937_v5 = vld [vmem:[#allocation5 + $0x3c8] sm:$0xff]  }
  0x5b   :  { %1729 = vmatprep.subr.bf16.mxu1 %v1889_v7  ;;  %v1938_v6 = vld [vmem:[#allocation5 + $0x308] sm:$0xff]   ;;  %v396_v7 = vcombine.high %v392_v4, %v392_v4 }
  0x5d   :  { %1708 = vmatpush3.bf16.msra.mxu0 %v1890_v8  ;;  %v1940_v8 = vld [vmem:[#allocation5 + $0x350] sm:$0xff]  }
  0x5e   :  { %1709 = vmatprep.subr.bf16.mxu0 %v1892_v9  ;;  %1730 = vmatpush3.bf16.msra.mxu1 %v1891_v10  ;;  %v1939_v9 = vld [vmem:[#allocation5 + $0x388] sm:$0xff]   ;;  %v1941_v10 = vld [vmem:[#allocation5 + $0x3d0] sm:$0xff]  }
  0x5f   :  { %1731 = vmatprep.subr.bf16.mxu1 %v1893_v11  ;;  %v1942_v11 = vld [vmem:[#allocation5 + $0x310] sm:$0xff]  }
  0x61   :  { %1710 = vmatpush3.bf16.msra.mxu0 %v1894_v12  ;;  %v1944_v12 = vld [vmem:[#allocation5 + $0x358] sm:$0xff]  }
  0x62   :  { %1711 = vmatprep.subr.bf16.mxu0 %v1896_v13  ;;  %1732 = vmatpush3.bf16.msra.mxu1 %v1895_v14  ;;  %v1943_v13 = vld [vmem:[#allocation5 + $0x390] sm:$0xff]   ;;  %v1945_v14 = vld [vmem:[#allocation5 + $0x3d8] sm:$0xff]  }
  0x63   :  { %1733 = vmatprep.subr.bf16.mxu1 %v1897_v15  ;;  %v1946_v15 = vld [vmem:[#allocation5 + $0x318] sm:$0xff]  }
  0x65   :  { %1712 = vmatpush3.bf16.msra.mxu0 %v1898_v16  ;;  %v1948_v16 = vld [vmem:[#allocation5 + $0x360] sm:$0xff]  }
  0x66   :  { %1741 = vmatprep.subr.bf16.mxu0 %v1900_v18  ;;  %1734 = vmatpush3.bf16.msra.mxu1 %v1899_v19  ;;  %v1949_v18 = vld [vmem:[#allocation5 + $0x3e0] sm:$0xff]  }
  0x67   :  { %1763 = vmatprep.subr.bf16.mxu1 %v1901_v20  ;;  %v1950_v19 = vld [vmem:[#allocation5 + $0x320] sm:$0xff]   ;;  %v1952_v20 = vld [vmem:[#allocation5 + $0x368] sm:$0xff]  }
  0x68   :  { %1294 = vmatmul.mubr.bf16.vlgmr.msra.gmra.mrb[4].mxu0 %v329_v17  ;;  %v1947_v17 = vld [vmem:[#allocation5 + $0x398] sm:$0xff]  }
  0x69   :  { %1742 = vmatpush3.bf16.msra.mxu0 %v1902_v21  ;;  %1334 = vmatmul.mubr.bf16.vlgmr.msra.gmra.mrb[4].mxu1 %v345_v22  ;;  %v1951_v21 = vld [vmem:[#allocation5 + $0x3a0] sm:$0xff]   ;;  %v1953_v22 = vld [vmem:[#allocation5 + $0x3e8] sm:$0xff]  }
  0x6a   :  { %1743 = vmatprep.subr.bf16.mxu0 %v1904_v23  ;;  %1764 = vmatpush3.bf16.msra.mxu1 %v1903_v24  ;;  %v1954_v23 = vld [vmem:[#allocation5 + $0x328] sm:$0xff]   ;;  %v1956_v24 = vld [vmem:[#allocation5 + $0x370] sm:$0xff]  }
  0x6b   :  { %1765 = vmatprep.subr.bf16.mxu1 %v1905_v25  ;;  %1373 = vmatprep.mubr.bf16.mxu0 %v385_v61  ;;  %v1955_v25 = vld [vmem:[#allocation5 + $0x3a8] sm:$0xff]  }
  0x6c   :  { %1413 = vmatprep.mubr.bf16.mxu1 %v395_v2 }
  0x6d   :  { %1744 = vmatpush3.bf16.msra.mxu0 %v1906_v26  ;;  %v1957_v26 = vld [vmem:[#allocation5 + $0x3f0] sm:$0xff]  }
  0x6e   :  { %1745 = vmatprep.subr.bf16.mxu0 %v1908_v27  ;;  %1766 = vmatpush3.bf16.msra.mxu1 %v1907_v28  ;;  %v1958_v27 = vld [vmem:[#allocation5 + $0x330] sm:$0xff]   ;;  %v1960_v28 = vld [vmem:[#allocation5 + $0x378] sm:$0xff]  }
  0x6f   :  { %1767 = vmatprep.subr.bf16.mxu1 %v1909_v29  ;;  %v1959_v29 = vld [vmem:[#allocation5 + $0x3b0] sm:$0xff]  }
  0x71   :  { %1746 = vmatpush3.bf16.msra.mxu0 %v1910_v30  ;;  %v1961_v30 = vld [vmem:[#allocation5 + $0x3f8] sm:$0xff]  }
  0x72   :  { %1747 = vmatprep.subr.bf16.mxu0 %v1912_v31  ;;  %1768 = vmatpush3.bf16.msra.mxu1 %v1911_v32  ;;  %v1962_v31 = vld [vmem:[#allocation5 + $0x338] sm:$0xff]   ;;  %v378_v32 = vrot.slane %v2109_v59, %v2093_v35 }
  0x73   :  { %1769 = vmatprep.subr.bf16.mxu1 %v1913_v33  ;;  %v1963_v33 = vld [vmem:[#allocation5 + $0x3b8] sm:$0xff]  }
  0x75   :  { %1748 = vmatpush3.bf16.msra.mxu0 %v1914_v34  ;;  %v394_v34 = vcombine.high %v378_v32, %v378_v32 }
  0x76   :  { %1749 = vmatprep.subr.bf16.mxu0 %v1916_v36  ;;  %1770 = vmatpush3.bf16.msra.mxu1 %v1915_v37 }
  0x77   :  { %1771 = vmatprep.subr.bf16.mxu1 %v1917_v38 }
  0x79   :  { %1750 = vmatpush3.bf16.msra.mxu0 %v1918_v39 }
  0x7a   :  { %1751 = vmatprep.subr.bf16.mxu0 %v1920_v40  ;;  %1772 = vmatpush3.bf16.msra.mxu1 %v1919_v41 }
  0x7b   :  { %1773 = vmatprep.subr.bf16.mxu1 %v1921_v42 }
  0x7d   :  { %1752 = vmatpush3.bf16.msra.mxu0 %v1922_v43 }
  0x7e   :  { %1753 = vmatprep.subr.bf16.mxu0 %v1924_v44  ;;  %1774 = vmatpush3.bf16.msra.mxu1 %v1923_v45 }
  0x7f   :  { %1775 = vmatprep.subr.bf16.mxu1 %v1925_v46 }
  0x81   :  { %1754 = vmatpush3.bf16.msra.mxu0 %v1926_v47 }
  0x82   :  { %1755 = vmatprep.subr.bf16.mxu0 %v1928_v48  ;;  %1776 = vmatpush3.bf16.msra.mxu1 %v1927_v49 }
  0x83   :  { %1777 = vmatprep.subr.bf16.mxu1 %v1929_v50 }
  0x85   :  { %1756 = vmatpush3.bf16.msra.mxu0 %v1930_v52 }
  0x86   :  { %1785 = vmatprep.subr.bf16.mxu0 %v1932_v55  ;;  %1778 = vmatpush3.bf16.msra.mxu1 %v1931_v56 }
  0x87   :  { %1807 = vmatprep.subr.bf16.mxu1 %v1933_v60 }
  0x88   :  { %1374 = vmatmul.mubr.bf16.vlgmr.msra.gmra.mrb[8].mxu0 %v371_v58 }
  0x89   :  { %1786 = vmatpush3.bf16.msra.mxu0 %v1934_v62  ;;  %1414 = vmatmul.mubr.bf16.vlgmr.msra.gmra.mrb[8].mxu1 %v393_v0 }
  0x8a   :  { %1787 = vmatprep.subr.bf16.mxu0 %v1936_v1  ;;  %1808 = vmatpush3.bf16.msra.mxu1 %v1935_v3 }
  0x8b   :  { %1453 = vmatprep.mubr.bf16.mxu0 %v392_v4  ;;  %1809 = vmatprep.subr.bf16.mxu1 %v1937_v5 }
  0x8c   :  { %1493 = vmatprep.mubr.bf16.mxu1 %v396_v7 }
  0x8d   :  { %1788 = vmatpush3.bf16.msra.mxu0 %v1938_v6 }
  0x8e   :  { %1789 = vmatprep.subr.bf16.mxu0 %v1940_v8  ;;  %1810 = vmatpush3.bf16.msra.mxu1 %v1939_v9 }
  0x8f   :  { %1811 = vmatprep.subr.bf16.mxu1 %v1941_v10 }
  0x91   :  { %1790 = vmatpush3.bf16.msra.mxu0 %v1942_v11 }
  0x92   :  { %1791 = vmatprep.subr.bf16.mxu0 %v1944_v12  ;;  %1812 = vmatpush3.bf16.msra.mxu1 %v1943_v13 }
  0x93   :  { %1813 = vmatprep.subr.bf16.mxu1 %v1945_v14 }
  0x95   :  { %1792 = vmatpush3.bf16.msra.mxu0 %v1946_v15 }
  0x96   :  { %1793 = vmatprep.subr.bf16.mxu0 %v1948_v16  ;;  %1814 = vmatpush3.bf16.msra.mxu1 %v1947_v17 }
  0x97   :  { %1815 = vmatprep.subr.bf16.mxu1 %v1949_v18 }
  0x99   :  { %1794 = vmatpush3.bf16.msra.mxu0 %v1950_v19 }
  0x9a   :  { %1795 = vmatprep.subr.bf16.mxu0 %v1952_v20  ;;  %1816 = vmatpush3.bf16.msra.mxu1 %v1951_v21 }
  0x9b   :  { %1817 = vmatprep.subr.bf16.mxu1 %v1953_v22 }
  0x9d   :  { %1796 = vmatpush3.bf16.msra.mxu0 %v1954_v23 }
  0x9e   :  { %1797 = vmatprep.subr.bf16.mxu0 %v1956_v24  ;;  %1818 = vmatpush3.bf16.msra.mxu1 %v1955_v25 }
  0x9f   :  { %1819 = vmatprep.subr.bf16.mxu1 %v1957_v26 }
  0xa1   :  { %1798 = vmatpush3.bf16.msra.mxu0 %v1958_v27 }
  0xa2   :  { %1799 = vmatprep.subr.bf16.mxu0 %v1960_v28  ;;  %1820 = vmatpush3.bf16.msra.mxu1 %v1959_v29 }
  0xa3   :  { %1821 = vmatprep.subr.bf16.mxu1 %v1961_v30 }
  0xa5   :  { %1800 = vmatpush3.bf16.msra.mxu0 %v1962_v31 }
  0xa6   :  { %1822 = vmatpush3.bf16.msra.mxu1 %v1963_v33 }
  0xa8   :  { %1454 = vmatmul.mubr.bf16.vlgmr.msra.gmra.mrb[12].mxu0 %v378_v32 }
  0xa9   :  { %1494 = vmatmul.mubr.bf16.vlgmr.msra.gmra.mrb[12].mxu1 %v394_v34 }
 0x11b   :  { %v1669_v36 = vpop.f32.mrb[0].mxu0 }
 0x11c   :  { %v1670_v37 = vpop.f32.mrb[1].mxu0  ;;  %v1691_v38 = vpop.f32.mrb[0].mxu1 }
 0x11d   :  { %v1671_v39 = vadd.f32 %v1670_v37, %v1669_v36  ;;  %v1672_v40 = vpop.f32.mrb[2].mxu0  ;;  %v1692_v41 = vpop.f32.mrb[1].mxu1 }
 0x11e   :  { %v1673_v42 = vpop.f32.mrb[3].mxu0  ;;  %v1693_v43 = vadd.f32 %v1692_v41, %v1691_v38  ;;  %v1694_v44 = vpop.f32.mrb[2].mxu1 }
 0x11f   :  { %v1695_v45 = vpop.f32.mrb[3].mxu1 }
 0x120   :  { %v1256_v46 = vadd.f32 %v1693_v43, %v1671_v39 }
 0x13b   :  { %v1713_v35 = vpop.f32.mrb[4].mxu0 }
 0x13c   :  { %v1714_v47 = vpop.f32.mrb[5].mxu0  ;;  %v1735_v48 = vpop.f32.mrb[4].mxu1 }
 0x13d   :  { %v1715_v49 = vadd.f32 %v1714_v47, %v1713_v35  ;;  %v1716_v50 = vpop.f32.mrb[6].mxu0  ;;  %v1736_v51 = vpop.f32.mrb[5].mxu1 }
 0x13e   :  { %v1717_v52 = vpop.f32.mrb[7].mxu0  ;;  %v1737_v54 = vadd.f32 %v1736_v51, %v1735_v48  ;;  %v1738_v55 = vpop.f32.mrb[6].mxu1 }
 0x13f   :  { %v1296_v53 = vadd.f32 %v1715_v49, %v1256_v46  ;;  %v1739_v56 = vpop.f32.mrb[7].mxu1 }
 0x141   :  { %v1336_v57 = vadd.f32 %v1737_v54, %v1296_v53 }
 0x15b   :  { %v1757_v58 = vpop.f32.mrb[8].mxu0 }
 0x15c   :  { %v1758_v59 = vpop.f32.mrb[9].mxu0  ;;  %v1779_v60 = vpop.f32.mrb[8].mxu1 }
 0x15d   :  { %v1759_v61 = vadd.f32 %v1758_v59, %v1757_v58  ;;  %v1760_v62 = vpop.f32.mrb[10].mxu0  ;;  %v1780_v63 = vpop.f32.mrb[9].mxu1 }
 0x15e   :  { %v1761_v0 = vpop.f32.mrb[11].mxu0  ;;  %v1781_v2 = vadd.f32 %v1780_v63, %v1779_v60  ;;  %v1782_v3 = vpop.f32.mrb[10].mxu1 }
 0x15f   :  { %v1376_v1 = vadd.f32 %v1759_v61, %v1336_v57  ;;  %v1783_v4 = vpop.f32.mrb[11].mxu1 }
 0x161   :  { %v1416_v5 = vadd.f32 %v1781_v2, %v1376_v1 }
 0x17b   :  { %v1801_v6 = vpop.f32.mrb[12].mxu0 }
 0x17c   :  { %v1802_v7 = vpop.f32.mrb[13].mxu0  ;;  %v1823_v8 = vpop.f32.mrb[12].mxu1 }
 0x17d   :  { %v1803_v9 = vadd.f32 %v1802_v7, %v1801_v6  ;;  %v1804_v10 = vpop.f32.mrb[14].mxu0  ;;  %v1824_v11 = vpop.f32.mrb[13].mxu1 }
 0x17e   :  { %v1805_v12 = vpop.f32.mrb[15].mxu0  ;;  %v1825_v14 = vadd.f32 %v1824_v11, %v1823_v8  ;;  %v1826_v15 = vpop.f32.mrb[14].mxu1 }
 0x17f   :  { %v1456_v13 = vadd.f32 %v1803_v9, %v1416_v5  ;;  %v1827_v16 = vpop.f32.mrb[15].mxu1 }
 0x181   :  { %v1496_v17 = vadd.f32 %v1825_v14, %v1456_v13 }
 0x183   :  { %v1501_v18 = vsub.f32 0.0, %v1496_v17 }
 0x185   :  { %v1502_v19 = vmul.f32 1.442695, %v1501_v18 }
 0x187   :  { %1965 = vpow2.f32 %v1502_v19 }
 0x191   :  { %v1966_v20 = vpop.eup %1965 }
 0x192   :  { %v1504_v21 = vadd.f32 1.0, %v1966_v20 }
 0x194   :  { %1967 = vrcp.f32 %v1504_v21 }
 0x19e   :  { %v1968_v22 = vpop.eup %1967 }
 0x19f   :  { %v1506_v23 = vmax.f32 %v1968_v22, 0.0 }
 0x1a1   :  { %v1507_v24 = vmin.f32 %v1506_v23, 1.0 }
 0x1a3   :  { %1508 = vst [vmem:[#allocation7] sm:$0x3] %v1507_v24 }
 0x1a4   :  { %2024 = shalt.err (!%p2021_p6)
}
 0x1a5   :  { %s2025_s10 = scalar_lea.hbm %s2131_s2, 32 }
 0x1a6   :  { %p2026_p7 = scmp.ne.s32.totalorder %s2131_s2, %s2025_s10  ;;  %p2029_p8 = scmp.lt.u32.totalorder %s2025_s10, %s2131_s2 }
 0x1a8   :  { %p2031_p9 = pnand %p2029_p8, %p2026_p7 }
 0x1aa   :  { %2034 = shalt.err (!%p2031_p9)
}
 0x1ab   :  { %1518 = dma.vmem_to_hbm [thread:$0]  %s1516_s6, 32, %s2131_s2, [#allocation4]  }
 0x1ac   :  { %2039 = dma.done.wait [#allocation4], 32  }
 0x1ad   :  { %2040 = vsyncadd [#allocation4], 4294967264 }
 0x1ae   :  { %1522 = vsyncpa [#allocation3], 1 }
 0x1af   :  { %1523 = vsyncpa [#allocation6], 1 }
 0x1b0   :  { %1524 = vsyncpa [#allocation4], 1 }

</bundles_post_ra>
